<compile_context>
chip_gen: v7x
topology: tpu7x:2x2x1
jax: 0.10.0
libtpu: 0.0.40
codegen_flags: <defaults>
</compile_context>

<pallas_src>
import functools

import numpy as np
import jax
import jax.numpy as jnp
from jax.experimental import pallas as pl
from jax.experimental.pallas import tpu as pltpu

_PAD = 3  # max padding needed (7 // 2); smaller kernels read at an inner offset


# ------------------------------ fused kernel ---------------------------------
def _fftpeg_kernel(x_ref, w7_ref, w5_ref, w3_ref, b_ref,
                   fri_ref, gri_ref, wr_ref, wi_ref,
                   o_ref, pad_ref, *, H, W, C, M, mxu_dtype):
    # x_ref/o_ref : (1, S, C) feature tokens (cls row handled in the wrapper).
    # w{7,5,3}_ref: (k*k, C) depthwise taps.   b_ref: (3, C) biases.
    # fri_ref     : (2M, S)  stacked [Re; Im] truncated-rfft2 matrix.
    # gri_ref     : (S, 2M)  stacked [gr | -gi] irfft2 matrix.
    # wr_ref/wi_ref: (M, 3C, C) branch-stacked complex channel-mixing weights.
    # pad_ref     : (H+6, W+6, C) VMEM scratch for the zero-padded feature map.
    f32 = jnp.float32
    S = H * W
    Hp, Wp = H + 2 * _PAD, W + 2 * _PAD

    feat = x_ref[0].astype(f32)                          # (S, C), C in lanes

    # --- padded slab: zero ONLY the border strips (interior overwritten) ----
    pad_ref[0:_PAD, :, :] = jnp.zeros((_PAD, Wp, C), f32)
    pad_ref[_PAD + H:, :, :] = jnp.zeros((_PAD, Wp, C), f32)
    pad_ref[:, 0:_PAD, :] = jnp.zeros((Hp, _PAD, C), f32)
    pad_ref[:, _PAD + W:, :] = jnp.zeros((Hp, _PAD, C), f32)
    pad_ref[_PAD:_PAD + H, _PAD:_PAD + W, :] = feat.reshape(H, W, C)
    xp = pad_ref[...]                                    # (Hp, Wp, C)

    def dwconv(w_ref_k, bias_row, k):
        # nn.Conv2d(C, C, k, 1, k//2, groups=C): k*k shifted MACs, taps
        # broadcast over (H, W) in-kernel.  W-shift hoisted (k sublane shifts
        # instead of k*k); H-shift is a free slab slice.
        off = _PAD - k // 2
        taps = w_ref_k[...]                              # (k*k, C)
        acc = jnp.zeros((H, W, C), f32)
        for kw in range(k):
            xw = xp[:, off + kw:off + kw + W, :]         # (Hp, W, C)
            for kh in range(k):
                acc = acc + xw[off + kh:off + kh + H, :, :] \
                    * taps[kh * k + kw][None, None, :]
        return (acc + bias_row[None, None, :]).reshape(S, C)

    # --- three depthwise convs feed ONE channel-concatenated slab -----------
    p7 = dwconv(w7_ref, b_ref[0], 7)
    p5 = dwconv(w5_ref, b_ref[1], 5)
    p3 = dwconv(w3_ref, b_ref[2], 3)
    pcat = jnp.concatenate([p7, p5, p3], axis=1)         # (S, 3C)

    # --- fused spectral path -------------------------------------------------
    # forward truncated rfft2 of all three branches: ONE stacked-Re/Im matmul
    xf = jnp.dot(fri_ref[...].astype(mxu_dtype), pcat.astype(mxu_dtype),
                 preferred_element_type=f32)             # (2M, 3C)
    # per-mode complex channel mixing on the MXU; contracting over 3C also
    # sums the three branches in the frequency domain (irfft2 is linear).
    xf3 = jnp.stack([xf[:M, :], xf[M:, :]], axis=1).astype(mxu_dtype)  # (M,2,3C)
    ar = jnp.einsum('mri,mio->mro', xf3, wr_ref[...].astype(mxu_dtype),
                    preferred_element_type=f32)          # (M, 2, C): [Re*Wr; Im*Wr]
    ai = jnp.einsum('mri,mio->mro', xf3, wi_ref[...].astype(mxu_dtype),
                    preferred_element_type=f32)          # (M, 2, C): [Re*Wi; Im*Wi]
    of_re = ar[:, 0, :] - ai[:, 1, :]                    # (M, C)
    of_im = ai[:, 0, :] + ar[:, 1, :]                    # (M, C)
    of = jnp.concatenate([of_re, of_im], axis=0)         # (2M, C)
    # inverse irfft2 of the summed spectrum: ONE matmul, then residual add
    r = feat + jnp.dot(gri_ref[...].astype(mxu_dtype), of.astype(mxu_dtype),
                       preferred_element_type=f32)       # (S, C)

    o_ref[0] = r.astype(o_ref.dtype)


# ------------------------------- wrapper --------------------------------------
def fftpeg_forward(x, H, W, consts, *, mxu_dtype=jnp.float32,
                   vmem_limit_bytes=48 * 1024 * 1024):
    """x: (B, 1 + H*W, C) token sequence (cls first).  One fused pallas_call.

    The cls row is an identity passthrough in the torch module, so it is
    handled here in the wrapper and never enters the kernel (aligned blocks).
    """
    # TODO(synk): @TimeCounter_Process is a host-side timing decorator; no kernel equivalent.
    B, N, C = x.shape
    S = H * W
    assert N == 1 + S
    Hp, Wp = H + 2 * _PAD, W + 2 * _PAD
    M = consts["fri"].shape[0] // 2

    def const_spec(shape):
        zeros = (0,) * len(shape)
        return pl.BlockSpec(shape, lambda b, _z=zeros: _z)

    kernel = functools.partial(_fftpeg_kernel, H=H, W=W, C=C, M=M,
                               mxu_dtype=mxu_dtype)
    feat = x[:, 1:]                                      # (B, S, C)
    out_feat = pl.pallas_call(
        kernel,
        out_shape=jax.ShapeDtypeStruct((B, S, C), x.dtype),
        grid_spec=pltpu.PrefetchScalarGridSpec(
            num_scalar_prefetch=0,
            grid=(B,),
            in_specs=[
                pl.BlockSpec((1, S, C), lambda b: (b, 0, 0)),
                const_spec(consts["dw7_w"].shape),
                const_spec(consts["dw5_w"].shape),
                const_spec(consts["dw3_w"].shape),
                const_spec(consts["dw_b"].shape),
                const_spec(consts["fri"].shape),
                const_spec(consts["gri"].shape),
                const_spec(consts["mix_re"].shape),
                const_spec(consts["mix_im"].shape),
            ],
            out_specs=pl.BlockSpec((1, S, C), lambda b: (b, 0, 0)),
            scratch_shapes=[pltpu.VMEM((Hp, Wp, C), jnp.float32)],
        ),
        compiler_params=pltpu.CompilerParams(
            dimension_semantics=("parallel",),            # megacore over batch
            vmem_limit_bytes=vmem_limit_bytes),
    )(feat, consts["dw7_w"], consts["dw5_w"], consts["dw3_w"], consts["dw_b"],
      consts["fri"], consts["gri"], consts["mix_re"], consts["mix_im"])

    return jnp.concatenate([x[:, :1], out_feat], axis=1)  # cls passthrough


# ------------------------- kernel-layout constants -----------------------------
def prepare_constants(params, mats):
    """Host-side prep: stacked Re/Im DFT matrices and branch-stacked mixing
    weights, done once outside the jitted forward."""
    fr, fi, gr, gi = mats
    fri = jnp.concatenate([fr, fi], axis=0)              # (2M, S)
    gri = jnp.concatenate([gr, -gi], axis=1)              # (S, 2M)
    three, M, C, _ = params["sc_re"].shape
    mix_re = jnp.transpose(params["sc_re"], (1, 0, 2, 3)).reshape(M, three * C, C)
    mix_im = jnp.transpose(params["sc_im"], (1, 0, 2, 3)).reshape(M, three * C, C)
    return {"fri": fri, "gri": gri, "mix_re": mix_re, "mix_im": mix_im,
            "dw7_w": params["dw7_w"], "dw5_w": params["dw5_w"],
            "dw3_w": params["dw3_w"], "dw_b": params["dw_b"]}


# ------------------------- DFT matrices & parameters --------------------------
def make_fft_mats(H, W, m1, m2, dtype=jnp.float32):
    """Real matrices realizing torch rfft2 (kept corner modes) and irfft2
    ('backward' norm) over the flattened spatial axis s = h*W + w."""
    S, M = H * W, 2 * m1 * m2
    u = np.concatenate([np.arange(m1), np.arange(H - m1, H)]).astype(np.float64)
    v = np.arange(m2, dtype=np.float64)
    h = np.arange(H, dtype=np.float64)
    w = np.arange(W, dtype=np.float64)

    # forward: F[(u,v),(h,w)] = exp(-2*pi*i*(u*h/H + v*w/W))
    ph = (np.outer(u, h) / H)[:, None, :, None] + (np.outer(v, w) / W)[None, :, None, :]
    ang = -2.0 * np.pi * ph                                   # (2m1, m2, H, W)
    fr = np.cos(ang).reshape(M, S)
    fi = np.sin(ang).reshape(M, S)

    # inverse: Hermitian irfft weights (2x paired freqs, 1x DC/Nyquist), 1/(H*W)
    c = np.where(np.logical_or(v == 0, np.logical_and(W % 2 == 0, v == W // 2)), 1.0, 2.0)
    ph2 = (np.outer(h, u) / H)[:, None, :, None] + (np.outer(w, v) / W)[None, :, None, :]
    ang2 = 2.0 * np.pi * ph2                                  # (H, W, 2m1, m2)
    gr = (np.cos(ang2) * (c / (H * W))[None, None, None, :]).reshape(S, M)
    gi = (np.sin(ang2) * (c / (H * W))[None, None, None, :]).reshape(S, M)
    return tuple(jnp.asarray(m, dtype) for m in (fr, fi, gr, gi))


def init_params(key, C, m1, m2, dtype=jnp.float32):
    """Torch-equivalent init, pre-arranged into kernel-friendly layouts."""
    M = 2 * m1 * m2
    keys = iter(jax.random.split(key, 18))
    scale = 1.0 / (C * C)
    sc_re, sc_im = [], []
    for _ in range(3):                          # conv0 / conv1 / conv2
        w1r = scale * jax.random.uniform(next(keys), (C, C, m1, m2), dtype)
        w1i = scale * jax.random.uniform(next(keys), (C, C, m1, m2), dtype)
        w2r = scale * jax.random.uniform(next(keys), (C, C, m1, m2), dtype)
        w2i = scale * jax.random.uniform(next(keys), (C, C, m1, m2), dtype)
        wr = jnp.concatenate([w1r, w2r], axis=2)                 # (C, C, 2m1, m2)
        wi = jnp.concatenate([w1i, w2i], axis=2)
        sc_re.append(jnp.transpose(wr, (2, 3, 0, 1)).reshape(M, C, C))
        sc_im.append(jnp.transpose(wi, (2, 3, 0, 1)).reshape(M, C, C))
    params = {"sc_re": jnp.stack(sc_re), "sc_im": jnp.stack(sc_im)}  # (3, M, C, C)

    biases = []
    for name, k in zip(("dw7", "dw5", "dw3"), (7, 5, 3)):        # projection_, _1, _2
        bound = 1.0 / np.sqrt(k * k)
        w = jax.random.uniform(next(keys), (C, 1, k, k), dtype, -bound, bound)
        b = jax.random.uniform(next(keys), (C,), dtype, -bound, bound)
        params[f"{name}_w"] = jnp.transpose(w.reshape(C, k * k), (1, 0))  # (k*k, C)
        biases.append(b)
    params["dw_b"] = jnp.stack(biases)                           # (3, C)
    return params


# ----------------------- pure-JAX reference (check only) ----------------------
def _reference_forward(x, H, W, params, m1, m2):
    B, N, C = x.shape
    cls_tok, feat = x[:, :1], x[:, 1:]
    img = jnp.transpose(feat, (0, 2, 1)).reshape(B, C, H, W)

    def dwconv(w_kkC, bias, k):
        w = jnp.transpose(w_kkC, (1, 0)).reshape(C, 1, k, k)
        out = jax.lax.conv_general_dilated(
            img, w, window_strides=(1, 1),
            padding=[(k // 2, k // 2), (k // 2, k // 2)],
            dimension_numbers=("NCHW", "OIHW", "NCHW"), feature_group_count=C)
        return out + bias[None, :, None, None]

    def spectral(p, idx):
        wre = params["sc_re"][idx].reshape(2 * m1, m2, C, C).transpose(2, 3, 0, 1)
        wim = params["sc_im"][idx].reshape(2 * m1, m2, C, C).transpose(2, 3, 0, 1)
        w1 = wre[:, :, :m1] + 1j * wim[:, :, :m1]
        w2 = wre[:, :, m1:] + 1j * wim[:, :, m1:]
        xf = jnp.fft.rfft2(p)
        out_ft = jnp.zeros(xf.shape, xf.dtype)
        mul1 = jnp.sum(xf[:, :, None, :m1, :m2] * w1[None], axis=1)
        mul2 = jnp.sum(xf[:, :, None, -m1:, :m2] * w2[None], axis=1)
        out_ft = out_ft.at[:, :, :m1, :m2].set(mul1)
        out_ft = out_ft.at[:, :, -m1:, :m2].set(mul2)
        return jnp.fft.irfft2(out_ft, s=(H, W))

    p7 = dwconv(params["dw7_w"], params["dw_b"][0], 7)
    p5 = dwconv(params["dw5_w"], params["dw_b"][1], 5)
    p3 = dwconv(params["dw3_w"], params["dw_b"][2], 3)
    r = spectral(p7, 0) + img + spectral(p5, 1) + spectral(p3, 2)
    out = jnp.transpose(r.reshape(B, C, H * W), (0, 2, 1))
    return jnp.concatenate([cls_tok, out], axis=1)


# ----------------------------------- main --------------------------------------
if __name__ == "__main__":
    B, width, H, W = 2, 4, 8, 8
    modes1, modes2 = 4, 4
    assert 2 * modes1 <= H and modes2 <= W // 2 + 1

    key = jax.random.PRNGKey(0)
    kp, kx = jax.random.split(key)
    params = init_params(kp, width, modes1, modes2)
    mats = make_fft_mats(H, W, modes1, modes2)
    consts = prepare_constants(params, mats)
    x = jax.random.normal(kx, (B, 1 + H * W, width), jnp.float32)

    fwd = jax.jit(fftpeg_forward, static_argnums=(1, 2))
    out = jax.block_until_ready(fwd(x, H, W, consts))

    assert out.shape == (B, 1 + H * W, width)
    assert bool(jnp.all(jnp.isfinite(out)))

    ref = jax.block_until_ready(_reference_forward(x, H, W, params, modes1, modes2))
    err = float(jnp.max(jnp.abs(out - ref)))
    assert err < 2e-3, f"kernel deviates from FFT reference: max abs err {err}"
    print("KERNEL_OK")
</pallas_src>

<mosaic_0001>
module attributes {stable_mosaic.version = 11 : i64} {
  func.func @_fftpeg_kernel(%arg0: i32, %arg1: memref<1x64x4xf32, #tpu.memory_space<vmem>>, %arg2: memref<49x4xf32, #tpu.memory_space<vmem>>, %arg3: memref<25x4xf32, #tpu.memory_space<vmem>>, %arg4: memref<9x4xf32, #tpu.memory_space<vmem>>, %arg5: memref<3x4xf32, #tpu.memory_space<vmem>>, %arg6: memref<64x64xf32, #tpu.memory_space<vmem>>, %arg7: memref<64x64xf32, #tpu.memory_space<vmem>>, %arg8: memref<32x12x4xf32, #tpu.memory_space<vmem>>, %arg9: memref<32x12x4xf32, #tpu.memory_space<vmem>>, %arg10: memref<1x64x4xf32, #tpu.memory_space<vmem>>, %arg11: memref<14x14x4xf32, #tpu.memory_space<vmem>>) attributes {dimension_semantics = [#tpu.dimension_semantics<parallel>], iteration_bounds = array<i64: 2>, scalar_prefetch = 0 : i64, scratch_operands = 1 : i64, tpu.core_type = #tpu.core_type<tc>, window_params = [{transform_indices = @transform_0, window_bounds = array<i64: 1, 64, 4>}, {pipeline_mode = #tpu.pipeline_mode<synchronous>, transform_indices = @transform_1, window_bounds = array<i64: 49, 4>}, {pipeline_mode = #tpu.pipeline_mode<synchronous>, transform_indices = @transform_2, window_bounds = array<i64: 25, 4>}, {pipeline_mode = #tpu.pipeline_mode<synchronous>, transform_indices = @transform_3, window_bounds = array<i64: 9, 4>}, {pipeline_mode = #tpu.pipeline_mode<synchronous>, transform_indices = @transform_4, window_bounds = array<i64: 3, 4>}, {pipeline_mode = #tpu.pipeline_mode<synchronous>, transform_indices = @transform_5, window_bounds = array<i64: 64, 64>}, {pipeline_mode = #tpu.pipeline_mode<synchronous>, transform_indices = @transform_6, window_bounds = array<i64: 64, 64>}, {pipeline_mode = #tpu.pipeline_mode<synchronous>, transform_indices = @transform_7, window_bounds = array<i64: 32, 12, 4>}, {pipeline_mode = #tpu.pipeline_mode<synchronous>, transform_indices = @transform_8, window_bounds = array<i64: 32, 12, 4>}, {transform_indices = @transform_9, window_bounds = array<i64: 1, 64, 4>}]} {
    %c0 = arith.constant 0 : index
    %c0_0 = arith.constant 0 : index
    %c0_1 = arith.constant 0 : index
    %0 = vector.load %arg1[%c0, %c0_0, %c0_1] : memref<1x64x4xf32, #tpu.memory_space<vmem>>, vector<1x64x4xf32>
    %1 = vector.shape_cast %0 : vector<1x64x4xf32> to vector<64x4xf32>
    %cst = arith.constant 0.000000e+00 : f32
    %2 = vector.broadcast %cst : f32 to vector<3x14x4xf32>
    %c0_2 = arith.constant 0 : index
    %c0_3 = arith.constant 0 : index
    %c0_4 = arith.constant 0 : index
    %3 = vector.load %arg11[%c0_2, %c0_3, %c0_4] : memref<14x14x4xf32, #tpu.memory_space<vmem>>, vector<3x14x4xf32>
    tpu.vector_store %arg11[%c0_2, %c0_3, %c0_4], %2 {strides = array<i32>} : memref<14x14x4xf32, #tpu.memory_space<vmem>>, vector<3x14x4xf32>,
    %cst_5 = arith.constant 0.000000e+00 : f32
    %4 = vector.broadcast %cst_5 : f32 to vector<3x14x4xf32>
    %c11 = arith.constant 11 : index
    %c0_6 = arith.constant 0 : index
    %c0_7 = arith.constant 0 : index
    %5 = vector.load %arg11[%c11, %c0_6, %c0_7] : memref<14x14x4xf32, #tpu.memory_space<vmem>>, vector<3x14x4xf32>
    tpu.vector_store %arg11[%c11, %c0_6, %c0_7], %4 {strides = array<i32>} : memref<14x14x4xf32, #tpu.memory_space<vmem>>, vector<3x14x4xf32>,
    %cst_8 = arith.constant 0.000000e+00 : f32
    %6 = vector.broadcast %cst_8 : f32 to vector<14x3x4xf32>
    %c0_9 = arith.constant 0 : index
    %c0_10 = arith.constant 0 : index
    %c0_11 = arith.constant 0 : index
    %7 = vector.load %arg11[%c0_9, %c0_10, %c0_11] : memref<14x14x4xf32, #tpu.memory_space<vmem>>, vector<14x3x4xf32>
    tpu.vector_store %arg11[%c0_9, %c0_10, %c0_11], %6 {strides = array<i32>} : memref<14x14x4xf32, #tpu.memory_space<vmem>>, vector<14x3x4xf32>,
    %cst_12 = arith.constant 0.000000e+00 : f32
    %8 = vector.broadcast %cst_12 : f32 to vector<14x3x4xf32>
    %c0_13 = arith.constant 0 : index
    %c11_14 = arith.constant 11 : index
    %c0_15 = arith.constant 0 : index
    %9 = vector.load %arg11[%c0_13, %c11_14, %c0_15] : memref<14x14x4xf32, #tpu.memory_space<vmem>>, vector<14x3x4xf32>
    tpu.vector_store %arg11[%c0_13, %c11_14, %c0_15], %8 {strides = array<i32>} : memref<14x14x4xf32, #tpu.memory_space<vmem>>, vector<14x3x4xf32>,
    %10 = vector.shape_cast %1 : vector<64x4xf32> to vector<8x8x4xf32>
    %c3 = arith.constant 3 : index
    %c3_16 = arith.constant 3 : index
    %c0_17 = arith.constant 0 : index
    %11 = vector.load %arg11[%c3, %c3_16, %c0_17] : memref<14x14x4xf32, #tpu.memory_space<vmem>>, vector<8x8x4xf32>
    tpu.vector_store %arg11[%c3, %c3_16, %c0_17], %10 {strides = array<i32>} : memref<14x14x4xf32, #tpu.memory_space<vmem>>, vector<8x8x4xf32>,
    %c0_18 = arith.constant 0 : index
    %c0_19 = arith.constant 0 : index
    %c0_20 = arith.constant 0 : index
    %12 = vector.load %arg11[%c0_18, %c0_19, %c0_20] : memref<14x14x4xf32, #tpu.memory_space<vmem>>, vector<14x14x4xf32>
    %c0_21 = arith.constant 0 : index
    %c0_22 = arith.constant 0 : index
    %13 = vector.load %arg5[%c0_21, %c0_22] : memref<3x4xf32, #tpu.memory_space<vmem>>, vector<1x4xf32>
    %14 = vector.shape_cast %13 : vector<1x4xf32> to vector<4xf32>
    %c0_23 = arith.constant 0 : index
    %c0_24 = arith.constant 0 : index
    %15 = vector.load %arg2[%c0_23, %c0_24] : memref<49x4xf32, #tpu.memory_space<vmem>>, vector<49x4xf32>
    %cst_25 = arith.constant 0.000000e+00 : f32
    %16 = vector.broadcast %cst_25 : f32 to vector<8x8x4xf32>
    %17 = vector.extract_strided_slice %12 {offsets = [0, 0, 0], sizes = [14, 8, 4], strides = [1, 1, 1]} : vector<14x14x4xf32> to vector<14x8x4xf32>
    %18 = vector.extract_strided_slice %17 {offsets = [0, 0, 0], sizes = [8, 8, 4], strides = [1, 1, 1]} : vector<14x8x4xf32> to vector<8x8x4xf32>
    %19 = vector.extract_strided_slice %15 {offsets = [0, 0], sizes = [1, 4], strides = [1, 1]} : vector<49x4xf32> to vector<1x4xf32>
    %20 = vector.shape_cast %19 : vector<1x4xf32> to vector<4xf32>
    %21 = vector.shape_cast %20 : vector<4xf32> to vector<1x1x4xf32>
    %22 = vector.broadcast %21 : vector<1x1x4xf32> to vector<8x8x4xf32>
    %23 = arith.mulf %18, %22 : vector<8x8x4xf32>
    %24 = arith.addf %16, %23 : vector<8x8x4xf32>
    %25 = vector.extract_strided_slice %17 {offsets = [1, 0, 0], sizes = [8, 8, 4], strides = [1, 1, 1]} : vector<14x8x4xf32> to vector<8x8x4xf32>
    %26 = vector.extract_strided_slice %15 {offsets = [7, 0], sizes = [1, 4], strides = [1, 1]} : vector<49x4xf32> to vector<1x4xf32>
    %27 = vector.shape_cast %26 : vector<1x4xf32> to vector<4xf32>
    %28 = vector.shape_cast %27 : vector<4xf32> to vector<1x1x4xf32>
    %29 = vector.broadcast %28 : vector<1x1x4xf32> to vector<8x8x4xf32>
    %30 = arith.mulf %25, %29 : vector<8x8x4xf32>
    %31 = arith.addf %24, %30 : vector<8x8x4xf32>
    %32 = vector.extract_strided_slice %17 {offsets = [2, 0, 0], sizes = [8, 8, 4], strides = [1, 1, 1]} : vector<14x8x4xf32> to vector<8x8x4xf32>
    %33 = vector.extract_strided_slice %15 {offsets = [14, 0], sizes = [1, 4], strides = [1, 1]} : vector<49x4xf32> to vector<1x4xf32>
    %34 = vector.shape_cast %33 : vector<1x4xf32> to vector<4xf32>
    %35 = vector.shape_cast %34 : vector<4xf32> to vector<1x1x4xf32>
    %36 = vector.broadcast %35 : vector<1x1x4xf32> to vector<8x8x4xf32>
    %37 = arith.mulf %32, %36 : vector<8x8x4xf32>
    %38 = arith.addf %31, %37 : vector<8x8x4xf32>
    %39 = vector.extract_strided_slice %17 {offsets = [3, 0, 0], sizes = [8, 8, 4], strides = [1, 1, 1]} : vector<14x8x4xf32> to vector<8x8x4xf32>
    %40 = vector.extract_strided_slice %15 {offsets = [21, 0], sizes = [1, 4], strides = [1, 1]} : vector<49x4xf32> to vector<1x4xf32>
    %41 = vector.shape_cast %40 : vector<1x4xf32> to vector<4xf32>
    %42 = vector.shape_cast %41 : vector<4xf32> to vector<1x1x4xf32>
    %43 = vector.broadcast %42 : vector<1x1x4xf32> to vector<8x8x4xf32>
    %44 = arith.mulf %39, %43 : vector<8x8x4xf32>
    %45 = arith.addf %38, %44 : vector<8x8x4xf32>
    %46 = vector.extract_strided_slice %17 {offsets = [4, 0, 0], sizes = [8, 8, 4], strides = [1, 1, 1]} : vector<14x8x4xf32> to vector<8x8x4xf32>
    %47 = vector.extract_strided_slice %15 {offsets = [28, 0], sizes = [1, 4], strides = [1, 1]} : vector<49x4xf32> to vector<1x4xf32>
    %48 = vector.shape_cast %47 : vector<1x4xf32> to vector<4xf32>
    %49 = vector.shape_cast %48 : vector<4xf32> to vector<1x1x4xf32>
    %50 = vector.broadcast %49 : vector<1x1x4xf32> to vector<8x8x4xf32>
    %51 = arith.mulf %46, %50 : vector<8x8x4xf32>
    %52 = arith.addf %45, %51 : vector<8x8x4xf32>
    %53 = vector.extract_strided_slice %17 {offsets = [5, 0, 0], sizes = [8, 8, 4], strides = [1, 1, 1]} : vector<14x8x4xf32> to vector<8x8x4xf32>
    %54 = vector.extract_strided_slice %15 {offsets = [35, 0], sizes = [1, 4], strides = [1, 1]} : vector<49x4xf32> to vector<1x4xf32>
    %55 = vector.shape_cast %54 : vector<1x4xf32> to vector<4xf32>
    %56 = vector.shape_cast %55 : vector<4xf32> to vector<1x1x4xf32>
    %57 = vector.broadcast %56 : vector<1x1x4xf32> to vector<8x8x4xf32>
    %58 = arith.mulf %53, %57 : vector<8x8x4xf32>
    %59 = arith.addf %52, %58 : vector<8x8x4xf32>
    %60 = vector.extract_strided_slice %17 {offsets = [6, 0, 0], sizes = [8, 8, 4], strides = [1, 1, 1]} : vector<14x8x4xf32> to vector<8x8x4xf32>
    %61 = vector.extract_strided_slice %15 {offsets = [42, 0], sizes = [1, 4], strides = [1, 1]} : vector<49x4xf32> to vector<1x4xf32>
    %62 = vector.shape_cast %61 : vector<1x4xf32> to vector<4xf32>
    %63 = vector.shape_cast %62 : vector<4xf32> to vector<1x1x4xf32>
    %64 = vector.broadcast %63 : vector<1x1x4xf32> to vector<8x8x4xf32>
    %65 = arith.mulf %60, %64 : vector<8x8x4xf32>
    %66 = arith.addf %59, %65 : vector<8x8x4xf32>
    %67 = vector.extract_strided_slice %12 {offsets = [0, 1, 0], sizes = [14, 8, 4], strides = [1, 1, 1]} : vector<14x14x4xf32> to vector<14x8x4xf32>
    %68 = vector.extract_strided_slice %67 {offsets = [0, 0, 0], sizes = [8, 8, 4], strides = [1, 1, 1]} : vector<14x8x4xf32> to vector<8x8x4xf32>
    %69 = vector.extract_strided_slice %15 {offsets = [1, 0], sizes = [1, 4], strides = [1, 1]} : vector<49x4xf32> to vector<1x4xf32>
    %70 = vector.shape_cast %69 : vector<1x4xf32> to vector<4xf32>
    %71 = vector.shape_cast %70 : vector<4xf32> to vector<1x1x4xf32>
    %72 = vector.broadcast %71 : vector<1x1x4xf32> to vector<8x8x4xf32>
    %73 = arith.mulf %68, %72 : vector<8x8x4xf32>
    %74 = arith.addf %66, %73 : vector<8x8x4xf32>
    %75 = vector.extract_strided_slice %67 {offsets = [1, 0, 0], sizes = [8, 8, 4], strides = [1, 1, 1]} : vector<14x8x4xf32> to vector<8x8x4xf32>
    %76 = vector.extract_strided_slice %15 {offsets = [8, 0], sizes = [1, 4], strides = [1, 1]} : vector<49x4xf32> to vector<1x4xf32>
    %77 = vector.shape_cast %76 : vector<1x4xf32> to vector<4xf32>
    %78 = vector.shape_cast %77 : vector<4xf32> to vector<1x1x4xf32>
    %79 = vector.broadcast %78 : vector<1x1x4xf32> to vector<8x8x4xf32>
    %80 = arith.mulf %75, %79 : vector<8x8x4xf32>
    %81 = arith.addf %74, %80 : vector<8x8x4xf32>
    %82 = vector.extract_strided_slice %67 {offsets = [2, 0, 0], sizes = [8, 8, 4], strides = [1, 1, 1]} : vector<14x8x4xf32> to vector<8x8x4xf32>
    %83 = vector.extract_strided_slice %15 {offsets = [15, 0], sizes = [1, 4], strides = [1, 1]} : vector<49x4xf32> to vector<1x4xf32>
    %84 = vector.shape_cast %83 : vector<1x4xf32> to vector<4xf32>
    %85 = vector.shape_cast %84 : vector<4xf32> to vector<1x1x4xf32>
    %86 = vector.broadcast %85 : vector<1x1x4xf32> to vector<8x8x4xf32>
    %87 = arith.mulf %82, %86 : vector<8x8x4xf32>
    %88 = arith.addf %81, %87 : vector<8x8x4xf32>
    %89 = vector.extract_strided_slice %67 {offsets = [3, 0, 0], sizes = [8, 8, 4], strides = [1, 1, 1]} : vector<14x8x4xf32> to vector<8x8x4xf32>
    %90 = vector.extract_strided_slice %15 {offsets = [22, 0], sizes = [1, 4], strides = [1, 1]} : vector<49x4xf32> to vector<1x4xf32>
    %91 = vector.shape_cast %90 : vector<1x4xf32> to vector<4xf32>
    %92 = vector.shape_cast %91 : vector<4xf32> to vector<1x1x4xf32>
    %93 = vector.broadcast %92 : vector<1x1x4xf32> to vector<8x8x4xf32>
    %94 = arith.mulf %89, %93 : vector<8x8x4xf32>
    %95 = arith.addf %88, %94 : vector<8x8x4xf32>
    %96 = vector.extract_strided_slice %67 {offsets = [4, 0, 0], sizes = [8, 8, 4], strides = [1, 1, 1]} : vector<14x8x4xf32> to vector<8x8x4xf32>
    %97 = vector.extract_strided_slice %15 {offsets = [29, 0], sizes = [1, 4], strides = [1, 1]} : vector<49x4xf32> to vector<1x4xf32>
    %98 = vector.shape_cast %97 : vector<1x4xf32> to vector<4xf32>
    %99 = vector.shape_cast %98 : vector<4xf32> to vector<1x1x4xf32>
    %100 = vector.broadcast %99 : vector<1x1x4xf32> to vector<8x8x4xf32>
    %101 = arith.mulf %96, %100 : vector<8x8x4xf32>
    %102 = arith.addf %95, %101 : vector<8x8x4xf32>
    %103 = vector.extract_strided_slice %67 {offsets = [5, 0, 0], sizes = [8, 8, 4], strides = [1, 1, 1]} : vector<14x8x4xf32> to vector<8x8x4xf32>
    %104 = vector.extract_strided_slice %15 {offsets = [36, 0], sizes = [1, 4], strides = [1, 1]} : vector<49x4xf32> to vector<1x4xf32>
    %105 = vector.shape_cast %104 : vector<1x4xf32> to vector<4xf32>
    %106 = vector.shape_cast %105 : vector<4xf32> to vector<1x1x4xf32>
    %107 = vector.broadcast %106 : vector<1x1x4xf32> to vector<8x8x4xf32>
    %108 = arith.mulf %103, %107 : vector<8x8x4xf32>
    %109 = arith.addf %102, %108 : vector<8x8x4xf32>
    %110 = vector.extract_strided_slice %67 {offsets = [6, 0, 0], sizes = [8, 8, 4], strides = [1, 1, 1]} : vector<14x8x4xf32> to vector<8x8x4xf32>
    %111 = vector.extract_strided_slice %15 {offsets = [43, 0], sizes = [1, 4], strides = [1, 1]} : vector<49x4xf32> to vector<1x4xf32>
    %112 = vector.shape_cast %111 : vector<1x4xf32> to vector<4xf32>
    %113 = vector.shape_cast %112 : vector<4xf32> to vector<1x1x4xf32>
    %114 = vector.broadcast %113 : vector<1x1x4xf32> to vector<8x8x4xf32>
    %115 = arith.mulf %110, %114 : vector<8x8x4xf32>
    %116 = arith.addf %109, %115 : vector<8x8x4xf32>
    %117 = vector.extract_strided_slice %12 {offsets = [0, 2, 0], sizes = [14, 8, 4], strides = [1, 1, 1]} : vector<14x14x4xf32> to vector<14x8x4xf32>
    %118 = vector.extract_strided_slice %117 {offsets = [0, 0, 0], sizes = [8, 8, 4], strides = [1, 1, 1]} : vector<14x8x4xf32> to vector<8x8x4xf32>
    %119 = vector.extract_strided_slice %15 {offsets = [2, 0], sizes = [1, 4], strides = [1, 1]} : vector<49x4xf32> to vector<1x4xf32>
    %120 = vector.shape_cast %119 : vector<1x4xf32> to vector<4xf32>
    %121 = vector.shape_cast %120 : vector<4xf32> to vector<1x1x4xf32>
    %122 = vector.broadcast %121 : vector<1x1x4xf32> to vector<8x8x4xf32>
    %123 = arith.mulf %118, %122 : vector<8x8x4xf32>
    %124 = arith.addf %116, %123 : vector<8x8x4xf32>
    %125 = vector.extract_strided_slice %117 {offsets = [1, 0, 0], sizes = [8, 8, 4], strides = [1, 1, 1]} : vector<14x8x4xf32> to vector<8x8x4xf32>
    %126 = vector.extract_strided_slice %15 {offsets = [9, 0], sizes = [1, 4], strides = [1, 1]} : vector<49x4xf32> to vector<1x4xf32>
    %127 = vector.shape_cast %126 : vector<1x4xf32> to vector<4xf32>
    %128 = vector.shape_cast %127 : vector<4xf32> to vector<1x1x4xf32>
    %129 = vector.broadcast %128 : vector<1x1x4xf32> to vector<8x8x4xf32>
    %130 = arith.mulf %125, %129 : vector<8x8x4xf32>
    %131 = arith.addf %124, %130 : vector<8x8x4xf32>
    %132 = vector.extract_strided_slice %117 {offsets = [2, 0, 0], sizes = [8, 8, 4], strides = [1, 1, 1]} : vector<14x8x4xf32> to vector<8x8x4xf32>
    %133 = vector.extract_strided_slice %15 {offsets = [16, 0], sizes = [1, 4], strides = [1, 1]} : vector<49x4xf32> to vector<1x4xf32>
    %134 = vector.shape_cast %133 : vector<1x4xf32> to vector<4xf32>
    %135 = vector.shape_cast %134 : vector<4xf32> to vector<1x1x4xf32>
    %136 = vector.broadcast %135 : vector<1x1x4xf32> to vector<8x8x4xf32>
    %137 = arith.mulf %132, %136 : vector<8x8x4xf32>
    %138 = arith.addf %131, %137 : vector<8x8x4xf32>
    %139 = vector.extract_strided_slice %117 {offsets = [3, 0, 0], sizes = [8, 8, 4], strides = [1, 1, 1]} : vector<14x8x4xf32> to vector<8x8x4xf32>
    %140 = vector.extract_strided_slice %15 {offsets = [23, 0], sizes = [1, 4], strides = [1, 1]} : vector<49x4xf32> to vector<1x4xf32>
    %141 = vector.shape_cast %140 : vector<1x4xf32> to vector<4xf32>
    %142 = vector.shape_cast %141 : vector<4xf32> to vector<1x1x4xf32>
    %143 = vector.broadcast %142 : vector<1x1x4xf32> to vector<8x8x4xf32>
    %144 = arith.mulf %139, %143 : vector<8x8x4xf32>
    %145 = arith.addf %138, %144 : vector<8x8x4xf32>
    %146 = vector.extract_strided_slice %117 {offsets = [4, 0, 0], sizes = [8, 8, 4], strides = [1, 1, 1]} : vector<14x8x4xf32> to vector<8x8x4xf32>
    %147 = vector.extract_strided_slice %15 {offsets = [30, 0], sizes = [1, 4], strides = [1, 1]} : vector<49x4xf32> to vector<1x4xf32>
    %148 = vector.shape_cast %147 : vector<1x4xf32> to vector<4xf32>
    %149 = vector.shape_cast %148 : vector<4xf32> to vector<1x1x4xf32>
    %150 = vector.broadcast %149 : vector<1x1x4xf32> to vector<8x8x4xf32>
    %151 = arith.mulf %146, %150 : vector<8x8x4xf32>
    %152 = arith.addf %145, %151 : vector<8x8x4xf32>
    %153 = vector.extract_strided_slice %117 {offsets = [5, 0, 0], sizes = [8, 8, 4], strides = [1, 1, 1]} : vector<14x8x4xf32> to vector<8x8x4xf32>
    %154 = vector.extract_strided_slice %15 {offsets = [37, 0], sizes = [1, 4], strides = [1, 1]} : vector<49x4xf32> to vector<1x4xf32>
    %155 = vector.shape_cast %154 : vector<1x4xf32> to vector<4xf32>
    %156 = vector.shape_cast %155 : vector<4xf32> to vector<1x1x4xf32>
    %157 = vector.broadcast %156 : vector<1x1x4xf32> to vector<8x8x4xf32>
    %158 = arith.mulf %153, %157 : vector<8x8x4xf32>
    %159 = arith.addf %152, %158 : vector<8x8x4xf32>
    %160 = vector.extract_strided_slice %117 {offsets = [6, 0, 0], sizes = [8, 8, 4], strides = [1, 1, 1]} : vector<14x8x4xf32> to vector<8x8x4xf32>
    %161 = vector.extract_strided_slice %15 {offsets = [44, 0], sizes = [1, 4], strides = [1, 1]} : vector<49x4xf32> to vector<1x4xf32>
    %162 = vector.shape_cast %161 : vector<1x4xf32> to vector<4xf32>
    %163 = vector.shape_cast %162 : vector<4xf32> to vector<1x1x4xf32>
    %164 = vector.broadcast %163 : vector<1x1x4xf32> to vector<8x8x4xf32>
    %165 = arith.mulf %160, %164 : vector<8x8x4xf32>
    %166 = arith.addf %159, %165 : vector<8x8x4xf32>
    %167 = vector.extract_strided_slice %12 {offsets = [0, 3, 0], sizes = [14, 8, 4], strides = [1, 1, 1]} : vector<14x14x4xf32> to vector<14x8x4xf32>
    %168 = vector.extract_strided_slice %167 {offsets = [0, 0, 0], sizes = [8, 8, 4], strides = [1, 1, 1]} : vector<14x8x4xf32> to vector<8x8x4xf32>
    %169 = vector.extract_strided_slice %15 {offsets = [3, 0], sizes = [1, 4], strides = [1, 1]} : vector<49x4xf32> to vector<1x4xf32>
    %170 = vector.shape_cast %169 : vector<1x4xf32> to vector<4xf32>
    %171 = vector.shape_cast %170 : vector<4xf32> to vector<1x1x4xf32>
    %172 = vector.broadcast %171 : vector<1x1x4xf32> to vector<8x8x4xf32>
    %173 = arith.mulf %168, %172 : vector<8x8x4xf32>
    %174 = arith.addf %166, %173 : vector<8x8x4xf32>
    %175 = vector.extract_strided_slice %167 {offsets = [1, 0, 0], sizes = [8, 8, 4], strides = [1, 1, 1]} : vector<14x8x4xf32> to vector<8x8x4xf32>
    %176 = vector.extract_strided_slice %15 {offsets = [10, 0], sizes = [1, 4], strides = [1, 1]} : vector<49x4xf32> to vector<1x4xf32>
    %177 = vector.shape_cast %176 : vector<1x4xf32> to vector<4xf32>
    %178 = vector.shape_cast %177 : vector<4xf32> to vector<1x1x4xf32>
    %179 = vector.broadcast %178 : vector<1x1x4xf32> to vector<8x8x4xf32>
    %180 = arith.mulf %175, %179 : vector<8x8x4xf32>
    %181 = arith.addf %174, %180 : vector<8x8x4xf32>
    %182 = vector.extract_strided_slice %167 {offsets = [2, 0, 0], sizes = [8, 8, 4], strides = [1, 1, 1]} : vector<14x8x4xf32> to vector<8x8x4xf32>
    %183 = vector.extract_strided_slice %15 {offsets = [17, 0], sizes = [1, 4], strides = [1, 1]} : vector<49x4xf32> to vector<1x4xf32>
    %184 = vector.shape_cast %183 : vector<1x4xf32> to vector<4xf32>
    %185 = vector.shape_cast %184 : vector<4xf32> to vector<1x1x4xf32>
    %186 = vector.broadcast %185 : vector<1x1x4xf32> to vector<8x8x4xf32>
    %187 = arith.mulf %182, %186 : vector<8x8x4xf32>
    %188 = arith.addf %181, %187 : vector<8x8x4xf32>
    %189 = vector.extract_strided_slice %167 {offsets = [3, 0, 0], sizes = [8, 8, 4], strides = [1, 1, 1]} : vector<14x8x4xf32> to vector<8x8x4xf32>
    %190 = vector.extract_strided_slice %15 {offsets = [24, 0], sizes = [1, 4], strides = [1, 1]} : vector<49x4xf32> to vector<1x4xf32>
    %191 = vector.shape_cast %190 : vector<1x4xf32> to vector<4xf32>
    %192 = vector.shape_cast %191 : vector<4xf32> to vector<1x1x4xf32>
    %193 = vector.broadcast %192 : vector<1x1x4xf32> to vector<8x8x4xf32>
    %194 = arith.mulf %189, %193 : vector<8x8x4xf32>
    %195 = arith.addf %188, %194 : vector<8x8x4xf32>
    %196 = vector.extract_strided_slice %167 {offsets = [4, 0, 0], sizes = [8, 8, 4], strides = [1, 1, 1]} : vector<14x8x4xf32> to vector<8x8x4xf32>
    %197 = vector.extract_strided_slice %15 {offsets = [31, 0], sizes = [1, 4], strides = [1, 1]} : vector<49x4xf32> to vector<1x4xf32>
    %198 = vector.shape_cast %197 : vector<1x4xf32> to vector<4xf32>
    %199 = vector.shape_cast %198 : vector<4xf32> to vector<1x1x4xf32>
    %200 = vector.broadcast %199 : vector<1x1x4xf32> to vector<8x8x4xf32>
    %201 = arith.mulf %196, %200 : vector<8x8x4xf32>
    %202 = arith.addf %195, %201 : vector<8x8x4xf32>
    %203 = vector.extract_strided_slice %167 {offsets = [5, 0, 0], sizes = [8, 8, 4], strides = [1, 1, 1]} : vector<14x8x4xf32> to vector<8x8x4xf32>
    %204 = vector.extract_strided_slice %15 {offsets = [38, 0], sizes = [1, 4], strides = [1, 1]} : vector<49x4xf32> to vector<1x4xf32>
    %205 = vector.shape_cast %204 : vector<1x4xf32> to vector<4xf32>
    %206 = vector.shape_cast %205 : vector<4xf32> to vector<1x1x4xf32>
    %207 = vector.broadcast %206 : vector<1x1x4xf32> to vector<8x8x4xf32>
    %208 = arith.mulf %203, %207 : vector<8x8x4xf32>
    %209 = arith.addf %202, %208 : vector<8x8x4xf32>
    %210 = vector.extract_strided_slice %167 {offsets = [6, 0, 0], sizes = [8, 8, 4], strides = [1, 1, 1]} : vector<14x8x4xf32> to vector<8x8x4xf32>
    %211 = vector.extract_strided_slice %15 {offsets = [45, 0], sizes = [1, 4], strides = [1, 1]} : vector<49x4xf32> to vector<1x4xf32>
    %212 = vector.shape_cast %211 : vector<1x4xf32> to vector<4xf32>
    %213 = vector.shape_cast %212 : vector<4xf32> to vector<1x1x4xf32>
    %214 = vector.broadcast %213 : vector<1x1x4xf32> to vector<8x8x4xf32>
    %215 = arith.mulf %210, %214 : vector<8x8x4xf32>
    %216 = arith.addf %209, %215 : vector<8x8x4xf32>
    %217 = vector.extract_strided_slice %12 {offsets = [0, 4, 0], sizes = [14, 8, 4], strides = [1, 1, 1]} : vector<14x14x4xf32> to vector<14x8x4xf32>
    %218 = vector.extract_strided_slice %217 {offsets = [0, 0, 0], sizes = [8, 8, 4], strides = [1, 1, 1]} : vector<14x8x4xf32> to vector<8x8x4xf32>
    %219 = vector.extract_strided_slice %15 {offsets = [4, 0], sizes = [1, 4], strides = [1, 1]} : vector<49x4xf32> to vector<1x4xf32>
    %220 = vector.shape_cast %219 : vector<1x4xf32> to vector<4xf32>
    %221 = vector.shape_cast %220 : vector<4xf32> to vector<1x1x4xf32>
    %222 = vector.broadcast %221 : vector<1x1x4xf32> to vector<8x8x4xf32>
    %223 = arith.mulf %218, %222 : vector<8x8x4xf32>
    %224 = arith.addf %216, %223 : vector<8x8x4xf32>
    %225 = vector.extract_strided_slice %217 {offsets = [1, 0, 0], sizes = [8, 8, 4], strides = [1, 1, 1]} : vector<14x8x4xf32> to vector<8x8x4xf32>
    %226 = vector.extract_strided_slice %15 {offsets = [11, 0], sizes = [1, 4], strides = [1, 1]} : vector<49x4xf32> to vector<1x4xf32>
    %227 = vector.shape_cast %226 : vector<1x4xf32> to vector<4xf32>
    %228 = vector.shape_cast %227 : vector<4xf32> to vector<1x1x4xf32>
    %229 = vector.broadcast %228 : vector<1x1x4xf32> to vector<8x8x4xf32>
    %230 = arith.mulf %225, %229 : vector<8x8x4xf32>
    %231 = arith.addf %224, %230 : vector<8x8x4xf32>
    %232 = vector.extract_strided_slice %217 {offsets = [2, 0, 0], sizes = [8, 8, 4], strides = [1, 1, 1]} : vector<14x8x4xf32> to vector<8x8x4xf32>
    %233 = vector.extract_strided_slice %15 {offsets = [18, 0], sizes = [1, 4], strides = [1, 1]} : vector<49x4xf32> to vector<1x4xf32>
    %234 = vector.shape_cast %233 : vector<1x4xf32> to vector<4xf32>
    %235 = vector.shape_cast %234 : vector<4xf32> to vector<1x1x4xf32>
    %236 = vector.broadcast %235 : vector<1x1x4xf32> to vector<8x8x4xf32>
    %237 = arith.mulf %232, %236 : vector<8x8x4xf32>
    %238 = arith.addf %231, %237 : vector<8x8x4xf32>
    %239 = vector.extract_strided_slice %217 {offsets = [3, 0, 0], sizes = [8, 8, 4], strides = [1, 1, 1]} : vector<14x8x4xf32> to vector<8x8x4xf32>
    %240 = vector.extract_strided_slice %15 {offsets = [25, 0], sizes = [1, 4], strides = [1, 1]} : vector<49x4xf32> to vector<1x4xf32>
    %241 = vector.shape_cast %240 : vector<1x4xf32> to vector<4xf32>
    %242 = vector.shape_cast %241 : vector<4xf32> to vector<1x1x4xf32>
    %243 = vector.broadcast %242 : vector<1x1x4xf32> to vector<8x8x4xf32>
    %244 = arith.mulf %239, %243 : vector<8x8x4xf32>
    %245 = arith.addf %238, %244 : vector<8x8x4xf32>
    %246 = vector.extract_strided_slice %217 {offsets = [4, 0, 0], sizes = [8, 8, 4], strides = [1, 1, 1]} : vector<14x8x4xf32> to vector<8x8x4xf32>
    %247 = vector.extract_strided_slice %15 {offsets = [32, 0], sizes = [1, 4], strides = [1, 1]} : vector<49x4xf32> to vector<1x4xf32>
    %248 = vector.shape_cast %247 : vector<1x4xf32> to vector<4xf32>
    %249 = vector.shape_cast %248 : vector<4xf32> to vector<1x1x4xf32>
    %250 = vector.broadcast %249 : vector<1x1x4xf32> to vector<8x8x4xf32>
    %251 = arith.mulf %246, %250 : vector<8x8x4xf32>
    %252 = arith.addf %245, %251 : vector<8x8x4xf32>
    %253 = vector.extract_strided_slice %217 {offsets = [5, 0, 0], sizes = [8, 8, 4], strides = [1, 1, 1]} : vector<14x8x4xf32> to vector<8x8x4xf32>
    %254 = vector.extract_strided_slice %15 {offsets = [39, 0], sizes = [1, 4], strides = [1, 1]} : vector<49x4xf32> to vector<1x4xf32>
    %255 = vector.shape_cast %254 : vector<1x4xf32> to vector<4xf32>
    %256 = vector.shape_cast %255 : vector<4xf32> to vector<1x1x4xf32>
    %257 = vector.broadcast %256 : vector<1x1x4xf32> to vector<8x8x4xf32>
    %258 = arith.mulf %253, %257 : vector<8x8x4xf32>
    %259 = arith.addf %252, %258 : vector<8x8x4xf32>
    %260 = vector.extract_strided_slice %217 {offsets = [6, 0, 0], sizes = [8, 8, 4], strides = [1, 1, 1]} : vector<14x8x4xf32> to vector<8x8x4xf32>
    %261 = vector.extract_strided_slice %15 {offsets = [46, 0], sizes = [1, 4], strides = [1, 1]} : vector<49x4xf32> to vector<1x4xf32>
    %262 = vector.shape_cast %261 : vector<1x4xf32> to vector<4xf32>
    %263 = vector.shape_cast %262 : vector<4xf32> to vector<1x1x4xf32>
    %264 = vector.broadcast %263 : vector<1x1x4xf32> to vector<8x8x4xf32>
    %265 = arith.mulf %260, %264 : vector<8x8x4xf32>
    %266 = arith.addf %259, %265 : vector<8x8x4xf32>
    %267 = vector.extract_strided_slice %12 {offsets = [0, 5, 0], sizes = [14, 8, 4], strides = [1, 1, 1]} : vector<14x14x4xf32> to vector<14x8x4xf32>
    %268 = vector.extract_strided_slice %267 {offsets = [0, 0, 0], sizes = [8, 8, 4], strides = [1, 1, 1]} : vector<14x8x4xf32> to vector<8x8x4xf32>
    %269 = vector.extract_strided_slice %15 {offsets = [5, 0], sizes = [1, 4], strides = [1, 1]} : vector<49x4xf32> to vector<1x4xf32>
    %270 = vector.shape_cast %269 : vector<1x4xf32> to vector<4xf32>
    %271 = vector.shape_cast %270 : vector<4xf32> to vector<1x1x4xf32>
    %272 = vector.broadcast %271 : vector<1x1x4xf32> to vector<8x8x4xf32>
    %273 = arith.mulf %268, %272 : vector<8x8x4xf32>
    %274 = arith.addf %266, %273 : vector<8x8x4xf32>
    %275 = vector.extract_strided_slice %267 {offsets = [1, 0, 0], sizes = [8, 8, 4], strides = [1, 1, 1]} : vector<14x8x4xf32> to vector<8x8x4xf32>
    %276 = vector.extract_strided_slice %15 {offsets = [12, 0], sizes = [1, 4], strides = [1, 1]} : vector<49x4xf32> to vector<1x4xf32>
    %277 = vector.shape_cast %276 : vector<1x4xf32> to vector<4xf32>
    %278 = vector.shape_cast %277 : vector<4xf32> to vector<1x1x4xf32>
    %279 = vector.broadcast %278 : vector<1x1x4xf32> to vector<8x8x4xf32>
    %280 = arith.mulf %275, %279 : vector<8x8x4xf32>
    %281 = arith.addf %274, %280 : vector<8x8x4xf32>
    %282 = vector.extract_strided_slice %267 {offsets = [2, 0, 0], sizes = [8, 8, 4], strides = [1, 1, 1]} : vector<14x8x4xf32> to vector<8x8x4xf32>
    %283 = vector.extract_strided_slice %15 {offsets = [19, 0], sizes = [1, 4], strides = [1, 1]} : vector<49x4xf32> to vector<1x4xf32>
    %284 = vector.shape_cast %283 : vector<1x4xf32> to vector<4xf32>
    %285 = vector.shape_cast %284 : vector<4xf32> to vector<1x1x4xf32>
    %286 = vector.broadcast %285 : vector<1x1x4xf32> to vector<8x8x4xf32>
    %287 = arith.mulf %282, %286 : vector<8x8x4xf32>
    %288 = arith.addf %281, %287 : vector<8x8x4xf32>
    %289 = vector.extract_strided_slice %267 {offsets = [3, 0, 0], sizes = [8, 8, 4], strides = [1, 1, 1]} : vector<14x8x4xf32> to vector<8x8x4xf32>
    %290 = vector.extract_strided_slice %15 {offsets = [26, 0], sizes = [1, 4], strides = [1, 1]} : vector<49x4xf32> to vector<1x4xf32>
    %291 = vector.shape_cast %290 : vector<1x4xf32> to vector<4xf32>
    %292 = vector.shape_cast %291 : vector<4xf32> to vector<1x1x4xf32>
    %293 = vector.broadcast %292 : vector<1x1x4xf32> to vector<8x8x4xf32>
    %294 = arith.mulf %289, %293 : vector<8x8x4xf32>
    %295 = arith.addf %288, %294 : vector<8x8x4xf32>
    %296 = vector.extract_strided_slice %267 {offsets = [4, 0, 0], sizes = [8, 8, 4], strides = [1, 1, 1]} : vector<14x8x4xf32> to vector<8x8x4xf32>
    %297 = vector.extract_strided_slice %15 {offsets = [33, 0], sizes = [1, 4], strides = [1, 1]} : vector<49x4xf32> to vector<1x4xf32>
    %298 = vector.shape_cast %297 : vector<1x4xf32> to vector<4xf32>
    %299 = vector.shape_cast %298 : vector<4xf32> to vector<1x1x4xf32>
    %300 = vector.broadcast %299 : vector<1x1x4xf32> to vector<8x8x4xf32>
    %301 = arith.mulf %296, %300 : vector<8x8x4xf32>
    %302 = arith.addf %295, %301 : vector<8x8x4xf32>
    %303 = vector.extract_strided_slice %267 {offsets = [5, 0, 0], sizes = [8, 8, 4], strides = [1, 1, 1]} : vector<14x8x4xf32> to vector<8x8x4xf32>
    %304 = vector.extract_strided_slice %15 {offsets = [40, 0], sizes = [1, 4], strides = [1, 1]} : vector<49x4xf32> to vector<1x4xf32>
    %305 = vector.shape_cast %304 : vector<1x4xf32> to vector<4xf32>
    %306 = vector.shape_cast %305 : vector<4xf32> to vector<1x1x4xf32>
    %307 = vector.broadcast %306 : vector<1x1x4xf32> to vector<8x8x4xf32>
    %308 = arith.mulf %303, %307 : vector<8x8x4xf32>
    %309 = arith.addf %302, %308 : vector<8x8x4xf32>
    %310 = vector.extract_strided_slice %267 {offsets = [6, 0, 0], sizes = [8, 8, 4], strides = [1, 1, 1]} : vector<14x8x4xf32> to vector<8x8x4xf32>
    %311 = vector.extract_strided_slice %15 {offsets = [47, 0], sizes = [1, 4], strides = [1, 1]} : vector<49x4xf32> to vector<1x4xf32>
    %312 = vector.shape_cast %311 : vector<1x4xf32> to vector<4xf32>
    %313 = vector.shape_cast %312 : vector<4xf32> to vector<1x1x4xf32>
    %314 = vector.broadcast %313 : vector<1x1x4xf32> to vector<8x8x4xf32>
    %315 = arith.mulf %310, %314 : vector<8x8x4xf32>
    %316 = arith.addf %309, %315 : vector<8x8x4xf32>
    %317 = vector.extract_strided_slice %12 {offsets = [0, 6, 0], sizes = [14, 8, 4], strides = [1, 1, 1]} : vector<14x14x4xf32> to vector<14x8x4xf32>
    %318 = vector.extract_strided_slice %317 {offsets = [0, 0, 0], sizes = [8, 8, 4], strides = [1, 1, 1]} : vector<14x8x4xf32> to vector<8x8x4xf32>
    %319 = vector.extract_strided_slice %15 {offsets = [6, 0], sizes = [1, 4], strides = [1, 1]} : vector<49x4xf32> to vector<1x4xf32>
    %320 = vector.shape_cast %319 : vector<1x4xf32> to vector<4xf32>
    %321 = vector.shape_cast %320 : vector<4xf32> to vector<1x1x4xf32>
    %322 = vector.broadcast %321 : vector<1x1x4xf32> to vector<8x8x4xf32>
    %323 = arith.mulf %318, %322 : vector<8x8x4xf32>
    %324 = arith.addf %316, %323 : vector<8x8x4xf32>
    %325 = vector.extract_strided_slice %317 {offsets = [1, 0, 0], sizes = [8, 8, 4], strides = [1, 1, 1]} : vector<14x8x4xf32> to vector<8x8x4xf32>
    %326 = vector.extract_strided_slice %15 {offsets = [13, 0], sizes = [1, 4], strides = [1, 1]} : vector<49x4xf32> to vector<1x4xf32>
    %327 = vector.shape_cast %326 : vector<1x4xf32> to vector<4xf32>
    %328 = vector.shape_cast %327 : vector<4xf32> to vector<1x1x4xf32>
    %329 = vector.broadcast %328 : vector<1x1x4xf32> to vector<8x8x4xf32>
    %330 = arith.mulf %325, %329 : vector<8x8x4xf32>
    %331 = arith.addf %324, %330 : vector<8x8x4xf32>
    %332 = vector.extract_strided_slice %317 {offsets = [2, 0, 0], sizes = [8, 8, 4], strides = [1, 1, 1]} : vector<14x8x4xf32> to vector<8x8x4xf32>
    %333 = vector.extract_strided_slice %15 {offsets = [20, 0], sizes = [1, 4], strides = [1, 1]} : vector<49x4xf32> to vector<1x4xf32>
    %334 = vector.shape_cast %333 : vector<1x4xf32> to vector<4xf32>
    %335 = vector.shape_cast %334 : vector<4xf32> to vector<1x1x4xf32>
    %336 = vector.broadcast %335 : vector<1x1x4xf32> to vector<8x8x4xf32>
    %337 = arith.mulf %332, %336 : vector<8x8x4xf32>
    %338 = arith.addf %331, %337 : vector<8x8x4xf32>
    %339 = vector.extract_strided_slice %317 {offsets = [3, 0, 0], sizes = [8, 8, 4], strides = [1, 1, 1]} : vector<14x8x4xf32> to vector<8x8x4xf32>
    %340 = vector.extract_strided_slice %15 {offsets = [27, 0], sizes = [1, 4], strides = [1, 1]} : vector<49x4xf32> to vector<1x4xf32>
    %341 = vector.shape_cast %340 : vector<1x4xf32> to vector<4xf32>
    %342 = vector.shape_cast %341 : vector<4xf32> to vector<1x1x4xf32>
    %343 = vector.broadcast %342 : vector<1x1x4xf32> to vector<8x8x4xf32>
    %344 = arith.mulf %339, %343 : vector<8x8x4xf32>
    %345 = arith.addf %338, %344 : vector<8x8x4xf32>
    %346 = vector.extract_strided_slice %317 {offsets = [4, 0, 0], sizes = [8, 8, 4], strides = [1, 1, 1]} : vector<14x8x4xf32> to vector<8x8x4xf32>
    %347 = vector.extract_strided_slice %15 {offsets = [34, 0], sizes = [1, 4], strides = [1, 1]} : vector<49x4xf32> to vector<1x4xf32>
    %348 = vector.shape_cast %347 : vector<1x4xf32> to vector<4xf32>
    %349 = vector.shape_cast %348 : vector<4xf32> to vector<1x1x4xf32>
    %350 = vector.broadcast %349 : vector<1x1x4xf32> to vector<8x8x4xf32>
    %351 = arith.mulf %346, %350 : vector<8x8x4xf32>
    %352 = arith.addf %345, %351 : vector<8x8x4xf32>
    %353 = vector.extract_strided_slice %317 {offsets = [5, 0, 0], sizes = [8, 8, 4], strides = [1, 1, 1]} : vector<14x8x4xf32> to vector<8x8x4xf32>
    %354 = vector.extract_strided_slice %15 {offsets = [41, 0], sizes = [1, 4], strides = [1, 1]} : vector<49x4xf32> to vector<1x4xf32>
    %355 = vector.shape_cast %354 : vector<1x4xf32> to vector<4xf32>
    %356 = vector.shape_cast %355 : vector<4xf32> to vector<1x1x4xf32>
    %357 = vector.broadcast %356 : vector<1x1x4xf32> to vector<8x8x4xf32>
    %358 = arith.mulf %353, %357 : vector<8x8x4xf32>
    %359 = arith.addf %352, %358 : vector<8x8x4xf32>
    %360 = vector.extract_strided_slice %317 {offsets = [6, 0, 0], sizes = [8, 8, 4], strides = [1, 1, 1]} : vector<14x8x4xf32> to vector<8x8x4xf32>
    %361 = vector.extract_strided_slice %15 {offsets = [48, 0], sizes = [1, 4], strides = [1, 1]} : vector<49x4xf32> to vector<1x4xf32>
    %362 = vector.shape_cast %361 : vector<1x4xf32> to vector<4xf32>
    %363 = vector.shape_cast %362 : vector<4xf32> to vector<1x1x4xf32>
    %364 = vector.broadcast %363 : vector<1x1x4xf32> to vector<8x8x4xf32>
    %365 = arith.mulf %360, %364 : vector<8x8x4xf32>
    %366 = arith.addf %359, %365 : vector<8x8x4xf32>
    %367 = vector.shape_cast %14 : vector<4xf32> to vector<1x1x4xf32>
    %368 = vector.broadcast %367 : vector<1x1x4xf32> to vector<8x8x4xf32>
    %369 = arith.addf %366, %368 : vector<8x8x4xf32>
    %370 = vector.shape_cast %369 : vector<8x8x4xf32> to vector<64x4xf32>
    %c1 = arith.constant 1 : index
    %c0_26 = arith.constant 0 : index
    %371 = vector.load %arg5[%c1, %c0_26] : memref<3x4xf32, #tpu.memory_space<vmem>>, vector<1x4xf32>
    %372 = vector.shape_cast %371 : vector<1x4xf32> to vector<4xf32>
    %c0_27 = arith.constant 0 : index
    %c0_28 = arith.constant 0 : index
    %373 = vector.load %arg3[%c0_27, %c0_28] : memref<25x4xf32, #tpu.memory_space<vmem>>, vector<25x4xf32>
    %cst_29 = arith.constant 0.000000e+00 : f32
    %374 = vector.broadcast %cst_29 : f32 to vector<8x8x4xf32>
    %375 = vector.extract_strided_slice %12 {offsets = [0, 1, 0], sizes = [14, 8, 4], strides = [1, 1, 1]} : vector<14x14x4xf32> to vector<14x8x4xf32>
    %376 = vector.extract_strided_slice %375 {offsets = [1, 0, 0], sizes = [8, 8, 4], strides = [1, 1, 1]} : vector<14x8x4xf32> to vector<8x8x4xf32>
    %377 = vector.extract_strided_slice %373 {offsets = [0, 0], sizes = [1, 4], strides = [1, 1]} : vector<25x4xf32> to vector<1x4xf32>
    %378 = vector.shape_cast %377 : vector<1x4xf32> to vector<4xf32>
    %379 = vector.shape_cast %378 : vector<4xf32> to vector<1x1x4xf32>
    %380 = vector.broadcast %379 : vector<1x1x4xf32> to vector<8x8x4xf32>
    %381 = arith.mulf %376, %380 : vector<8x8x4xf32>
    %382 = arith.addf %374, %381 : vector<8x8x4xf32>
    %383 = vector.extract_strided_slice %375 {offsets = [2, 0, 0], sizes = [8, 8, 4], strides = [1, 1, 1]} : vector<14x8x4xf32> to vector<8x8x4xf32>
    %384 = vector.extract_strided_slice %373 {offsets = [5, 0], sizes = [1, 4], strides = [1, 1]} : vector<25x4xf32> to vector<1x4xf32>
    %385 = vector.shape_cast %384 : vector<1x4xf32> to vector<4xf32>
    %386 = vector.shape_cast %385 : vector<4xf32> to vector<1x1x4xf32>
    %387 = vector.broadcast %386 : vector<1x1x4xf32> to vector<8x8x4xf32>
    %388 = arith.mulf %383, %387 : vector<8x8x4xf32>
    %389 = arith.addf %382, %388 : vector<8x8x4xf32>
    %390 = vector.extract_strided_slice %375 {offsets = [3, 0, 0], sizes = [8, 8, 4], strides = [1, 1, 1]} : vector<14x8x4xf32> to vector<8x8x4xf32>
    %391 = vector.extract_strided_slice %373 {offsets = [10, 0], sizes = [1, 4], strides = [1, 1]} : vector<25x4xf32> to vector<1x4xf32>
    %392 = vector.shape_cast %391 : vector<1x4xf32> to vector<4xf32>
    %393 = vector.shape_cast %392 : vector<4xf32> to vector<1x1x4xf32>
    %394 = vector.broadcast %393 : vector<1x1x4xf32> to vector<8x8x4xf32>
    %395 = arith.mulf %390, %394 : vector<8x8x4xf32>
    %396 = arith.addf %389, %395 : vector<8x8x4xf32>
    %397 = vector.extract_strided_slice %375 {offsets = [4, 0, 0], sizes = [8, 8, 4], strides = [1, 1, 1]} : vector<14x8x4xf32> to vector<8x8x4xf32>
    %398 = vector.extract_strided_slice %373 {offsets = [15, 0], sizes = [1, 4], strides = [1, 1]} : vector<25x4xf32> to vector<1x4xf32>
    %399 = vector.shape_cast %398 : vector<1x4xf32> to vector<4xf32>
    %400 = vector.shape_cast %399 : vector<4xf32> to vector<1x1x4xf32>
    %401 = vector.broadcast %400 : vector<1x1x4xf32> to vector<8x8x4xf32>
    %402 = arith.mulf %397, %401 : vector<8x8x4xf32>
    %403 = arith.addf %396, %402 : vector<8x8x4xf32>
    %404 = vector.extract_strided_slice %375 {offsets = [5, 0, 0], sizes = [8, 8, 4], strides = [1, 1, 1]} : vector<14x8x4xf32> to vector<8x8x4xf32>
    %405 = vector.extract_strided_slice %373 {offsets = [20, 0], sizes = [1, 4], strides = [1, 1]} : vector<25x4xf32> to vector<1x4xf32>
    %406 = vector.shape_cast %405 : vector<1x4xf32> to vector<4xf32>
    %407 = vector.shape_cast %406 : vector<4xf32> to vector<1x1x4xf32>
    %408 = vector.broadcast %407 : vector<1x1x4xf32> to vector<8x8x4xf32>
    %409 = arith.mulf %404, %408 : vector<8x8x4xf32>
    %410 = arith.addf %403, %409 : vector<8x8x4xf32>
    %411 = vector.extract_strided_slice %12 {offsets = [0, 2, 0], sizes = [14, 8, 4], strides = [1, 1, 1]} : vector<14x14x4xf32> to vector<14x8x4xf32>
    %412 = vector.extract_strided_slice %411 {offsets = [1, 0, 0], sizes = [8, 8, 4], strides = [1, 1, 1]} : vector<14x8x4xf32> to vector<8x8x4xf32>
    %413 = vector.extract_strided_slice %373 {offsets = [1, 0], sizes = [1, 4], strides = [1, 1]} : vector<25x4xf32> to vector<1x4xf32>
    %414 = vector.shape_cast %413 : vector<1x4xf32> to vector<4xf32>
    %415 = vector.shape_cast %414 : vector<4xf32> to vector<1x1x4xf32>
    %416 = vector.broadcast %415 : vector<1x1x4xf32> to vector<8x8x4xf32>
    %417 = arith.mulf %412, %416 : vector<8x8x4xf32>
    %418 = arith.addf %410, %417 : vector<8x8x4xf32>
    %419 = vector.extract_strided_slice %411 {offsets = [2, 0, 0], sizes = [8, 8, 4], strides = [1, 1, 1]} : vector<14x8x4xf32> to vector<8x8x4xf32>
    %420 = vector.extract_strided_slice %373 {offsets = [6, 0], sizes = [1, 4], strides = [1, 1]} : vector<25x4xf32> to vector<1x4xf32>
    %421 = vector.shape_cast %420 : vector<1x4xf32> to vector<4xf32>
    %422 = vector.shape_cast %421 : vector<4xf32> to vector<1x1x4xf32>
    %423 = vector.broadcast %422 : vector<1x1x4xf32> to vector<8x8x4xf32>
    %424 = arith.mulf %419, %423 : vector<8x8x4xf32>
    %425 = arith.addf %418, %424 : vector<8x8x4xf32>
    %426 = vector.extract_strided_slice %411 {offsets = [3, 0, 0], sizes = [8, 8, 4], strides = [1, 1, 1]} : vector<14x8x4xf32> to vector<8x8x4xf32>
    %427 = vector.extract_strided_slice %373 {offsets = [11, 0], sizes = [1, 4], strides = [1, 1]} : vector<25x4xf32> to vector<1x4xf32>
    %428 = vector.shape_cast %427 : vector<1x4xf32> to vector<4xf32>
    %429 = vector.shape_cast %428 : vector<4xf32> to vector<1x1x4xf32>
    %430 = vector.broadcast %429 : vector<1x1x4xf32> to vector<8x8x4xf32>
    %431 = arith.mulf %426, %430 : vector<8x8x4xf32>
    %432 = arith.addf %425, %431 : vector<8x8x4xf32>
    %433 = vector.extract_strided_slice %411 {offsets = [4, 0, 0], sizes = [8, 8, 4], strides = [1, 1, 1]} : vector<14x8x4xf32> to vector<8x8x4xf32>
    %434 = vector.extract_strided_slice %373 {offsets = [16, 0], sizes = [1, 4], strides = [1, 1]} : vector<25x4xf32> to vector<1x4xf32>
    %435 = vector.shape_cast %434 : vector<1x4xf32> to vector<4xf32>
    %436 = vector.shape_cast %435 : vector<4xf32> to vector<1x1x4xf32>
    %437 = vector.broadcast %436 : vector<1x1x4xf32> to vector<8x8x4xf32>
    %438 = arith.mulf %433, %437 : vector<8x8x4xf32>
    %439 = arith.addf %432, %438 : vector<8x8x4xf32>
    %440 = vector.extract_strided_slice %411 {offsets = [5, 0, 0], sizes = [8, 8, 4], strides = [1, 1, 1]} : vector<14x8x4xf32> to vector<8x8x4xf32>
    %441 = vector.extract_strided_slice %373 {offsets = [21, 0], sizes = [1, 4], strides = [1, 1]} : vector<25x4xf32> to vector<1x4xf32>
    %442 = vector.shape_cast %441 : vector<1x4xf32> to vector<4xf32>
    %443 = vector.shape_cast %442 : vector<4xf32> to vector<1x1x4xf32>
    %444 = vector.broadcast %443 : vector<1x1x4xf32> to vector<8x8x4xf32>
    %445 = arith.mulf %440, %444 : vector<8x8x4xf32>
    %446 = arith.addf %439, %445 : vector<8x8x4xf32>
    %447 = vector.extract_strided_slice %12 {offsets = [0, 3, 0], sizes = [14, 8, 4], strides = [1, 1, 1]} : vector<14x14x4xf32> to vector<14x8x4xf32>
    %448 = vector.extract_strided_slice %447 {offsets = [1, 0, 0], sizes = [8, 8, 4], strides = [1, 1, 1]} : vector<14x8x4xf32> to vector<8x8x4xf32>
    %449 = vector.extract_strided_slice %373 {offsets = [2, 0], sizes = [1, 4], strides = [1, 1]} : vector<25x4xf32> to vector<1x4xf32>
    %450 = vector.shape_cast %449 : vector<1x4xf32> to vector<4xf32>
    %451 = vector.shape_cast %450 : vector<4xf32> to vector<1x1x4xf32>
    %452 = vector.broadcast %451 : vector<1x1x4xf32> to vector<8x8x4xf32>
    %453 = arith.mulf %448, %452 : vector<8x8x4xf32>
    %454 = arith.addf %446, %453 : vector<8x8x4xf32>
    %455 = vector.extract_strided_slice %447 {offsets = [2, 0, 0], sizes = [8, 8, 4], strides = [1, 1, 1]} : vector<14x8x4xf32> to vector<8x8x4xf32>
    %456 = vector.extract_strided_slice %373 {offsets = [7, 0], sizes = [1, 4], strides = [1, 1]} : vector<25x4xf32> to vector<1x4xf32>
    %457 = vector.shape_cast %456 : vector<1x4xf32> to vector<4xf32>
    %458 = vector.shape_cast %457 : vector<4xf32> to vector<1x1x4xf32>
    %459 = vector.broadcast %458 : vector<1x1x4xf32> to vector<8x8x4xf32>
    %460 = arith.mulf %455, %459 : vector<8x8x4xf32>
    %461 = arith.addf %454, %460 : vector<8x8x4xf32>
    %462 = vector.extract_strided_slice %447 {offsets = [3, 0, 0], sizes = [8, 8, 4], strides = [1, 1, 1]} : vector<14x8x4xf32> to vector<8x8x4xf32>
    %463 = vector.extract_strided_slice %373 {offsets = [12, 0], sizes = [1, 4], strides = [1, 1]} : vector<25x4xf32> to vector<1x4xf32>
    %464 = vector.shape_cast %463 : vector<1x4xf32> to vector<4xf32>
    %465 = vector.shape_cast %464 : vector<4xf32> to vector<1x1x4xf32>
    %466 = vector.broadcast %465 : vector<1x1x4xf32> to vector<8x8x4xf32>
    %467 = arith.mulf %462, %466 : vector<8x8x4xf32>
    %468 = arith.addf %461, %467 : vector<8x8x4xf32>
    %469 = vector.extract_strided_slice %447 {offsets = [4, 0, 0], sizes = [8, 8, 4], strides = [1, 1, 1]} : vector<14x8x4xf32> to vector<8x8x4xf32>
    %470 = vector.extract_strided_slice %373 {offsets = [17, 0], sizes = [1, 4], strides = [1, 1]} : vector<25x4xf32> to vector<1x4xf32>
    %471 = vector.shape_cast %470 : vector<1x4xf32> to vector<4xf32>
    %472 = vector.shape_cast %471 : vector<4xf32> to vector<1x1x4xf32>
    %473 = vector.broadcast %472 : vector<1x1x4xf32> to vector<8x8x4xf32>
    %474 = arith.mulf %469, %473 : vector<8x8x4xf32>
    %475 = arith.addf %468, %474 : vector<8x8x4xf32>
    %476 = vector.extract_strided_slice %447 {offsets = [5, 0, 0], sizes = [8, 8, 4], strides = [1, 1, 1]} : vector<14x8x4xf32> to vector<8x8x4xf32>
    %477 = vector.extract_strided_slice %373 {offsets = [22, 0], sizes = [1, 4], strides = [1, 1]} : vector<25x4xf32> to vector<1x4xf32>
    %478 = vector.shape_cast %477 : vector<1x4xf32> to vector<4xf32>
    %479 = vector.shape_cast %478 : vector<4xf32> to vector<1x1x4xf32>
    %480 = vector.broadcast %479 : vector<1x1x4xf32> to vector<8x8x4xf32>
    %481 = arith.mulf %476, %480 : vector<8x8x4xf32>
    %482 = arith.addf %475, %481 : vector<8x8x4xf32>
    %483 = vector.extract_strided_slice %12 {offsets = [0, 4, 0], sizes = [14, 8, 4], strides = [1, 1, 1]} : vector<14x14x4xf32> to vector<14x8x4xf32>
    %484 = vector.extract_strided_slice %483 {offsets = [1, 0, 0], sizes = [8, 8, 4], strides = [1, 1, 1]} : vector<14x8x4xf32> to vector<8x8x4xf32>
    %485 = vector.extract_strided_slice %373 {offsets = [3, 0], sizes = [1, 4], strides = [1, 1]} : vector<25x4xf32> to vector<1x4xf32>
    %486 = vector.shape_cast %485 : vector<1x4xf32> to vector<4xf32>
    %487 = vector.shape_cast %486 : vector<4xf32> to vector<1x1x4xf32>
    %488 = vector.broadcast %487 : vector<1x1x4xf32> to vector<8x8x4xf32>
    %489 = arith.mulf %484, %488 : vector<8x8x4xf32>
    %490 = arith.addf %482, %489 : vector<8x8x4xf32>
    %491 = vector.extract_strided_slice %483 {offsets = [2, 0, 0], sizes = [8, 8, 4], strides = [1, 1, 1]} : vector<14x8x4xf32> to vector<8x8x4xf32>
    %492 = vector.extract_strided_slice %373 {offsets = [8, 0], sizes = [1, 4], strides = [1, 1]} : vector<25x4xf32> to vector<1x4xf32>
    %493 = vector.shape_cast %492 : vector<1x4xf32> to vector<4xf32>
    %494 = vector.shape_cast %493 : vector<4xf32> to vector<1x1x4xf32>
    %495 = vector.broadcast %494 : vector<1x1x4xf32> to vector<8x8x4xf32>
    %496 = arith.mulf %491, %495 : vector<8x8x4xf32>
    %497 = arith.addf %490, %496 : vector<8x8x4xf32>
    %498 = vector.extract_strided_slice %483 {offsets = [3, 0, 0], sizes = [8, 8, 4], strides = [1, 1, 1]} : vector<14x8x4xf32> to vector<8x8x4xf32>
    %499 = vector.extract_strided_slice %373 {offsets = [13, 0], sizes = [1, 4], strides = [1, 1]} : vector<25x4xf32> to vector<1x4xf32>
    %500 = vector.shape_cast %499 : vector<1x4xf32> to vector<4xf32>
    %501 = vector.shape_cast %500 : vector<4xf32> to vector<1x1x4xf32>
    %502 = vector.broadcast %501 : vector<1x1x4xf32> to vector<8x8x4xf32>
    %503 = arith.mulf %498, %502 : vector<8x8x4xf32>
    %504 = arith.addf %497, %503 : vector<8x8x4xf32>
    %505 = vector.extract_strided_slice %483 {offsets = [4, 0, 0], sizes = [8, 8, 4], strides = [1, 1, 1]} : vector<14x8x4xf32> to vector<8x8x4xf32>
    %506 = vector.extract_strided_slice %373 {offsets = [18, 0], sizes = [1, 4], strides = [1, 1]} : vector<25x4xf32> to vector<1x4xf32>
    %507 = vector.shape_cast %506 : vector<1x4xf32> to vector<4xf32>
    %508 = vector.shape_cast %507 : vector<4xf32> to vector<1x1x4xf32>
    %509 = vector.broadcast %508 : vector<1x1x4xf32> to vector<8x8x4xf32>
    %510 = arith.mulf %505, %509 : vector<8x8x4xf32>
    %511 = arith.addf %504, %510 : vector<8x8x4xf32>
    %512 = vector.extract_strided_slice %483 {offsets = [5, 0, 0], sizes = [8, 8, 4], strides = [1, 1, 1]} : vector<14x8x4xf32> to vector<8x8x4xf32>
    %513 = vector.extract_strided_slice %373 {offsets = [23, 0], sizes = [1, 4], strides = [1, 1]} : vector<25x4xf32> to vector<1x4xf32>
    %514 = vector.shape_cast %513 : vector<1x4xf32> to vector<4xf32>
    %515 = vector.shape_cast %514 : vector<4xf32> to vector<1x1x4xf32>
    %516 = vector.broadcast %515 : vector<1x1x4xf32> to vector<8x8x4xf32>
    %517 = arith.mulf %512, %516 : vector<8x8x4xf32>
    %518 = arith.addf %511, %517 : vector<8x8x4xf32>
    %519 = vector.extract_strided_slice %12 {offsets = [0, 5, 0], sizes = [14, 8, 4], strides = [1, 1, 1]} : vector<14x14x4xf32> to vector<14x8x4xf32>
    %520 = vector.extract_strided_slice %519 {offsets = [1, 0, 0], sizes = [8, 8, 4], strides = [1, 1, 1]} : vector<14x8x4xf32> to vector<8x8x4xf32>
    %521 = vector.extract_strided_slice %373 {offsets = [4, 0], sizes = [1, 4], strides = [1, 1]} : vector<25x4xf32> to vector<1x4xf32>
    %522 = vector.shape_cast %521 : vector<1x4xf32> to vector<4xf32>
    %523 = vector.shape_cast %522 : vector<4xf32> to vector<1x1x4xf32>
    %524 = vector.broadcast %523 : vector<1x1x4xf32> to vector<8x8x4xf32>
    %525 = arith.mulf %520, %524 : vector<8x8x4xf32>
    %526 = arith.addf %518, %525 : vector<8x8x4xf32>
    %527 = vector.extract_strided_slice %519 {offsets = [2, 0, 0], sizes = [8, 8, 4], strides = [1, 1, 1]} : vector<14x8x4xf32> to vector<8x8x4xf32>
    %528 = vector.extract_strided_slice %373 {offsets = [9, 0], sizes = [1, 4], strides = [1, 1]} : vector<25x4xf32> to vector<1x4xf32>
    %529 = vector.shape_cast %528 : vector<1x4xf32> to vector<4xf32>
    %530 = vector.shape_cast %529 : vector<4xf32> to vector<1x1x4xf32>
    %531 = vector.broadcast %530 : vector<1x1x4xf32> to vector<8x8x4xf32>
    %532 = arith.mulf %527, %531 : vector<8x8x4xf32>
    %533 = arith.addf %526, %532 : vector<8x8x4xf32>
    %534 = vector.extract_strided_slice %519 {offsets = [3, 0, 0], sizes = [8, 8, 4], strides = [1, 1, 1]} : vector<14x8x4xf32> to vector<8x8x4xf32>
    %535 = vector.extract_strided_slice %373 {offsets = [14, 0], sizes = [1, 4], strides = [1, 1]} : vector<25x4xf32> to vector<1x4xf32>
    %536 = vector.shape_cast %535 : vector<1x4xf32> to vector<4xf32>
    %537 = vector.shape_cast %536 : vector<4xf32> to vector<1x1x4xf32>
    %538 = vector.broadcast %537 : vector<1x1x4xf32> to vector<8x8x4xf32>
    %539 = arith.mulf %534, %538 : vector<8x8x4xf32>
    %540 = arith.addf %533, %539 : vector<8x8x4xf32>
    %541 = vector.extract_strided_slice %519 {offsets = [4, 0, 0], sizes = [8, 8, 4], strides = [1, 1, 1]} : vector<14x8x4xf32> to vector<8x8x4xf32>
    %542 = vector.extract_strided_slice %373 {offsets = [19, 0], sizes = [1, 4], strides = [1, 1]} : vector<25x4xf32> to vector<1x4xf32>
    %543 = vector.shape_cast %542 : vector<1x4xf32> to vector<4xf32>
    %544 = vector.shape_cast %543 : vector<4xf32> to vector<1x1x4xf32>
    %545 = vector.broadcast %544 : vector<1x1x4xf32> to vector<8x8x4xf32>
    %546 = arith.mulf %541, %545 : vector<8x8x4xf32>
    %547 = arith.addf %540, %546 : vector<8x8x4xf32>
    %548 = vector.extract_strided_slice %519 {offsets = [5, 0, 0], sizes = [8, 8, 4], strides = [1, 1, 1]} : vector<14x8x4xf32> to vector<8x8x4xf32>
    %549 = vector.extract_strided_slice %373 {offsets = [24, 0], sizes = [1, 4], strides = [1, 1]} : vector<25x4xf32> to vector<1x4xf32>
    %550 = vector.shape_cast %549 : vector<1x4xf32> to vector<4xf32>
    %551 = vector.shape_cast %550 : vector<4xf32> to vector<1x1x4xf32>
    %552 = vector.broadcast %551 : vector<1x1x4xf32> to vector<8x8x4xf32>
    %553 = arith.mulf %548, %552 : vector<8x8x4xf32>
    %554 = arith.addf %547, %553 : vector<8x8x4xf32>
    %555 = vector.shape_cast %372 : vector<4xf32> to vector<1x1x4xf32>
    %556 = vector.broadcast %555 : vector<1x1x4xf32> to vector<8x8x4xf32>
    %557 = arith.addf %554, %556 : vector<8x8x4xf32>
    %558 = vector.shape_cast %557 : vector<8x8x4xf32> to vector<64x4xf32>
    %c2 = arith.constant 2 : index
    %c0_30 = arith.constant 0 : index
    %559 = vector.load %arg5[%c2, %c0_30] : memref<3x4xf32, #tpu.memory_space<vmem>>, vector<1x4xf32>
    %560 = vector.shape_cast %559 : vector<1x4xf32> to vector<4xf32>
    %c0_31 = arith.constant 0 : index
    %c0_32 = arith.constant 0 : index
    %561 = vector.load %arg4[%c0_31, %c0_32] : memref<9x4xf32, #tpu.memory_space<vmem>>, vector<9x4xf32>
    %cst_33 = arith.constant 0.000000e+00 : f32
    %562 = vector.broadcast %cst_33 : f32 to vector<8x8x4xf32>
    %563 = vector.extract_strided_slice %12 {offsets = [0, 2, 0], sizes = [14, 8, 4], strides = [1, 1, 1]} : vector<14x14x4xf32> to vector<14x8x4xf32>
    %564 = vector.extract_strided_slice %563 {offsets = [2, 0, 0], sizes = [8, 8, 4], strides = [1, 1, 1]} : vector<14x8x4xf32> to vector<8x8x4xf32>
    %565 = vector.extract_strided_slice %561 {offsets = [0, 0], sizes = [1, 4], strides = [1, 1]} : vector<9x4xf32> to vector<1x4xf32>
    %566 = vector.shape_cast %565 : vector<1x4xf32> to vector<4xf32>
    %567 = vector.shape_cast %566 : vector<4xf32> to vector<1x1x4xf32>
    %568 = vector.broadcast %567 : vector<1x1x4xf32> to vector<8x8x4xf32>
    %569 = arith.mulf %564, %568 : vector<8x8x4xf32>
    %570 = arith.addf %562, %569 : vector<8x8x4xf32>
    %571 = vector.extract_strided_slice %563 {offsets = [3, 0, 0], sizes = [8, 8, 4], strides = [1, 1, 1]} : vector<14x8x4xf32> to vector<8x8x4xf32>
    %572 = vector.extract_strided_slice %561 {offsets = [3, 0], sizes = [1, 4], strides = [1, 1]} : vector<9x4xf32> to vector<1x4xf32>
    %573 = vector.shape_cast %572 : vector<1x4xf32> to vector<4xf32>
    %574 = vector.shape_cast %573 : vector<4xf32> to vector<1x1x4xf32>
    %575 = vector.broadcast %574 : vector<1x1x4xf32> to vector<8x8x4xf32>
    %576 = arith.mulf %571, %575 : vector<8x8x4xf32>
    %577 = arith.addf %570, %576 : vector<8x8x4xf32>
    %578 = vector.extract_strided_slice %563 {offsets = [4, 0, 0], sizes = [8, 8, 4], strides = [1, 1, 1]} : vector<14x8x4xf32> to vector<8x8x4xf32>
    %579 = vector.extract_strided_slice %561 {offsets = [6, 0], sizes = [1, 4], strides = [1, 1]} : vector<9x4xf32> to vector<1x4xf32>
    %580 = vector.shape_cast %579 : vector<1x4xf32> to vector<4xf32>
    %581 = vector.shape_cast %580 : vector<4xf32> to vector<1x1x4xf32>
    %582 = vector.broadcast %581 : vector<1x1x4xf32> to vector<8x8x4xf32>
    %583 = arith.mulf %578, %582 : vector<8x8x4xf32>
    %584 = arith.addf %577, %583 : vector<8x8x4xf32>
    %585 = vector.extract_strided_slice %12 {offsets = [0, 3, 0], sizes = [14, 8, 4], strides = [1, 1, 1]} : vector<14x14x4xf32> to vector<14x8x4xf32>
    %586 = vector.extract_strided_slice %585 {offsets = [2, 0, 0], sizes = [8, 8, 4], strides = [1, 1, 1]} : vector<14x8x4xf32> to vector<8x8x4xf32>
    %587 = vector.extract_strided_slice %561 {offsets = [1, 0], sizes = [1, 4], strides = [1, 1]} : vector<9x4xf32> to vector<1x4xf32>
    %588 = vector.shape_cast %587 : vector<1x4xf32> to vector<4xf32>
    %589 = vector.shape_cast %588 : vector<4xf32> to vector<1x1x4xf32>
    %590 = vector.broadcast %589 : vector<1x1x4xf32> to vector<8x8x4xf32>
    %591 = arith.mulf %586, %590 : vector<8x8x4xf32>
    %592 = arith.addf %584, %591 : vector<8x8x4xf32>
    %593 = vector.extract_strided_slice %585 {offsets = [3, 0, 0], sizes = [8, 8, 4], strides = [1, 1, 1]} : vector<14x8x4xf32> to vector<8x8x4xf32>
    %594 = vector.extract_strided_slice %561 {offsets = [4, 0], sizes = [1, 4], strides = [1, 1]} : vector<9x4xf32> to vector<1x4xf32>
    %595 = vector.shape_cast %594 : vector<1x4xf32> to vector<4xf32>
    %596 = vector.shape_cast %595 : vector<4xf32> to vector<1x1x4xf32>
    %597 = vector.broadcast %596 : vector<1x1x4xf32> to vector<8x8x4xf32>
    %598 = arith.mulf %593, %597 : vector<8x8x4xf32>
    %599 = arith.addf %592, %598 : vector<8x8x4xf32>
    %600 = vector.extract_strided_slice %585 {offsets = [4, 0, 0], sizes = [8, 8, 4], strides = [1, 1, 1]} : vector<14x8x4xf32> to vector<8x8x4xf32>
    %601 = vector.extract_strided_slice %561 {offsets = [7, 0], sizes = [1, 4], strides = [1, 1]} : vector<9x4xf32> to vector<1x4xf32>
    %602 = vector.shape_cast %601 : vector<1x4xf32> to vector<4xf32>
    %603 = vector.shape_cast %602 : vector<4xf32> to vector<1x1x4xf32>
    %604 = vector.broadcast %603 : vector<1x1x4xf32> to vector<8x8x4xf32>
    %605 = arith.mulf %600, %604 : vector<8x8x4xf32>
    %606 = arith.addf %599, %605 : vector<8x8x4xf32>
    %607 = vector.extract_strided_slice %12 {offsets = [0, 4, 0], sizes = [14, 8, 4], strides = [1, 1, 1]} : vector<14x14x4xf32> to vector<14x8x4xf32>
    %608 = vector.extract_strided_slice %607 {offsets = [2, 0, 0], sizes = [8, 8, 4], strides = [1, 1, 1]} : vector<14x8x4xf32> to vector<8x8x4xf32>
    %609 = vector.extract_strided_slice %561 {offsets = [2, 0], sizes = [1, 4], strides = [1, 1]} : vector<9x4xf32> to vector<1x4xf32>
    %610 = vector.shape_cast %609 : vector<1x4xf32> to vector<4xf32>
    %611 = vector.shape_cast %610 : vector<4xf32> to vector<1x1x4xf32>
    %612 = vector.broadcast %611 : vector<1x1x4xf32> to vector<8x8x4xf32>
    %613 = arith.mulf %608, %612 : vector<8x8x4xf32>
    %614 = arith.addf %606, %613 : vector<8x8x4xf32>
    %615 = vector.extract_strided_slice %607 {offsets = [3, 0, 0], sizes = [8, 8, 4], strides = [1, 1, 1]} : vector<14x8x4xf32> to vector<8x8x4xf32>
    %616 = vector.extract_strided_slice %561 {offsets = [5, 0], sizes = [1, 4], strides = [1, 1]} : vector<9x4xf32> to vector<1x4xf32>
    %617 = vector.shape_cast %616 : vector<1x4xf32> to vector<4xf32>
    %618 = vector.shape_cast %617 : vector<4xf32> to vector<1x1x4xf32>
    %619 = vector.broadcast %618 : vector<1x1x4xf32> to vector<8x8x4xf32>
    %620 = arith.mulf %615, %619 : vector<8x8x4xf32>
    %621 = arith.addf %614, %620 : vector<8x8x4xf32>
    %622 = vector.extract_strided_slice %607 {offsets = [4, 0, 0], sizes = [8, 8, 4], strides = [1, 1, 1]} : vector<14x8x4xf32> to vector<8x8x4xf32>
    %623 = vector.extract_strided_slice %561 {offsets = [8, 0], sizes = [1, 4], strides = [1, 1]} : vector<9x4xf32> to vector<1x4xf32>
    %624 = vector.shape_cast %623 : vector<1x4xf32> to vector<4xf32>
    %625 = vector.shape_cast %624 : vector<4xf32> to vector<1x1x4xf32>
    %626 = vector.broadcast %625 : vector<1x1x4xf32> to vector<8x8x4xf32>
    %627 = arith.mulf %622, %626 : vector<8x8x4xf32>
    %628 = arith.addf %621, %627 : vector<8x8x4xf32>
    %629 = vector.shape_cast %560 : vector<4xf32> to vector<1x1x4xf32>
    %630 = vector.broadcast %629 : vector<1x1x4xf32> to vector<8x8x4xf32>
    %631 = arith.addf %628, %630 : vector<8x8x4xf32>
    %632 = vector.shape_cast %631 : vector<8x8x4xf32> to vector<64x4xf32>
    %633 = tpu.concatenate %370, %558, %632 in 1 : vector<64x4xf32>, vector<64x4xf32>, vector<64x4xf32> -> vector<64x12xf32>
    %c0_34 = arith.constant 0 : index
    %c0_35 = arith.constant 0 : index
    %634 = vector.load %arg6[%c0_34, %c0_35] : memref<64x64xf32, #tpu.memory_space<vmem>>, vector<64x64xf32>
    %cst_36 = arith.constant dense<0.000000e+00> : vector<64x12xf32>
    %635 = tpu.matmul %634, %633, %cst_36 {dimension_numbers = #tpu.dot_dimension_numbers<[1], [0], [0], [1], [0, 0, 1, 1], [], []>} : vector<64x64xf32>, vector<64x12xf32>, vector<64x12xf32> -> vector<64x12xf32>
    %636 = vector.extract_strided_slice %635 {offsets = [0, 0], sizes = [32, 12], strides = [1, 1]} : vector<64x12xf32> to vector<32x12xf32>
    %637 = vector.extract_strided_slice %635 {offsets = [32, 0], sizes = [32, 12], strides = [1, 1]} : vector<64x12xf32> to vector<32x12xf32>
    %638 = vector.shape_cast %636 : vector<32x12xf32> to vector<32x1x12xf32>
    %639 = vector.shape_cast %637 : vector<32x12xf32> to vector<32x1x12xf32>
    %640 = tpu.concatenate %638, %639 in 1 : vector<32x1x12xf32>, vector<32x1x12xf32> -> vector<32x2x12xf32>
    %c0_37 = arith.constant 0 : index
    %c0_38 = arith.constant 0 : index
    %c0_39 = arith.constant 0 : index
    %641 = vector.load %arg8[%c0_37, %c0_38, %c0_39] : memref<32x12x4xf32, #tpu.memory_space<vmem>>, vector<32x12x4xf32>
    "tpu.trace_start"() <{level = 10 : i32, message = "mri,mio->mro"}> : () -> ()
    %cst_40 = arith.constant dense<0.000000e+00> : vector<32x2x4xf32>
    %642 = tpu.matmul %640, %641, %cst_40 {dimension_numbers = #tpu.dot_dimension_numbers<[2], [1], [1], [2], [0, 0, 0, 1, 1, 2], [0], [0]>} : vector<32x2x12xf32>, vector<32x12x4xf32>, vector<32x2x4xf32> -> vector<32x2x4xf32>
    "tpu.trace_stop"() : () -> ()
    %c0_41 = arith.constant 0 : index
    %c0_42 = arith.constant 0 : index
    %c0_43 = arith.constant 0 : index
    %643 = vector.load %arg9[%c0_41, %c0_42, %c0_43] : memref<32x12x4xf32, #tpu.memory_space<vmem>>, vector<32x12x4xf32>
    "tpu.trace_start"() <{level = 10 : i32, message = "mri,mio->mro"}> : () -> ()
    %cst_44 = arith.constant dense<0.000000e+00> : vector<32x2x4xf32>
    %644 = tpu.matmul %640, %643, %cst_44 {dimension_numbers = #tpu.dot_dimension_numbers<[2], [1], [1], [2], [0, 0, 0, 1, 1, 2], [0], [0]>} : vector<32x2x12xf32>, vector<32x12x4xf32>, vector<32x2x4xf32> -> vector<32x2x4xf32>
    "tpu.trace_stop"() : () -> ()
    %645 = vector.extract_strided_slice %642 {offsets = [0, 0, 0], sizes = [32, 1, 4], strides = [1, 1, 1]} : vector<32x2x4xf32> to vector<32x1x4xf32>
    %646 = vector.shape_cast %645 : vector<32x1x4xf32> to vector<32x4xf32>
    %647 = vector.extract_strided_slice %644 {offsets = [0, 1, 0], sizes = [32, 1, 4], strides = [1, 1, 1]} : vector<32x2x4xf32> to vector<32x1x4xf32>
    %648 = vector.shape_cast %647 : vector<32x1x4xf32> to vector<32x4xf32>
    %649 = arith.subf %646, %648 : vector<32x4xf32>
    %650 = vector.extract_strided_slice %644 {offsets = [0, 0, 0], sizes = [32, 1, 4], strides = [1, 1, 1]} : vector<32x2x4xf32> to vector<32x1x4xf32>
    %651 = vector.shape_cast %650 : vector<32x1x4xf32> to vector<32x4xf32>
    %652 = vector.extract_strided_slice %642 {offsets = [0, 1, 0], sizes = [32, 1, 4], strides = [1, 1, 1]} : vector<32x2x4xf32> to vector<32x1x4xf32>
    %653 = vector.shape_cast %652 : vector<32x1x4xf32> to vector<32x4xf32>
    %654 = arith.addf %651, %653 : vector<32x4xf32>
    %655 = tpu.concatenate %649, %654 in 0 : vector<32x4xf32>, vector<32x4xf32> -> vector<64x4xf32>
    %c0_45 = arith.constant 0 : index
    %c0_46 = arith.constant 0 : index
    %656 = vector.load %arg7[%c0_45, %c0_46] : memref<64x64xf32, #tpu.memory_space<vmem>>, vector<64x64xf32>
    %cst_47 = arith.constant dense<0.000000e+00> : vector<64x4xf32>
    %657 = tpu.matmul %656, %655, %cst_47 {dimension_numbers = #tpu.dot_dimension_numbers<[1], [0], [0], [1], [0, 0, 1, 1], [], []>} : vector<64x64xf32>, vector<64x4xf32>, vector<64x4xf32> -> vector<64x4xf32>
    %658 = arith.addf %1, %657 : vector<64x4xf32>
    %c0_48 = arith.constant 0 : index
    %c0_49 = arith.constant 0 : index
    %c0_50 = arith.constant 0 : index
    %659 = vector.load %arg10[%c0_48, %c0_49, %c0_50] : memref<1x64x4xf32, #tpu.memory_space<vmem>>, vector<1x64x4xf32>
    %660 = vector.shape_cast %659 : vector<1x64x4xf32> to vector<64x4xf32>
    %661 = vector.shape_cast %658 : vector<64x4xf32> to vector<1x64x4xf32>
    tpu.vector_store %arg10[%c0_48, %c0_49, %c0_50], %661 {strides = array<i32>} : memref<1x64x4xf32, #tpu.memory_space<vmem>>, vector<1x64x4xf32>,
    return
  }
  func.func @transform_0(%arg0: i32) -> (i32, i32, i32) {
    %c0_i32 = arith.constant 0 : i32
    %c0_i32_0 = arith.constant 0 : i32
    %c0_i32_1 = arith.constant 0 : i32
    return %arg0, %c0_i32, %c0_i32_0 : i32, i32, i32
  }
  func.func @transform_1(%arg0: i32) -> (i32, i32) {
    %c0_i32 = arith.constant 0 : i32
    %c0_i32_0 = arith.constant 0 : i32
    %c0_i32_1 = arith.constant 0 : i32
    return %c0_i32, %c0_i32_0 : i32, i32
  }
  func.func @transform_2(%arg0: i32) -> (i32, i32) {
    %c0_i32 = arith.constant 0 : i32
    %c0_i32_0 = arith.constant 0 : i32
    %c0_i32_1 = arith.constant 0 : i32
    return %c0_i32, %c0_i32_0 : i32, i32
  }
  func.func @transform_3(%arg0: i32) -> (i32, i32) {
    %c0_i32 = arith.constant 0 : i32
    %c0_i32_0 = arith.constant 0 : i32
    %c0_i32_1 = arith.constant 0 : i32
    return %c0_i32, %c0_i32_0 : i32, i32
  }
  func.func @transform_4(%arg0: i32) -> (i32, i32) {
    %c0_i32 = arith.constant 0 : i32
    %c0_i32_0 = arith.constant 0 : i32
    %c0_i32_1 = arith.constant 0 : i32
    return %c0_i32, %c0_i32_0 : i32, i32
  }
  func.func @transform_5(%arg0: i32) -> (i32, i32) {
    %c0_i32 = arith.constant 0 : i32
    %c0_i32_0 = arith.constant 0 : i32
    %c0_i32_1 = arith.constant 0 : i32
    return %c0_i32, %c0_i32_0 : i32, i32
  }
  func.func @transform_6(%arg0: i32) -> (i32, i32) {
    %c0_i32 = arith.constant 0 : i32
    %c0_i32_0 = arith.constant 0 : i32
    %c0_i32_1 = arith.constant 0 : i32
    return %c0_i32, %c0_i32_0 : i32, i32
  }
  func.func @transform_7(%arg0: i32) -> (i32, i32, i32) {
    %c0_i32 = arith.constant 0 : i32
    %c0_i32_0 = arith.constant 0 : i32
    %c0_i32_1 = arith.constant 0 : i32
    %c0_i32_2 = arith.constant 0 : i32
    return %c0_i32, %c0_i32_0, %c0_i32_1 : i32, i32, i32
  }
  func.func @transform_8(%arg0: i32) -> (i32, i32, i32) {
    %c0_i32 = arith.constant 0 : i32
    %c0_i32_0 = arith.constant 0 : i32
    %c0_i32_1 = arith.constant 0 : i32
    %c0_i32_2 = arith.constant 0 : i32
    return %c0_i32, %c0_i32_0, %c0_i32_1 : i32, i32, i32
  }
  func.func @transform_9(%arg0: i32) -> (i32, i32, i32) {
    %c0_i32 = arith.constant 0 : i32
    %c0_i32_0 = arith.constant 0 : i32
    %c0_i32_1 = arith.constant 0 : i32
    return %arg0, %c0_i32, %c0_i32_0 : i32, i32, i32
  }
}

</mosaic_0001>

<bundles_post_ra>
// kernel: fftpeg_forward.1
= control target key start
LH: loop header
LB: loop body
LE: loop exit
PB: predicated region body
PF: predicated region fallthrough
CT: control target
= control target key end

     0   :  { %s14367_s30 = smov 0   ;;  %s20354_s0 = inlined_call_operand.vmem [shape: f32[2,64,4], index: 0, kind: input, shape index: {}]   ;;  %s20355_s1 = inlined_call_operand.vmem [shape: f32[49,4], index: 1, kind: input, shape index: {}]   ;;  %s20356_s2 = inlined_call_operand.vmem [shape: f32[25,4], index: 2, kind: input, shape index: {}]   ;;  %s20357_s3 = inlined_call_operand.vmem [shape: f32[9,4], index: 3, kind: input, shape index: {}]   ;;  %s20358_s4 = inlined_call_operand.vmem [shape: f32[3,4], index: 4, kind: input, shape index: {}]   ;;  %s20359_s5 = inlined_call_operand.vmem [shape: f32[64,64], index: 5, kind: input, shape index: {}]   ;;  %s20360_s6 = inlined_call_operand.vmem [shape: f32[64,64], index: 6, kind: input, shape index: {}]   ;;  %s20361_s7 = inlined_call_operand.vmem [shape: f32[32,12,4], index: 7, kind: input, shape index: {}]   ;;  %s20362_s8 = inlined_call_operand.vmem [shape: f32[32,12,4], index: 8, kind: input, shape index: {}]   ;;  %s20363_s9 = inlined_call_operand.vmem [shape: f32[2,64,4], index: 9, kind: output, shape index: {}]  }
   0x1 LB: > { %s12968_s10 = sadd.s32 4294967295, %s14308_s30   ;;  %p12972_p0 = scmp.ge.s32.totalorder %s14308_s30, 1  ;;  %s14308_s30 = sphi %s14367_s30, %s19_s30  }
   0x2   : > { %p287_p1 = scmp.lt.s32.totalorder %s14308_s30, 3 }
   0x4   : > { %p288_p2 = pnand %p12972_p0, %p287_p1 }
   0x6   : > { %291 = sbr.rel (%p288_p2) target bundleno = 1896 (0x768), region = 56 }
   0xd   : > { %p14377_p3 = scmp.lt.s32.totalorder %s12968_s10, 1  ;;  %vm341_vm0 = vcmask 31744   ;;  %vm343_vm1 = vcmask 29696   ;;  %vm356_vm2 = vcmask 26624   ;;  %v20364_v0 = vmov 0.0   ;;  %v14473_v3 = vld [vmem:[%s20356_s2] sm:$0xff] }
   0xe   : > { %345 = vst.msk [vmem:[#allocation2 + $0x10] sm:$0xff] %vm341_vm0, %v20364_v0  ;;  %347 = vst.msk [vmem:[#allocation2 + $0x20] sm:$0xff] %vm341_vm0, %v20364_v0  ;;  %v430_v1 = vlaneseq  ;;  %v14497_v8 = vld [vmem:[%s20356_s2 + $0x8] sm:$0xff]  ;;  %v14502_v9 = vld [vmem:[%s20356_s2 + $0x10] sm:$0xff]  ;;  %vm606_vm3 = vcmask 1046528   ;;  %vm1139_vm4 = vcmask 1045504  }
   0xf   : > { %346 = vst.msk [vmem:[#allocation2 + $0x18] sm:$0x3f] %vm343_vm1, %v20364_v0  ;;  %348 = vst.msk [vmem:[#allocation2 + $0x28] sm:$0x3f] %vm343_vm1, %v20364_v0  ;;  %s21018_s10 = smov (!%p14377_p3, %s12968_s10), 1  ;;  %vm1672_vm5 = vcmask 1044480  }
  0x10   : > { %351 = vst.msk [vmem:[#allocation2 + $0xb8] sm:$0x3f] %vm343_vm1, %v20364_v0  ;;  %344 = vst.msk [vmem:[#allocation2 + $0x8] sm:$0x3f] %vm343_vm1, %v20364_v0  ;;  %v14467_v2 = vshrl.u32 %v430_v1, 7  ;;  %s13129_s12 = sshll.u32 %s21018_s10, 6 }
  0x11   : > { %360 = vst.msk [vmem:[#allocation2 + $0x30] sm:$0x7] %vm356_vm2, %v20364_v0  ;;  %361 = vst.msk [vmem:[#allocation2 + $0x40] sm:$0x7] %vm356_vm2, %v20364_v0  ;;  %s14480_s17 = scalar_lea.vmem %s20354_s0, %s13129_s12  ;;  %vm2205_vm6 = vcmask 1043456   ;;  %s14311_s26 = smov 4  }
  0x12   : > { %362 = vst.msk [vmem:[#allocation2 + $0x50] sm:$0x7] %vm356_vm2, %v20364_v0  ;;  %363 = vst.msk [vmem:[#allocation2 + $0x60] sm:$0x7] %vm356_vm2, %v20364_v0  ;;  %v14483_v4 = vsub.s32 0, %v14467_v2  ;;  %v14486_v5 = vsub.s32 7, %v14467_v2 }
  0x13   : > { %364 = vst.msk [vmem:[#allocation2 + $0x70] sm:$0x7] %vm356_vm2, %v20364_v0  ;;  %365 = vst.msk [vmem:[#allocation2 + $0x80] sm:$0x7] %vm356_vm2, %v20364_v0  ;;  %v14489_v6 = vsub.s32 6, %v14467_v2  ;;  %v14492_v7 = vsub.s32 5, %v14467_v2 }
  0x14   : > { %366 = vst.msk [vmem:[#allocation2 + $0x90] sm:$0x7] %vm356_vm2, %v20364_v0  ;;  %374 = vst.msk [vmem:[#allocation2 + $0x3b] sm:$0x7] %vm356_vm2, %v20364_v0  ;;  %v14505_v10 = vld [vmem:[%s14480_s17] sm:$0xff]  ;;  %v14508_v11 = vld [vmem:[%s14480_s17 + $0x8] sm:$0xff]  ;;  %v14542_v20 = vrot.slane %v14473_v3, %v14483_v4  ;;  %v14550_v22 = vrot.slane %v14497_v8, %v14486_v5  ;;  %v14591_v32 = vrot.slane %v14502_v9, %v14483_v4 }
  0x15   : > { %375 = vst.msk [vmem:[#allocation2 + $0x4b] sm:$0x7] %vm356_vm2, %v20364_v0  ;;  %376 = vst.msk [vmem:[#allocation2 + $0x5b] sm:$0x7] %vm356_vm2, %v20364_v0  ;;  %v14511_v12 = vld [vmem:[%s14480_s17 + $0x10] sm:$0xff]  ;;  %v14514_v13 = vsub.s32 4, %v14467_v2  ;;  %v14546_v21 = vrot.slane %v14473_v3, %v14492_v7  ;;  %v14571_v26 = vrot.slane %v14473_v3, %v14489_v6  ;;  %v14595_v33 = vrot.slane %v14502_v9, %v14492_v7 }
  0x16   : > { %377 = vst.msk [vmem:[#allocation2 + $0x6b] sm:$0x7] %vm356_vm2, %v20364_v0  ;;  %378 = vst.msk [vmem:[#allocation2 + $0x7b] sm:$0x7] %vm356_vm2, %v20364_v0  ;;  %v14517_v14 = vsub.s32 3, %v14467_v2  ;;  %v14520_v15 = vsub.s32 2, %v14467_v2 }
  0x17   : > { %379 = vst.msk [vmem:[#allocation2 + $0x8b] sm:$0x7] %vm356_vm2, %v20364_v0  ;;  %380 = vst.msk [vmem:[#allocation2 + $0x9b] sm:$0x7] %vm356_vm2, %v20364_v0  ;;  %v14523_v16 = vld [vmem:[%s14480_s17 + $0x18] sm:$0xff]  ;;  %v14526_v17 = vld [vmem:[%s14480_s17 + $0x20] sm:$0xff]  ;;  %v14567_v25 = vrot.slane %v14502_v9, %v14514_v13 }
  0x18   : > { %342 = vst.msk [vmem:[#allocation2] sm:$0xff] %vm341_vm0, %v20364_v0  ;;  %350 = vst.msk [vmem:[#allocation2 + $0xb0] sm:$0xff] %vm341_vm0, %v20364_v0  ;;  %v14529_v18 = vld [vmem:[%s14480_s17 + $0x28] sm:$0xff]  ;;  %v14538_v19 = vsub.s32 1, %v14467_v2  ;;  %v14553_v23 = vld [vmem:[%s14480_s17 + $0x30] sm:$0xff]  ;;  %v14563_v24 = vrot.slane %v14497_v8, %v14520_v15  ;;  %v14575_v27 = vrot.slane %v14497_v8, %v14517_v14  ;;  %v14599_v34 = vrot.slane %v14473_v3, %v14520_v15  ;;  %s14312_s15 = smov 8  }
  0x19   : > { %352 = vst.msk [vmem:[#allocation2 + $0xc0] sm:$0xff] %vm341_vm0, %v20364_v0  ;;  %354 = vst.msk [vmem:[#allocation2 + $0xd0] sm:$0xff] %vm341_vm0, %v20364_v0  ;;  %vm2738_vm7 = vcmask 1042432   ;;  %vm3271_vm8 = vcmask 1041408   ;;  %vm6644_vm9 = vcmask 64512   ;;  %vm6661_vm10 = vcmask 523264  }
  0x1a   : > { %353 = vst.msk [vmem:[#allocation2 + $0xc8] sm:$0x3f] %vm343_vm1, %v20364_v0  ;;  %355 = vst.msk [vmem:[#allocation2 + $0xd8] sm:$0x3f] %vm343_vm1, %v20364_v0  ;;  %v14587_v31 = vrot.slane %v14473_v3, %v14538_v19  ;;  %vm14314_vm11 = vmmov 1   ;;  %vm14315_vm13 = vmmov 0  }
  0x1b   : > { %367 = vst.msk [vmem:[#allocation2 + $0xa0] sm:$0x7] %vm356_vm2, %v20364_v0  ;;  %381 = vst.msk [vmem:[#allocation2 + $0xab] sm:$0x7] %vm356_vm2, %v20364_v0  ;;  %vm7383_vm14 = vcmask 1040384   ;;  %vm7480_vm15 = vcmask 97280  }
  0x1c   : > { %358 = vst.msk [vmem:[#allocation2 + $0x10] sm:$0x7] %vm356_vm2, %v20364_v0  ;;  %359 = vst.msk [vmem:[#allocation2 + $0x20] sm:$0x7] %vm356_vm2, %v20364_v0  ;;  %vm12602_vm1 = vcmask 1041409  }
  0x1d   : > { %372 = vst.msk [vmem:[#allocation2 + $0x1b] sm:$0x7] %vm356_vm2, %v20364_v0  ;;  %373 = vst.msk [vmem:[#allocation2 + $0x2b] sm:$0x7] %vm356_vm2, %v20364_v0 }
  0x1e   : > { %382 = vst.msk [vmem:[#allocation2 + $0xbb] sm:$0x7] %vm356_vm2, %v20364_v0  ;;  %357 = vst.msk [vmem:[#allocation2] sm:$0x7] %vm356_vm2, %v20364_v0 }
  0x1f   : > { %368 = vst.msk [vmem:[#allocation2 + $0xb0] sm:$0x7] %vm356_vm2, %v20364_v0  ;;  %369 = vst.msk [vmem:[#allocation2 + $0xc0] sm:$0x7] %vm356_vm2, %v20364_v0 }
  0x20   : > { %370 = vst.msk [vmem:[#allocation2 + $0xd0] sm:$0x7] %vm356_vm2, %v20364_v0  ;;  %371 = vst.msk [vmem:[#allocation2 + $0xb] sm:$0x7] %vm356_vm2, %v20364_v0 }
  0x21   : > { %383 = vst.msk [vmem:[#allocation2 + $0xcb] sm:$0x7] %vm356_vm2, %v20364_v0  ;;  %384 = vst.msk [vmem:[#allocation2 + $0xdb] sm:$0x7] %vm356_vm2, %v20364_v0  ;;  %vm12605_vm2 = vcmask 1042434  }
  0x22   : > { %20568 = vst [vmem:[#allocation3_spill] sm:$0xff] %v14467_v2  ;;  %20569 = vst [vmem:[#allocation4_spill] sm:$0xff] %v14483_v4 }
  0x23   : > { %20570 = vst [vmem:[#allocation5_spill] sm:$0xff] %v14486_v5  ;;  %20571 = vst [vmem:[#allocation6_spill] sm:$0xff] %v14489_v6  ;;  %v14579_v28 = vld [vmem:[#allocation2 + $0x10] sm:$0xff]  ;;  %v14583_v30 = vld [vmem:[#allocation2 + $0x20] sm:$0xff] }
  0x24   : > { %20572 = vst [vmem:[#allocation7_spill] sm:$0xff] %v14492_v7  ;;  %20573 = vst [vmem:[#allocation8_spill] sm:$0xff] %v14505_v10  ;;  %v14581_v29 = vld [vmem:[#allocation2 + $0x18] sm:$0x3f]  ;;  %v14601_v35 = vld [vmem:[#allocation2 + $0x28] sm:$0x3f]  ;;  %v3789_v36 = vmul.f32 %v14542_v20, %v14579_v28  ;;  %v3791_v38 = vmul.f32 %v14542_v20, %v14583_v30  ;;  %v3825_v39 = vmul.f32 %v14546_v21, %v14583_v30 }
  0x25   : > { %20574 = vst [vmem:[#allocation9_spill] sm:$0xff] %v14508_v11  ;;  %20575 = vst [vmem:[#allocation10_spill] sm:$0xff] %v14511_v12  ;;  %v3790_v37 = vmul.f32 %v14542_v20, %v14581_v29  ;;  %v3792_v40 = vmul.f32 %v14542_v20, %v14601_v35  ;;  %v3826_v41 = vmul.f32 %v14546_v21, %v14601_v35 }
  0x26   : > { %20576 = vst [vmem:[#allocation11_spill] sm:$0xff] %v14514_v13  ;;  %20577 = vst [vmem:[#allocation12_spill] sm:$0xff] %v14517_v14  ;;  %v3969_v42 = vmul.f32 %v14587_v31, %v14579_v28  ;;  %v3970_v43 = vmul.f32 %v14587_v31, %v14581_v29  ;;  %v3841_v44 = vadd.f32 %v3825_v39, %v3789_v36 }
  0x27   : > { %20578 = vst [vmem:[#allocation13_spill] sm:$0xff] %v14520_v15  ;;  %20579 = vst [vmem:[#allocation14_spill] sm:$0xff] %v14523_v16  ;;  %v3971_v45 = vmul.f32 %v14587_v31, %v14583_v30  ;;  %v3972_v46 = vmul.f32 %v14587_v31, %v14601_v35  ;;  %v4061_v47 = vmul.f32 %v14571_v26, %v14583_v30 }
  0x28   : > { %20580 = vst [vmem:[#allocation15_spill] sm:$0xff] %v14526_v17  ;;  %20581 = vst [vmem:[#allocation16_spill] sm:$0xff] %v14529_v18  ;;  %v3842_v48 = vadd.f32 %v3826_v41, %v3790_v37  ;;  %v4001_v49 = vrot.slane %v3969_v42, 1  ;;  %v4002_v50 = vrot.slane %v3970_v43, 1  ;;  %v4062_v51 = vmul.f32 %v14571_v26, %v14601_v35 }
  0x29   : > { %386 = vst.msk [vmem:[#allocation2 + $0x33] sm:$0xff] %vm341_vm0, %v14505_v10  ;;  %387 = vst.msk [vmem:[#allocation2 + $0x43] sm:$0xff] %vm341_vm0, %v14508_v11  ;;  %v4004_v55 = vrot.slane %v3971_v45, 1  ;;  %v4005_v56 = vrot.slane %v3972_v46, 1  ;;  %v14635_v57 = vmul.f32 %v14599_v34, %v14579_v28  ;;  %v14639_v58 = vmul.f32 %v14599_v34, %v14581_v29 }
  0x2a   : > { %388 = vst.msk [vmem:[#allocation2 + $0x53] sm:$0xff] %vm341_vm0, %v14511_v12  ;;  %20582 = vst [vmem:[#allocation17_spill] sm:$0xff] %v14538_v19 }
  0x2b   : > { %20583 = vst [vmem:[#allocation18_spill] sm:$0xff] %v14542_v20  ;;  %20584 = vst [vmem:[#allocation19_spill] sm:$0xff] %v14546_v21 }
  0x2c   : > { %20585 = vst [vmem:[#allocation20_spill] sm:$0xff] %v14550_v22  ;;  %20586 = vst [vmem:[#allocation21_spill] sm:$0xff] %v14553_v23 }
  0x2d   : > { %389 = vst.msk [vmem:[#allocation2 + $0x63] sm:$0xff] %vm341_vm0, %v14523_v16  ;;  %390 = vst.msk [vmem:[#allocation2 + $0x73] sm:$0xff] %vm341_vm0, %v14526_v17 }
  0x2e   : > { %391 = vst.msk [vmem:[#allocation2 + $0x83] sm:$0xff] %vm341_vm0, %v14529_v18  ;;  %20587 = vst [vmem:[#allocation22_spill] sm:$0xff] %v14563_v24 }
  0x2f   : > { %20588 = vst [vmem:[#allocation23_spill] sm:$0xff] %v14567_v25  ;;  %392 = vst.msk [vmem:[#allocation2 + $0x93] sm:$0xff] %vm341_vm0, %v14553_v23 }
  0x30   : > { %20589 = vst [vmem:[#allocation24_spill] sm:$0xff] %v14587_v31  ;;  %v14627_v52 = vld [vmem:[#allocation2 + $0x30] sm:$0xff]  ;;  %v14629_v53 = vld [vmem:[#allocation2 + $0x38] sm:$0x3f]  ;;  %v14631_v54 = vld [vmem:[#allocation2 + $0x40] sm:$0xff] }
  0x31   : > { %v14641_v59 = vld [vmem:[#allocation2 + $0x48] sm:$0x3f]  ;;  %v3827_v60 = vmul.f32 %v14546_v21, %v14627_v52  ;;  %v3828_v61 = vmul.f32 %v14546_v21, %v14629_v53  ;;  %v3861_v62 = vmul.f32 %v14563_v24, %v14627_v52  ;;  %v3862_v63 = vmul.f32 %v14563_v24, %v14629_v53  ;;  %v14659_v41 = vld [vmem:[#allocation2 + $0x50] sm:$0xff]  ;;  %v14661_v42 = vld [vmem:[#allocation2 + $0x58] sm:$0x3f] }
  0x32   : > { %v3863_v1 = vmul.f32 %v14563_v24, %v14631_v54  ;;  %v3864_v36 = vmul.f32 %v14563_v24, %v14641_v59  ;;  %v3897_v37 = vmul.f32 %v14550_v22, %v14631_v54  ;;  %v3898_v39 = vmul.f32 %v14550_v22, %v14641_v59  ;;  %vm18789_vm12 = vmpackc.low %vm2205_vm6, %vm14314_vm11 }
  0x33   : > { %v3843_v43 = vadd.f32 %v3827_v60, %v3791_v38  ;;  %v3844_v45 = vadd.f32 %v3828_v61, %v3792_v40  ;;  %v3877_v46 = vadd.f32 %v3861_v62, %v3841_v44  ;;  %v3878_v0 = vadd.f32 %v3862_v63, %v3842_v48 }
  0x34   : > { %v3899_v23 = vmul.f32 %v14550_v22, %v14659_v41  ;;  %v3900_v17 = vmul.f32 %v14550_v22, %v14661_v42  ;;  %v3933_v18 = vmul.f32 %v14567_v25, %v14659_v41  ;;  %v3934_v12 = vmul.f32 %v14567_v25, %v14661_v42  ;;  %v14671_v16 = vld [vmem:[#allocation2 + $0x60] sm:$0xff]  ;;  %v14673_v10 = vld [vmem:[#allocation2 + $0x68] sm:$0x3f] }
  0x35   : > { %v3879_v38 = vadd.f32 %v3863_v1, %v3843_v43  ;;  %v3880_v40 = vadd.f32 %v3864_v36, %v3844_v45  ;;  %v3913_v44 = vadd.f32 %v3897_v37, %v3877_v46  ;;  %v3914_v48 = vadd.f32 %v3898_v39, %v3878_v0 }
  0x36   : > { %v3935_v60 = vmul.f32 %v14567_v25, %v14671_v16  ;;  %v3936_v61 = vmul.f32 %v14567_v25, %v14673_v10  ;;  %v4003_v62 = vsel %vm606_vm3, %v4001_v49, %v4002_v50  ;;  %v4006_v63 = vsel %vm606_vm3, %v4004_v55, %v4005_v56 }
  0x37   : > { %v3915_v11 = vadd.f32 %v3899_v23, %v3879_v38  ;;  %v3916_v2 = vadd.f32 %v3900_v17, %v3880_v40  ;;  %v3949_v31 = vadd.f32 %v3933_v18, %v3913_v44  ;;  %v3950_v22 = vadd.f32 %v3934_v12, %v3914_v48 }
  0x38   : > { %v4063_v1 = vmul.f32 %v14571_v26, %v14627_v52  ;;  %v4064_v0 = vmul.f32 %v14571_v26, %v14629_v53  ;;  %v4093_v36 = vrot.slane %v4061_v47, 1  ;;  %v4094_v37 = vrot.slane %v4062_v51, 1 }
  0x39   : > { %v3951_v39 = vadd.f32 %v3935_v60, %v3915_v11  ;;  %v3952_v43 = vadd.f32 %v3936_v61, %v3916_v2  ;;  %v4041_v45 = vadd.f32 %v4003_v62, %v3949_v31  ;;  %v4042_v46 = vadd.f32 %v4002_v50, %v3950_v22 }
  0x3a   : > { %v4095_v49 = vsel %vm606_vm3, %v4093_v36, %v4094_v37  ;;  %v4096_v25 = vrot.slane %v4063_v1, 1  ;;  %v4097_v55 = vrot.slane %v4064_v0, 1  ;;  %v4153_v17 = vmul.f32 %v14575_v27, %v14627_v52 }
  0x3b   : > { %v4043_v12 = vadd.f32 %v4006_v63, %v3951_v39  ;;  %v4044_v18 = vadd.f32 %v4005_v56, %v3952_v43  ;;  %v4133_v23 = vadd.f32 %v4095_v49, %v4041_v45  ;;  %v4134_v38 = vadd.f32 %v4094_v37, %v4042_v46 }
  0x3c   : > { %v4098_v40 = vsel %vm606_vm3, %v4096_v25, %v4097_v55  ;;  %v4154_v47 = vmul.f32 %v14575_v27, %v14629_v53  ;;  %v4155_v2 = vmul.f32 %v14575_v27, %v14631_v54  ;;  %v4156_v11 = vmul.f32 %v14575_v27, %v14641_v59 }
  0x3d   : > { %v4135_v22 = vadd.f32 %v4098_v40, %v4043_v12  ;;  %v4136_v31 = vadd.f32 %v4097_v55, %v4044_v18  ;;  %v4185_v50 = vrot.slane %v4153_v17, 1  ;;  %v4245_v51 = vmul.f32 %v14591_v32, %v14631_v54 }
  0x3e   : > { %v4186_v56 = vrot.slane %v4154_v47, 1  ;;  %v4188_v44 = vrot.slane %v4155_v2, 1  ;;  %v4189_v48 = vrot.slane %v4156_v11, 1  ;;  %v4246_v25 = vmul.f32 %v14591_v32, %v14641_v59 }
  0x3f   : > { %v4247_v60 = vmul.f32 %v14591_v32, %v14659_v41  ;;  %v4248_v61 = vmul.f32 %v14591_v32, %v14661_v42  ;;  %v4277_v62 = vrot.slane %v4245_v51, 1  ;;  %v4337_v63 = vmul.f32 %v14595_v33, %v14659_v41 }
  0x40   : > { %v4187_v1 = vsel %vm606_vm3, %v4185_v50, %v4186_v56  ;;  %v4190_v0 = vsel %vm606_vm3, %v4188_v44, %v4189_v48  ;;  %v4226_v36 = vadd.f32 %v4186_v56, %v4134_v38  ;;  %v4228_v37 = vadd.f32 %v4189_v48, %v4136_v31 }
  0x41   : > { %v4225_v39 = vadd.f32 %v4187_v1, %v4133_v23  ;;  %v4227_v43 = vadd.f32 %v4190_v0, %v4135_v22  ;;  %v4278_v45 = vrot.slane %v4246_v25, 1  ;;  %v4280_v46 = vrot.slane %v4247_v60, 1 }
  0x42   : > { %v4281_v49 = vrot.slane %v4248_v61, 1  ;;  %v4338_v55 = vmul.f32 %v14595_v33, %v14661_v42  ;;  %v4339_v17 = vmul.f32 %v14595_v33, %v14671_v16  ;;  %v4340_v12 = vmul.f32 %v14595_v33, %v14673_v10 }
  0x43   : > { %v4279_v18 = vsel %vm606_vm3, %v4277_v62, %v4278_v45  ;;  %v4318_v40 = vadd.f32 %v4278_v45, %v4226_v36  ;;  %v4369_v47 = vrot.slane %v4337_v63, 1  ;;  %v4431_v23 = vmul.f32 %v14599_v34, %v14583_v30 }
  0x44   : > { %v4282_v38 = vsel %vm606_vm3, %v4280_v46, %v4281_v49  ;;  %v4317_v2 = vadd.f32 %v4279_v18, %v4225_v39  ;;  %v4320_v11 = vadd.f32 %v4281_v49, %v4228_v37  ;;  %v4370_v22 = vrot.slane %v4338_v55, 1 }
  0x45   : > { %v4319_v31 = vadd.f32 %v4282_v38, %v4227_v43  ;;  %v4372_v50 = vrot.slane %v4339_v17, 1  ;;  %v4373_v51 = vrot.slane %v4340_v12, 1  ;;  %v4432_v56 = vmul.f32 %v14599_v34, %v14601_v35 }
  0x46   : > { %v4371_v44 = vsel %vm606_vm3, %v4369_v47, %v4370_v22  ;;  %v4410_v48 = vadd.f32 %v4370_v22, %v4318_v40  ;;  %v4461_v25 = vrot.slane %v14635_v57, 2  ;;  %v4462_v60 = vrot.slane %v14639_v58, 2 }
  0x47   : > { %v4374_v61 = vsel %vm606_vm3, %v4372_v50, %v4373_v51  ;;  %v4409_v62 = vadd.f32 %v4371_v44, %v4317_v2  ;;  %v4412_v63 = vadd.f32 %v4373_v51, %v4320_v11  ;;  %v4464_v1 = vrot.slane %v4431_v23, 2 }
  0x48   : > { %v4411_v0 = vadd.f32 %v4374_v61, %v4319_v31  ;;  %v4463_v36 = vsel %vm1139_vm4, %v4461_v25, %v4462_v60  ;;  %v4465_v37 = vrot.slane %v4432_v56, 2  ;;  %v4502_v39 = vadd.f32 %v4462_v60, %v4410_v48 }
  0x49   : > { %v4501_v43 = vadd.f32 %v4463_v36, %v4409_v62  ;;  %v14726_v45 = vrot.slane %v14473_v3, %v14486_v5  ;;  %v14730_v57 = vrot.slane %v14497_v8, %v14514_v13  ;;  %v14734_v58 = vrot.slane %v14502_v9, %v14538_v19 }
  0x4a   : > { %v4466_v46 = vsel %vm1139_vm4, %v4464_v1, %v4465_v37  ;;  %v4504_v49 = vadd.f32 %v4465_v37, %v4412_v63  ;;  %v14739_v55 = vrot.slane %v14502_v9, %v14489_v6  ;;  %v14743_v17 = vrot.slane %v14473_v3, %v14517_v14 }
  0x4b   : > { %v4503_v12 = vadd.f32 %v4466_v46, %v4411_v0  ;;  %v4521_v18 = vmul.f32 %v14726_v45, %v14583_v30  ;;  %v4522_v40 = vmul.f32 %v14726_v45, %v14601_v35  ;;  %v4523_v47 = vmul.f32 %v14726_v45, %v14627_v52 }
  0x4c   : > { %v4524_v23 = vmul.f32 %v14726_v45, %v14629_v53  ;;  %v4613_v38 = vmul.f32 %v14730_v57, %v14627_v52  ;;  %v4614_v2 = vmul.f32 %v14730_v57, %v14629_v53  ;;  %v4615_v11 = vmul.f32 %v14730_v57, %v14631_v54 }
  0x4d   : > { %v4553_v22 = vrot.slane %v4521_v18, 2  ;;  %v4554_v31 = vrot.slane %v4522_v40, 2  ;;  %v4556_v50 = vrot.slane %v4523_v47, 2  ;;  %v4616_v51 = vmul.f32 %v14730_v57, %v14641_v59 }
  0x4e   : > { %v4557_v56 = vrot.slane %v4524_v23, 2  ;;  %v4645_v44 = vrot.slane %v4613_v38, 2  ;;  %v4646_v48 = vrot.slane %v4614_v2, 2  ;;  %v4648_v25 = vrot.slane %v4615_v11, 2 }
  0x4f   : > { %v4555_v60 = vsel %vm1139_vm4, %v4553_v22, %v4554_v31  ;;  %v4594_v61 = vadd.f32 %v4554_v31, %v4502_v39  ;;  %v4649_v62 = vrot.slane %v4616_v51, 2  ;;  %v4705_v63 = vmul.f32 %v14734_v58, %v14631_v54 }
  0x50   : > { %v4558_v1 = vsel %vm1139_vm4, %v4556_v50, %v4557_v56  ;;  %v4593_v0 = vadd.f32 %v4555_v60, %v4501_v43  ;;  %v4596_v36 = vadd.f32 %v4557_v56, %v4504_v49  ;;  %v4647_v37 = vsel %vm1139_vm4, %v4645_v44, %v4646_v48 }
  0x51   : > { %v4595_v46 = vadd.f32 %v4558_v1, %v4503_v12  ;;  %v4650_v18 = vsel %vm1139_vm4, %v4648_v25, %v4649_v62  ;;  %v4686_v40 = vadd.f32 %v4646_v48, %v4594_v61  ;;  %v4706_v47 = vmul.f32 %v14734_v58, %v14641_v59 }
  0x52   : > { %v4685_v23 = vadd.f32 %v4647_v37, %v4593_v0  ;;  %v4688_v39 = vadd.f32 %v4649_v62, %v4596_v36  ;;  %v4707_v38 = vmul.f32 %v14734_v58, %v14659_v41  ;;  %v4708_v2 = vmul.f32 %v14734_v58, %v14661_v42 }
  0x53   : > { %v4687_v43 = vadd.f32 %v4650_v18, %v4595_v46  ;;  %v4737_v49 = vrot.slane %v4705_v63, 2  ;;  %v4738_v11 = vrot.slane %v4706_v47, 2  ;;  %v4797_v12 = vmul.f32 %v14739_v55, %v14659_v41 }
  0x54   : > { %v4740_v22 = vrot.slane %v4707_v38, 2  ;;  %v4741_v31 = vrot.slane %v4708_v2, 2  ;;  %v4798_v50 = vmul.f32 %v14739_v55, %v14661_v42  ;;  %v4799_v51 = vmul.f32 %v14739_v55, %v14671_v16 }
  0x55   : > { %v4739_v56 = vsel %vm1139_vm4, %v4737_v49, %v4738_v11  ;;  %v4778_v44 = vadd.f32 %v4738_v11, %v4686_v40  ;;  %v4800_v48 = vmul.f32 %v14739_v55, %v14673_v10  ;;  %v4829_v25 = vrot.slane %v4797_v12, 2 }
  0x56   : > { %v4742_v60 = vsel %vm1139_vm4, %v4740_v22, %v4741_v31  ;;  %v4777_v61 = vadd.f32 %v4739_v56, %v4685_v23  ;;  %v4780_v62 = vadd.f32 %v4741_v31, %v4688_v39  ;;  %v4830_v63 = vrot.slane %v4798_v50, 2 }
  0x57   : > { %v4779_v1 = vadd.f32 %v4742_v60, %v4687_v43  ;;  %v4832_v0 = vrot.slane %v4799_v51, 2  ;;  %v4833_v36 = vrot.slane %v4800_v48, 2  ;;  %v4889_v37 = vmul.f32 %v14743_v17, %v14579_v28 }
  0x58   : > { %v4831_v46 = vsel %vm1139_vm4, %v4829_v25, %v4830_v63  ;;  %v4870_v18 = vadd.f32 %v4830_v63, %v4778_v44  ;;  %v4890_v40 = vmul.f32 %v14743_v17, %v14581_v29  ;;  %v4891_v47 = vmul.f32 %v14743_v17, %v14583_v30 }
  0x59   : > { %v4834_v38 = vsel %vm1139_vm4, %v4832_v0, %v4833_v36  ;;  %v4869_v23 = vadd.f32 %v4831_v46, %v4777_v61  ;;  %v4872_v39 = vadd.f32 %v4833_v36, %v4780_v62  ;;  %v4892_v2 = vmul.f32 %v14743_v17, %v14601_v35 }
  0x5a   : > { %v4871_v43 = vadd.f32 %v4834_v38, %v4779_v1  ;;  %v4921_v49 = vrot.slane %v4889_v37, 3  ;;  %v4922_v11 = vrot.slane %v4890_v40, 3  ;;  %v4924_v12 = vrot.slane %v4891_v47, 3 }
  0x5b   : > { %v4925_v22 = vrot.slane %v4892_v2, 3  ;;  %v14795_v31 = vrot.slane %v14497_v8, %v14483_v4  ;;  %v14799_v50 = vrot.slane %v14497_v8, %v14492_v7  ;;  %v14803_v51 = vrot.slane %v14502_v9, %v14520_v15  ;;  %v14832_v2 = vld [vmem:[%s14480_s17 + $0x38] sm:$0xff]  ;;  %s332_s17 = scalar_lea.vmem %s20363_s9, %s13129_s12 }
  0x5c   : > { %v4923_v56 = vsel %vm1672_vm5, %v4921_v49, %v4922_v11  ;;  %v4962_v44 = vadd.f32 %v4922_v11, %v4870_v18  ;;  %v14808_v48 = vrot.slane %v14502_v9, %v14486_v5  ;;  %v14812_v25 = vrot.slane %v14473_v3, %v14514_v13  ;;  %20590 = vst [vmem:[#allocation25_spill] sm:$0xff] %v14832_v2 }
  0x5d   : > { %v4926_v60 = vsel %vm1672_vm5, %v4924_v12, %v4925_v22  ;;  %v4961_v61 = vadd.f32 %v4923_v56, %v4869_v23  ;;  %v4964_v62 = vadd.f32 %v4925_v22, %v4872_v39  ;;  %v4981_v63 = vmul.f32 %v14795_v31, %v14583_v30  ;;  %393 = vst.msk [vmem:[#allocation2 + $0xa3] sm:$0xff] %vm341_vm0, %v14832_v2 }
  0x5e   : > { %v4963_v1 = vadd.f32 %v4926_v60, %v4871_v43  ;;  %v4982_v0 = vmul.f32 %v14795_v31, %v14601_v35  ;;  %v4983_v36 = vmul.f32 %v14795_v31, %v14627_v52  ;;  %v4984_v37 = vmul.f32 %v14795_v31, %v14629_v53 }
  0x5f   : > { %v5013_v3 = vrot.slane %v4981_v63, 3  ;;  %v5073_v46 = vmul.f32 %v14799_v50, %v14627_v52  ;;  %v5074_v18 = vmul.f32 %v14799_v50, %v14629_v53  ;;  %v5075_v40 = vmul.f32 %v14799_v50, %v14631_v54 }
  0x60   : > { %v5014_v47 = vrot.slane %v4982_v0, 3  ;;  %v5016_v38 = vrot.slane %v4983_v36, 3  ;;  %v5017_v23 = vrot.slane %v4984_v37, 3  ;;  %v5076_v39 = vmul.f32 %v14799_v50, %v14641_v59 }
  0x61   : > { %v5105_v43 = vrot.slane %v5073_v46, 3  ;;  %v5106_v49 = vrot.slane %v5074_v18, 3  ;;  %v5108_v11 = vrot.slane %v5075_v40, 3  ;;  %v5165_v12 = vmul.f32 %v14803_v51, %v14631_v54 }
  0x62   : > { %v5015_v22 = vsel %vm1672_vm5, %v5013_v3, %v5014_v47  ;;  %v5018_v56 = vsel %vm1672_vm5, %v5016_v38, %v5017_v23  ;;  %v5054_v60 = vadd.f32 %v5014_v47, %v4962_v44  ;;  %v5056_v63 = vadd.f32 %v5017_v23, %v4964_v62 }
  0x63   : > { %v5053_v0 = vadd.f32 %v5015_v22, %v4961_v61  ;;  %v5055_v36 = vadd.f32 %v5018_v56, %v4963_v1  ;;  %v5107_v37 = vsel %vm1672_vm5, %v5105_v43, %v5106_v49  ;;  %v5109_v7 = vrot.slane %v5076_v39, 3 }
  0x64   : > { %v5146_v46 = vadd.f32 %v5106_v49, %v5054_v60  ;;  %v5166_v18 = vmul.f32 %v14803_v51, %v14641_v59  ;;  %v5167_v40 = vmul.f32 %v14803_v51, %v14659_v41  ;;  %v5168_v3 = vmul.f32 %v14803_v51, %v14661_v42 }
  0x65   : > { %v5110_v38 = vsel %vm1672_vm5, %v5108_v11, %v5109_v7  ;;  %v5145_v44 = vadd.f32 %v5107_v37, %v5053_v0  ;;  %v5148_v62 = vadd.f32 %v5109_v7, %v5056_v63  ;;  %v5197_v61 = vrot.slane %v5165_v12, 3 }
  0x66   : > { %v5147_v1 = vadd.f32 %v5110_v38, %v5055_v36  ;;  %v5198_v47 = vrot.slane %v5166_v18, 3  ;;  %v5200_v23 = vrot.slane %v5167_v40, 3  ;;  %v5201_v39 = vrot.slane %v5168_v3, 3 }
  0x67   : > { %v5257_v43 = vmul.f32 %v14808_v48, %v14659_v41  ;;  %v5258_v49 = vmul.f32 %v14808_v48, %v14661_v42  ;;  %v5259_v22 = vmul.f32 %v14808_v48, %v14671_v16  ;;  %v5260_v56 = vmul.f32 %v14808_v48, %v14673_v10 }
  0x68   : > { %v5199_v11 = vsel %vm1672_vm5, %v5197_v61, %v5198_v47  ;;  %v5202_v7 = vsel %vm1672_vm5, %v5200_v23, %v5201_v39  ;;  %v5238_v12 = vadd.f32 %v5198_v47, %v5146_v46  ;;  %v5240_v60 = vadd.f32 %v5201_v39, %v5148_v62  ;;  %v14865_v61 = vld [vmem:[%s20356_s2 + $0x18] ss:$0 sm:$0xff] }
  0x69   : > { %v5237_v63 = vadd.f32 %v5199_v11, %v5145_v44  ;;  %v5239_v0 = vadd.f32 %v5202_v7, %v5147_v1  ;;  %v5289_v36 = vrot.slane %v5257_v43, 3  ;;  %v5290_v37 = vrot.slane %v5258_v49, 3 }
  0x6a   : > { %v5292_v18 = vrot.slane %v5259_v22, 3  ;;  %v5293_v40 = vrot.slane %v5260_v56, 3  ;;  %v5349_v3 = vmul.f32 %v14812_v25, %v14579_v28  ;;  %v5350_v38 = vmul.f32 %v14812_v25, %v14581_v29 }
  0x6b   : > { %v5291_v46 = vsel %vm1672_vm5, %v5289_v36, %v5290_v37  ;;  %v5330_v62 = vadd.f32 %v5290_v37, %v5238_v12  ;;  %v5351_v44 = vmul.f32 %v14812_v25, %v14583_v30  ;;  %v5352_v1 = vmul.f32 %v14812_v25, %v14601_v35 }
  0x6c   : > { %v5294_v47 = vsel %vm1672_vm5, %v5292_v18, %v5293_v40  ;;  %v5329_v28 = vadd.f32 %v5291_v46, %v5237_v63  ;;  %v5332_v23 = vadd.f32 %v5293_v40, %v5240_v60  ;;  %v5381_v39 = vrot.slane %v5349_v3, 4 }
  0x6d   : > { %v5331_v29 = vadd.f32 %v5294_v47, %v5239_v0  ;;  %v5382_v43 = vrot.slane %v5350_v38, 4  ;;  %v5384_v49 = vrot.slane %v5351_v44, 4  ;;  %v5385_v22 = vrot.slane %v5352_v1, 4 }
  0x6e   : > { %v14875_v56 = vrot.slane %v14497_v8, %v14538_v19  ;;  %v14879_v11 = vrot.slane %v14497_v8, %v14489_v6  ;;  %v14883_v7 = vrot.slane %v14502_v9, %v14517_v14  ;;  %v5717_v12 = vmul.f32 %v14865_v61, %v14659_v41 }
  0x6f   : > { %v5383_v60 = vsel %vm2205_vm6, %v5381_v39, %v5382_v43  ;;  %v5386_v63 = vsel %vm2205_vm6, %v5384_v49, %v5385_v22  ;;  %v5422_v0 = vadd.f32 %v5382_v43, %v5330_v62  ;;  %v5424_v36 = vadd.f32 %v5385_v22, %v5332_v23 }
  0x70   : > { %v5421_v37 = vadd.f32 %v5383_v60, %v5329_v28  ;;  %v5423_v18 = vadd.f32 %v5386_v63, %v5331_v29  ;;  %v5441_v40 = vmul.f32 %v14875_v56, %v14583_v30  ;;  %v5442_v8 = vmul.f32 %v14875_v56, %v14601_v35 }
  0x71   : > { %v5443_v9 = vmul.f32 %v14875_v56, %v14627_v52  ;;  %v5444_v3 = vmul.f32 %v14875_v56, %v14629_v53  ;;  %v5533_v38 = vmul.f32 %v14879_v11, %v14627_v52  ;;  %v5534_v46 = vmul.f32 %v14879_v11, %v14629_v53 }
  0x72   : > { %v5473_v62 = vrot.slane %v5441_v40, 4  ;;  %v5474_v44 = vrot.slane %v5442_v8, 4  ;;  %v5535_v30 = vmul.f32 %v14879_v11, %v14631_v54  ;;  %v5536_v35 = vmul.f32 %v14879_v11, %v14641_v59 }
  0x73   : > { %v5476_v1 = vrot.slane %v5443_v9, 4  ;;  %v5477_v47 = vrot.slane %v5444_v3, 4  ;;  %v5565_v28 = vrot.slane %v5533_v38, 4  ;;  %v5566_v23 = vrot.slane %v5534_v46, 4 }
  0x74   : > { %v5475_v39 = vsel %vm2205_vm6, %v5473_v62, %v5474_v44  ;;  %v5514_v29 = vadd.f32 %v5474_v44, %v5422_v0  ;;  %v5568_v43 = vrot.slane %v5535_v30, 4  ;;  %v5569_v49 = vrot.slane %v5536_v35, 4 }
  0x75   : > { %v5478_v22 = vsel %vm2205_vm6, %v5476_v1, %v5477_v47  ;;  %v5513_v60 = vadd.f32 %v5475_v39, %v5421_v37  ;;  %v5516_v63 = vadd.f32 %v5477_v47, %v5424_v36  ;;  %v5567_v40 = vsel %vm2205_vm6, %v5565_v28, %v5566_v23 }
  0x76   : > { %v5515_v8 = vadd.f32 %v5478_v22, %v5423_v18  ;;  %v5570_v2 = vsel %vm2205_vm6, %v5568_v43, %v5569_v49  ;;  %v5606_v15 = vadd.f32 %v5566_v23, %v5514_v29  ;;  %v5625_v9 = vmul.f32 %v14883_v7, %v14631_v54 }
  0x77   : > { %v5605_v3 = vadd.f32 %v5567_v40, %v5513_v60  ;;  %v5608_v38 = vadd.f32 %v5569_v49, %v5516_v63  ;;  %v5626_v0 = vmul.f32 %v14883_v7, %v14641_v59  ;;  %v5627_v46 = vmul.f32 %v14883_v7, %v14659_v41  ;;  %v14927_v49 = vld [vmem:[%s20358_s4 + $0x1] ss:$0 sm:$0xff] }
  0x78   : > { %v5607_v62 = vadd.f32 %v5570_v2, %v5515_v8  ;;  %v5628_v36 = vmul.f32 %v14883_v7, %v14661_v42  ;;  %v5657_v37 = vrot.slane %v5625_v9, 4  ;;  %v5718_v18 = vmul.f32 %v14865_v61, %v14661_v42 }
  0x79   : > { %v5658_v44 = vrot.slane %v5626_v0, 4  ;;  %v5660_v30 = vrot.slane %v5627_v46, 4  ;;  %v5719_v35 = vmul.f32 %v14865_v61, %v14671_v16  ;;  %v5720_v1 = vmul.f32 %v14865_v61, %v14673_v10 }
  0x7a   : > { %v5661_v47 = vrot.slane %v5628_v36, 4  ;;  %v5749_v28 = vrot.slane %v5717_v12, 4  ;;  %v5750_v23 = vrot.slane %v5718_v18, 4  ;;  %v3794_v36 = vmul.f32 %v14542_v20, %v14629_v53 }
  0x7b   : > { %v5659_v2 = vsel %vm2205_vm6, %v5657_v37, %v5658_v44  ;;  %v5698_v39 = vadd.f32 %v5658_v44, %v5606_v15  ;;  %v5752_v29 = vrot.slane %v5719_v35, 4  ;;  %v5753_v43 = vrot.slane %v5720_v1, 4 }
  0x7c   : > { %v5662_v22 = vsel %vm2205_vm6, %v5660_v30, %v5661_v47  ;;  %v5697_v60 = vadd.f32 %v5659_v2, %v5605_v3  ;;  %v5700_v63 = vadd.f32 %v5661_v47, %v5608_v38  ;;  %v5751_v40 = vsel %vm2205_vm6, %v5749_v28, %v5750_v23 }
  0x7d   : > { %v5699_v8 = vadd.f32 %v5662_v22, %v5607_v62  ;;  %v5754_v12 = vsel %vm2205_vm6, %v5752_v29, %v5753_v43  ;;  %v5790_v9 = vadd.f32 %v5750_v23, %v5698_v39  ;;  %v3793_v15 = vmul.f32 %v14542_v20, %v14627_v52 }
  0x7e   : > { %v5789_v0 = vadd.f32 %v5751_v40, %v5697_v60  ;;  %v5792_v46 = vadd.f32 %v5753_v43, %v5700_v63  ;;  %v3795_v37 = vmul.f32 %v14542_v20, %v14631_v54  ;;  %v3796_v38 = vmul.f32 %v14542_v20, %v14641_v59  ;;  %v14952_v60 = vld [vmem:[#allocation2 + $0x70] sm:$0xff] }
  0x7f   : > { %v5791_v18 = vadd.f32 %v5754_v12, %v5699_v8  ;;  %v5810_v3 = vadd.f32 %v14927_v49, %v5790_v9  ;;  %v3829_v62 = vmul.f32 %v14546_v21, %v14631_v54  ;;  %v3830_v35 = vmul.f32 %v14546_v21, %v14641_v59  ;;  %v14958_v9 = vld [vmem:[#allocation2 + $0x78] sm:$0x3f] }
  0x80   : > { %v5809_v44 = vadd.f32 %v14927_v49, %v5789_v0  ;;  %v5812_v30 = vadd.f32 %v14927_v49, %v5792_v46  ;;  %v3831_v1 = vmul.f32 %v14546_v21, %v14659_v41  ;;  %v3832_v23 = vmul.f32 %v14546_v21, %v14661_v42  ;;  %v20592_v21 = vld [vmem:[#allocation23_spill] sm:$0xff] }
  0x81   : > { %v5811_v47 = vadd.f32 %v14927_v49, %v5791_v18  ;;  %v5842_v28 = vrot.slane %v5810_v3, 1  ;;  %v3845_v2 = vadd.f32 %v3829_v62, %v3793_v15  ;;  %v3846_v43 = vadd.f32 %v3830_v35, %v3794_v36  ;;  %v20591_v36 = vld [vmem:[#allocation20_spill] sm:$0xff]  ;;  %v14967_v18 = vld [vmem:[#allocation2 + $0x80] sm:$0xff] }
  0x82   : > { %v5841_v39 = vrot.slane %v5809_v44, 1  ;;  %v5845_v29 = vrot.slane %v5812_v30, 1  ;;  %v3847_v22 = vadd.f32 %v3831_v1, %v3795_v37  ;;  %v3848_v40 = vadd.f32 %v3832_v23, %v3796_v38  ;;  %v14969_v3 = vld [vmem:[#allocation2 + $0x88] sm:$0x3f] }
  0x83   : > { %v5844_v63 = vrot.slane %v5811_v47, 1  ;;  %v3865_v8 = vmul.f32 %v14563_v24, %v14659_v41  ;;  %v3866_v12 = vmul.f32 %v14563_v24, %v14661_v42  ;;  %v3867_v15 = vmul.f32 %v14563_v24, %v14671_v16 }
  0x84   : > { %v5843_v0 = vsel %vm606_vm3, %v5841_v39, %v5842_v28  ;;  %v3868_v46 = vmul.f32 %v14563_v24, %v14673_v10  ;;  %v3901_v37 = vmul.f32 %v20591_v36, %v14671_v16  ;;  %v3902_v30 = vmul.f32 %v20591_v36, %v14673_v10 }
  0x85   : > { %v5846_v38 = vsel %vm606_vm3, %v5844_v63, %v5845_v29  ;;  %v3881_v62 = vadd.f32 %v3865_v8, %v3845_v2  ;;  %v3882_v44 = vadd.f32 %v3866_v12, %v3846_v43  ;;  %v3883_v1 = vadd.f32 %v3867_v15, %v3847_v22  ;;  %v20593_v8 = vld [vmem:[#allocation24_spill] sm:$0xff] }
  0x86   : > { %v14162_v35 = vpack.i.bf16 %v5846_v38, %v5843_v0  ;;  %v3884_v47 = vadd.f32 %v3868_v46, %v3848_v40  ;;  %v3903_v28 = vmul.f32 %v20591_v36, %v14952_v60  ;;  %v3904_v23 = vmul.f32 %v20591_v36, %v14958_v9 }
  0x87   : > { %v3917_v39 = vadd.f32 %v3901_v37, %v3881_v62  ;;  %v3918_v24 = vadd.f32 %v3902_v30, %v3882_v44  ;;  %v3937_v20 = vmul.f32 %v20592_v21, %v14952_v60  ;;  %v3938_v29 = vmul.f32 %v20592_v21, %v14958_v9 }
  0x88   : > { %14163 = vrot.lane.b32.xlu0 %v14162_v35, %s14311_s26  ;;  %v3919_v2 = vadd.f32 %v3903_v28, %v3883_v1  ;;  %v3939_v43 = vmul.f32 %v20592_v21, %v14967_v18  ;;  %v3940_v22 = vmul.f32 %v20592_v21, %v14969_v3  ;;  %v3920_v63 = vadd.f32 %v3904_v23, %v3884_v47 }
  0x89   : > { %v3953_v40 = vadd.f32 %v3937_v20, %v3917_v39  ;;  %v3973_v12 = vmul.f32 %v20593_v8, %v14627_v52  ;;  %v3974_v0 = vmul.f32 %v20593_v8, %v14629_v53  ;;  %v3954_v15 = vadd.f32 %v3938_v29, %v3918_v24 }
  0x8a   : > { %v3955_v46 = vadd.f32 %v3939_v43, %v3919_v2  ;;  %v3975_v37 = vmul.f32 %v20593_v8, %v14631_v54  ;;  %v3976_v38 = vmul.f32 %v20593_v8, %v14641_v59  ;;  %v3956_v62 = vadd.f32 %v3940_v22, %v3920_v63 }
  0x8b   : > { %v4007_v44 = vrot.slane %v3973_v12, 1  ;;  %v4008_v30 = vrot.slane %v3974_v0, 1  ;;  %v4065_v20 = vmul.f32 %v14571_v26, %v14631_v54  ;;  %v4066_v47 = vmul.f32 %v14571_v26, %v14641_v59 }
  0x8c   : > { %v4010_v35 = vrot.slane %v3975_v37, 1  ;;  %v4011_v1 = vrot.slane %v3976_v38, 1  ;;  %v4067_v24 = vmul.f32 %v14571_v26, %v14659_v41  ;;  %v4068_v39 = vmul.f32 %v14571_v26, %v14661_v42 }
  0x8d   : > { %v4009_v28 = vsel %vm606_vm3, %v4007_v44, %v4008_v30  ;;  %v4046_v23 = vadd.f32 %v4008_v30, %v3954_v15  ;;  %v4099_v2 = vrot.slane %v4065_v20, 1  ;;  %v4100_v63 = vrot.slane %v4066_v47, 1 }
  0x8e   : > { %v4012_v29 = vsel %vm606_vm3, %v4010_v35, %v4011_v1  ;;  %v4045_v43 = vadd.f32 %v4009_v28, %v3953_v40  ;;  %v4048_v22 = vadd.f32 %v4011_v1, %v3956_v62  ;;  %v4102_v0 = vrot.slane %v4067_v24, 1 }
  0x8f   : > { %v4047_v12 = vadd.f32 %v4012_v29, %v3955_v46  ;;  %v4103_v37 = vrot.slane %v4068_v39, 1  ;;  %v4157_v38 = vmul.f32 %v14575_v27, %v14659_v41  ;;  %v4101_v8 = vsel %vm606_vm3, %v4099_v2, %v4100_v63 }
  0x90   : > { %v4138_v21 = vadd.f32 %v4100_v63, %v4046_v23  ;;  %v4158_v15 = vmul.f32 %v14575_v27, %v14661_v42  ;;  %v4159_v44 = vmul.f32 %v14575_v27, %v14671_v16  ;;  %v4137_v40 = vadd.f32 %v4101_v8, %v4045_v43 }
  0x91   : > { %v4104_v30 = vsel %vm606_vm3, %v4102_v0, %v4103_v37  ;;  %v4140_v62 = vadd.f32 %v4103_v37, %v4048_v22  ;;  %v4160_v46 = vmul.f32 %v14575_v27, %v14673_v10  ;;  %v4191_v35 = vrot.slane %v4157_v38, 1 }
  0x92   : > { %v4139_v20 = vadd.f32 %v4104_v30, %v4047_v12  ;;  %v4192_v1 = vrot.slane %v4158_v15, 1  ;;  %v4194_v47 = vrot.slane %v4159_v44, 1  ;;  %v4249_v28 = vmul.f32 %v14591_v32, %v14671_v16 }
  0x93   : > { %v4195_v24 = vrot.slane %v4160_v46, 1  ;;  %v4250_v23 = vmul.f32 %v14591_v32, %v14673_v10  ;;  %v4251_v39 = vmul.f32 %v14591_v32, %v14952_v60  ;;  %v4252_v29 = vmul.f32 %v14591_v32, %v14958_v9 }
  0x94   : > { %v4193_v8 = vsel %vm606_vm3, %v4191_v35, %v4192_v1  ;;  %v4230_v2 = vadd.f32 %v4192_v1, %v4138_v21  ;;  %v4341_v43 = vmul.f32 %v14595_v33, %v14952_v60  ;;  %v4283_v0 = vrot.slane %v4249_v28, 1 }
  0x95   : > { %v4196_v22 = vsel %vm606_vm3, %v4194_v47, %v4195_v24  ;;  %v4229_v63 = vadd.f32 %v4193_v8, %v4137_v40  ;;  %v4232_v12 = vadd.f32 %v4195_v24, %v4140_v62  ;;  %v4284_v38 = vrot.slane %v4250_v23, 1 }
  0x96   : > { %v4231_v37 = vadd.f32 %v4196_v22, %v4139_v20  ;;  %v4286_v15 = vrot.slane %v4251_v39, 1  ;;  %v4287_v44 = vrot.slane %v4252_v29, 1  ;;  %v4342_v30 = vmul.f32 %v14595_v33, %v14958_v9 }
  0x97   : > { %v4343_v21 = vmul.f32 %v14595_v33, %v14967_v18  ;;  %v4344_v46 = vmul.f32 %v14595_v33, %v14969_v3  ;;  %v4375_v35 = vrot.slane %v4341_v43, 1  ;;  %v4285_v1 = vsel %vm606_vm3, %v4283_v0, %v4284_v38 }
  0x98   : > { %v4288_v40 = vsel %vm606_vm3, %v4286_v15, %v4287_v44  ;;  %v4322_v62 = vadd.f32 %v4284_v38, %v4230_v2  ;;  %v4324_v47 = vadd.f32 %v4287_v44, %v4232_v12  ;;  %v4321_v20 = vadd.f32 %v4285_v1, %v4229_v63 }
  0x99   : > { %v4323_v24 = vadd.f32 %v4288_v40, %v4231_v37  ;;  %v4376_v28 = vrot.slane %v4342_v30, 1  ;;  %v4378_v23 = vrot.slane %v4343_v21, 1  ;;  %v4379_v39 = vrot.slane %v4344_v46, 1 }
  0x9a   : > { %v4433_v8 = vmul.f32 %v14599_v34, %v14627_v52  ;;  %v4434_v29 = vmul.f32 %v14599_v34, %v14629_v53  ;;  %v4435_v43 = vmul.f32 %v14599_v34, %v14631_v54  ;;  %v4436_v2 = vmul.f32 %v14599_v34, %v14641_v59 }
  0x9b   : > { %v4377_v22 = vsel %vm606_vm3, %v4375_v35, %v4376_v28  ;;  %v4414_v0 = vadd.f32 %v4376_v28, %v4322_v62  ;;  %v4525_v63 = vmul.f32 %v14726_v45, %v14631_v54  ;;  %v4380_v12 = vsel %vm606_vm3, %v4378_v23, %v4379_v39 }
  0x9c   : > { %v4413_v37 = vadd.f32 %v4377_v22, %v4321_v20  ;;  %v4416_v38 = vadd.f32 %v4379_v39, %v4324_v47  ;;  %v4467_v15 = vrot.slane %v4433_v8, 2  ;;  %v4415_v44 = vadd.f32 %v4380_v12, %v4323_v24 }
  0x9d   : > { %v4468_v30 = vrot.slane %v4434_v29, 2  ;;  %v4470_v53 = vrot.slane %v4435_v43, 2  ;;  %v4471_v21 = vrot.slane %v4436_v2, 2  ;;  %v4526_v46 = vmul.f32 %v14726_v45, %v14641_v59 }
  0x9e   : > { %v4527_v35 = vmul.f32 %v14726_v45, %v14659_v41  ;;  %v4528_v1 = vmul.f32 %v14726_v45, %v14661_v42  ;;  %v4559_v40 = vrot.slane %v4525_v63, 2  ;;  %v4617_v29 = vmul.f32 %v14730_v57, %v14659_v41 }
  0x9f   : > { %v4469_v54 = vsel %vm1139_vm4, %v4467_v15, %v4468_v30  ;;  %v4472_v62 = vsel %vm1139_vm4, %v4470_v53, %v4471_v21  ;;  %v4506_v47 = vadd.f32 %v4468_v30, %v4414_v0  ;;  %v4508_v20 = vadd.f32 %v4471_v21, %v4416_v38 }
  0xa0   : > { %v4505_v24 = vadd.f32 %v4469_v54, %v4413_v37  ;;  %v4507_v28 = vadd.f32 %v4472_v62, %v4415_v44  ;;  %v4560_v23 = vrot.slane %v4526_v46, 2  ;;  %v4562_v39 = vrot.slane %v4527_v35, 2 }
  0xa1   : > { %v4563_v8 = vrot.slane %v4528_v1, 2  ;;  %v4618_v43 = vmul.f32 %v14730_v57, %v14661_v42  ;;  %v4619_v22 = vmul.f32 %v14730_v57, %v14671_v16  ;;  %v4620_v0 = vmul.f32 %v14730_v57, %v14673_v10 }
  0xa2   : > { %v4561_v2 = vsel %vm1139_vm4, %v4559_v40, %v4560_v23  ;;  %v4598_v63 = vadd.f32 %v4560_v23, %v4506_v47  ;;  %v4709_v12 = vmul.f32 %v14734_v58, %v14671_v16  ;;  %v4651_v41 = vrot.slane %v4617_v29, 2 }
  0xa3   : > { %v4564_v37 = vsel %vm1139_vm4, %v4562_v39, %v4563_v8  ;;  %v4597_v38 = vadd.f32 %v4561_v2, %v4505_v24  ;;  %v4600_v15 = vadd.f32 %v4563_v8, %v4508_v20  ;;  %v4652_v30 = vrot.slane %v4618_v43, 2 }
  0xa4   : > { %v4599_v44 = vadd.f32 %v4564_v37, %v4507_v28  ;;  %v4654_v42 = vrot.slane %v4619_v22, 2  ;;  %v4655_v53 = vrot.slane %v4620_v0, 2  ;;  %v4710_v21 = vmul.f32 %v14734_v58, %v14673_v10 }
  0xa5   : > { %v4711_v46 = vmul.f32 %v14734_v58, %v14952_v60  ;;  %v4712_v35 = vmul.f32 %v14734_v58, %v14958_v9  ;;  %v4743_v1 = vrot.slane %v4709_v12, 2  ;;  %v4653_v16 = vsel %vm1139_vm4, %v4651_v41, %v4652_v30 }
  0xa6   : > { %v4656_v40 = vsel %vm1139_vm4, %v4654_v42, %v4655_v53  ;;  %v4690_v54 = vadd.f32 %v4652_v30, %v4598_v63  ;;  %v4692_v62 = vadd.f32 %v4655_v53, %v4600_v15  ;;  %v4689_v47 = vadd.f32 %v4653_v16, %v4597_v38  ;;  %v15087_v30 = vld [vmem:[#allocation2 + $0x38] sm:$0x3f]  ;;  %v15091_v53 = vld [vmem:[#allocation2 + $0x40] sm:$0xff] }
  0xa7   : > { %v4691_v20 = vadd.f32 %v4656_v40, %v4599_v44  ;;  %v4744_v24 = vrot.slane %v4710_v21, 2  ;;  %v4746_v28 = vrot.slane %v4711_v46, 2  ;;  %v4747_v23 = vrot.slane %v4712_v35, 2 }
  0xa8   : > { %v4801_v10 = vmul.f32 %v14739_v55, %v14952_v60  ;;  %v4802_v39 = vmul.f32 %v14739_v55, %v14958_v9  ;;  %v4803_v8 = vmul.f32 %v14739_v55, %v14967_v18  ;;  %v4804_v22 = vmul.f32 %v14739_v55, %v14969_v3 }
  0xa9   : > { %v4745_v29 = vsel %vm1139_vm4, %v4743_v1, %v4744_v24  ;;  %v4782_v43 = vadd.f32 %v4744_v24, %v4690_v54  ;;  %v4893_v2 = vmul.f32 %v14743_v17, %v14627_v52  ;;  %v4748_v63 = vsel %vm1139_vm4, %v4746_v28, %v4747_v23 }
  0xaa   : > { %v4781_v0 = vadd.f32 %v4745_v29, %v4689_v47  ;;  %v4784_v12 = vadd.f32 %v4747_v23, %v4692_v62  ;;  %v4835_v37 = vrot.slane %v4801_v10, 2  ;;  %v4783_v38 = vadd.f32 %v4748_v63, %v4691_v20  ;;  %v15101_v23 = vld [vmem:[#allocation2 + $0x48] sm:$0x3f]  ;;  %v15105_v10 = vld [vmem:[#allocation2 + $0x50] sm:$0xff] }
  0xab   : > { %v4836_v15 = vrot.slane %v4802_v39, 2  ;;  %v4838_v41 = vrot.slane %v4803_v8, 2  ;;  %v4839_v44 = vrot.slane %v4804_v22, 2  ;;  %v4894_v42 = vmul.f32 %v15087_v30, %v14743_v17 }
  0xac   : > { %v4895_v21 = vmul.f32 %v15091_v53, %v14743_v17  ;;  %v4896_v52 = vmul.f32 %v14743_v17, %v14641_v59  ;;  %v4927_v46 = vrot.slane %v4893_v2, 3  ;;  %v4985_v28 = vmul.f32 %v15091_v53, %v14795_v31 }
  0xad   : > { %v4837_v35 = vsel %vm1139_vm4, %v4835_v37, %v4836_v15  ;;  %v4840_v1 = vsel %vm1139_vm4, %v4838_v41, %v4839_v44  ;;  %v4874_v16 = vadd.f32 %v4836_v15, %v4782_v43  ;;  %v4876_v40 = vadd.f32 %v4839_v44, %v4784_v12  ;;  %v15110_v43 = vld [vmem:[#allocation2 + $0x58] sm:$0x3f] }
  0xae   : > { %v4873_v54 = vadd.f32 %v4837_v35, %v4781_v0  ;;  %v4875_v62 = vadd.f32 %v4840_v1, %v4783_v38  ;;  %v4928_v47 = vrot.slane %v4894_v42, 3  ;;  %v4930_v20 = vrot.slane %v4895_v21, 3  ;;  %v15119_v21 = vld [vmem:[#allocation2 + $0x60] sm:$0xff] }
  0xaf   : > { %v4931_v24 = vrot.slane %v4896_v52, 3  ;;  %v4986_v59 = vmul.f32 %v15101_v23, %v14795_v31  ;;  %v4987_v39 = vmul.f32 %v15105_v10, %v14795_v31  ;;  %v4988_v22 = vmul.f32 %v15110_v43, %v14795_v31 }
  0xb0   : > { %v4929_v8 = vsel %vm1672_vm5, %v4927_v46, %v4928_v47  ;;  %v4966_v29 = vadd.f32 %v4928_v47, %v4874_v16  ;;  %v5077_v2 = vmul.f32 %v15105_v10, %v14799_v50  ;;  %v5019_v37 = vrot.slane %v4985_v28, 3  ;;  %v15123_v46 = vld [vmem:[#allocation2 + $0x68] sm:$0x3f] }
  0xb1   : > { %v4932_v63 = vsel %vm1672_vm5, %v4930_v20, %v4931_v24  ;;  %v4965_v0 = vadd.f32 %v4929_v8, %v4873_v54  ;;  %v4968_v12 = vadd.f32 %v4931_v24, %v4876_v40  ;;  %v5020_v15 = vrot.slane %v4986_v59, 3 }
  0xb2   : > { %v4967_v38 = vadd.f32 %v4932_v63, %v4875_v62  ;;  %v5022_v41 = vrot.slane %v4987_v39, 3  ;;  %v5023_v44 = vrot.slane %v4988_v22, 3  ;;  %v5078_v42 = vmul.f32 %v15110_v43, %v14799_v50 }
  0xb3   : > { %v5079_v52 = vmul.f32 %v15119_v21, %v14799_v50  ;;  %v5080_v35 = vmul.f32 %v15123_v46, %v14799_v50  ;;  %v5111_v1 = vrot.slane %v5077_v2, 3  ;;  %v5021_v16 = vsel %vm1672_vm5, %v5019_v37, %v5020_v15 }
  0xb4   : > { %v5024_v40 = vsel %vm1672_vm5, %v5022_v41, %v5023_v44  ;;  %v5058_v54 = vadd.f32 %v5020_v15, %v4966_v29  ;;  %v5060_v62 = vadd.f32 %v5023_v44, %v4968_v12  ;;  %v5057_v47 = vadd.f32 %v5021_v16, %v4965_v0 }
  0xb5   : > { %v5059_v20 = vadd.f32 %v5024_v40, %v4967_v38  ;;  %v5112_v24 = vrot.slane %v5078_v42, 3  ;;  %v5114_v28 = vrot.slane %v5079_v52, 3  ;;  %v5115_v59 = vrot.slane %v5080_v35, 3 }
  0xb6   : > { %v5169_v39 = vmul.f32 %v15119_v21, %v14803_v51  ;;  %v5170_v8 = vmul.f32 %v15123_v46, %v14803_v51  ;;  %v5171_v22 = vmul.f32 %v14803_v51, %v14952_v60  ;;  %v5172_v29 = vmul.f32 %v14803_v51, %v14958_v9 }
  0xb7   : > { %v5113_v2 = vsel %vm1672_vm5, %v5111_v1, %v5112_v24  ;;  %v5150_v63 = vadd.f32 %v5112_v24, %v5058_v54  ;;  %v5261_v0 = vmul.f32 %v14808_v48, %v14952_v60  ;;  %v5116_v12 = vsel %vm1672_vm5, %v5114_v28, %v5115_v59 }
  0xb8   : > { %v5149_v37 = vadd.f32 %v5113_v2, %v5057_v47  ;;  %v5152_v38 = vadd.f32 %v5115_v59, %v5060_v62  ;;  %v5203_v15 = vrot.slane %v5169_v39, 3  ;;  %v5151_v41 = vadd.f32 %v5116_v12, %v5059_v20 }
  0xb9   : > { %v5204_v44 = vrot.slane %v5170_v8, 3  ;;  %v5206_v42 = vrot.slane %v5171_v22, 3  ;;  %v5207_v52 = vrot.slane %v5172_v29, 3  ;;  %v5262_v35 = vmul.f32 %v14808_v48, %v14958_v9  ;;  %v15149_v22 = vld [vmem:[#allocation2 + $0x30] sm:$0xff] }
  0xba   : > { %v5263_v1 = vmul.f32 %v14808_v48, %v14967_v18  ;;  %v5264_v16 = vmul.f32 %v14808_v48, %v14969_v3  ;;  %v5295_v40 = vrot.slane %v5261_v0, 3  ;;  %v5353_v2 = vmul.f32 %v15149_v22, %v14812_v25 }
  0xbb   : > { %v5205_v54 = vsel %vm1672_vm5, %v5203_v15, %v5204_v44  ;;  %v5208_v47 = vsel %vm1672_vm5, %v5206_v42, %v5207_v52  ;;  %v5242_v62 = vadd.f32 %v5204_v44, %v5150_v63  ;;  %v5244_v24 = vadd.f32 %v5207_v52, %v5152_v38 }
  0xbc   : > { %v5241_v20 = vadd.f32 %v5205_v54, %v5149_v37  ;;  %v5243_v28 = vadd.f32 %v5208_v47, %v5151_v41  ;;  %v5296_v59 = vrot.slane %v5262_v35, 3  ;;  %v5298_v39 = vrot.slane %v5263_v1, 3 }
  0xbd   : > { %v5299_v8 = vrot.slane %v5264_v16, 3  ;;  %v5354_v29 = vmul.f32 %v15087_v30, %v14812_v25  ;;  %v5355_v0 = vmul.f32 %v15091_v53, %v14812_v25  ;;  %v5356_v37 = vmul.f32 %v15101_v23, %v14812_v25 }
  0xbe   : > { %v5297_v12 = vsel %vm1672_vm5, %v5295_v40, %v5296_v59  ;;  %v5334_v63 = vadd.f32 %v5296_v59, %v5242_v62  ;;  %v5445_v38 = vmul.f32 %v15091_v53, %v14875_v56  ;;  %v5387_v42 = vrot.slane %v5353_v2, 4 }
  0xbf   : > { %v5300_v15 = vsel %vm1672_vm5, %v5298_v39, %v5299_v8  ;;  %v5333_v41 = vadd.f32 %v5297_v12, %v5241_v20  ;;  %v5336_v44 = vadd.f32 %v5299_v8, %v5244_v24  ;;  %v5388_v35 = vrot.slane %v5354_v29, 4 }
  0xc0   : > { %v5335_v52 = vadd.f32 %v5300_v15, %v5243_v28  ;;  %v5390_v1 = vrot.slane %v5355_v0, 4  ;;  %v5391_v16 = vrot.slane %v5356_v37, 4  ;;  %v5446_v54 = vmul.f32 %v15101_v23, %v14875_v56 }
  0xc1   : > { %v5447_v40 = vmul.f32 %v15105_v10, %v14875_v56  ;;  %v5448_v47 = vmul.f32 %v15110_v43, %v14875_v56  ;;  %v5479_v62 = vrot.slane %v5445_v38, 4  ;;  %v5389_v59 = vsel %vm2205_vm6, %v5387_v42, %v5388_v35 }
  0xc2   : > { %v5392_v20 = vsel %vm2205_vm6, %v5390_v1, %v5391_v16  ;;  %v5426_v24 = vadd.f32 %v5388_v35, %v5334_v63  ;;  %v5428_v39 = vadd.f32 %v5391_v16, %v5336_v44  ;;  %v5425_v28 = vadd.f32 %v5389_v59, %v5333_v41 }
  0xc3   : > { %v5427_v8 = vadd.f32 %v5392_v20, %v5335_v52  ;;  %v5480_v2 = vrot.slane %v5446_v54, 4  ;;  %v5482_v29 = vrot.slane %v5447_v40, 4  ;;  %v5483_v0 = vrot.slane %v5448_v47, 4 }
  0xc4   : > { %v5537_v12 = vmul.f32 %v15105_v10, %v14879_v11  ;;  %v5538_v37 = vmul.f32 %v15110_v43, %v14879_v11  ;;  %v5539_v38 = vmul.f32 %v15119_v21, %v14879_v11  ;;  %v5540_v63 = vmul.f32 %v15123_v46, %v14879_v11 }
  0xc5   : > { %v5481_v15 = vsel %vm2205_vm6, %v5479_v62, %v5480_v2  ;;  %v5518_v42 = vadd.f32 %v5480_v2, %v5426_v24  ;;  %v5629_v41 = vmul.f32 %v15119_v21, %v14883_v7  ;;  %v5484_v44 = vsel %vm2205_vm6, %v5482_v29, %v5483_v0 }
  0xc6   : > { %v5517_v52 = vadd.f32 %v5481_v15, %v5425_v28  ;;  %v5520_v35 = vadd.f32 %v5483_v0, %v5428_v39  ;;  %v5571_v1 = vrot.slane %v5537_v12, 4  ;;  %v5519_v16 = vadd.f32 %v5484_v44, %v5427_v8  ;;  %v15194_v8 = vld [vmem:[%s20357_s3] sm:$0xff] }
  0xc7   : > { %v5572_v54 = vrot.slane %v5538_v37, 4  ;;  %v5574_v40 = vrot.slane %v5539_v38, 4  ;;  %v5575_v47 = vrot.slane %v5540_v63, 4  ;;  %v5630_v59 = vmul.f32 %v15123_v46, %v14883_v7 }
  0xc8   : > { %v5631_v62 = vmul.f32 %v14883_v7, %v14952_v60  ;;  %v5632_v20 = vmul.f32 %v14883_v7, %v14958_v9  ;;  %v5663_v24 = vrot.slane %v5629_v41, 4  ;;  %v5721_v63 = vmul.f32 %v14865_v61, %v14952_v60 }
  0xc9   : > { %v5573_v2 = vsel %vm2205_vm6, %v5571_v1, %v5572_v54  ;;  %v5576_v28 = vsel %vm2205_vm6, %v5574_v40, %v5575_v47  ;;  %v5610_v39 = vadd.f32 %v5572_v54, %v5518_v42  ;;  %v5612_v29 = vadd.f32 %v5575_v47, %v5520_v35 }
  0xca   : > { %v5609_v0 = vadd.f32 %v5573_v2, %v5517_v52  ;;  %v5611_v12 = vadd.f32 %v5576_v28, %v5519_v16  ;;  %v5664_v37 = vrot.slane %v5630_v59, 4  ;;  %v5666_v38 = vrot.slane %v5631_v62, 4  ;;  %v15214_v28 = vld [vmem:[#allocation2 + $0x28] sm:$0x3f] }
  0xcb   : > { %v5667_v15 = vrot.slane %v5632_v20, 4  ;;  %v5722_v41 = vmul.f32 %v14865_v61, %v14958_v9  ;;  %v5723_v42 = vmul.f32 %v14865_v61, %v14967_v18  ;;  %v5724_v1 = vmul.f32 %v14865_v61, %v14969_v3  ;;  %v15210_v18 = vld [vmem:[#allocation2 + $0x20] sm:$0xff] }
  0xcc   : > { %v5665_v44 = vsel %vm2205_vm6, %v5663_v24, %v5664_v37  ;;  %v5702_v35 = vadd.f32 %v5664_v37, %v5610_v39  ;;  %v15207_v52 = vrot.slane %v15194_v8, %v14483_v4  ;;  %v5755_v47 = vrot.slane %v5721_v63, 4 }
  0xcd   : > { %v5668_v16 = vsel %vm2205_vm6, %v5666_v38, %v5667_v15  ;;  %v5701_v54 = vadd.f32 %v5665_v44, %v5609_v0  ;;  %v5704_v40 = vadd.f32 %v5667_v15, %v5612_v29  ;;  %v5756_v62 = vrot.slane %v5722_v41, 4 }
  0xce   : > { %v5703_v59 = vadd.f32 %v5668_v16, %v5611_v12  ;;  %v5758_v20 = vrot.slane %v5723_v42, 4  ;;  %v5759_v2 = vrot.slane %v5724_v1, 4  ;;  %v5872_v24 = vmul.f32 %v15210_v18, %v15207_v52 }
  0xcf   : > { %v5873_v61 = vmul.f32 %v15214_v28, %v15207_v52  ;;  %v5874_v3 = vmul.f32 %v15149_v22, %v15207_v52  ;;  %v5875_v39 = vmul.f32 %v15087_v30, %v15207_v52  ;;  %v5757_v29 = vsel %vm2205_vm6, %v5755_v47, %v5756_v62 }
  0xd0   : > { %v5760_v0 = vsel %vm2205_vm6, %v5758_v20, %v5759_v2  ;;  %v5794_v12 = vadd.f32 %v5756_v62, %v5702_v35  ;;  %v5796_v37 = vadd.f32 %v5759_v2, %v5704_v40  ;;  %v5793_v38 = vadd.f32 %v5757_v29, %v5701_v54 }
  0xd1   : > { %v5795_v15 = vadd.f32 %v5760_v0, %v5703_v59  ;;  %v15226_v63 = vrot.slane %v15194_v8, %v14517_v14  ;;  %v15230_v41 = vrot.slane %v15194_v8, %v14489_v6  ;;  %v15236_v1 = vrot.slane %v15194_v8, %v14538_v19 }
  0xd2   : > { %v5814_v42 = vadd.f32 %v14927_v49, %v5794_v12  ;;  %v5816_v44 = vadd.f32 %v14927_v49, %v5796_v37  ;;  %v15240_v35 = vrot.slane %v15194_v8, %v14514_v13  ;;  %v5813_v16 = vadd.f32 %v14927_v49, %v5793_v38 }
  0xd3   : > { %v5815_v54 = vadd.f32 %v14927_v49, %v5795_v15  ;;  %v5908_v40 = vmul.f32 %v15149_v22, %v15226_v63  ;;  %v5909_v47 = vmul.f32 %v15087_v30, %v15226_v63  ;;  %v5910_v20 = vmul.f32 %v15091_v53, %v15226_v63 }
  0xd4   : > { %20594 = vst [vmem:[#allocation26_spill] sm:$0xff] %v15240_v35  ;;  %v5848_v59 = vrot.slane %v5814_v42, 1  ;;  %v5851_v62 = vrot.slane %v5816_v44, 1  ;;  %v5911_v2 = vmul.f32 %v15101_v23, %v15226_v63  ;;  %v5847_v29 = vrot.slane %v5813_v16, 1 }
  0xd5   : > { %v5850_v0 = vrot.slane %v5815_v54, 1  ;;  %v5924_v12 = vadd.f32 %v5908_v40, %v5872_v24  ;;  %v5925_v37 = vadd.f32 %v5909_v47, %v5873_v61  ;;  %v5926_v38 = vadd.f32 %v5910_v20, %v5874_v3 }
  0xd6   : > { %v5927_v49 = vadd.f32 %v5911_v2, %v5875_v39  ;;  %v5944_v15 = vmul.f32 %v15091_v53, %v15230_v41  ;;  %v5945_v19 = vmul.f32 %v15101_v23, %v15230_v41  ;;  %v5849_v42 = vsel %vm606_vm3, %v5847_v29, %v5848_v59 }
  0xd7   : > { %v5852_v44 = vsel %vm606_vm3, %v5850_v0, %v5851_v62  ;;  %v5946_v14 = vmul.f32 %v15105_v10, %v15230_v41  ;;  %v5947_v16 = vmul.f32 %v15110_v43, %v15230_v41  ;;  %v5980_v39 = vmul.f32 %v15210_v18, %v15236_v1 }
  0xd8   : > { %v14172_v24 = vpack.i.bf16 %v5852_v44, %v5849_v42  ;;  %v5960_v61 = vadd.f32 %v5944_v15, %v5924_v12  ;;  %v5961_v3 = vadd.f32 %v5945_v19, %v5925_v37  ;;  %v5981_v47 = vmul.f32 %v15214_v28, %v15236_v1 }
  0xd9   : > { %v5962_v54 = vadd.f32 %v5946_v14, %v5926_v38  ;;  %v5963_v40 = vadd.f32 %v5947_v16, %v5927_v49  ;;  %v5982_v59 = vmul.f32 %v15149_v22, %v15236_v1  ;;  %v5983_v62 = vmul.f32 %v15087_v30, %v15236_v1 }
  0xda   : > { %14173 = vrot.lane.b32.xlu1 %v14172_v24, %s14311_s26  ;;  %v6012_v20 = vrot.slane %v5980_v39, 1  ;;  %v6072_v19 = vmul.f32 %v15149_v22, %v15240_v35  ;;  %v6073_v2 = vmul.f32 %v15087_v30, %v15240_v35  ;;  %v6013_v14 = vrot.slane %v5981_v47, 1 }
  0xdb   : > { %v6015_v29 = vrot.slane %v5982_v59, 1  ;;  %v6074_v0 = vmul.f32 %v15091_v53, %v15240_v35  ;;  %v6075_v12 = vmul.f32 %v15101_v23, %v15240_v35  ;;  %v6016_v37 = vrot.slane %v5983_v62, 1  ;;  %v15289_v62 = vld [vmem:[%s20357_s3 + $0x8] ss:$0 sm:$0xff] }
  0xdc   : > { %v6104_v38 = vrot.slane %v6072_v19, 1  ;;  %v6105_v49 = vrot.slane %v6073_v2, 1  ;;  %v15281_v15 = vrot.slane %v15194_v8, %v14486_v5  ;;  %v6014_v42 = vsel %vm606_vm3, %v6012_v20, %v6013_v14 }
  0xdd   : > { %v6053_v44 = vadd.f32 %v6013_v14, %v5961_v3  ;;  %v6107_v16 = vrot.slane %v6074_v0, 1  ;;  %v6108_v24 = vrot.slane %v6075_v12, 1  ;;  %v6017_v39 = vsel %vm606_vm3, %v6015_v29, %v6016_v37 }
  0xde   : > { %v6052_v47 = vadd.f32 %v6014_v42, %v5960_v61  ;;  %v6055_v59 = vadd.f32 %v6016_v37, %v5963_v40  ;;  %v6106_v13 = vsel %vm606_vm3, %v6104_v38, %v6105_v49  ;;  %v6054_v19 = vadd.f32 %v6017_v39, %v5962_v54  ;;  %v20595_v54 = vld [vmem:[#allocation13_spill] sm:$0xff]  ;;  %v20596_v42 = vld [vmem:[#allocation7_spill] sm:$0xff] }
  0xdf   : > { %v6109_v2 = vsel %vm606_vm3, %v6107_v16, %v6108_v24  ;;  %v6145_v6 = vadd.f32 %v6105_v49, %v6053_v44  ;;  %v6164_v3 = vmul.f32 %v15091_v53, %v15281_v15  ;;  %v6165_v61 = vmul.f32 %v15101_v23, %v15281_v15 }
  0xe0   : > { %v6144_v20 = vadd.f32 %v6106_v13, %v6052_v47  ;;  %v6147_v14 = vadd.f32 %v6108_v24, %v6055_v59  ;;  %v6166_v40 = vmul.f32 %v15105_v10, %v15281_v15  ;;  %v6146_v29 = vadd.f32 %v6109_v2, %v6054_v19 }
  0xe1   : > { %v6167_v0 = vmul.f32 %v15110_v43, %v15281_v15  ;;  %v6196_v12 = vrot.slane %v6164_v3, 1  ;;  %v15302_v37 = vrot.slane %v15194_v8, %v20595_v54  ;;  %v6197_v38 = vrot.slane %v6165_v61, 1 }
  0xe2   : > { %v6199_v49 = vrot.slane %v6166_v40, 1  ;;  %v15306_v13 = vrot.slane %v15194_v8, %v20596_v42  ;;  %v6440_v44 = vmul.f32 %v15091_v53, %v15289_v62  ;;  %v6169_v4 = vmul.f32 %v15123_v46, %v15281_v15 }
  0xe3   : > { %v6200_v16 = vrot.slane %v6167_v0, 1  ;;  %v6256_v24 = vmul.f32 %v15210_v18, %v15302_v37  ;;  %v6257_v39 = vmul.f32 %v15214_v28, %v15302_v37  ;;  %v6258_v47 = vmul.f32 %v15149_v22, %v15302_v37 }
  0xe4   : > { %v6198_v59 = vsel %vm606_vm3, %v6196_v12, %v6197_v38  ;;  %v6237_v19 = vadd.f32 %v6197_v38, %v6145_v6  ;;  %v6259_v8 = vmul.f32 %v15087_v30, %v15302_v37  ;;  %v6348_v2 = vmul.f32 %v15149_v22, %v15306_v13 }
  0xe5   : > { %v6201_v3 = vsel %vm606_vm3, %v6199_v49, %v6200_v16  ;;  %v6236_v61 = vadd.f32 %v6198_v59, %v6144_v20  ;;  %v6239_v40 = vadd.f32 %v6200_v16, %v6147_v14  ;;  %v6288_v18 = vrot.slane %v6256_v24, 2 }
  0xe6   : > { %v6238_v0 = vadd.f32 %v6201_v3, %v6146_v29  ;;  %v6289_v54 = vrot.slane %v6257_v39, 2  ;;  %v6291_v28 = vrot.slane %v6258_v47, 2  ;;  %v6292_v42 = vrot.slane %v6259_v8, 2 }
  0xe7   : > { %v6349_v5 = vmul.f32 %v15087_v30, %v15306_v13  ;;  %v6350_v6 = vmul.f32 %v15091_v53, %v15306_v13  ;;  %v6351_v12 = vmul.f32 %v15101_v23, %v15306_v13  ;;  %v6380_v38 = vrot.slane %v6348_v2, 2 }
  0xe8   : > { %v6290_v22 = vsel %vm1139_vm4, %v6288_v18, %v6289_v54  ;;  %v6293_v20 = vsel %vm1139_vm4, %v6291_v28, %v6292_v42  ;;  %v6329_v14 = vadd.f32 %v6289_v54, %v6237_v19  ;;  %v6331_v49 = vadd.f32 %v6292_v42, %v6239_v40  ;;  %v15343_v40 = vld [vmem:[%s20358_s4 + $0x2] ss:$0 sm:$0xff] }
  0xe9   : > { %v6328_v29 = vadd.f32 %v6290_v22, %v6236_v61  ;;  %v6330_v16 = vadd.f32 %v6293_v20, %v6238_v0  ;;  %v6381_v24 = vrot.slane %v6349_v5, 2  ;;  %v6383_v39 = vrot.slane %v6350_v6, 2 }
  0xea   : > { %v6384_v47 = vrot.slane %v6351_v12, 2  ;;  %v6441_v30 = vmul.f32 %v15101_v23, %v15289_v62  ;;  %v6442_v59 = vmul.f32 %v15105_v10, %v15289_v62  ;;  %v6443_v8 = vmul.f32 %v15110_v43, %v15289_v62 }
  0xeb   : > { %v6382_v2 = vsel %vm1139_vm4, %v6380_v38, %v6381_v24  ;;  %v6421_v3 = vadd.f32 %v6381_v24, %v6329_v14  ;;  %v6472_v18 = vrot.slane %v6440_v44, 2  ;;  %v5876_v54 = vmul.f32 %v15091_v53, %v15207_v52 }
  0xec   : > { %v6385_v5 = vsel %vm1139_vm4, %v6383_v39, %v6384_v47  ;;  %v6420_v42 = vadd.f32 %v6382_v2, %v6328_v29  ;;  %v6423_v19 = vadd.f32 %v6384_v47, %v6331_v49  ;;  %v6473_v61 = vrot.slane %v6441_v30, 2 }
  0xed   : > { %v6422_v0 = vadd.f32 %v6385_v5, %v6330_v16  ;;  %v6475_v28 = vrot.slane %v6442_v59, 2  ;;  %v6476_v6 = vrot.slane %v6443_v8, 2  ;;  %v5877_v12 = vmul.f32 %v15101_v23, %v15207_v52 }
  0xee   : > { %v6474_v44 = vsel %vm1139_vm4, %v6472_v18, %v6473_v61  ;;  %v6513_v38 = vadd.f32 %v6473_v61, %v6421_v3  ;;  %v5878_v22 = vmul.f32 %v15105_v10, %v15207_v52  ;;  %v5879_v20 = vmul.f32 %v15110_v43, %v15207_v52 }
  0xef   : > { %v6477_v14 = vsel %vm1139_vm4, %v6475_v28, %v6476_v6  ;;  %v6512_v49 = vadd.f32 %v6474_v44, %v6420_v42  ;;  %v6515_v29 = vadd.f32 %v6476_v6, %v6423_v19  ;;  %v5912_v16 = vmul.f32 %v15105_v10, %v15226_v63 }
  0xf0   : > { %v6514_v24 = vadd.f32 %v6477_v14, %v6422_v0  ;;  %v6533_v39 = vadd.f32 %v15343_v40, %v6513_v38  ;;  %v5913_v47 = vmul.f32 %v15110_v43, %v15226_v63  ;;  %v5914_v30 = vmul.f32 %v15119_v21, %v15226_v63 }
  0xf1   : > { %v6532_v59 = vadd.f32 %v15343_v40, %v6512_v49  ;;  %v6535_v8 = vadd.f32 %v15343_v40, %v6515_v29  ;;  %v5915_v2 = vmul.f32 %v15123_v46, %v15226_v63  ;;  %v5928_v3 = vadd.f32 %v5912_v16, %v5876_v54 }
  0xf2   : > { %v6534_v18 = vadd.f32 %v15343_v40, %v6514_v24  ;;  %v6565_v5 = vrot.slane %v6533_v39, 2  ;;  %v5929_v42 = vadd.f32 %v5913_v47, %v5877_v12  ;;  %v5930_v19 = vadd.f32 %v5914_v30, %v5878_v22 }
  0xf3   : > { %v6564_v61 = vrot.slane %v6532_v59, 2  ;;  %v6568_v0 = vrot.slane %v6535_v8, 2  ;;  %v5931_v28 = vadd.f32 %v5915_v2, %v5879_v20  ;;  %v5948_v6 = vmul.f32 %v15119_v21, %v15230_v41 }
  0xf4   : > { %v6567_v44 = vrot.slane %v6534_v18, 2  ;;  %v5949_v38 = vmul.f32 %v15123_v46, %v15230_v41  ;;  %v5950_v14 = vmul.f32 %v15230_v41, %v14952_v60  ;;  %v5951_v54 = vmul.f32 %v15230_v41, %v14958_v9 }
  0xf5   : > { %v6566_v49 = vsel %vm1139_vm4, %v6564_v61, %v6565_v5  ;;  %v5964_v12 = vadd.f32 %v5948_v6, %v5928_v3  ;;  %v5984_v22 = vmul.f32 %v15091_v53, %v15236_v1  ;;  %v5985_v20 = vmul.f32 %v15101_v23, %v15236_v1 }
  0xf6   : > { %v6569_v29 = vsel %vm1139_vm4, %v6567_v44, %v6568_v0  ;;  %v5965_v16 = vadd.f32 %v5949_v38, %v5929_v42  ;;  %v5966_v24 = vadd.f32 %v5950_v14, %v5930_v19  ;;  %v5967_v39 = vadd.f32 %v5951_v54, %v5931_v28 }
  0xf7   : > { %v14167_v47 = vpack.i.bf16 %v6569_v29, %v6566_v49  ;;  %v5986_v30 = vmul.f32 %v15105_v10, %v15236_v1  ;;  %v5987_v59 = vmul.f32 %v15110_v43, %v15236_v1  ;;  %v6018_v8 = vrot.slane %v5984_v22, 1 }
  0xf8   : > { %v6019_v2 = vrot.slane %v5985_v20, 1  ;;  %v6076_v3 = vmul.f32 %v15105_v10, %v15240_v35  ;;  %v6077_v18 = vmul.f32 %v15110_v43, %v15240_v35  ;;  %v6078_v5 = vmul.f32 %v15119_v21, %v15240_v35 }
  0xf9   : > { %14168 = vrot.lane.b32.xlu0 %v14167_v47, %s14312_s15  ;;  %v6021_v42 = vrot.slane %v5986_v30, 1  ;;  %v6022_v19 = vrot.slane %v5987_v59, 1  ;;  %v6079_v61 = vmul.f32 %v15123_v46, %v15240_v35  ;;  %v6168_v0 = vmul.f32 %v15119_v21, %v15281_v15 }
  0xfa   : > { %v6020_v28 = vsel %vm606_vm3, %v6018_v8, %v6019_v2  ;;  %v6057_v6 = vadd.f32 %v6019_v2, %v5965_v16  ;;  %v6110_v44 = vrot.slane %v6076_v3, 1  ;;  %v6111_v38 = vrot.slane %v6077_v18, 1 }
  0xfb   : > { %v6023_v14 = vsel %vm606_vm3, %v6021_v42, %v6022_v19  ;;  %v6056_v54 = vadd.f32 %v6020_v28, %v5964_v12  ;;  %v6059_v49 = vadd.f32 %v6022_v19, %v5967_v39  ;;  %v6113_v22 = vrot.slane %v6078_v5, 1 }
  0xfc   : > { %v6058_v20 = vadd.f32 %v6023_v14, %v5966_v24  ;;  %v6112_v29 = vsel %vm606_vm3, %v6110_v44, %v6111_v38  ;;  %v6114_v47 = vrot.slane %v6079_v61, 1  ;;  %v6149_v30 = vadd.f32 %v6111_v38, %v6057_v6 }
  0xfd   : > { %v6148_v59 = vadd.f32 %v6112_v29, %v6056_v54  ;;  %v6170_v8 = vmul.f32 %v15281_v15, %v14952_v60  ;;  %v6171_v16 = vmul.f32 %v15281_v15, %v14958_v9  ;;  %v6202_v39 = vrot.slane %v6168_v0, 1 }
  0xfe   : > { %v6115_v2 = vsel %vm606_vm3, %v6113_v22, %v6114_v47  ;;  %v6151_v12 = vadd.f32 %v6114_v47, %v6059_v49  ;;  %v6260_v24 = vmul.f32 %v15091_v53, %v15302_v37  ;;  %v6203_v18 = vrot.slane %v6169_v4, 1 }
  0xff   : > { %v6150_v3 = vadd.f32 %v6115_v2, %v6058_v20  ;;  %v6205_v5 = vrot.slane %v6170_v8, 1  ;;  %v6206_v42 = vrot.slane %v6171_v16, 1  ;;  %v6261_v19 = vmul.f32 %v15101_v23, %v15302_v37 }
 0x100   : > { %v6262_v60 = vmul.f32 %v15105_v10, %v15302_v37  ;;  %v6263_v9 = vmul.f32 %v15110_v43, %v15302_v37  ;;  %v6294_v61 = vrot.slane %v6260_v24, 2  ;;  %v6204_v28 = vsel %vm606_vm3, %v6202_v39, %v6203_v18 }
 0x101   : > { %v6207_v0 = vsel %vm606_vm3, %v6205_v5, %v6206_v42  ;;  %v6241_v6 = vadd.f32 %v6203_v18, %v6149_v30  ;;  %v6243_v53 = vadd.f32 %v6206_v42, %v6151_v12  ;;  %v6240_v44 = vadd.f32 %v6204_v28, %v6148_v59  ;;  %v15428_v5 = vld [vmem:[#allocation2 + $0x70] sm:$0xff] }
 0x102   : > { %v6242_v4 = vadd.f32 %v6207_v0, %v6150_v3  ;;  %v6295_v38 = vrot.slane %v6261_v19, 2  ;;  %v6297_v14 = vrot.slane %v6262_v60, 2  ;;  %v6298_v54 = vrot.slane %v6263_v9, 2  ;;  %v15432_v19 = vld [vmem:[#allocation2 + $0x78] sm:$0x3f] }
 0x103   : > { %v6352_v23 = vmul.f32 %v15105_v10, %v15306_v13  ;;  %v6353_v49 = vmul.f32 %v15110_v43, %v15306_v13  ;;  %v6354_v22 = vmul.f32 %v15119_v21, %v15306_v13  ;;  %v6355_v47 = vmul.f32 %v15123_v46, %v15306_v13 }
 0x104   : > { %v6296_v20 = vsel %vm1139_vm4, %v6294_v61, %v6295_v38  ;;  %v6333_v29 = vadd.f32 %v6295_v38, %v6241_v6  ;;  %v6444_v30 = vmul.f32 %v15119_v21, %v15289_v62  ;;  %v6299_v59 = vsel %vm1139_vm4, %v6297_v14, %v6298_v54 }
 0x105   : > { %v6332_v8 = vadd.f32 %v6296_v20, %v6240_v44  ;;  %v6335_v16 = vadd.f32 %v6298_v54, %v6243_v53  ;;  %v6386_v2 = vrot.slane %v6352_v23, 2  ;;  %v6334_v12 = vadd.f32 %v6299_v59, %v6242_v4  ;;  %v20597_v54 = vld [vmem:[#allocation18_spill] sm:$0xff] }
 0x106   : > { %v6387_v39 = vrot.slane %v6353_v49, 2  ;;  %v6389_v24 = vrot.slane %v6354_v22, 2  ;;  %v6390_v3 = vrot.slane %v6355_v47, 2  ;;  %v6445_v18 = vmul.f32 %v15123_v46, %v15289_v62  ;;  %v20598_v47 = vld [vmem:[#allocation19_spill] sm:$0xff] }
 0x107   : > { %v6446_v42 = vmul.f32 %v15428_v5, %v15289_v62  ;;  %v6447_v60 = vmul.f32 %v15432_v19, %v15289_v62  ;;  %v6478_v9 = vrot.slane %v6444_v30, 2  ;;  %v3797_v23 = vmul.f32 %v15105_v10, %v20597_v54 }
 0x108   : > { %v6388_v61 = vsel %vm1139_vm4, %v6386_v2, %v6387_v39  ;;  %v6391_v28 = vsel %vm1139_vm4, %v6389_v24, %v6390_v3  ;;  %v6425_v0 = vadd.f32 %v6387_v39, %v6333_v29  ;;  %v6427_v6 = vadd.f32 %v6390_v3, %v6335_v16 }
 0x109   : > { %v6424_v53 = vadd.f32 %v6388_v61, %v6332_v8  ;;  %v6426_v44 = vadd.f32 %v6391_v28, %v6334_v12  ;;  %v6479_v4 = vrot.slane %v6445_v18, 2  ;;  %v6481_v38 = vrot.slane %v6446_v42, 2 }
 0x10a   : > { %v6482_v14 = vrot.slane %v6447_v60, 2  ;;  %v3798_v49 = vmul.f32 %v15110_v43, %v20597_v54  ;;  %v3799_v62 = vmul.f32 %v15119_v21, %v20597_v54  ;;  %v3800_v29 = vmul.f32 %v15123_v46, %v20597_v54 }
 0x10b   : > { %v6480_v22 = vsel %vm1139_vm4, %v6478_v9, %v6479_v4  ;;  %v6517_v20 = vadd.f32 %v6479_v4, %v6425_v0  ;;  %v3833_v30 = vmul.f32 %v15119_v21, %v20598_v47  ;;  %v3834_v2 = vmul.f32 %v15123_v46, %v20598_v47 }
 0x10c   : > { %v6483_v59 = vsel %vm1139_vm4, %v6481_v38, %v6482_v14  ;;  %v6516_v8 = vadd.f32 %v6480_v22, %v6424_v53  ;;  %v6519_v16 = vadd.f32 %v6482_v14, %v6427_v6  ;;  %v3835_v24 = vmul.f32 %v15428_v5, %v20598_v47  ;;  %v15460_v53 = vld [vmem:[#allocation2 + $0x90] sm:$0xff]  ;;  %v20599_v38 = vld [vmem:[#allocation22_spill] sm:$0xff] }
 0x10d   : > { %v6518_v12 = vadd.f32 %v6483_v59, %v6426_v44  ;;  %v6537_v39 = vadd.f32 %v15343_v40, %v6517_v20  ;;  %v3836_v3 = vmul.f32 %v15432_v19, %v20598_v47  ;;  %v3849_v60 = vadd.f32 %v3833_v30, %v3797_v23  ;;  %v15466_v20 = vld [vmem:[#allocation2 + $0x98] sm:$0x3f]  ;;  %v15468_v23 = vld [vmem:[#allocation2 + $0x80] sm:$0xff] }
 0x10e   : > { %v6536_v18 = vadd.f32 %v15343_v40, %v6516_v8  ;;  %v6539_v42 = vadd.f32 %v15343_v40, %v6519_v16  ;;  %v3850_v9 = vadd.f32 %v3834_v2, %v3798_v49  ;;  %v3851_v0 = vadd.f32 %v3835_v24, %v3799_v62  ;;  %v15472_v49 = vld [vmem:[#allocation2 + $0x88] sm:$0x3f]  ;;  %v15479_v8 = vld [vmem:[#allocation2 + $0xa0] sm:$0xff] }
 0x10f   : > { %v6538_v61 = vadd.f32 %v15343_v40, %v6518_v12  ;;  %v6571_v28 = vrot.slane %v6537_v39, 2  ;;  %v3852_v6 = vadd.f32 %v3836_v3, %v3800_v29  ;;  %v3869_v14 = vmul.f32 %v15428_v5, %v20599_v38  ;;  %v15484_v24 = vld [vmem:[#allocation2 + $0xa8] sm:$0x3f] }
 0x110   : > { %v6570_v44 = vrot.slane %v6536_v18, 2  ;;  %v6574_v4 = vrot.slane %v6539_v42, 2  ;;  %v3870_v22 = vmul.f32 %v15432_v19, %v20599_v38  ;;  %v3871_v40 = vmul.f32 %v15468_v23, %v20599_v38 }
 0x111   : > { %v6573_v59 = vrot.slane %v6538_v61, 2  ;;  %v3872_v62 = vmul.f32 %v15472_v49, %v20599_v38  ;;  %v3905_v29 = vmul.f32 %v15468_v23, %v20591_v36  ;;  %v3885_v16 = vadd.f32 %v3869_v14, %v3849_v60 }
 0x112   : > { %v6572_v30 = vsel %vm1139_vm4, %v6570_v44, %v6571_v28  ;;  %v3886_v2 = vadd.f32 %v3870_v22, %v3850_v9  ;;  %v3906_v12 = vmul.f32 %v15472_v49, %v20591_v36  ;;  %v3887_v3 = vadd.f32 %v3871_v40, %v3851_v0  ;;  %v20600_v9 = vld [vmem:[#allocation23_spill] sm:$0xff] }
 0x113   : > { %v6575_v39 = vsel %vm1139_vm4, %v6573_v59, %v6574_v4  ;;  %v3888_v18 = vadd.f32 %v3872_v62, %v3852_v6  ;;  %v3907_v42 = vmul.f32 %v20591_v36, %v15460_v53  ;;  %v3908_v28 = vmul.f32 %v20591_v36, %v15466_v20  ;;  %v20601_v59 = vld [vmem:[#allocation24_spill] sm:$0xff] }
 0x114   : > { %v14177_v61 = vpack.i.bf16 %v6575_v39, %v6572_v30  ;;  %v3921_v44 = vadd.f32 %v3905_v29, %v3885_v16  ;;  %v3922_v38 = vadd.f32 %v3906_v12, %v3886_v2  ;;  %v3941_v14 = vmul.f32 %v20600_v9, %v15460_v53 }
 0x115   : > { %v3923_v60 = vadd.f32 %v3907_v42, %v3887_v3  ;;  %v3942_v4 = vmul.f32 %v20600_v9, %v15466_v20  ;;  %v3943_v0 = vmul.f32 %v20600_v9, %v15479_v8  ;;  %v3924_v6 = vadd.f32 %v3908_v28, %v3888_v18 }
 0x116   : > { %14178 = vrot.lane.b32.xlu1 %v14177_v61, %s14312_s15  ;;  %v3944_v22 = vmul.f32 %v20600_v9, %v15484_v24  ;;  %v3977_v40 = vmul.f32 %v15105_v10, %v20601_v59  ;;  %v3978_v62 = vmul.f32 %v15110_v43, %v20601_v59  ;;  %v3957_v29 = vadd.f32 %v3941_v14, %v3921_v44 }
 0x117   : > { %v3958_v30 = vadd.f32 %v3942_v4, %v3922_v38  ;;  %v3959_v16 = vadd.f32 %v3943_v0, %v3923_v60  ;;  %v3979_v2 = vmul.f32 %v15119_v21, %v20601_v59  ;;  %v3980_v39 = vmul.f32 %v15123_v46, %v20601_v59 }
 0x118   : > { %v3960_v12 = vadd.f32 %v3944_v22, %v3924_v6  ;;  %v4013_v3 = vrot.slane %v3977_v40, 1  ;;  %v4014_v18 = vrot.slane %v3978_v62, 1  ;;  %v4069_v61 = vmul.f32 %v15119_v21, %v14571_v26 }
 0x119   : > { %v4016_v42 = vrot.slane %v3979_v2, 1  ;;  %v4070_v28 = vmul.f32 %v15123_v46, %v14571_v26  ;;  %v4071_v38 = vmul.f32 %v15428_v5, %v14571_v26  ;;  %v4017_v60 = vrot.slane %v3980_v39, 1 }
 0x11a   : > { %v4015_v44 = vsel %vm606_vm3, %v4013_v3, %v4014_v18  ;;  %v4050_v14 = vadd.f32 %v4014_v18, %v3958_v30  ;;  %v4072_v4 = vmul.f32 %v15432_v19, %v14571_v26  ;;  %v4105_v6 = vrot.slane %v4069_v61, 1 }
 0x11b   : > { %v4049_v0 = vadd.f32 %v4015_v44, %v3957_v29  ;;  %v4106_v22 = vrot.slane %v4070_v28, 1  ;;  %v4108_v40 = vrot.slane %v4071_v38, 1  ;;  %v4018_v62 = vsel %vm606_vm3, %v4016_v42, %v4017_v60 }
 0x11c   : > { %v4052_v2 = vadd.f32 %v4017_v60, %v3960_v12  ;;  %v4109_v59 = vrot.slane %v4072_v4, 1  ;;  %v4161_v9 = vmul.f32 %v15428_v5, %v14575_v27  ;;  %v4051_v36 = vadd.f32 %v4018_v62, %v3959_v16 }
 0x11d   : > { %v4107_v47 = vsel %vm606_vm3, %v4105_v6, %v4106_v22  ;;  %v4142_v3 = vadd.f32 %v4106_v22, %v4050_v14  ;;  %v4162_v30 = vmul.f32 %v15432_v19, %v14575_v27  ;;  %v4163_v61 = vmul.f32 %v15468_v23, %v14575_v27 }
 0x11e   : > { %v4110_v39 = vsel %vm606_vm3, %v4108_v40, %v4109_v59  ;;  %v4141_v29 = vadd.f32 %v4107_v47, %v4049_v0  ;;  %v4144_v18 = vadd.f32 %v4109_v59, %v4052_v2  ;;  %v4164_v12 = vmul.f32 %v15472_v49, %v14575_v27 }
 0x11f   : > { %v4143_v42 = vadd.f32 %v4110_v39, %v4051_v36  ;;  %v4197_v28 = vrot.slane %v4161_v9, 1  ;;  %v4198_v38 = vrot.slane %v4162_v30, 1  ;;  %v4200_v16 = vrot.slane %v4163_v61, 1 }
 0x120   : > { %v4253_v44 = vmul.f32 %v15468_v23, %v14591_v32  ;;  %v4254_v60 = vmul.f32 %v15472_v49, %v14591_v32  ;;  %v4255_v47 = vmul.f32 %v14591_v32, %v15460_v53  ;;  %v4201_v14 = vrot.slane %v4164_v12, 1 }
 0x121   : > { %v4199_v59 = vsel %vm606_vm3, %v4197_v28, %v4198_v38  ;;  %v4234_v4 = vadd.f32 %v4198_v38, %v4142_v3  ;;  %v4256_v36 = vmul.f32 %v14591_v32, %v15466_v20  ;;  %v4345_v30 = vmul.f32 %v14595_v33, %v15460_v53 }
 0x122   : > { %v4233_v0 = vadd.f32 %v4199_v59, %v4141_v29  ;;  %v4289_v9 = vrot.slane %v4253_v44, 1  ;;  %v4290_v6 = vrot.slane %v4254_v60, 1  ;;  %v4292_v22 = vrot.slane %v4255_v47, 1 }
 0x123   : > { %v4202_v40 = vsel %vm606_vm3, %v4200_v16, %v4201_v14  ;;  %v4236_v62 = vadd.f32 %v4201_v14, %v4144_v18  ;;  %v4293_v2 = vrot.slane %v4256_v36, 1  ;;  %v4346_v3 = vmul.f32 %v14595_v33, %v15466_v20 }
 0x124   : > { %v4235_v39 = vadd.f32 %v4202_v40, %v4143_v42  ;;  %v4291_v61 = vsel %vm606_vm3, %v4289_v9, %v4290_v6  ;;  %v4326_v28 = vadd.f32 %v4290_v6, %v4234_v4  ;;  %v4347_v44 = vmul.f32 %v14595_v33, %v15479_v8 }
 0x125   : > { %v4294_v12 = vsel %vm606_vm3, %v4292_v22, %v4293_v2  ;;  %v4325_v29 = vadd.f32 %v4291_v61, %v4233_v0  ;;  %v4328_v38 = vadd.f32 %v4293_v2, %v4236_v62  ;;  %v4348_v18 = vmul.f32 %v14595_v33, %v15484_v24 }
 0x126   : > { %v4327_v16 = vadd.f32 %v4294_v12, %v4235_v39  ;;  %v4381_v60 = vrot.slane %v4345_v30, 1  ;;  %v4382_v47 = vrot.slane %v4346_v3, 1  ;;  %v4384_v42 = vrot.slane %v4347_v44, 1 }
 0x127   : > { %v4437_v59 = vmul.f32 %v15105_v10, %v14599_v34  ;;  %v4438_v14 = vmul.f32 %v15110_v43, %v14599_v34  ;;  %v4439_v4 = vmul.f32 %v15119_v21, %v14599_v34  ;;  %v4385_v0 = vrot.slane %v4348_v18, 1 }
 0x128   : > { %v4383_v36 = vsel %vm606_vm3, %v4381_v60, %v4382_v47  ;;  %v4418_v9 = vadd.f32 %v4382_v47, %v4326_v28  ;;  %v4440_v6 = vmul.f32 %v15123_v46, %v14599_v34  ;;  %v4529_v43 = vmul.f32 %v15119_v21, %v14726_v45 }
 0x129   : > { %v4417_v22 = vadd.f32 %v4383_v36, %v4325_v29  ;;  %v4473_v40 = vrot.slane %v4437_v59, 2  ;;  %v4474_v62 = vrot.slane %v4438_v14, 2  ;;  %v4476_v2 = vrot.slane %v4439_v4, 2 }
 0x12a   : > { %v4386_v30 = vsel %vm606_vm3, %v4384_v42, %v4385_v0  ;;  %v4420_v10 = vadd.f32 %v4385_v0, %v4328_v38  ;;  %v4477_v39 = vrot.slane %v4440_v6, 2  ;;  %v4530_v28 = vmul.f32 %v15123_v46, %v14726_v45 }
 0x12b   : > { %v4419_v61 = vadd.f32 %v4386_v30, %v4327_v16  ;;  %v4475_v3 = vsel %vm1139_vm4, %v4473_v40, %v4474_v62  ;;  %v4510_v12 = vadd.f32 %v4474_v62, %v4418_v9  ;;  %v4531_v60 = vmul.f32 %v15428_v5, %v14726_v45 }
 0x12c   : > { %v4478_v44 = vsel %vm1139_vm4, %v4476_v2, %v4477_v39  ;;  %v4509_v29 = vadd.f32 %v4475_v3, %v4417_v22  ;;  %v4512_v18 = vadd.f32 %v4477_v39, %v4420_v10  ;;  %v4532_v38 = vmul.f32 %v15432_v19, %v14726_v45 }
 0x12d   : > { %v4511_v47 = vadd.f32 %v4478_v44, %v4419_v61  ;;  %v4565_v42 = vrot.slane %v4529_v43, 2  ;;  %v4566_v21 = vrot.slane %v4530_v28, 2  ;;  %v4568_v16 = vrot.slane %v4531_v60, 2 }
 0x12e   : > { %v4621_v59 = vmul.f32 %v15428_v5, %v14730_v57  ;;  %v4622_v46 = vmul.f32 %v15432_v19, %v14730_v57  ;;  %v4623_v14 = vmul.f32 %v15468_v23, %v14730_v57  ;;  %v4569_v36 = vrot.slane %v4532_v38, 2 }
 0x12f   : > { %v4567_v4 = vsel %vm1139_vm4, %v4565_v42, %v4566_v21  ;;  %v4602_v0 = vadd.f32 %v4566_v21, %v4510_v12  ;;  %v4624_v9 = vmul.f32 %v15472_v49, %v14730_v57  ;;  %v4713_v39 = vmul.f32 %v15468_v23, %v14734_v58 }
 0x130   : > { %v4601_v6 = vadd.f32 %v4567_v4, %v4509_v29  ;;  %v4657_v22 = vrot.slane %v4621_v59, 2  ;;  %v4658_v40 = vrot.slane %v4622_v46, 2  ;;  %v4660_v62 = vrot.slane %v4623_v14, 2 }
 0x131   : > { %v4570_v2 = vsel %vm1139_vm4, %v4568_v16, %v4569_v36  ;;  %v4604_v30 = vadd.f32 %v4569_v36, %v4512_v18  ;;  %v4661_v10 = vrot.slane %v4624_v9, 2  ;;  %v4714_v12 = vmul.f32 %v15472_v49, %v14734_v58 }
 0x132   : > { %v4603_v43 = vadd.f32 %v4570_v2, %v4511_v47  ;;  %v4659_v61 = vsel %vm1139_vm4, %v4657_v22, %v4658_v40  ;;  %v4694_v3 = vadd.f32 %v4658_v40, %v4602_v0  ;;  %v4715_v60 = vmul.f32 %v14734_v58, %v15460_v53 }
 0x133   : > { %v4662_v28 = vsel %vm1139_vm4, %v4660_v62, %v4661_v10  ;;  %v4693_v44 = vadd.f32 %v4659_v61, %v4601_v6  ;;  %v4696_v29 = vadd.f32 %v4661_v10, %v4604_v30  ;;  %v4716_v18 = vmul.f32 %v14734_v58, %v15466_v20  ;;  %v15597_v10 = vld [vmem:[#allocation2 + $0x50] sm:$0xff] }
 0x134   : > { %v4695_v38 = vadd.f32 %v4662_v28, %v4603_v43  ;;  %v4749_v42 = vrot.slane %v4713_v39, 2  ;;  %v4750_v21 = vrot.slane %v4714_v12, 2  ;;  %v4752_v47 = vrot.slane %v4715_v60, 2  ;;  %v15602_v12 = vld [vmem:[#allocation2 + $0x58] sm:$0x3f] }
 0x135   : > { %v4805_v16 = vmul.f32 %v14739_v55, %v15460_v53  ;;  %v4806_v59 = vmul.f32 %v14739_v55, %v15466_v20  ;;  %v4807_v46 = vmul.f32 %v14739_v55, %v15479_v8  ;;  %v4753_v4 = vrot.slane %v4716_v18, 2 }
 0x136   : > { %v4751_v14 = vsel %vm1139_vm4, %v4749_v42, %v4750_v21  ;;  %v4786_v36 = vadd.f32 %v4750_v21, %v4694_v3  ;;  %v4808_v0 = vmul.f32 %v14739_v55, %v15484_v24  ;;  %v4897_v39 = vmul.f32 %v15597_v10, %v14743_v17 }
 0x137   : > { %v4785_v9 = vadd.f32 %v4751_v14, %v4693_v44  ;;  %v4841_v6 = vrot.slane %v4805_v16, 2  ;;  %v4842_v22 = vrot.slane %v4806_v59, 2  ;;  %v4844_v40 = vrot.slane %v4807_v46, 2 }
 0x138   : > { %v4754_v62 = vsel %vm1139_vm4, %v4752_v47, %v4753_v4  ;;  %v4788_v2 = vadd.f32 %v4753_v4, %v4696_v29  ;;  %v4845_v30 = vrot.slane %v4808_v0, 2  ;;  %v4898_v28 = vmul.f32 %v15602_v12, %v14743_v17  ;;  %v15607_v29 = vld [vmem:[#allocation2 + $0x60] sm:$0xff]  ;;  %v15611_v47 = vld [vmem:[#allocation2 + $0x68] sm:$0x3f] }
 0x139   : > { %v4787_v43 = vadd.f32 %v4754_v62, %v4695_v38  ;;  %v4843_v61 = vsel %vm1139_vm4, %v4841_v6, %v4842_v22  ;;  %v4878_v3 = vadd.f32 %v4842_v22, %v4786_v36  ;;  %v4899_v42 = vmul.f32 %v15607_v29, %v14743_v17 }
 0x13a   : > { %v4846_v44 = vsel %vm1139_vm4, %v4844_v40, %v4845_v30  ;;  %v4877_v60 = vadd.f32 %v4843_v61, %v4785_v9  ;;  %v4880_v18 = vadd.f32 %v4845_v30, %v4788_v2  ;;  %v4900_v38 = vmul.f32 %v15611_v47, %v14743_v17 }
 0x13b   : > { %v4879_v21 = vadd.f32 %v4846_v44, %v4787_v43  ;;  %v4933_v16 = vrot.slane %v4897_v39, 3  ;;  %v4934_v59 = vrot.slane %v4898_v28, 3  ;;  %v4936_v46 = vrot.slane %v4899_v42, 3 }
 0x13c   : > { %v4989_v14 = vmul.f32 %v15607_v29, %v14795_v31  ;;  %v4990_v4 = vmul.f32 %v15611_v47, %v14795_v31  ;;  %v4991_v36 = vmul.f32 %v15428_v5, %v14795_v31  ;;  %v4937_v9 = vrot.slane %v4900_v38, 3 }
 0x13d   : > { %v4935_v0 = vsel %vm1672_vm5, %v4933_v16, %v4934_v59  ;;  %v4970_v6 = vadd.f32 %v4934_v59, %v4878_v3  ;;  %v4992_v22 = vmul.f32 %v15432_v19, %v14795_v31  ;;  %v5081_v28 = vmul.f32 %v15428_v5, %v14799_v50 }
 0x13e   : > { %v4969_v40 = vadd.f32 %v4935_v0, %v4877_v60  ;;  %v5025_v62 = vrot.slane %v4989_v14, 3  ;;  %v5026_v2 = vrot.slane %v4990_v4, 3  ;;  %v5028_v30 = vrot.slane %v4991_v36, 3 }
 0x13f   : > { %v4938_v39 = vsel %vm1672_vm5, %v4936_v46, %v4937_v9  ;;  %v4972_v43 = vadd.f32 %v4937_v9, %v4880_v18  ;;  %v5029_v61 = vrot.slane %v4992_v22, 3  ;;  %v5082_v3 = vmul.f32 %v15432_v19, %v14799_v50 }
 0x140   : > { %v4971_v44 = vadd.f32 %v4938_v39, %v4879_v21  ;;  %v5027_v42 = vsel %vm1672_vm5, %v5025_v62, %v5026_v2  ;;  %v5062_v16 = vadd.f32 %v5026_v2, %v4970_v6  ;;  %v5083_v14 = vmul.f32 %v15468_v23, %v14799_v50 }
 0x141   : > { %v5030_v38 = vsel %vm1672_vm5, %v5028_v30, %v5029_v61  ;;  %v5061_v60 = vadd.f32 %v5027_v42, %v4969_v40  ;;  %v5064_v59 = vadd.f32 %v5029_v61, %v4972_v43  ;;  %v5084_v18 = vmul.f32 %v15472_v49, %v14799_v50 }
 0x142   : > { %v5063_v46 = vadd.f32 %v5030_v38, %v4971_v44  ;;  %v5117_v4 = vrot.slane %v5081_v28, 3  ;;  %v5118_v36 = vrot.slane %v5082_v3, 3  ;;  %v5120_v21 = vrot.slane %v5083_v14, 3 }
 0x143   : > { %v5173_v0 = vmul.f32 %v15468_v23, %v14803_v51  ;;  %v5174_v9 = vmul.f32 %v15472_v49, %v14803_v51  ;;  %v5175_v6 = vmul.f32 %v14803_v51, %v15460_v53  ;;  %v5121_v40 = vrot.slane %v5084_v18, 3 }
 0x144   : > { %v5119_v22 = vsel %vm1672_vm5, %v5117_v4, %v5118_v36  ;;  %v5154_v62 = vadd.f32 %v5118_v36, %v5062_v16  ;;  %v5176_v2 = vmul.f32 %v14803_v51, %v15466_v20  ;;  %v5265_v3 = vmul.f32 %v14808_v48, %v15460_v53 }
 0x145   : > { %v5153_v30 = vadd.f32 %v5119_v22, %v5061_v60  ;;  %v5209_v39 = vrot.slane %v5173_v0, 3  ;;  %v5210_v43 = vrot.slane %v5174_v9, 3  ;;  %v5212_v61 = vrot.slane %v5175_v6, 3 }
 0x146   : > { %v5122_v28 = vsel %vm1672_vm5, %v5120_v21, %v5121_v40  ;;  %v5156_v44 = vadd.f32 %v5121_v40, %v5064_v59  ;;  %v5213_v42 = vrot.slane %v5176_v2, 3  ;;  %v5266_v16 = vmul.f32 %v14808_v48, %v15466_v20 }
 0x147   : > { %v5155_v38 = vadd.f32 %v5122_v28, %v5063_v46  ;;  %v5211_v14 = vsel %vm1672_vm5, %v5209_v39, %v5210_v43  ;;  %v5246_v4 = vadd.f32 %v5210_v43, %v5154_v62  ;;  %v5267_v0 = vmul.f32 %v14808_v48, %v15479_v8 }
 0x148   : > { %v5214_v18 = vsel %vm1672_vm5, %v5212_v61, %v5213_v42  ;;  %v5245_v60 = vadd.f32 %v5211_v14, %v5153_v30  ;;  %v5248_v36 = vadd.f32 %v5213_v42, %v5156_v44  ;;  %v5268_v59 = vmul.f32 %v14808_v48, %v15484_v24 }
 0x149   : > { %v5247_v21 = vadd.f32 %v5214_v18, %v5155_v38  ;;  %v5301_v9 = vrot.slane %v5265_v3, 3  ;;  %v5302_v6 = vrot.slane %v5266_v16, 3  ;;  %v5304_v46 = vrot.slane %v5267_v0, 3 }
 0x14a   : > { %v5357_v22 = vmul.f32 %v15597_v10, %v14812_v25  ;;  %v5358_v40 = vmul.f32 %v15602_v12, %v14812_v25  ;;  %v5359_v62 = vmul.f32 %v15607_v29, %v14812_v25  ;;  %v5305_v30 = vrot.slane %v5268_v59, 3 }
 0x14b   : > { %v5303_v2 = vsel %vm1672_vm5, %v5301_v9, %v5302_v6  ;;  %v5338_v39 = vadd.f32 %v5302_v6, %v5246_v4  ;;  %v5360_v43 = vmul.f32 %v15611_v47, %v14812_v25  ;;  %v5449_v12 = vmul.f32 %v15607_v29, %v14875_v56 }
 0x14c   : > { %v5337_v61 = vadd.f32 %v5303_v2, %v5245_v60  ;;  %v5393_v28 = vrot.slane %v5357_v22, 4  ;;  %v5394_v44 = vrot.slane %v5358_v40, 4  ;;  %v5396_v42 = vrot.slane %v5359_v62, 4 }
 0x14d   : > { %v5306_v3 = vsel %vm1672_vm5, %v5304_v46, %v5305_v30  ;;  %v5340_v10 = vadd.f32 %v5305_v30, %v5248_v36  ;;  %v5397_v38 = vrot.slane %v5360_v43, 4  ;;  %v5450_v4 = vmul.f32 %v15611_v47, %v14875_v56 }
 0x14e   : > { %v5339_v14 = vadd.f32 %v5306_v3, %v5247_v21  ;;  %v5395_v16 = vsel %vm2205_vm6, %v5393_v28, %v5394_v44  ;;  %v5430_v18 = vadd.f32 %v5394_v44, %v5338_v39  ;;  %v5451_v9 = vmul.f32 %v15428_v5, %v14875_v56 }
 0x14f   : > { %v5398_v0 = vsel %vm2205_vm6, %v5396_v42, %v5397_v38  ;;  %v5429_v60 = vadd.f32 %v5395_v16, %v5337_v61  ;;  %v5432_v59 = vadd.f32 %v5397_v38, %v5340_v10  ;;  %v5452_v36 = vmul.f32 %v15432_v19, %v14875_v56 }
 0x150   : > { %v5431_v6 = vadd.f32 %v5398_v0, %v5339_v14  ;;  %v5485_v46 = vrot.slane %v5449_v12, 4  ;;  %v5486_v22 = vrot.slane %v5450_v4, 4  ;;  %v5488_v21 = vrot.slane %v5451_v9, 4 }
 0x151   : > { %v5541_v40 = vmul.f32 %v15428_v5, %v14879_v11  ;;  %v5542_v62 = vmul.f32 %v15432_v19, %v14879_v11  ;;  %v5543_v2 = vmul.f32 %v15468_v23, %v14879_v11  ;;  %v5489_v39 = vrot.slane %v5452_v36, 4 }
 0x152   : > { %v5487_v30 = vsel %vm2205_vm6, %v5485_v46, %v5486_v22  ;;  %v5522_v43 = vadd.f32 %v5486_v22, %v5430_v18  ;;  %v5544_v61 = vmul.f32 %v15472_v49, %v14879_v11  ;;  %v5633_v14 = vmul.f32 %v15468_v23, %v14883_v7 }
 0x153   : > { %v5521_v28 = vadd.f32 %v5487_v30, %v5429_v60  ;;  %v5577_v44 = vrot.slane %v5541_v40, 4  ;;  %v5578_v42 = vrot.slane %v5542_v62, 4  ;;  %v5580_v3 = vrot.slane %v5543_v2, 4  ;;  %v15698_v62 = vld [vmem:[%s20356_s2 + $0x18] ss:$0 sm:$0xff] }
 0x154   : > { %v5490_v10 = vsel %vm2205_vm6, %v5488_v21, %v5489_v39  ;;  %v5524_v38 = vadd.f32 %v5489_v39, %v5432_v59  ;;  %v5581_v12 = vrot.slane %v5544_v61, 4  ;;  %v5634_v18 = vmul.f32 %v15472_v49, %v14883_v7 }
 0x155   : > { %v5523_v16 = vadd.f32 %v5490_v10, %v5431_v6  ;;  %v5579_v4 = vsel %vm2205_vm6, %v5577_v44, %v5578_v42  ;;  %v5614_v0 = vadd.f32 %v5578_v42, %v5522_v43  ;;  %v5635_v46 = vmul.f32 %v14883_v7, %v15460_v53 }
 0x156   : > { %v5582_v9 = vsel %vm2205_vm6, %v5580_v3, %v5581_v12  ;;  %v5613_v60 = vadd.f32 %v5579_v4, %v5521_v28  ;;  %v5616_v36 = vadd.f32 %v5581_v12, %v5524_v38  ;;  %v5636_v59 = vmul.f32 %v14883_v7, %v15466_v20 }
 0x157   : > { %v5615_v22 = vadd.f32 %v5582_v9, %v5523_v16  ;;  %v5669_v21 = vrot.slane %v5633_v14, 4  ;;  %v5670_v40 = vrot.slane %v5634_v18, 4  ;;  %v5672_v6 = vrot.slane %v5635_v46, 4 }
 0x158   : > { %v5725_v2 = vmul.f32 %v15698_v62, %v15460_v53  ;;  %v5726_v30 = vmul.f32 %v15698_v62, %v15466_v20  ;;  %v5727_v39 = vmul.f32 %v15698_v62, %v15479_v8  ;;  %v5673_v61 = vrot.slane %v5636_v59, 4 }
 0x159   : > { %v5671_v43 = vsel %vm2205_vm6, %v5669_v21, %v5670_v40  ;;  %v5706_v28 = vadd.f32 %v5670_v40, %v5614_v0  ;;  %v5728_v44 = vmul.f32 %v15698_v62, %v15484_v24  ;;  %v5880_v4 = vmul.f32 %v15607_v29, %v15207_v52 }
 0x15a   : > { %v5705_v42 = vadd.f32 %v5671_v43, %v5613_v60  ;;  %v5761_v3 = vrot.slane %v5725_v2, 4  ;;  %v5762_v10 = vrot.slane %v5726_v30, 4  ;;  %v5764_v38 = vrot.slane %v5727_v39, 4 }
 0x15b   : > { %v5674_v12 = vsel %vm2205_vm6, %v5672_v6, %v5673_v61  ;;  %v5708_v14 = vadd.f32 %v5673_v61, %v5616_v36  ;;  %v5765_v16 = vrot.slane %v5728_v44, 4  ;;  %v5881_v0 = vmul.f32 %v15611_v47, %v15207_v52  ;;  %v15721_v36 = vld [vmem:[%s20358_s4 + $0x1] ss:$0 sm:$0xff] }
 0x15c   : > { %v5707_v18 = vadd.f32 %v5674_v12, %v5615_v22  ;;  %v5763_v9 = vsel %vm2205_vm6, %v5761_v3, %v5762_v10  ;;  %v5798_v46 = vadd.f32 %v5762_v10, %v5706_v28  ;;  %v5882_v40 = vmul.f32 %v15428_v5, %v15207_v52 }
 0x15d   : > { %v5766_v59 = vsel %vm2205_vm6, %v5764_v38, %v5765_v16  ;;  %v5797_v60 = vadd.f32 %v5763_v9, %v5705_v42  ;;  %v5800_v21 = vadd.f32 %v5765_v16, %v5708_v14  ;;  %v5883_v2 = vmul.f32 %v15432_v19, %v15207_v52 }
 0x15e   : > { %v5799_v6 = vadd.f32 %v5766_v59, %v5707_v18  ;;  %v5818_v22 = vadd.f32 %v15721_v36, %v5798_v46  ;;  %v5916_v30 = vmul.f32 %v15428_v5, %v15226_v63  ;;  %v5917_v61 = vmul.f32 %v15432_v19, %v15226_v63 }
 0x15f   : > { %v5817_v39 = vadd.f32 %v15721_v36, %v5797_v60  ;;  %v5820_v43 = vadd.f32 %v15721_v36, %v5800_v21  ;;  %v5918_v28 = vmul.f32 %v15468_v23, %v15226_v63  ;;  %v5919_v3 = vmul.f32 %v15472_v49, %v15226_v63 }
 0x160   : > { %v5819_v44 = vadd.f32 %v15721_v36, %v5799_v6  ;;  %v5854_v42 = vrot.slane %v5818_v22, 1  ;;  %v5932_v10 = vadd.f32 %v5916_v30, %v5880_v4  ;;  %v5933_v14 = vadd.f32 %v5917_v61, %v5881_v0 }
 0x161   : > { %v5853_v38 = vrot.slane %v5817_v39, 1  ;;  %v5857_v12 = vrot.slane %v5820_v43, 1  ;;  %v5934_v16 = vadd.f32 %v5918_v28, %v5882_v40  ;;  %v5935_v9 = vadd.f32 %v5919_v3, %v5883_v2 }
 0x162   : > { %v5856_v18 = vrot.slane %v5819_v44, 1  ;;  %v5952_v46 = vmul.f32 %v15468_v23, %v15230_v41  ;;  %v5953_v59 = vmul.f32 %v15472_v49, %v15230_v41  ;;  %v5954_v21 = vmul.f32 %v15230_v41, %v15460_v53 }
 0x163   : > { %v5855_v60 = vsel %vm606_vm3, %v5853_v38, %v5854_v42  ;;  %v5955_v4 = vmul.f32 %v15230_v41, %v15466_v20  ;;  %v5988_v0 = vmul.f32 %v15607_v29, %v15236_v1  ;;  %v5989_v2 = vmul.f32 %v15611_v47, %v15236_v1 }
 0x164   : > { %v5858_v40 = vsel %vm606_vm3, %v5856_v18, %v5857_v12  ;;  %v5968_v6 = vadd.f32 %v5952_v46, %v5932_v10  ;;  %v5969_v22 = vadd.f32 %v5953_v59, %v5933_v14  ;;  %v5970_v39 = vadd.f32 %v5954_v21, %v5934_v16 }
 0x165   : > { %v14187_v30 = vpack.i.bf16 %v5858_v40, %v5855_v60  ;;  %v5971_v43 = vadd.f32 %v5955_v4, %v5935_v9  ;;  %v5990_v61 = vmul.f32 %v15428_v5, %v15236_v1  ;;  %v5991_v28 = vmul.f32 %v15432_v19, %v15236_v1 }
 0x166   : > { %v6024_v44 = vrot.slane %v5988_v0, 1  ;;  %v6025_v42 = vrot.slane %v5989_v2, 1  ;;  %v6080_v3 = vmul.f32 %v15428_v5, %v15240_v35  ;;  %v6081_v38 = vmul.f32 %v15432_v19, %v15240_v35 }
 0x167   : > { %14188 = vrot.lane.b32.xlu0 %v14187_v30, %s14311_s26  ;;  %v6027_v10 = vrot.slane %v5990_v61, 1  ;;  %v6082_v12 = vmul.f32 %v15468_v23, %v15240_v35  ;;  %v6083_v14 = vmul.f32 %v15472_v49, %v15240_v35  ;;  %v6028_v18 = vrot.slane %v5991_v28, 1 }
 0x168   : > { %v6026_v16 = vsel %vm606_vm3, %v6024_v44, %v6025_v42  ;;  %v6061_v9 = vadd.f32 %v6025_v42, %v5969_v22  ;;  %v6116_v46 = vrot.slane %v6080_v3, 1  ;;  %v6117_v60 = vrot.slane %v6081_v38, 1 }
 0x169   : > { %v6060_v59 = vadd.f32 %v6026_v16, %v5968_v6  ;;  %v6119_v21 = vrot.slane %v6082_v12, 1  ;;  %v6120_v4 = vrot.slane %v6083_v14, 1  ;;  %v6029_v0 = vsel %vm606_vm3, %v6027_v10, %v6028_v18 }
 0x16a   : > { %v6063_v40 = vadd.f32 %v6028_v18, %v5971_v43  ;;  %v6172_v2 = vmul.f32 %v15468_v23, %v15281_v15  ;;  %v6173_v30 = vmul.f32 %v15472_v49, %v15281_v15  ;;  %v6062_v61 = vadd.f32 %v6029_v0, %v5970_v39 }
 0x16b   : > { %v6118_v35 = vsel %vm606_vm3, %v6116_v46, %v6117_v60  ;;  %v6121_v28 = vsel %vm606_vm3, %v6119_v21, %v6120_v4  ;;  %v6153_v22 = vadd.f32 %v6117_v60, %v6061_v9  ;;  %v6174_v42 = vmul.f32 %v15281_v15, %v15460_v53 }
 0x16c   : > { %v6152_v44 = vadd.f32 %v6118_v35, %v6060_v59  ;;  %v6155_v6 = vadd.f32 %v6120_v4, %v6063_v40  ;;  %v6175_v43 = vmul.f32 %v15281_v15, %v15466_v20  ;;  %v6154_v3 = vadd.f32 %v6121_v28, %v6062_v61 }
 0x16d   : > { %v6208_v10 = vrot.slane %v6172_v2, 1  ;;  %v6209_v38 = vrot.slane %v6173_v30, 1  ;;  %v6264_v12 = vmul.f32 %v15607_v29, %v15302_v37  ;;  %v6211_v39 = vrot.slane %v6174_v42, 1 }
 0x16e   : > { %v6212_v14 = vrot.slane %v6175_v43, 1  ;;  %v6265_v16 = vmul.f32 %v15611_v47, %v15302_v37  ;;  %v6266_v35 = vmul.f32 %v15428_v5, %v15302_v37  ;;  %v6267_v46 = vmul.f32 %v15432_v19, %v15302_v37 }
 0x16f   : > { %v6210_v18 = vsel %vm606_vm3, %v6208_v10, %v6209_v38  ;;  %v6245_v9 = vadd.f32 %v6209_v38, %v6153_v22  ;;  %v6300_v59 = vrot.slane %v6264_v12, 2  ;;  %v6356_v47 = vmul.f32 %v15428_v5, %v15306_v13 }
 0x170   : > { %v6213_v60 = vsel %vm606_vm3, %v6211_v39, %v6212_v14  ;;  %v6244_v21 = vadd.f32 %v6210_v18, %v6152_v44  ;;  %v6247_v4 = vadd.f32 %v6212_v14, %v6155_v6  ;;  %v6301_v29 = vrot.slane %v6265_v16, 2  ;;  %v15799_v14 = vld [vmem:[%s20357_s3 + $0x8] ss:$0 sm:$0xff] }
 0x171   : > { %v6246_v0 = vadd.f32 %v6213_v60, %v6154_v3  ;;  %v6303_v40 = vrot.slane %v6266_v35, 2  ;;  %v6304_v2 = vrot.slane %v6267_v46, 2  ;;  %v6357_v28 = vmul.f32 %v15432_v19, %v15306_v13 }
 0x172   : > { %v6302_v30 = vsel %vm1139_vm4, %v6300_v59, %v6301_v29  ;;  %v6337_v61 = vadd.f32 %v6301_v29, %v6245_v9  ;;  %v6358_v22 = vmul.f32 %v15468_v23, %v15306_v13  ;;  %v6359_v43 = vmul.f32 %v15472_v49, %v15306_v13 }
 0x173   : > { %v6305_v42 = vsel %vm1139_vm4, %v6303_v40, %v6304_v2  ;;  %v6336_v44 = vadd.f32 %v6302_v30, %v6244_v21  ;;  %v6339_v6 = vadd.f32 %v6304_v2, %v6247_v4  ;;  %v6392_v10 = vrot.slane %v6356_v47, 2 }
 0x174   : > { %v6338_v3 = vadd.f32 %v6305_v42, %v6246_v0  ;;  %v6393_v38 = vrot.slane %v6357_v28, 2  ;;  %v6395_v12 = vrot.slane %v6358_v22, 2  ;;  %v6396_v39 = vrot.slane %v6359_v43, 2  ;;  %v20602_v42 = vld [vmem:[#allocation19_spill] sm:$0xff] }
 0x175   : > { %v6448_v16 = vmul.f32 %v15799_v14, %v15468_v23  ;;  %v6449_v35 = vmul.f32 %v15799_v14, %v15472_v49  ;;  %v6450_v18 = vmul.f32 %v15799_v14, %v15460_v53  ;;  %v6451_v59 = vmul.f32 %v15799_v14, %v15466_v20 }
 0x176   : > { %v6394_v9 = vsel %vm1139_vm4, %v6392_v10, %v6393_v38  ;;  %v6429_v46 = vadd.f32 %v6393_v38, %v6337_v61  ;;  %v3801_v60 = vmul.f32 %v15428_v5, %v20597_v54  ;;  %v6397_v21 = vsel %vm1139_vm4, %v6395_v12, %v6396_v39 }
 0x177   : > { %v6428_v4 = vadd.f32 %v6394_v9, %v6336_v44  ;;  %v6431_v29 = vadd.f32 %v6396_v39, %v6339_v6  ;;  %v6484_v0 = vrot.slane %v6448_v16, 2  ;;  %v6430_v40 = vadd.f32 %v6397_v21, %v6338_v3 }
 0x178   : > { %v6485_v2 = vrot.slane %v6449_v35, 2  ;;  %v6487_v47 = vrot.slane %v6450_v18, 2  ;;  %v6488_v30 = vrot.slane %v6451_v59, 2  ;;  %v3802_v28 = vmul.f32 %v15432_v19, %v20597_v54 }
 0x179   : > { %v3803_v61 = vmul.f32 %v15468_v23, %v20597_v54  ;;  %v3804_v22 = vmul.f32 %v15472_v49, %v20597_v54  ;;  %v3837_v5 = vmul.f32 %v15468_v23, %v20602_v42  ;;  %v3838_v19 = vmul.f32 %v15472_v49, %v20602_v42  ;;  %v15830_v54 = vld [vmem:[%s20358_s4 + $0x2] ss:$0 sm:$0xff] }
 0x17a   : > { %v6486_v44 = vsel %vm1139_vm4, %v6484_v0, %v6485_v2  ;;  %v6489_v6 = vsel %vm1139_vm4, %v6487_v47, %v6488_v30  ;;  %v6521_v43 = vadd.f32 %v6485_v2, %v6429_v46  ;;  %v6523_v3 = vadd.f32 %v6488_v30, %v6431_v29  ;;  %20603 = vst [vmem:[#allocation18_spill] sm:$0xff] %v15830_v54  ;;  %v15840_v47 = vld [vmem:[#allocation2 + $0xb8] sm:$0x3f] }
 0x17b   : > { %v6520_v10 = vadd.f32 %v6486_v44, %v6428_v4  ;;  %v6522_v38 = vadd.f32 %v6489_v6, %v6430_v40  ;;  %v3839_v12 = vmul.f32 %v20602_v42, %v15460_v53  ;;  %v3840_v35 = vmul.f32 %v20602_v42, %v15466_v20  ;;  %v20604_v40 = vld [vmem:[#allocation22_spill] sm:$0xff]  ;;  %v15842_v6 = vld [vmem:[#allocation2 + $0xb0] sm:$0xff] }
 0x17c   : > { %v6541_v39 = vadd.f32 %v15830_v54, %v6521_v43  ;;  %v6543_v16 = vadd.f32 %v15830_v54, %v6523_v3  ;;  %v3853_v18 = vadd.f32 %v3837_v5, %v3801_v60  ;;  %v3854_v59 = vadd.f32 %v3838_v19, %v3802_v28  ;;  %v15858_v19 = vld [vmem:[#allocation2 + $0xc8] sm:$0x3f] }
 0x17d   : > { %v6540_v9 = vadd.f32 %v15830_v54, %v6520_v10  ;;  %v6542_v46 = vadd.f32 %v15830_v54, %v6522_v38  ;;  %v3855_v21 = vadd.f32 %v3839_v12, %v3803_v61  ;;  %v3856_v0 = vadd.f32 %v3840_v35, %v3804_v22  ;;  %v20605_v22 = vld [vmem:[#allocation20_spill] sm:$0xff]  ;;  %v15856_v38 = vld [vmem:[#allocation2 + $0xc0] sm:$0xff] }
 0x17e   : > { %v6577_v4 = vrot.slane %v6541_v39, 2  ;;  %v6580_v29 = vrot.slane %v6543_v16, 2  ;;  %v3873_v2 = vmul.f32 %v20604_v40, %v15460_v53  ;;  %v3874_v60 = vmul.f32 %v20604_v40, %v15466_v20 }
 0x17f   : > { %v6576_v30 = vrot.slane %v6540_v9, 2  ;;  %v6579_v44 = vrot.slane %v6542_v46, 2  ;;  %v3875_v42 = vmul.f32 %v20604_v40, %v15479_v8  ;;  %v3876_v28 = vmul.f32 %v20604_v40, %v15484_v24 }
 0x180   : > { %v3889_v61 = vadd.f32 %v3873_v2, %v3853_v18  ;;  %v3909_v5 = vmul.f32 %v20605_v22, %v15479_v8  ;;  %v3910_v43 = vmul.f32 %v20605_v22, %v15484_v24  ;;  %v3890_v12 = vadd.f32 %v3874_v60, %v3854_v59 }
 0x181   : > { %v6578_v3 = vsel %vm1139_vm4, %v6576_v30, %v6577_v4  ;;  %v6581_v10 = vsel %vm1139_vm4, %v6579_v44, %v6580_v29  ;;  %v3891_v39 = vadd.f32 %v3875_v42, %v3855_v21  ;;  %v3892_v35 = vadd.f32 %v3876_v28, %v3856_v0  ;;  %v20606_v4 = vld [vmem:[#allocation23_spill] sm:$0xff]  ;;  %v15873_v42 = vld [vmem:[#allocation2 + $0x70] sm:$0xff]  ;;  %v20607_v28 = vld [vmem:[#allocation24_spill] sm:$0xff] }
 0x182   : > { %v14182_v16 = vpack.i.bf16 %v6581_v10, %v6578_v3  ;;  %v3911_v18 = vmul.f32 %v20605_v22, %v15842_v6  ;;  %v3912_v9 = vmul.f32 %v20605_v22, %v15840_v47  ;;  %v3925_v46 = vadd.f32 %v3909_v5, %v3889_v61  ;;  %v15877_v22 = vld [vmem:[#allocation2 + $0x78] sm:$0x3f] }
 0x183   : > { %v3926_v40 = vadd.f32 %v3910_v43, %v3890_v12  ;;  %v3945_v2 = vmul.f32 %v20606_v4, %v15842_v6  ;;  %v3946_v29 = vmul.f32 %v20606_v4, %v15840_v47  ;;  %v3947_v0 = vmul.f32 %v20606_v4, %v15856_v38 }
 0x184   : > { %14183 = vrot.lane.b32.xlu1 %v14182_v16, %s14312_s15  ;;  %v3927_v59 = vadd.f32 %v3911_v18, %v3891_v39  ;;  %v3928_v21 = vadd.f32 %v3912_v9, %v3892_v35  ;;  %v3948_v30 = vmul.f32 %v20606_v4, %v15858_v19  ;;  %v3981_v61 = vmul.f32 %v15873_v42, %v20607_v28 }
 0x185   : > { %v3961_v44 = vadd.f32 %v3945_v2, %v3925_v46  ;;  %v3962_v60 = vadd.f32 %v3946_v29, %v3926_v40  ;;  %v3982_v5 = vmul.f32 %v15877_v22, %v20607_v28  ;;  %v3983_v10 = vmul.f32 %v15468_v23, %v20607_v28 }
 0x186   : > { %v3963_v43 = vadd.f32 %v3947_v0, %v3927_v59  ;;  %v3964_v3 = vadd.f32 %v3948_v30, %v3928_v21  ;;  %v3984_v12 = vmul.f32 %v15472_v49, %v20607_v28  ;;  %v4019_v39 = vrot.slane %v3981_v61, 1 }
 0x187   : > { %v4020_v16 = vrot.slane %v3982_v5, 1  ;;  %v4073_v35 = vmul.f32 %v15468_v23, %v14571_v26  ;;  %v4074_v18 = vmul.f32 %v15472_v49, %v14571_v26  ;;  %v4022_v9 = vrot.slane %v3983_v10, 1 }
 0x188   : > { %v4023_v46 = vrot.slane %v3984_v12, 1  ;;  %v4075_v40 = vmul.f32 %v14571_v26, %v15460_v53  ;;  %v4076_v4 = vmul.f32 %v14571_v26, %v15466_v20  ;;  %v4165_v54 = vmul.f32 %v14575_v27, %v15460_v53 }
 0x189   : > { %v4021_v2 = vsel %vm606_vm3, %v4019_v39, %v4020_v16  ;;  %v4054_v29 = vadd.f32 %v4020_v16, %v3962_v60  ;;  %v4111_v59 = vrot.slane %v4073_v35, 1  ;;  %v4112_v21 = vrot.slane %v4074_v18, 1 }
 0x18a   : > { %v4024_v0 = vsel %vm606_vm3, %v4022_v9, %v4023_v46  ;;  %v4053_v30 = vadd.f32 %v4021_v2, %v3961_v44  ;;  %v4056_v23 = vadd.f32 %v4023_v46, %v3964_v3  ;;  %v4114_v28 = vrot.slane %v4075_v40, 1 }
 0x18b   : > { %v4055_v61 = vadd.f32 %v4024_v0, %v3963_v43  ;;  %v4113_v49 = vsel %vm606_vm3, %v4111_v59, %v4112_v21  ;;  %v4115_v5 = vrot.slane %v4076_v4, 1  ;;  %v4146_v10 = vadd.f32 %v4112_v21, %v4054_v29 }
 0x18c   : > { %v4145_v12 = vadd.f32 %v4113_v49, %v4053_v30  ;;  %v4166_v26 = vmul.f32 %v14575_v27, %v15466_v20  ;;  %v4167_v60 = vmul.f32 %v14575_v27, %v15479_v8  ;;  %v4168_v43 = vmul.f32 %v14575_v27, %v15484_v24 }
 0x18d   : > { %v4116_v39 = vsel %vm606_vm3, %v4114_v28, %v4115_v5  ;;  %v4148_v44 = vadd.f32 %v4115_v5, %v4056_v23  ;;  %v4257_v3 = vmul.f32 %v14591_v32, %v15479_v8  ;;  %v4203_v35 = vrot.slane %v4165_v54, 1 }
 0x18e   : > { %v4147_v16 = vadd.f32 %v4116_v39, %v4055_v61  ;;  %v4204_v18 = vrot.slane %v4166_v26, 1  ;;  %v4206_v9 = vrot.slane %v4167_v60, 1  ;;  %v4207_v53 = vrot.slane %v4168_v43, 1 }
 0x18f   : > { %v4258_v20 = vmul.f32 %v14591_v32, %v15484_v24  ;;  %v4259_v46 = vmul.f32 %v14591_v32, %v15842_v6  ;;  %v4260_v40 = vmul.f32 %v14591_v32, %v15840_v47  ;;  %v4295_v2 = vrot.slane %v4257_v3, 1 }
 0x190   : > { %v4205_v4 = vsel %vm606_vm3, %v4203_v35, %v4204_v18  ;;  %v4238_v27 = vadd.f32 %v4204_v18, %v4146_v10  ;;  %v4349_v8 = vmul.f32 %v14595_v33, %v15842_v6  ;;  %v4208_v54 = vsel %vm606_vm3, %v4206_v9, %v4207_v53  ;;  %v15929_v35 = vld [vmem:[#allocation2 + $0x80] sm:$0xff]  ;;  %v15933_v18 = vld [vmem:[#allocation2 + $0x88] sm:$0x3f] }
 0x191   : > { %v4237_v29 = vadd.f32 %v4205_v4, %v4145_v12  ;;  %v4240_v59 = vadd.f32 %v4207_v53, %v4148_v44  ;;  %v4296_v21 = vrot.slane %v4258_v20, 1  ;;  %v4239_v0 = vadd.f32 %v4208_v54, %v4147_v16 }
 0x192   : > { %v4298_v24 = vrot.slane %v4259_v46, 1  ;;  %v4299_v30 = vrot.slane %v4260_v40, 1  ;;  %v4350_v23 = vmul.f32 %v14595_v33, %v15840_v47  ;;  %v4351_v61 = vmul.f32 %v14595_v33, %v15856_v38 }
 0x193   : > { %v4297_v32 = vsel %vm606_vm3, %v4295_v2, %v4296_v21  ;;  %v4330_v28 = vadd.f32 %v4296_v21, %v4238_v27  ;;  %v4352_v49 = vmul.f32 %v14595_v33, %v15858_v19  ;;  %v4387_v26 = vrot.slane %v4349_v8, 1 }
 0x194   : > { %v4300_v5 = vsel %vm606_vm3, %v4298_v24, %v4299_v30  ;;  %v4329_v10 = vadd.f32 %v4297_v32, %v4237_v29  ;;  %v4332_v12 = vadd.f32 %v4299_v30, %v4240_v59  ;;  %v4388_v39 = vrot.slane %v4350_v23, 1  ;;  %v15944_v24 = vld [vmem:[#allocation2 + $0x90] sm:$0xff]  ;;  %v15948_v23 = vld [vmem:[#allocation2 + $0x98] sm:$0x3f] }
 0x195   : > { %v4331_v60 = vadd.f32 %v4300_v5, %v4239_v0  ;;  %v4390_v44 = vrot.slane %v4351_v61, 1  ;;  %v4391_v43 = vrot.slane %v4352_v49, 1  ;;  %v4441_v3 = vmul.f32 %v15873_v42, %v14599_v34 }
 0x196   : > { %v4442_v16 = vmul.f32 %v15877_v22, %v14599_v34  ;;  %v4443_v33 = vmul.f32 %v15929_v35, %v14599_v34  ;;  %v4444_v9 = vmul.f32 %v15933_v18, %v14599_v34  ;;  %v4389_v53 = vsel %vm606_vm3, %v4387_v26, %v4388_v39 }
 0x197   : > { %v4392_v20 = vsel %vm606_vm3, %v4390_v44, %v4391_v43  ;;  %v4422_v46 = vadd.f32 %v4388_v39, %v4330_v28  ;;  %v4424_v40 = vadd.f32 %v4391_v43, %v4332_v12  ;;  %v4421_v4 = vadd.f32 %v4389_v53, %v4329_v10  ;;  %v15957_v43 = vld [vmem:[#allocation2 + $0xa0] sm:$0xff] }
 0x198   : > { %v4423_v27 = vadd.f32 %v4392_v20, %v4331_v60  ;;  %v4479_v2 = vrot.slane %v4441_v3, 2  ;;  %v4480_v8 = vrot.slane %v4442_v16, 2  ;;  %v4482_v54 = vrot.slane %v4443_v33, 2  ;;  %v15961_v3 = vld [vmem:[#allocation2 + $0xa8] sm:$0x3f] }
 0x199   : > { %v4483_v29 = vrot.slane %v4444_v9, 2  ;;  %v4533_v59 = vmul.f32 %v15929_v35, %v14726_v45  ;;  %v4534_v21 = vmul.f32 %v15933_v18, %v14726_v45  ;;  %v4535_v30 = vmul.f32 %v15944_v24, %v14726_v45 }
 0x19a   : > { %v4481_v34 = vsel %vm1139_vm4, %v4479_v2, %v4480_v8  ;;  %v4514_v0 = vadd.f32 %v4480_v8, %v4422_v46  ;;  %v4536_v32 = vmul.f32 %v15948_v23, %v14726_v45  ;;  %v4625_v39 = vmul.f32 %v15944_v24, %v14730_v57 }
 0x19b   : > { %v4484_v28 = vsel %vm1139_vm4, %v4482_v54, %v4483_v29  ;;  %v4513_v61 = vadd.f32 %v4481_v34, %v4421_v4  ;;  %v4516_v49 = vadd.f32 %v4483_v29, %v4424_v40  ;;  %v4571_v5 = vrot.slane %v4533_v59, 2 }
 0x19c   : > { %v4515_v10 = vadd.f32 %v4484_v28, %v4423_v27  ;;  %v4572_v12 = vrot.slane %v4534_v21, 2  ;;  %v4574_v26 = vrot.slane %v4535_v30, 2  ;;  %v4575_v60 = vrot.slane %v4536_v32, 2 }
 0x19d   : > { %v4626_v44 = vmul.f32 %v15948_v23, %v14730_v57  ;;  %v4627_v45 = vmul.f32 %v15957_v43, %v14730_v57  ;;  %v4628_v16 = vmul.f32 %v15961_v3, %v14730_v57  ;;  %v4663_v4 = vrot.slane %v4625_v39, 2 }
 0x19e   : > { %v4573_v33 = vsel %vm1139_vm4, %v4571_v5, %v4572_v12  ;;  %v4576_v9 = vsel %vm1139_vm4, %v4574_v26, %v4575_v60  ;;  %v4606_v53 = vadd.f32 %v4572_v12, %v4514_v0  ;;  %v4608_v20 = vadd.f32 %v4575_v60, %v4516_v49 }
 0x19f   : > { %v4605_v46 = vadd.f32 %v4573_v33, %v4513_v61  ;;  %v4607_v40 = vadd.f32 %v4576_v9, %v4515_v10  ;;  %v4664_v27 = vrot.slane %v4626_v44, 2  ;;  %v4666_v2 = vrot.slane %v4627_v45, 2 }
 0x1a0   : > { %v4667_v8 = vrot.slane %v4628_v16, 2  ;;  %v4717_v54 = vmul.f32 %v15957_v43, %v14734_v58  ;;  %v4718_v29 = vmul.f32 %v15961_v3, %v14734_v58  ;;  %v4719_v21 = vmul.f32 %v14734_v58, %v15842_v6 }
 0x1a1   : > { %v4665_v57 = vsel %vm1139_vm4, %v4663_v4, %v4664_v27  ;;  %v4698_v59 = vadd.f32 %v4664_v27, %v4606_v53  ;;  %v4720_v34 = vmul.f32 %v14734_v58, %v15840_v47  ;;  %v4809_v12 = vmul.f32 %v14739_v55, %v15842_v6 }
 0x1a2   : > { %v4668_v0 = vsel %vm1139_vm4, %v4666_v2, %v4667_v8  ;;  %v4697_v30 = vadd.f32 %v4665_v57, %v4605_v46  ;;  %v4700_v32 = vadd.f32 %v4667_v8, %v4608_v20  ;;  %v4755_v28 = vrot.slane %v4717_v54, 2 }
 0x1a3   : > { %v4699_v61 = vadd.f32 %v4668_v0, %v4607_v40  ;;  %v4756_v49 = vrot.slane %v4718_v29, 2  ;;  %v4758_v5 = vrot.slane %v4719_v21, 2  ;;  %v4759_v10 = vrot.slane %v4720_v34, 2 }
 0x1a4   : > { %v4810_v26 = vmul.f32 %v14739_v55, %v15840_v47  ;;  %v4811_v60 = vmul.f32 %v14739_v55, %v15856_v38  ;;  %v4812_v58 = vmul.f32 %v14739_v55, %v15858_v19  ;;  %v4847_v53 = vrot.slane %v4809_v12, 2 }
 0x1a5   : > { %v4757_v39 = vsel %vm1139_vm4, %v4755_v28, %v4756_v49  ;;  %v4760_v44 = vsel %vm1139_vm4, %v4758_v5, %v4759_v10  ;;  %v4790_v45 = vadd.f32 %v4756_v49, %v4698_v59  ;;  %v4792_v16 = vadd.f32 %v4759_v10, %v4700_v32 }
 0x1a6   : > { %v4789_v33 = vadd.f32 %v4757_v39, %v4697_v30  ;;  %v4791_v9 = vadd.f32 %v4760_v44, %v4699_v61  ;;  %v4848_v20 = vrot.slane %v4810_v26, 2  ;;  %v4850_v46 = vrot.slane %v4811_v60, 2 }
 0x1a7   : > { %v4851_v40 = vrot.slane %v4812_v58, 2  ;;  %v4901_v4 = vmul.f32 %v15873_v42, %v14743_v17  ;;  %v4902_v27 = vmul.f32 %v15877_v22, %v14743_v17  ;;  %v4903_v8 = vmul.f32 %v15929_v35, %v14743_v17 }
 0x1a8   : > { %v4849_v55 = vsel %vm1139_vm4, %v4847_v53, %v4848_v20  ;;  %v4882_v2 = vadd.f32 %v4848_v20, %v4790_v45  ;;  %v4904_v54 = vmul.f32 %v15933_v18, %v14743_v17  ;;  %v4993_v28 = vmul.f32 %v15929_v35, %v14795_v31 }
 0x1a9   : > { %v4852_v29 = vsel %vm1139_vm4, %v4850_v46, %v4851_v40  ;;  %v4881_v57 = vadd.f32 %v4849_v55, %v4789_v33  ;;  %v4884_v59 = vadd.f32 %v4851_v40, %v4792_v16  ;;  %v4939_v21 = vrot.slane %v4901_v4, 3 }
 0x1aa   : > { %v4883_v34 = vadd.f32 %v4852_v29, %v4791_v9  ;;  %v4940_v0 = vrot.slane %v4902_v27, 3  ;;  %v4942_v30 = vrot.slane %v4903_v8, 3  ;;  %v4943_v32 = vrot.slane %v4904_v54, 3 }
 0x1ab   : > { %v4994_v61 = vmul.f32 %v15933_v18, %v14795_v31  ;;  %v4995_v49 = vmul.f32 %v15944_v24, %v14795_v31  ;;  %v4996_v17 = vmul.f32 %v15948_v23, %v14795_v31  ;;  %v5031_v39 = vrot.slane %v4993_v28, 3 }
 0x1ac   : > { %v4941_v5 = vsel %vm1672_vm5, %v4939_v21, %v4940_v0  ;;  %v4944_v10 = vsel %vm1672_vm5, %v4942_v30, %v4943_v32  ;;  %v4974_v12 = vadd.f32 %v4940_v0, %v4882_v2  ;;  %v4976_v26 = vadd.f32 %v4943_v32, %v4884_v59 }
 0x1ad   : > { %v4973_v60 = vadd.f32 %v4941_v5, %v4881_v57  ;;  %v4975_v58 = vadd.f32 %v4944_v10, %v4883_v34  ;;  %v5032_v44 = vrot.slane %v4994_v61, 3  ;;  %v5034_v45 = vrot.slane %v4995_v49, 3 }
 0x1ae   : > { %v5035_v16 = vrot.slane %v4996_v17, 3  ;;  %v5085_v33 = vmul.f32 %v15944_v24, %v14799_v50  ;;  %v5086_v9 = vmul.f32 %v15948_v23, %v14799_v50  ;;  %v5087_v20 = vmul.f32 %v15957_v43, %v14799_v50 }
 0x1af   : > { %v5033_v31 = vsel %vm1672_vm5, %v5031_v39, %v5032_v44  ;;  %v5066_v53 = vadd.f32 %v5032_v44, %v4974_v12  ;;  %v5088_v46 = vmul.f32 %v15961_v3, %v14799_v50  ;;  %v5177_v57 = vmul.f32 %v15957_v43, %v14803_v51 }
 0x1b0   : > { %v5036_v40 = vsel %vm1672_vm5, %v5034_v45, %v5035_v16  ;;  %v5065_v4 = vadd.f32 %v5033_v31, %v4973_v60  ;;  %v5068_v27 = vadd.f32 %v5035_v16, %v4976_v26  ;;  %v5123_v55 = vrot.slane %v5085_v33, 3 }
 0x1b1   : > { %v5067_v2 = vadd.f32 %v5036_v40, %v4975_v58  ;;  %v5124_v8 = vrot.slane %v5086_v9, 3  ;;  %v5126_v54 = vrot.slane %v5087_v20, 3  ;;  %v5127_v29 = vrot.slane %v5088_v46, 3 }
 0x1b2   : > { %v5178_v59 = vmul.f32 %v15961_v3, %v14803_v51  ;;  %v5179_v21 = vmul.f32 %v14803_v51, %v15842_v6  ;;  %v5180_v50 = vmul.f32 %v14803_v51, %v15840_v47  ;;  %v5215_v49 = vrot.slane %v5177_v57, 3 }
 0x1b3   : > { %v5125_v34 = vsel %vm1672_vm5, %v5123_v55, %v5124_v8  ;;  %v5128_v0 = vsel %vm1672_vm5, %v5126_v54, %v5127_v29  ;;  %v5158_v30 = vadd.f32 %v5124_v8, %v5066_v53  ;;  %v5160_v32 = vadd.f32 %v5127_v29, %v5068_v27 }
 0x1b4   : > { %v5157_v28 = vadd.f32 %v5125_v34, %v5065_v4  ;;  %v5159_v61 = vadd.f32 %v5128_v0, %v5067_v2  ;;  %v5216_v17 = vrot.slane %v5178_v59, 3  ;;  %v5218_v5 = vrot.slane %v5179_v21, 3 }
 0x1b5   : > { %v5219_v10 = vrot.slane %v5180_v50, 3  ;;  %v5269_v12 = vmul.f32 %v14808_v48, %v15842_v6  ;;  %v5270_v26 = vmul.f32 %v14808_v48, %v15840_v47  ;;  %v5271_v58 = vmul.f32 %v14808_v48, %v15856_v38 }
 0x1b6   : > { %v5217_v51 = vsel %vm1672_vm5, %v5215_v49, %v5216_v17  ;;  %v5250_v60 = vadd.f32 %v5216_v17, %v5158_v30  ;;  %v5272_v39 = vmul.f32 %v14808_v48, %v15858_v19  ;;  %v5361_v46 = vmul.f32 %v15873_v42, %v14812_v25 }
 0x1b7   : > { %v5220_v44 = vsel %vm1672_vm5, %v5218_v5, %v5219_v10  ;;  %v5249_v45 = vadd.f32 %v5217_v51, %v5157_v28  ;;  %v5252_v16 = vadd.f32 %v5219_v10, %v5160_v32  ;;  %v5307_v33 = vrot.slane %v5269_v12, 3 }
 0x1b8   : > { %v5251_v9 = vadd.f32 %v5220_v44, %v5159_v61  ;;  %v5308_v31 = vrot.slane %v5270_v26, 3  ;;  %v5310_v53 = vrot.slane %v5271_v58, 3  ;;  %v5311_v20 = vrot.slane %v5272_v39, 3 }
 0x1b9   : > { %v5362_v40 = vmul.f32 %v15877_v22, %v14812_v25  ;;  %v5363_v4 = vmul.f32 %v15929_v35, %v14812_v25  ;;  %v5364_v48 = vmul.f32 %v15933_v18, %v14812_v25  ;;  %v5399_v57 = vrot.slane %v5361_v46, 4 }
 0x1ba   : > { %v5309_v27 = vsel %vm1672_vm5, %v5307_v33, %v5308_v31  ;;  %v5312_v55 = vsel %vm1672_vm5, %v5310_v53, %v5311_v20  ;;  %v5342_v2 = vadd.f32 %v5308_v31, %v5250_v60  ;;  %v5344_v8 = vadd.f32 %v5311_v20, %v5252_v16 }
 0x1bb   : > { %v5341_v54 = vadd.f32 %v5309_v27, %v5249_v45  ;;  %v5343_v29 = vadd.f32 %v5312_v55, %v5251_v9  ;;  %v5400_v59 = vrot.slane %v5362_v40, 4  ;;  %v5402_v21 = vrot.slane %v5363_v4, 4 }
 0x1bc   : > { %v5403_v50 = vrot.slane %v5364_v48, 4  ;;  %v5453_v34 = vmul.f32 %v15929_v35, %v14875_v56  ;;  %v5454_v0 = vmul.f32 %v15933_v18, %v14875_v56  ;;  %v5455_v32 = vmul.f32 %v15944_v24, %v14875_v56 }
 0x1bd   : > { %v5401_v25 = vsel %vm2205_vm6, %v5399_v57, %v5400_v59  ;;  %v5434_v30 = vadd.f32 %v5400_v59, %v5342_v2  ;;  %v5456_v28 = vmul.f32 %v15948_v23, %v14875_v56  ;;  %v5545_v60 = vmul.f32 %v15944_v24, %v14879_v11 }
 0x1be   : > { %v5404_v61 = vsel %vm2205_vm6, %v5402_v21, %v5403_v50  ;;  %v5433_v49 = vadd.f32 %v5401_v25, %v5341_v54  ;;  %v5436_v17 = vadd.f32 %v5403_v50, %v5344_v8  ;;  %v5491_v5 = vrot.slane %v5453_v34, 4 }
 0x1bf   : > { %v5435_v10 = vadd.f32 %v5404_v61, %v5343_v29  ;;  %v5492_v12 = vrot.slane %v5454_v0, 4  ;;  %v5494_v26 = vrot.slane %v5455_v32, 4  ;;  %v5495_v51 = vrot.slane %v5456_v28, 4 }
 0x1c0   : > { %v5546_v58 = vmul.f32 %v15948_v23, %v14879_v11  ;;  %v5547_v39 = vmul.f32 %v15957_v43, %v14879_v11  ;;  %v5548_v56 = vmul.f32 %v15961_v3, %v14879_v11  ;;  %v5583_v53 = vrot.slane %v5545_v60, 4 }
 0x1c1   : > { %v5493_v44 = vsel %vm2205_vm6, %v5491_v5, %v5492_v12  ;;  %v5496_v45 = vsel %vm2205_vm6, %v5494_v26, %v5495_v51  ;;  %v5526_v16 = vadd.f32 %v5492_v12, %v5434_v30  ;;  %v5528_v33 = vadd.f32 %v5495_v51, %v5436_v17 }
 0x1c2   : > { %v5525_v9 = vadd.f32 %v5493_v44, %v5433_v49  ;;  %v5527_v31 = vadd.f32 %v5496_v45, %v5435_v10  ;;  %v5584_v20 = vrot.slane %v5546_v58, 4  ;;  %v5586_v46 = vrot.slane %v5547_v39, 4 }
 0x1c3   : > { %v5587_v40 = vrot.slane %v5548_v56, 4  ;;  %v5637_v4 = vmul.f32 %v15957_v43, %v14883_v7  ;;  %v5638_v48 = vmul.f32 %v15961_v3, %v14883_v7  ;;  %v5639_v55 = vmul.f32 %v14883_v7, %v15842_v6 }
 0x1c4   : > { %v5585_v11 = vsel %vm2205_vm6, %v5583_v53, %v5584_v20  ;;  %v5618_v27 = vadd.f32 %v5584_v20, %v5526_v16  ;;  %v5640_v2 = vmul.f32 %v14883_v7, %v15840_v47  ;;  %v5729_v0 = vmul.f32 %v15698_v62, %v15842_v6 }
 0x1c5   : > { %v5588_v8 = vsel %vm2205_vm6, %v5586_v46, %v5587_v40  ;;  %v5617_v54 = vadd.f32 %v5585_v11, %v5525_v9  ;;  %v5620_v29 = vadd.f32 %v5587_v40, %v5528_v33  ;;  %v5675_v57 = vrot.slane %v5637_v4, 4 }
 0x1c6   : > { %v5619_v59 = vadd.f32 %v5588_v8, %v5527_v31  ;;  %v5676_v21 = vrot.slane %v5638_v48, 4  ;;  %v5678_v50 = vrot.slane %v5639_v55, 4  ;;  %v5679_v34 = vrot.slane %v5640_v2, 4 }
 0x1c7   : > { %v5730_v25 = vmul.f32 %v15698_v62, %v15840_v47  ;;  %v5731_v30 = vmul.f32 %v15698_v62, %v15856_v38  ;;  %v5732_v7 = vmul.f32 %v15698_v62, %v15858_v19  ;;  %v5767_v10 = vrot.slane %v5729_v0, 4 }
 0x1c8   : > { %v5677_v32 = vsel %vm2205_vm6, %v5675_v57, %v5676_v21  ;;  %v5680_v28 = vsel %vm2205_vm6, %v5678_v50, %v5679_v34  ;;  %v5710_v61 = vadd.f32 %v5676_v21, %v5618_v27  ;;  %v5712_v49 = vadd.f32 %v5679_v34, %v5620_v29 }
 0x1c9   : > { %v5709_v17 = vadd.f32 %v5677_v32, %v5617_v54  ;;  %v5711_v5 = vadd.f32 %v5680_v28, %v5619_v59  ;;  %v5768_v12 = vrot.slane %v5730_v25, 4  ;;  %v5770_v26 = vrot.slane %v5731_v30, 4 }
 0x1ca   : > { %v5771_v51 = vrot.slane %v5732_v7, 4  ;;  %v5884_v60 = vmul.f32 %v15929_v35, %v15207_v52  ;;  %v5885_v38 = vmul.f32 %v15933_v18, %v15207_v52  ;;  %v5886_v58 = vmul.f32 %v15944_v24, %v15207_v52 }
 0x1cb   : > { %v5769_v62 = vsel %vm2205_vm6, %v5767_v10, %v5768_v12  ;;  %v5802_v19 = vadd.f32 %v5768_v12, %v5710_v61  ;;  %v5887_v39 = vmul.f32 %v15948_v23, %v15207_v52  ;;  %v5920_v16 = vmul.f32 %v15944_v24, %v15226_v63 }
 0x1cc   : > { %v5772_v56 = vsel %vm2205_vm6, %v5770_v26, %v5771_v51  ;;  %v5801_v44 = vadd.f32 %v5769_v62, %v5709_v17  ;;  %v5804_v45 = vadd.f32 %v5771_v51, %v5712_v49  ;;  %v5921_v31 = vmul.f32 %v15948_v23, %v15226_v63  ;;  %v20608_v17 = vld [vmem:[#allocation26_spill] sm:$0xff] }
 0x1cd   : > { %v5803_v33 = vadd.f32 %v5772_v56, %v5711_v5  ;;  %v5822_v9 = vadd.f32 %v15721_v36, %v5802_v19  ;;  %v5922_v53 = vmul.f32 %v15957_v43, %v15226_v63  ;;  %v5923_v46 = vmul.f32 %v15961_v3, %v15226_v63 }
 0x1ce   : > { %v5821_v20 = vadd.f32 %v15721_v36, %v5801_v44  ;;  %v5824_v52 = vadd.f32 %v15721_v36, %v5804_v45  ;;  %v5936_v40 = vadd.f32 %v5920_v16, %v5884_v60  ;;  %v5937_v11 = vadd.f32 %v5921_v31, %v5885_v38 }
 0x1cf   : > { %v5823_v4 = vadd.f32 %v15721_v36, %v5803_v33  ;;  %v5860_v48 = vrot.slane %v5822_v9, 1  ;;  %v5938_v27 = vadd.f32 %v5922_v53, %v5886_v58  ;;  %v5939_v8 = vadd.f32 %v5923_v46, %v5887_v39 }
 0x1d0   : > { %v5859_v55 = vrot.slane %v5821_v20, 1  ;;  %v5863_v2 = vrot.slane %v5824_v52, 1  ;;  %v5956_v54 = vmul.f32 %v15957_v43, %v15230_v41  ;;  %v5957_v57 = vmul.f32 %v15961_v3, %v15230_v41 }
 0x1d1   : > { %v5862_v29 = vrot.slane %v5823_v4, 1  ;;  %v5958_v59 = vmul.f32 %v15230_v41, %v15842_v6  ;;  %v5959_v63 = vmul.f32 %v15230_v41, %v15840_v47  ;;  %v5992_v50 = vmul.f32 %v15929_v35, %v15236_v1 }
 0x1d2   : > { %v5861_v36 = vsel %vm606_vm3, %v5859_v55, %v5860_v48  ;;  %v5972_v21 = vadd.f32 %v5956_v54, %v5936_v40  ;;  %v5993_v34 = vmul.f32 %v15933_v18, %v15236_v1  ;;  %v5973_v25 = vadd.f32 %v5957_v57, %v5937_v11 }
 0x1d3   : > { %v5864_v0 = vsel %vm606_vm3, %v5862_v29, %v5863_v2  ;;  %v5974_v30 = vadd.f32 %v5958_v59, %v5938_v27  ;;  %v5975_v7 = vadd.f32 %v5959_v63, %v5939_v8  ;;  %v5994_v28 = vmul.f32 %v15944_v24, %v15236_v1 }
 0x1d4   : > { %v14192_v32 = vpack.i.bf16 %v5864_v0, %v5861_v36  ;;  %v5995_v41 = vmul.f32 %v15948_v23, %v15236_v1  ;;  %v6030_v61 = vrot.slane %v5992_v50, 1  ;;  %v6031_v49 = vrot.slane %v5993_v34, 1 }
 0x1d5   : > { %v6084_v5 = vmul.f32 %v15944_v24, %v20608_v17  ;;  %v6085_v10 = vmul.f32 %v15948_v23, %v20608_v17  ;;  %v6086_v12 = vmul.f32 %v15957_v43, %v20608_v17  ;;  %v6033_v26 = vrot.slane %v5994_v28, 1 }
 0x1d6   : > { %14193 = vrot.lane.b32.xlu0 %v14192_v32, %s14311_s26  ;;  %v6034_v51 = vrot.slane %v5995_v41, 1  ;;  %v6087_v60 = vmul.f32 %v15961_v3, %v20608_v17  ;;  %v6176_v1 = vmul.f32 %v15957_v43, %v15281_v15  ;;  %v6032_v38 = vsel %vm606_vm3, %v6030_v61, %v6031_v49 }
 0x1d7   : > { %v6065_v62 = vadd.f32 %v6031_v49, %v5973_v25  ;;  %v6122_v19 = vrot.slane %v6084_v5, 1  ;;  %v6123_v58 = vrot.slane %v6085_v10, 1  ;;  %v6064_v56 = vadd.f32 %v6032_v38, %v5972_v21 }
 0x1d8   : > { %v6035_v39 = vsel %vm606_vm3, %v6033_v26, %v6034_v51  ;;  %v6067_v44 = vadd.f32 %v6034_v51, %v5975_v7  ;;  %v6125_v45 = vrot.slane %v6086_v12, 1  ;;  %v6126_v9 = vrot.slane %v6087_v60, 1 }
 0x1d9   : > { %v6066_v16 = vadd.f32 %v6035_v39, %v5974_v30  ;;  %v6124_v33 = vsel %vm606_vm3, %v6122_v19, %v6123_v58  ;;  %v6157_v31 = vadd.f32 %v6123_v58, %v6065_v62  ;;  %v6177_v20 = vmul.f32 %v15961_v3, %v15281_v15 }
 0x1da   : > { %v6156_v53 = vadd.f32 %v6124_v33, %v6064_v56  ;;  %v6178_v52 = vmul.f32 %v15281_v15, %v15842_v6  ;;  %v6179_v46 = vmul.f32 %v15281_v15, %v15840_v47  ;;  %v6127_v40 = vsel %vm606_vm3, %v6125_v45, %v6126_v9  ;;  %v16183_v45 = vld [vmem:[%s20355_s1] sm:$0xff] }
 0x1db   : > { %v6159_v4 = vadd.f32 %v6126_v9, %v6067_v44  ;;  %v6214_v48 = vrot.slane %v6176_v1, 1  ;;  %v6268_v11 = vmul.f32 %v15929_v35, %v15302_v37  ;;  %v6158_v27 = vadd.f32 %v6127_v40, %v6066_v16 }
 0x1dc   : > { %v6215_v55 = vrot.slane %v6177_v20, 1  ;;  %v6217_v2 = vrot.slane %v6178_v52, 1  ;;  %v6218_v8 = vrot.slane %v6179_v46, 1  ;;  %v6269_v54 = vmul.f32 %v15933_v18, %v15302_v37  ;;  %v16196_v52 = vld [vmem:[%s20355_s1 + $0x10] sm:$0xff]  ;;  %v20610_v46 = vld [vmem:[#allocation4_spill] sm:$0xff] }
 0x1dd   : > { %v6270_v29 = vmul.f32 %v15944_v24, %v15302_v37  ;;  %v6271_v15 = vmul.f32 %v15948_v23, %v15302_v37  ;;  %v6306_v57 = vrot.slane %v6268_v11, 2  ;;  %v6360_v7 = vmul.f32 %v15944_v24, %v15306_v13 }
 0x1de   : > { %v6216_v59 = vsel %vm606_vm3, %v6214_v48, %v6215_v55  ;;  %v6219_v63 = vsel %vm606_vm3, %v6217_v2, %v6218_v8  ;;  %v6249_v36 = vadd.f32 %v6215_v55, %v6157_v31  ;;  %v6251_v21 = vadd.f32 %v6218_v8, %v6159_v4  ;;  %v20612_v4 = vld [vmem:[#allocation5_spill] sm:$0xff]  ;;  %v16210_v2 = vld [vmem:[%s20355_s1 + $0x18] sm:$0xff] }
 0x1df   : > { %v6248_v50 = vadd.f32 %v6216_v59, %v6156_v53  ;;  %v6250_v34 = vadd.f32 %v6219_v63, %v6158_v27  ;;  %v6307_v0 = vrot.slane %v6269_v54, 2  ;;  %v6309_v25 = vrot.slane %v6270_v29, 2  ;;  %v20614_v8 = vld [vmem:[#allocation6_spill] sm:$0xff]  ;;  %v16220_v59 = vld [vmem:[%s20355_s1 + $0x20] sm:$0xff] }
 0x1e0   : > { %v6310_v30 = vrot.slane %v6271_v15, 2  ;;  %v6361_v32 = vmul.f32 %v15948_v23, %v15306_v13  ;;  %v6362_v37 = vmul.f32 %v15957_v43, %v15306_v13  ;;  %v6363_v61 = vmul.f32 %v15961_v3, %v15306_v13  ;;  %v20616_v15 = vld [vmem:[#allocation18_spill] sm:$0xff]  ;;  %v16222_v63 = vld [vmem:[#allocation2 + $0x20] sm:$0xff] }
 0x1e1   : > { %v6308_v28 = vsel %vm1139_vm4, %v6306_v57, %v6307_v0  ;;  %v6341_v41 = vadd.f32 %v6307_v0, %v6249_v36  ;;  %v6452_v49 = vmul.f32 %v15957_v43, %v15799_v14  ;;  %v6398_v12 = vrot.slane %v6360_v7, 2  ;;  %v16176_v43 = vpop.permute.xlu0 %14163 }
 0x1e2   : > { %v6311_v17 = vsel %vm1139_vm4, %v6309_v25, %v6310_v30  ;;  %v6340_v5 = vadd.f32 %v6308_v28, %v6248_v50  ;;  %v6343_v10 = vadd.f32 %v6310_v30, %v6251_v21  ;;  %v6399_v51 = vrot.slane %v6361_v32, 2  ;;  %20609 = vst [vmem:[#allocation19_spill] sm:$0xff] %v16176_v43  ;;  %v16228_v21 = vld [vmem:[#allocation2 + $0x40] sm:$0xff]  ;;  %v16248_v28 = vld [vmem:[%s20355_s1 + $0x28] sm:$0xff]  ;;  %v16350_v43 = vld [vmem:[#allocation2 + $0x58] sm:$0x3f] }
 0x1e3   : > { %v6342_v26 = vadd.f32 %v6311_v17, %v6250_v34  ;;  %v6401_v60 = vrot.slane %v6362_v37, 2  ;;  %v6402_v1 = vrot.slane %v6363_v61, 2  ;;  %v6453_v38 = vmul.f32 %v15961_v3, %v15799_v14  ;;  %v20617_v30 = vld [vmem:[#allocation7_spill] sm:$0xff] }
 0x1e4   : > { %v6454_v62 = vmul.f32 %v15799_v14, %v15842_v6  ;;  %v6455_v13 = vmul.f32 %v15799_v14, %v15840_v47  ;;  %v6490_v19 = vrot.slane %v6452_v49, 2  ;;  %v6400_v58 = vsel %vm1139_vm4, %v6398_v12, %v6399_v51  ;;  %v16188_v14 = vld [vmem:[%s20355_s1 + $0x8] sm:$0xff]  ;;  %v20619_v49 = vld [vmem:[#allocation11_spill] sm:$0xff] }
 0x1e5   : > { %v6403_v39 = vsel %vm1139_vm4, %v6401_v60, %v6402_v1  ;;  %v6433_v56 = vadd.f32 %v6399_v51, %v6341_v41  ;;  %v6435_v44 = vadd.f32 %v6402_v1, %v6343_v10  ;;  %v6432_v3 = vadd.f32 %v6400_v58, %v6340_v5  ;;  %v16250_v41 = vld [vmem:[#allocation2 + $0x50] sm:$0xff]  ;;  %v16268_v1 = vld [vmem:[#allocation2 + $0x60] sm:$0xff] }
 0x1e6   : > { %v6434_v16 = vadd.f32 %v6403_v39, %v6342_v26  ;;  %v6491_v6 = vrot.slane %v6453_v38, 2  ;;  %v6493_v33 = vrot.slane %v6454_v62, 2  ;;  %v6494_v47 = vrot.slane %v6455_v13, 2  ;;  %v20622_v26 = vld [vmem:[#allocation12_spill] sm:$0xff]  ;;  %v20628_v39 = vld [vmem:[#allocation13_spill] sm:$0xff] }
 0x1e7   : > { %v16200_v40 = vrot.slane %v16183_v45, %v20610_v46  ;;  %v16204_v48 = vrot.slane %v16183_v45, %v20612_v4  ;;  %v16214_v54 = vrot.slane %v16188_v14, %v20614_v8  ;;  %v16242_v7 = vrot.slane %v16196_v52, %v20617_v30 }
 0x1e8   : > { %v6492_v53 = vsel %vm1139_vm4, %v6490_v19, %v6491_v6  ;;  %v6525_v20 = vadd.f32 %v6491_v6, %v6433_v56  ;;  %v6495_v11 = vsel %vm1139_vm4, %v6493_v33, %v6494_v47  ;;  %v6527_v55 = vadd.f32 %v6494_v47, %v6435_v44  ;;  %v20630_v44 = vld [vmem:[#allocation17_spill] sm:$0xff] }
 0x1e9   : > { %20611 = vst [vmem:[#allocation22_spill] sm:$0xff] %v16200_v40  ;;  %20613 = vst [vmem:[#allocation20_spill] sm:$0xff] %v16204_v48  ;;  %v6524_v27 = vadd.f32 %v6492_v53, %v6432_v3  ;;  %v6526_v29 = vadd.f32 %v6495_v11, %v6434_v16  ;;  %v16226_v36 = vmul.f32 %v16222_v63, %v16200_v40 }
 0x1ea   : > { %20615 = vst [vmem:[#allocation23_spill] sm:$0xff] %v16214_v54  ;;  %v6545_v57 = vadd.f32 %v20616_v15, %v6525_v20  ;;  %v16232_v50 = vmul.f32 %v16228_v21, %v16204_v48  ;;  %v6547_v0 = vadd.f32 %v20616_v15, %v6527_v55  ;;  %v16238_v25 = vmul.f32 %v16228_v21, %v16214_v54  ;;  %v16318_v55 = vld [vmem:[#allocation2 + $0x28] sm:$0x3f] }
 0x1eb   : > { %v6544_v34 = vadd.f32 %v20616_v15, %v6524_v27  ;;  %20618 = vst [vmem:[#allocation24_spill] sm:$0xff] %v16242_v7  ;;  %v6546_v32 = vadd.f32 %v20616_v15, %v6526_v29  ;;  %v16254_v61 = vmul.f32 %v16250_v41, %v16214_v54  ;;  %v16258_v17 = vrot.slane %v16210_v2, %v20619_v49  ;;  %v16322_v15 = vld [vmem:[#allocation2 + $0x38] sm:$0x3f] }
 0x1ec   : > { %v6583_v37 = vrot.slane %v6545_v57, 2  ;;  %v6586_v10 = vrot.slane %v6547_v0, 2  ;;  %v16262_v12 = vmul.f32 %v16250_v41, %v16242_v7  ;;  %v16266_v51 = vrot.slane %v16220_v59, %v20622_v26 }
 0x1ed   : > { %20620 = vst [vmem:[#allocation26_spill] sm:$0xff] %v16258_v17  ;;  %v6582_v5 = vrot.slane %v6544_v34, 2  ;;  %v6585_v60 = vrot.slane %v6546_v32, 2  ;;  %v16272_v38 = vmul.f32 %v16268_v1, %v16242_v7  ;;  %v16276_v62 = vmul.f32 %v16268_v1, %v16258_v17 }
 0x1ee   : > { %20621 = vst [vmem:[#allocation5_spill] sm:$0xff] %v16262_v12  ;;  %20623 = vst [vmem:[#allocation6_spill] sm:$0xff] %v16266_v51  ;;  %v16280_v13 = vmul.f32 %v15873_v42, %v16258_v17  ;;  %v16285_v58 = vmul.f32 %v15873_v42, %v16266_v51  ;;  %v16289_v56 = vrot.slane %v16248_v28, %v20628_v39 }
 0x1ef   : > { %20624 = vst [vmem:[#allocation18_spill] sm:$0xff] %v16272_v38  ;;  %20625 = vst [vmem:[#allocation7_spill] sm:$0xff] %v16276_v62  ;;  %v6584_v19 = vsel %vm1139_vm4, %v6582_v5, %v6583_v37  ;;  %v16293_v3 = vrot.slane %v16183_v45, %v20630_v44  ;;  %v6587_v16 = vsel %vm1139_vm4, %v6585_v60, %v6586_v10  ;;  %v16335_v37 = vld [vmem:[#allocation2 + $0x48] sm:$0x3f] }
 0x1f0   : > { %20626 = vst [vmem:[#allocation11_spill] sm:$0xff] %v16280_v13  ;;  %20627 = vst [vmem:[#allocation12_spill] sm:$0xff] %v16285_v58  ;;  %v16298_v6 = vmul.f32 %v15929_v35, %v16266_v51  ;;  %v16302_v33 = vrot.slane %v16188_v14, %v20610_v46  ;;  %v16306_v47 = vrot.slane %v16188_v14, %v20612_v4 }
 0x1f1   : > { %20629 = vst [vmem:[#allocation13_spill] sm:$0xff] %v16289_v56  ;;  %20631 = vst [vmem:[#allocation17_spill] sm:$0xff] %v16293_v3  ;;  %v14197_v53 = vpack.i.bf16 %v6587_v16, %v6584_v19  ;;  %v16310_v20 = vmul.f32 %v15929_v35, %v16289_v56  ;;  %v578_v11 = vmul.f32 %v16222_v63, %v16293_v3 }
 0x1f2   : > { %20632 = vst [vmem:[#allocation27_spill] sm:$0xff] %v16298_v6  ;;  %20633 = vst [vmem:[#allocation28_spill] sm:$0xff] %v16306_v47  ;;  %v16316_v27 = vrot.slane %v16196_v52, %v20614_v8  ;;  %v579_v29 = vmul.f32 %v16318_v55, %v16293_v3  ;;  %v16326_v57 = vmul.f32 %v16322_v15, %v16293_v3 }
 0x1f3   : > { %20634 = vst [vmem:[#allocation29_spill] sm:$0xff] %v16310_v20  ;;  %v16330_v34 = vmul.f32 %v16322_v15, %v16302_v33  ;;  %v657_v0 = vmul.f32 %v16228_v21, %v16302_v33  ;;  %14198 = vrot.lane.b32.xlu1 %v14197_v53, %s14312_s15  ;;  %v613_v32 = vrot.slane %v578_v11, 1  ;;  %v658_v5 = vmul.f32 %v16335_v37, %v16302_v33 }
 0x1f4   : > { %20635 = vst [vmem:[#allocation30_spill] sm:$0xff] %v16316_v27  ;;  %v731_v10 = vmul.f32 %v16228_v21, %v16306_v47  ;;  %v732_v60 = vmul.f32 %v16335_v37, %v16306_v47  ;;  %v16345_v19 = vmul.f32 %v15944_v24, %v16289_v56  ;;  %v614_v16 = vrot.slane %v579_v29, 1 }
 0x1f5   : > { %v692_v53 = vrot.slane %v657_v0, 1  ;;  %v693_v11 = vrot.slane %v658_v5, 1  ;;  %v733_v31 = vmul.f32 %v16250_v41, %v16306_v47  ;;  %v734_v51 = vmul.f32 %v16350_v43, %v16306_v47 }
 0x1f6   : > { %20636 = vst [vmem:[#allocation31_spill] sm:$0xff] %v16345_v19  ;;  %v765_v17 = vrot.slane %v731_v10, 1  ;;  %v766_v54 = vrot.slane %v732_v60, 1  ;;  %v807_v56 = vmul.f32 %v16250_v41, %v16316_v27  ;;  %v808_v29 = vmul.f32 %v16350_v43, %v16316_v27  ;;  %v16367_v10 = vld [vmem:[#allocation2 + $0x68] sm:$0x3f] }
 0x1f7   : > { %v16360_v0 = vsel %vm606_vm3, %v613_v32, %v614_v16  ;;  %v768_v5 = vrot.slane %v733_v31, 1  ;;  %v769_v9 = vrot.slane %v734_v51, 1  ;;  %v809_v19 = vmul.f32 %v16268_v1, %v16316_v27 }
 0x1f8   : > { %20637 = vst [vmem:[#allocation32_spill] sm:$0xff] %v16360_v0  ;;  %v16365_v47 = vsel %vm606_vm3, %v692_v53, %v693_v11  ;;  %v810_v60 = vmul.f32 %v16367_v10, %v16316_v27  ;;  %v841_v7 = vrot.slane %v807_v56, 1  ;;  %v842_v20 = vrot.slane %v808_v29, 1 }
 0x1f9   : > { %20638 = vst [vmem:[#allocation33_spill] sm:$0xff] %v16365_v47  ;;  %v16372_v6 = vsel %vm606_vm3, %v765_v17, %v766_v54  ;;  %v16375_v32 = vsel %vm606_vm3, %v768_v5, %v769_v9  ;;  %v844_v31 = vrot.slane %v809_v19, 1  ;;  %v16379_v51 = vrot.slane %v16210_v2, %v20617_v30 }
 0x1fa   : > { %20639 = vst [vmem:[#allocation34_spill] sm:$0xff] %v16372_v6  ;;  %20640 = vst [vmem:[#allocation35_spill] sm:$0xff] %v16375_v32  ;;  %v16382_v16 = vsel %vm606_vm3, %v841_v7, %v842_v20  ;;  %v845_v53 = vrot.slane %v810_v60, 1  ;;  %v16386_v11 = vrot.slane %v16220_v59, %v20619_v49  ;;  %v16390_v54 = vrot.slane %v16248_v28, %v20622_v26 }
 0x1fb   : > { %20641 = vst [vmem:[#allocation36_spill] sm:$0xff] %v16379_v51  ;;  %20642 = vst [vmem:[#allocation37_spill] sm:$0xff] %v16382_v16  ;;  %v883_v9 = vmul.f32 %v16268_v1, %v16379_v51  ;;  %v884_v17 = vmul.f32 %v16367_v10, %v16379_v51  ;;  %v885_v56 = vmul.f32 %v15873_v42, %v16379_v51 }
 0x1fc   : > { %20643 = vst [vmem:[#allocation38_spill] sm:$0xff] %v16386_v11  ;;  %20644 = vst [vmem:[#allocation39_spill] sm:$0xff] %v16390_v54  ;;  %v886_v7 = vmul.f32 %v15877_v22, %v16379_v51  ;;  %v959_v20 = vmul.f32 %v15873_v42, %v16386_v11  ;;  %v960_v19 = vmul.f32 %v15877_v22, %v16386_v11 }
 0x1fd   : > { %v961_v29 = vmul.f32 %v15929_v35, %v16386_v11  ;;  %v16408_v5 = vrot.slane %v16183_v45, %v20628_v39  ;;  %v917_v60 = vrot.slane %v883_v9, 1  ;;  %v918_v27 = vrot.slane %v884_v17, 1 }
 0x1fe   : > { %v920_v16 = vrot.slane %v885_v56, 1  ;;  %v921_v32 = vrot.slane %v886_v7, 1  ;;  %v16411_v6 = vsel %vm606_vm3, %v844_v31, %v845_v53  ;;  %v962_v42 = vmul.f32 %v15933_v18, %v16386_v11 }
 0x1ff   : > { %20645 = vst [vmem:[#allocation40_spill] sm:$0xff] %v16411_v6  ;;  %v993_v51 = vrot.slane %v959_v20, 1  ;;  %v994_v47 = vrot.slane %v960_v19, 1  ;;  %v16416_v22 = vsel %vm606_vm3, %v917_v60, %v918_v27  ;;  %v996_v0 = vrot.slane %v961_v29, 1 }
 0x200   : > { %20646 = vst [vmem:[#allocation41_spill] sm:$0xff] %v16416_v22  ;;  %v1035_v58 = vmul.f32 %v15929_v35, %v16390_v54  ;;  %v1036_v9 = vmul.f32 %v15933_v18, %v16390_v54  ;;  %v16423_v17 = vsel %vm606_vm3, %v920_v16, %v921_v32  ;;  %v997_v31 = vrot.slane %v962_v42, 1 }
 0x201   : > { %20647 = vst [vmem:[#allocation42_spill] sm:$0xff] %v16423_v17  ;;  %v1037_v53 = vmul.f32 %v15944_v24, %v16390_v54  ;;  %v1038_v56 = vmul.f32 %v15948_v23, %v16390_v54  ;;  %v1111_v20 = vmul.f32 %v16222_v63, %v16408_v5  ;;  %v1112_v19 = vmul.f32 %v16318_v55, %v16408_v5 }
 0x202   : > { %v1069_v7 = vrot.slane %v1035_v58, 1  ;;  %v1070_v27 = vrot.slane %v1036_v9, 1  ;;  %v16434_v29 = vsel %vm606_vm3, %v993_v51, %v994_v47  ;;  %v16438_v60 = vmul.f32 %v16322_v15, %v16408_v5 }
 0x203   : > { %20648 = vst [vmem:[#allocation43_spill] sm:$0xff] %v16434_v29  ;;  %v1072_v32 = vrot.slane %v1037_v53, 1  ;;  %v1073_v16 = vrot.slane %v1038_v56, 1  ;;  %v16441_v42 = vsel %vm606_vm3, %v996_v0, %v997_v31  ;;  %v1146_v58 = vrot.slane %v1111_v20, 2 }
 0x204   : > { %20649 = vst [vmem:[#allocation44_spill] sm:$0xff] %v16438_v60  ;;  %20650 = vst [vmem:[#allocation45_spill] sm:$0xff] %v16441_v42  ;;  %v1147_v9 = vrot.slane %v1112_v19, 2  ;;  %v16445_v54 = vrot.slane %v16188_v14, %v20630_v44  ;;  %v16448_v11 = vsel %vm606_vm3, %v1069_v7, %v1070_v27  ;;  %v16456_v53 = vrot.slane %v16196_v52, %v20610_v46 }
 0x205   : > { %20652 = vst [vmem:[#allocation47_spill] sm:$0xff] %v16448_v11  ;;  %v16451_v47 = vsel %vm606_vm3, %v1072_v32, %v1073_v16  ;;  %v16468_v7 = vrot.slane %v16196_v52, %v20612_v4  ;;  %v16502_v42 = vrot.slane %v16220_v59, %v20617_v30 }
 0x206   : > { %20651 = vst [vmem:[#allocation46_spill] sm:$0xff] %v16445_v54  ;;  %20653 = vst [vmem:[#allocation48_spill] sm:$0xff] %v16451_v47  ;;  %v16460_v0 = vmul.f32 %v16322_v15, %v16445_v54  ;;  %v1190_v31 = vmul.f32 %v16228_v21, %v16445_v54  ;;  %v1191_v56 = vmul.f32 %v16335_v37, %v16445_v54 }
 0x207   : > { %20654 = vst [vmem:[#allocation49_spill] sm:$0xff] %v16456_v53  ;;  %20656 = vst [vmem:[#allocation51_spill] sm:$0xff] %v16468_v7  ;;  %v1264_v27 = vmul.f32 %v16228_v21, %v16456_v53  ;;  %v1265_v20 = vmul.f32 %v16335_v37, %v16456_v53  ;;  %v1266_v19 = vmul.f32 %v16250_v41, %v16456_v53 }
 0x208   : > { %20655 = vst [vmem:[#allocation50_spill] sm:$0xff] %v16460_v0  ;;  %v1267_v32 = vmul.f32 %v16350_v43, %v16456_v53  ;;  %v16479_v16 = vsel %vm1139_vm4, %v1146_v58, %v1147_v9  ;;  %v1225_v51 = vrot.slane %v1190_v31, 2  ;;  %v1226_v47 = vrot.slane %v1191_v56, 2  ;;  %20661 = vst [vmem:[#allocation56_spill] sm:$0xff] %v16502_v42 }
 0x209   : > { %20657 = vst [vmem:[#allocation52_spill] sm:$0xff] %v16479_v16  ;;  %v1340_v11 = vmul.f32 %v16250_v41, %v16468_v7  ;;  %v1298_v29 = vrot.slane %v1264_v27, 2  ;;  %v1299_v17 = vrot.slane %v1265_v20, 2  ;;  %v1301_v22 = vrot.slane %v1266_v19, 2 }
 0x20a   : > { %v1302_v6 = vrot.slane %v1267_v32, 2  ;;  %v1341_v13 = vmul.f32 %v16350_v43, %v16468_v7  ;;  %v1342_v53 = vmul.f32 %v16268_v1, %v16468_v7  ;;  %v1343_v58 = vmul.f32 %v16367_v10, %v16468_v7 }
 0x20b   : > { %v16491_v9 = vsel %vm1139_vm4, %v1225_v51, %v1226_v47  ;;  %v16494_v31 = vsel %vm1139_vm4, %v1298_v29, %v1299_v17  ;;  %v1374_v56 = vrot.slane %v1340_v11, 2  ;;  %v16498_v27 = vrot.slane %v16210_v2, %v20614_v8  ;;  %v16508_v17 = vld [vmem:[#allocation2 + $0x70] sm:$0xff]  ;;  %v16512_v29 = vld [vmem:[#allocation2 + $0x78] sm:$0x3f] }
 0x20c   : > { %20658 = vst [vmem:[#allocation53_spill] sm:$0xff] %v16491_v9  ;;  %20659 = vst [vmem:[#allocation54_spill] sm:$0xff] %v16494_v31  ;;  %v1375_v20 = vrot.slane %v1341_v13, 2  ;;  %v1377_v19 = vrot.slane %v1342_v53, 2  ;;  %v1378_v32 = vrot.slane %v1343_v58, 2  ;;  %v16517_v51 = vsel %vm1139_vm4, %v1301_v22, %v1302_v6 }
 0x20d   : > { %20660 = vst [vmem:[#allocation55_spill] sm:$0xff] %v16498_v27  ;;  %v1416_v7 = vmul.f32 %v16268_v1, %v16498_v27  ;;  %v1417_v47 = vmul.f32 %v16367_v10, %v16498_v27  ;;  %v1418_v11 = vmul.f32 %v16508_v17, %v16498_v27  ;;  %v1419_v13 = vmul.f32 %v16512_v29, %v16498_v27 }
 0x20e   : > { %20662 = vst [vmem:[#allocation57_spill] sm:$0xff] %v16517_v51  ;;  %v16520_v53 = vsel %vm1139_vm4, %v1374_v56, %v1375_v20  ;;  %v1492_v58 = vmul.f32 %v16508_v17, %v16502_v42  ;;  %v1493_v31 = vmul.f32 %v16512_v29, %v16502_v42  ;;  %v1494_v60 = vmul.f32 %v15929_v35, %v16502_v42 }
 0x20f   : > { %20663 = vst [vmem:[#allocation58_spill] sm:$0xff] %v16520_v53  ;;  %v1450_v9 = vrot.slane %v1416_v7, 2  ;;  %v1451_v16 = vrot.slane %v1417_v47, 2  ;;  %v1453_v62 = vrot.slane %v1418_v11, 2  ;;  %v1454_v0 = vrot.slane %v1419_v13, 2 }
 0x210   : > { %v1495_v6 = vmul.f32 %v15933_v18, %v16502_v42  ;;  %v1526_v22 = vrot.slane %v1492_v58, 2  ;;  %v1527_v27 = vrot.slane %v1493_v31, 2  ;;  %v16531_v56 = vsel %vm1139_vm4, %v1377_v19, %v1378_v32 }
 0x211   : > { %20664 = vst [vmem:[#allocation59_spill] sm:$0xff] %v16531_v56  ;;  %v16534_v20 = vsel %vm1139_vm4, %v1450_v9, %v1451_v16  ;;  %v16537_v53 = vsel %vm1139_vm4, %v1453_v62, %v1454_v0  ;;  %v16541_v7 = vrot.slane %v16248_v28, %v20619_v49  ;;  %v1529_v11 = vrot.slane %v1494_v60, 2 }
 0x212   : > { %20665 = vst [vmem:[#allocation60_spill] sm:$0xff] %v16534_v20  ;;  %20666 = vst [vmem:[#allocation61_spill] sm:$0xff] %v16537_v53  ;;  %v16544_v47 = vsel %vm1139_vm4, %v1526_v22, %v1527_v27  ;;  %v1530_v13 = vrot.slane %v1495_v6, 2  ;;  %v16548_v31 = vrot.slane %v16183_v45, %v20622_v26 }
 0x213   : > { %20667 = vst [vmem:[#allocation62_spill] sm:$0xff] %v16541_v7  ;;  %20668 = vst [vmem:[#allocation63_spill] sm:$0xff] %v16544_v47  ;;  %v1568_v16 = vmul.f32 %v15929_v35, %v16541_v7  ;;  %v1569_v62 = vmul.f32 %v15933_v18, %v16541_v7  ;;  %v1570_v0 = vmul.f32 %v15944_v24, %v16541_v7 }
 0x214   : > { %v1571_v9 = vmul.f32 %v15948_v23, %v16541_v7  ;;  %v1644_v60 = vmul.f32 %v16222_v63, %v16548_v31  ;;  %v1645_v27 = vmul.f32 %v16318_v55, %v16548_v31  ;;  %v16564_v19 = vmul.f32 %v16322_v15, %v16548_v31 }
 0x215   : > { %v16568_v35 = vrot.slane %v16188_v14, %v20628_v39  ;;  %v1602_v18 = vrot.slane %v1568_v16, 2  ;;  %v1603_v32 = vrot.slane %v1569_v62, 2  ;;  %v1605_v24 = vrot.slane %v1570_v0, 2 }
 0x216   : > { %20669 = vst [vmem:[#allocation64_spill] sm:$0xff] %v16564_v19  ;;  %v1606_v58 = vrot.slane %v1571_v9, 2  ;;  %v16571_v23 = vsel %vm1139_vm4, %v1529_v11, %v1530_v13  ;;  %v1679_v6 = vrot.slane %v1644_v60, 3  ;;  %v1680_v22 = vrot.slane %v1645_v27, 3 }
 0x217   : > { %20670 = vst [vmem:[#allocation65_spill] sm:$0xff] %v16571_v23  ;;  %v16575_v7 = vmul.f32 %v16322_v15, %v16568_v35  ;;  %v16578_v42 = vsel %vm1139_vm4, %v1602_v18, %v1603_v32  ;;  %v1723_v16 = vmul.f32 %v16228_v21, %v16568_v35  ;;  %v1724_v62 = vmul.f32 %v16335_v37, %v16568_v35 }
 0x218   : > { %20672 = vst [vmem:[#allocation67_spill] sm:$0xff] %v16578_v42  ;;  %v16586_v11 = vsel %vm1139_vm4, %v1605_v24, %v1606_v58  ;;  %v16589_v13 = vsel %vm1672_vm5, %v1679_v6, %v1680_v22  ;;  %v16594_v9 = vrot.slane %v16196_v52, %v20630_v44  ;;  %v16598_v18 = vrot.slane %v16210_v2, %v20610_v46 }
 0x219   : > { %20671 = vst [vmem:[#allocation66_spill] sm:$0xff] %v16575_v7  ;;  %20673 = vst [vmem:[#allocation68_spill] sm:$0xff] %v16586_v11  ;;  %v1758_v60 = vrot.slane %v1723_v16, 3  ;;  %v1759_v27 = vrot.slane %v1724_v62, 3  ;;  %v16602_v32 = vrot.slane %v16210_v2, %v20612_v4  ;;  %v16620_v47 = vrot.slane %v16220_v59, %v20614_v8 }
 0x21a   : > { %20674 = vst [vmem:[#allocation69_spill] sm:$0xff] %v16589_v13  ;;  %20675 = vst [vmem:[#allocation70_spill] sm:$0xff] %v16594_v9  ;;  %v1797_v24 = vmul.f32 %v16228_v21, %v16594_v9  ;;  %v1798_v58 = vmul.f32 %v16335_v37, %v16594_v9  ;;  %v1799_v6 = vmul.f32 %v16250_v41, %v16594_v9 }
 0x21b   : > { %20676 = vst [vmem:[#allocation71_spill] sm:$0xff] %v16598_v18  ;;  %20677 = vst [vmem:[#allocation72_spill] sm:$0xff] %v16602_v32  ;;  %v1800_v22 = vmul.f32 %v16350_v43, %v16594_v9  ;;  %v1873_v16 = vmul.f32 %v16250_v41, %v16598_v18  ;;  %v1874_v62 = vmul.f32 %v16350_v43, %v16598_v18 }
 0x21c   : > { %v1875_v0 = vmul.f32 %v16268_v1, %v16598_v18  ;;  %20678 = vst [vmem:[#allocation73_spill] sm:$0xff] %v16620_v47  ;;  %v1831_v13 = vrot.slane %v1797_v24, 3  ;;  %v1832_v11 = vrot.slane %v1798_v58, 3  ;;  %v1834_v42 = vrot.slane %v1799_v6, 3 }
 0x21d   : > { %v1835_v23 = vrot.slane %v1800_v22, 3  ;;  %v16623_v53 = vsel %vm1672_vm5, %v1758_v60, %v1759_v27  ;;  %v1876_v9 = vmul.f32 %v16367_v10, %v16598_v18  ;;  %v1907_v20 = vrot.slane %v1873_v16, 3 }
 0x21e   : > { %20679 = vst [vmem:[#allocation74_spill] sm:$0xff] %v16623_v53  ;;  %v1908_v56 = vrot.slane %v1874_v62, 3  ;;  %v16628_v51 = vsel %vm1672_vm5, %v1831_v13, %v1832_v11  ;;  %v1910_v7 = vrot.slane %v1875_v0, 3  ;;  %v1949_v19 = vmul.f32 %v16268_v1, %v16602_v32 }
 0x21f   : > { %20680 = vst [vmem:[#allocation75_spill] sm:$0xff] %v16628_v51  ;;  %v1950_v24 = vmul.f32 %v16367_v10, %v16602_v32  ;;  %v16635_v58 = vsel %vm1672_vm5, %v1834_v42, %v1835_v23  ;;  %v1911_v60 = vrot.slane %v1876_v9, 3  ;;  %v1951_v27 = vmul.f32 %v16508_v17, %v16602_v32  ;;  %v16648_v9 = vld [vmem:[#allocation2 + $0x80] sm:$0xff] }
 0x220   : > { %20681 = vst [vmem:[#allocation76_spill] sm:$0xff] %v16635_v58  ;;  %v1952_v6 = vmul.f32 %v16512_v29, %v16602_v32  ;;  %v1983_v22 = vrot.slane %v1949_v19, 3  ;;  %v2025_v13 = vmul.f32 %v16508_v17, %v16620_v47  ;;  %v2026_v0 = vmul.f32 %v16512_v29, %v16620_v47  ;;  %v16655_v19 = vld [vmem:[#allocation2 + $0x88] sm:$0x3f] }
 0x221   : > { %v1984_v11 = vrot.slane %v1950_v24, 3  ;;  %v16646_v16 = vsel %vm1672_vm5, %v1907_v20, %v1908_v56  ;;  %v1986_v42 = vrot.slane %v1951_v27, 3  ;;  %v2027_v62 = vmul.f32 %v16648_v9, %v16620_v47 }
 0x222   : > { %20682 = vst [vmem:[#allocation77_spill] sm:$0xff] %v16646_v16  ;;  %v1987_v23 = vrot.slane %v1952_v6, 3  ;;  %v16653_v32 = vsel %vm1672_vm5, %v1910_v7, %v1911_v60  ;;  %v2028_v24 = vmul.f32 %v16655_v19, %v16620_v47  ;;  %v2059_v18 = vrot.slane %v2025_v13, 3 }
 0x223   : > { %20683 = vst [vmem:[#allocation78_spill] sm:$0xff] %v16653_v32  ;;  %v2060_v58 = vrot.slane %v2026_v0, 3  ;;  %v16660_v56 = vsel %vm1672_vm5, %v1983_v22, %v1984_v11  ;;  %v2062_v27 = vrot.slane %v2027_v62, 3  ;;  %v16667_v6 = vrot.slane %v16248_v28, %v20617_v30  ;;  %v16684_v0 = vld [vmem:[#allocation2 + $0x90] sm:$0xff] }
 0x224   : > { %20684 = vst [vmem:[#allocation79_spill] sm:$0xff] %v16660_v56  ;;  %v16663_v20 = vsel %vm1672_vm5, %v1986_v42, %v1987_v23  ;;  %v2063_v60 = vrot.slane %v2028_v24, 3  ;;  %v16674_v47 = vrot.slane %v16183_v45, %v20619_v49  ;;  %v16678_v22 = vrot.slane %v16188_v14, %v20622_v26 }
 0x225   : > { %20685 = vst [vmem:[#allocation80_spill] sm:$0xff] %v16663_v20  ;;  %20686 = vst [vmem:[#allocation81_spill] sm:$0xff] %v16667_v6  ;;  %v16670_v7 = vsel %vm1672_vm5, %v2059_v18, %v2060_v58  ;;  %v2101_v11 = vmul.f32 %v16648_v9, %v16667_v6  ;;  %v2102_v13 = vmul.f32 %v16655_v19, %v16667_v6  ;;  %v16688_v58 = vld [vmem:[#allocation2 + $0x98] sm:$0x3f] }
 0x226   : > { %20687 = vst [vmem:[#allocation82_spill] sm:$0xff] %v16670_v7  ;;  %20688 = vst [vmem:[#allocation83_spill] sm:$0xff] %v16674_v47  ;;  %v2103_v18 = vmul.f32 %v16684_v0, %v16667_v6  ;;  %v2104_v42 = vmul.f32 %v16688_v58, %v16667_v6  ;;  %v2177_v23 = vmul.f32 %v16222_v63, %v16674_v47 }
 0x227   : > { %20689 = vst [vmem:[#allocation84_spill] sm:$0xff] %v16678_v22  ;;  %v2178_v62 = vmul.f32 %v16318_v55, %v16674_v47  ;;  %v16698_v24 = vmul.f32 %v16322_v15, %v16674_v47  ;;  %v16702_v7 = vrot.slane %v16196_v52, %v20628_v39  ;;  %v2135_v20 = vrot.slane %v2101_v11, 3 }
 0x228   : > { %v2136_v56 = vrot.slane %v2102_v13, 3  ;;  %v2138_v32 = vrot.slane %v2103_v18, 3  ;;  %v2139_v16 = vrot.slane %v2104_v42, 3  ;;  %v16705_v6 = vsel %vm1672_vm5, %v2062_v27, %v2063_v60 }
 0x229   : > { %20690 = vst [vmem:[#allocation85_spill] sm:$0xff] %v16698_v24  ;;  %20691 = vst [vmem:[#allocation86_spill] sm:$0xff] %v16702_v7  ;;  %v2212_v51 = vrot.slane %v2177_v23, 4  ;;  %v2213_v53 = vrot.slane %v2178_v62, 4  ;;  %v16709_v38 = vmul.f32 %v16322_v15, %v16678_v22  ;;  %v2256_v11 = vmul.f32 %v16228_v21, %v16678_v22 }
 0x22a   : > { %20692 = vst [vmem:[#allocation87_spill] sm:$0xff] %v16705_v6  ;;  %v16712_v47 = vsel %vm1672_vm5, %v2135_v20, %v2136_v56  ;;  %v2257_v13 = vmul.f32 %v16335_v37, %v16678_v22  ;;  %v16720_v27 = vsel %vm1672_vm5, %v2138_v32, %v2139_v16  ;;  %v2330_v18 = vmul.f32 %v16228_v21, %v16702_v7 }
 0x22b   : > { %20693 = vst [vmem:[#allocation88_spill] sm:$0xff] %v16709_v38  ;;  %20694 = vst [vmem:[#allocation89_spill] sm:$0xff] %v16712_v47  ;;  %v16723_v60 = vsel %vm2205_vm6, %v2212_v51, %v2213_v53  ;;  %v2331_v56 = vmul.f32 %v16335_v37, %v16702_v7  ;;  %v2291_v20 = vrot.slane %v2256_v11, 4  ;;  %v2332_v23 = vmul.f32 %v16250_v41, %v16702_v7 }
 0x22c   : > { %20695 = vst [vmem:[#allocation90_spill] sm:$0xff] %v16720_v27  ;;  %20696 = vst [vmem:[#allocation91_spill] sm:$0xff] %v16723_v60  ;;  %v2292_v42 = vrot.slane %v2257_v13, 4  ;;  %v2333_v62 = vmul.f32 %v16350_v43, %v16702_v7  ;;  %v2364_v16 = vrot.slane %v2330_v18, 4  ;;  %v16736_v51 = vrot.slane %v16210_v2, %v20630_v44 }
 0x22d   : > { %v2365_v12 = vrot.slane %v2331_v56, 4  ;;  %v2367_v60 = vrot.slane %v2332_v23, 4  ;;  %v16743_v13 = vrot.slane %v16220_v59, %v20610_v46  ;;  %v16753_v32 = vrot.slane %v16220_v59, %v20612_v4 }
 0x22e   : > { %20697 = vst [vmem:[#allocation92_spill] sm:$0xff] %v16736_v51  ;;  %v16739_v53 = vsel %vm2205_vm6, %v2291_v20, %v2292_v42  ;;  %v2368_v11 = vrot.slane %v2333_v62, 4  ;;  %v2406_v7 = vmul.f32 %v16250_v41, %v16736_v51  ;;  %v2407_v18 = vmul.f32 %v16350_v43, %v16736_v51 }
 0x22f   : > { %20698 = vst [vmem:[#allocation93_spill] sm:$0xff] %v16739_v53  ;;  %20699 = vst [vmem:[#allocation94_spill] sm:$0xff] %v16743_v13  ;;  %v2408_v56 = vmul.f32 %v16268_v1, %v16736_v51  ;;  %v16756_v20 = vsel %vm2205_vm6, %v2364_v16, %v2365_v12  ;;  %v2409_v42 = vmul.f32 %v16367_v10, %v16736_v51 }
 0x230   : > { %20700 = vst [vmem:[#allocation95_spill] sm:$0xff] %v16753_v32  ;;  %20701 = vst [vmem:[#allocation96_spill] sm:$0xff] %v16756_v20  ;;  %v2482_v23 = vmul.f32 %v16268_v1, %v16743_v13  ;;  %v2483_v62 = vmul.f32 %v16367_v10, %v16743_v13  ;;  %v2440_v53 = vrot.slane %v2406_v7, 4  ;;  %v2441_v27 = vrot.slane %v2407_v18, 4 }
 0x231   : > { %v2443_v47 = vrot.slane %v2408_v56, 4  ;;  %v2484_v6 = vmul.f32 %v16508_v17, %v16743_v13  ;;  %v2444_v38 = vrot.slane %v2409_v42, 4  ;;  %v2485_v12 = vmul.f32 %v16512_v29, %v16743_v13 }
 0x232   : > { %v2516_v16 = vrot.slane %v2482_v23, 4  ;;  %v2517_v20 = vrot.slane %v2483_v62, 4  ;;  %v16769_v51 = vsel %vm2205_vm6, %v2367_v60, %v2368_v11  ;;  %v2558_v22 = vmul.f32 %v16508_v17, %v16753_v32 }
 0x233   : > { %20702 = vst [vmem:[#allocation97_spill] sm:$0xff] %v16769_v51  ;;  %v2519_v24 = vrot.slane %v2484_v6, 4  ;;  %v2559_v7 = vmul.f32 %v16512_v29, %v16753_v32  ;;  %v16776_v18 = vsel %vm2205_vm6, %v2440_v53, %v2441_v27  ;;  %v16779_v56 = vsel %vm2205_vm6, %v2443_v47, %v2444_v38 }
 0x234   : > { %20703 = vst [vmem:[#allocation98_spill] sm:$0xff] %v16776_v18  ;;  %20704 = vst [vmem:[#allocation99_spill] sm:$0xff] %v16779_v56  ;;  %v2520_v42 = vrot.slane %v2485_v12, 4  ;;  %v2560_v23 = vmul.f32 %v16648_v9, %v16753_v32  ;;  %v2561_v60 = vmul.f32 %v16655_v19, %v16753_v32  ;;  %v2592_v6 = vrot.slane %v2558_v22, 4 }
 0x235   : > { %v2593_v11 = vrot.slane %v2559_v7, 4  ;;  %v16787_v62 = vrot.slane %v16248_v28, %v20614_v8  ;;  %v16790_v13 = vsel %vm2205_vm6, %v2516_v16, %v2517_v20  ;;  %v16797_v47 = vrot.slane %v16183_v45, %v20617_v30 }
 0x236   : > { %20706 = vst [vmem:[#allocation101_spill] sm:$0xff] %v16790_v13  ;;  %v16793_v27 = vsel %vm2205_vm6, %v2519_v24, %v2520_v42  ;;  %v2595_v38 = vrot.slane %v2560_v23, 4  ;;  %v2596_v53 = vrot.slane %v2561_v60, 4 }
 0x237   : > { %20705 = vst [vmem:[#allocation100_spill] sm:$0xff] %v16787_v62  ;;  %20707 = vst [vmem:[#allocation102_spill] sm:$0xff] %v16793_v27  ;;  %v2634_v22 = vmul.f32 %v16648_v9, %v16787_v62  ;;  %v2635_v12 = vmul.f32 %v16655_v19, %v16787_v62  ;;  %v2636_v20 = vmul.f32 %v16684_v0, %v16787_v62 }
 0x238   : > { %20708 = vst [vmem:[#allocation103_spill] sm:$0xff] %v16797_v47  ;;  %v2637_v24 = vmul.f32 %v16688_v58, %v16787_v62  ;;  %v2710_v16 = vmul.f32 %v16222_v63, %v16797_v47  ;;  %v2711_v7 = vmul.f32 %v16318_v55, %v16797_v47  ;;  %v16812_v42 = vsel %vm2205_vm6, %v2592_v6, %v2593_v11 }
 0x239   : > { %20709 = vst [vmem:[#allocation104_spill] sm:$0xff] %v16812_v42  ;;  %v2668_v23 = vrot.slane %v2634_v22, 4  ;;  %v2669_v60 = vrot.slane %v2635_v12, 4  ;;  %v16816_v32 = vmul.f32 %v16322_v15, %v16797_v47  ;;  %v2671_v27 = vrot.slane %v2636_v20, 4 }
 0x23a   : > { %v2672_v13 = vrot.slane %v2637_v24, 4  ;;  %v2745_v56 = vrot.slane %v2710_v16, 5  ;;  %v2746_v18 = vrot.slane %v2711_v7, 5  ;;  %v16819_v62 = vsel %vm2205_vm6, %v2595_v38, %v2596_v53 }
 0x23b   : > { %20710 = vst [vmem:[#allocation105_spill] sm:$0xff] %v16816_v32  ;;  %20711 = vst [vmem:[#allocation106_spill] sm:$0xff] %v16819_v62  ;;  %v16822_v51 = vsel %vm2205_vm6, %v2668_v23, %v2669_v60  ;;  %v16826_v6 = vrot.slane %v16188_v14, %v20619_v49  ;;  %v16830_v11 = vrot.slane %v16196_v52, %v20622_v26 }
 0x23c   : > { %20712 = vst [vmem:[#allocation107_spill] sm:$0xff] %v16822_v51  ;;  %v16833_v22 = vsel %vm2205_vm6, %v2671_v27, %v2672_v13  ;;  %v16836_v12 = vsel %vm2738_vm7, %v2745_v56, %v2746_v18  ;;  %v16841_v53 = vrot.slane %v16210_v2, %v20628_v39 }
 0x23d   : > { %20713 = vst [vmem:[#allocation108_spill] sm:$0xff] %v16826_v6  ;;  %20714 = vst [vmem:[#allocation109_spill] sm:$0xff] %v16830_v11  ;;  %v16845_v20 = vmul.f32 %v16322_v15, %v16826_v6  ;;  %v2789_v24 = vmul.f32 %v16228_v21, %v16826_v6  ;;  %v2790_v13 = vmul.f32 %v16335_v37, %v16826_v6 }
 0x23e   : > { %20715 = vst [vmem:[#allocation110_spill] sm:$0xff] %v16833_v22  ;;  %20716 = vst [vmem:[#allocation111_spill] sm:$0xff] %v16836_v12  ;;  %v2863_v18 = vmul.f32 %v16228_v21, %v16830_v11  ;;  %v2864_v56 = vmul.f32 %v16335_v37, %v16830_v11  ;;  %v2865_v27 = vmul.f32 %v16250_v41, %v16830_v11 }
 0x23f   : > { %20717 = vst [vmem:[#allocation112_spill] sm:$0xff] %v16841_v53  ;;  %20718 = vst [vmem:[#allocation113_spill] sm:$0xff] %v16845_v20  ;;  %v2866_v16 = vmul.f32 %v16350_v43, %v16830_v11  ;;  %v2939_v7 = vmul.f32 %v16250_v41, %v16841_v53  ;;  %v2824_v23 = vrot.slane %v2789_v24, 5  ;;  %v2825_v60 = vrot.slane %v2790_v13, 5 }
 0x240   : > { %v2897_v38 = vrot.slane %v2863_v18, 5  ;;  %v16863_v12 = vrot.slane %v16220_v59, %v20630_v44  ;;  %v2898_v22 = vrot.slane %v2864_v56, 5  ;;  %v2900_v51 = vrot.slane %v2865_v27, 5 }
 0x241   : > { %v2901_v62 = vrot.slane %v2866_v16, 5  ;;  %v2940_v42 = vmul.f32 %v16350_v43, %v16841_v53  ;;  %v2941_v11 = vmul.f32 %v16268_v1, %v16841_v53  ;;  %v2942_v24 = vmul.f32 %v16367_v10, %v16841_v53 }
 0x242   : > { %20719 = vst [vmem:[#allocation114_spill] sm:$0xff] %v16863_v12  ;;  %v2973_v13 = vrot.slane %v2939_v7, 5  ;;  %v16873_v18 = vsel %vm2738_vm7, %v2824_v23, %v2825_v60  ;;  %v16876_v6 = vsel %vm2738_vm7, %v2897_v38, %v2898_v22  ;;  %v3015_v27 = vmul.f32 %v16268_v1, %v16863_v12 }
 0x243   : > { %20720 = vst [vmem:[#allocation115_spill] sm:$0xff] %v16876_v6  ;;  %v2974_v56 = vrot.slane %v2940_v42, 5  ;;  %v2976_v16 = vrot.slane %v2941_v11, 5  ;;  %v2977_v47 = vrot.slane %v2942_v24, 5  ;;  %v3016_v32 = vmul.f32 %v16367_v10, %v16863_v12 }
 0x244   : > { %v3017_v20 = vmul.f32 %v16508_v17, %v16863_v12  ;;  %v16885_v7 = vsel %vm2738_vm7, %v2900_v51, %v2901_v62  ;;  %v3018_v23 = vmul.f32 %v16512_v29, %v16863_v12  ;;  %v3049_v22 = vrot.slane %v3015_v27, 5 }
 0x245   : > { %20721 = vst [vmem:[#allocation116_spill] sm:$0xff] %v16885_v7  ;;  %v16891_v42 = vrot.slane %v16248_v28, %v20610_v46  ;;  %v16894_v11 = vsel %vm2738_vm7, %v2973_v13, %v2974_v56  ;;  %v3050_v38 = vrot.slane %v3016_v32, 5  ;;  %v16898_v24 = vrot.slane %v16248_v28, %v20612_v4 }
 0x246   : > { %20723 = vst [vmem:[#allocation118_spill] sm:$0xff] %v16894_v11  ;;  %v3052_v60 = vrot.slane %v3017_v20, 5  ;;  %v3053_v53 = vrot.slane %v3018_v23, 5  ;;  %v16907_v46 = vsel %vm2738_vm7, %v2976_v16, %v2977_v47 }
 0x247   : > { %20722 = vst [vmem:[#allocation117_spill] sm:$0xff] %v16891_v42  ;;  %20724 = vst [vmem:[#allocation119_spill] sm:$0xff] %v16898_v24  ;;  %v3091_v51 = vmul.f32 %v16508_v17, %v16891_v42  ;;  %v3092_v62 = vmul.f32 %v16512_v29, %v16891_v42  ;;  %v3093_v27 = vmul.f32 %v16648_v9, %v16891_v42 }
 0x248   : > { %20725 = vst [vmem:[#allocation120_spill] sm:$0xff] %v16907_v46  ;;  %v3094_v32 = vmul.f32 %v16655_v19, %v16891_v42  ;;  %v3167_v4 = vmul.f32 %v16648_v9, %v16898_v24  ;;  %v3168_v20 = vmul.f32 %v16655_v19, %v16898_v24  ;;  %v16916_v13 = vsel %vm2738_vm7, %v3049_v22, %v3050_v38 }
 0x249   : > { %v3125_v56 = vrot.slane %v3091_v51, 5  ;;  %v3126_v23 = vrot.slane %v3092_v62, 5  ;;  %v3128_v12 = vrot.slane %v3093_v27, 5  ;;  %v3169_v47 = vmul.f32 %v16684_v0, %v16898_v24 }
 0x24a   : > { %v3129_v11 = vrot.slane %v3094_v32, 5  ;;  %v3170_v16 = vmul.f32 %v16688_v58, %v16898_v24  ;;  %v3201_v42 = vrot.slane %v3167_v4, 5  ;;  %v16923_v46 = vsel %vm2738_vm7, %v3052_v60, %v3053_v53 }
 0x24b   : > { %v16926_v7 = vsel %vm2738_vm7, %v3125_v56, %v3126_v23  ;;  %v3202_v6 = vrot.slane %v3168_v20, 5  ;;  %v16930_v22 = vrot.slane %v16183_v45, %v20614_v8  ;;  %v3204_v38 = vrot.slane %v3169_v47, 5 }
 0x24c   : > { %v3205_v51 = vrot.slane %v3170_v16, 5  ;;  %v16934_v62 = vrot.slane %v16188_v14, %v20617_v30  ;;  %v16937_v27 = vsel %vm2738_vm7, %v3128_v12, %v3129_v11  ;;  %v16963_v32 = vrot.slane %v16196_v52, %v20619_v49 }
 0x24d   : > { %20726 = vst [vmem:[#allocation121_spill] sm:$0xff] %v16930_v22  ;;  %v3243_v53 = vmul.f32 %v16222_v63, %v16930_v22  ;;  %v3244_v60 = vmul.f32 %v16318_v55, %v16930_v22  ;;  %v16945_v45 = vmul.f32 %v16322_v15, %v16930_v22  ;;  %v16948_v8 = vsel %vm2738_vm7, %v3201_v42, %v3202_v6 }
 0x24e   : > { %20727 = vst [vmem:[#allocation122_spill] sm:$0xff] %v16934_v62  ;;  %v16952_v14 = vmul.f32 %v16322_v15, %v16934_v62  ;;  %v3322_v30 = vmul.f32 %v16228_v21, %v16934_v62  ;;  %v3323_v63 = vmul.f32 %v16335_v37, %v16934_v62  ;;  %v16959_v12 = vsel %vm2738_vm7, %v3204_v38, %v3205_v51 }
 0x24f   : > { %v3278_v55 = vrot.slane %v3243_v53, 6  ;;  %v3279_v11 = vrot.slane %v3244_v60, 6  ;;  %20728 = vst [vmem:[#allocation123_spill] sm:$0xff] %v16963_v32  ;;  %v16969_v4 = vrot.slane %v16210_v2, %v20622_v26  ;;  %v3396_v56 = vmul.f32 %v16228_v21, %v16963_v32 }
 0x250   : > { %v3357_v42 = vrot.slane %v3322_v30, 6  ;;  %v3358_v20 = vrot.slane %v3323_v63, 6  ;;  %v3397_v23 = vmul.f32 %v16335_v37, %v16963_v32  ;;  %v3398_v52 = vmul.f32 %v16250_v41, %v16963_v32 }
 0x251   : > { %20729 = vst [vmem:[#allocation124_spill] sm:$0xff] %v16969_v4  ;;  %v16978_v49 = vsel %vm3271_vm8, %v3278_v55, %v3279_v11  ;;  %v3399_v47 = vmul.f32 %v16350_v43, %v16963_v32  ;;  %v3472_v2 = vmul.f32 %v16250_v41, %v16969_v4  ;;  %v3473_v26 = vmul.f32 %v16350_v43, %v16969_v4  ;;  %v20760_v32 = vld [vmem:[#allocation12_spill] sm:$0xff] }
 0x252   : > { %v3430_v16 = vrot.slane %v3396_v56, 6  ;;  %v3431_v21 = vrot.slane %v3397_v23, 6  ;;  %v3433_v38 = vrot.slane %v3398_v52, 6  ;;  %v3474_v37 = vmul.f32 %v16268_v1, %v16969_v4 }
 0x253   : > { %v3434_v51 = vrot.slane %v3399_v47, 6  ;;  %v3475_v53 = vmul.f32 %v16367_v10, %v16969_v4  ;;  %v3506_v60 = vrot.slane %v3472_v2, 6  ;;  %v3507_v30 = vrot.slane %v3473_v26, 6 }
 0x254   : > { %v16991_v63 = vsel %vm3271_vm8, %v3357_v42, %v3358_v20  ;;  %v16994_v41 = vsel %vm3271_vm8, %v3430_v16, %v3431_v21  ;;  %v3509_v55 = vrot.slane %v3474_v37, 6  ;;  %v16998_v43 = vrot.slane %v16220_v59, %v20628_v39  ;;  %v12977_v42 = vld [vmem:[%s20355_s1 + $0x30] ss:$0 sm:$0xff] }
 0x255   : > { %20730 = vst [vmem:[#allocation125_spill] sm:$0xff] %v16991_v63  ;;  %20731 = vst [vmem:[#allocation126_spill] sm:$0xff] %v16994_v41  ;;  %v17001_v11 = vsel %vm3271_vm8, %v3433_v38, %v3434_v51  ;;  %v17004_v56 = vsel %vm3271_vm8, %v3506_v60, %v3507_v30  ;;  %v3510_v23 = vrot.slane %v3475_v53, 6  ;;  %v17008_v52 = vrot.slane %v16248_v28, %v20630_v44  ;;  %v20794_v63 = vld [vmem:[#allocation47_spill] sm:$0xff] }
 0x256   : > { %20732 = vst [vmem:[#allocation127_spill] sm:$0xff] %v16998_v43  ;;  %20733 = vst [vmem:[#allocation128_spill] sm:$0xff] %v17001_v11  ;;  %v3548_v20 = vmul.f32 %v16268_v1, %v16998_v43  ;;  %v3549_v59 = vmul.f32 %v16367_v10, %v16998_v43  ;;  %v3550_v39 = vmul.f32 %v16508_v17, %v16998_v43 }
 0x257   : > { %20734 = vst [vmem:[#allocation129_spill] sm:$0xff] %v17004_v56  ;;  %20735 = vst [vmem:[#allocation130_spill] sm:$0xff] %v17008_v52  ;;  %v3551_v47 = vmul.f32 %v16512_v29, %v16998_v43  ;;  %v3624_v28 = vmul.f32 %v16508_v17, %v17008_v52  ;;  %v3625_v44 = vmul.f32 %v16512_v29, %v17008_v52 }
 0x258   : > { %v3626_v2 = vmul.f32 %v16648_v9, %v17008_v52  ;;  %v3700_v1 = vmul.f32 %v16648_v9, %v12977_v42  ;;  %v3582_v26 = vrot.slane %v3548_v20, 6  ;;  %v3583_v16 = vrot.slane %v3549_v59, 6 }
 0x259   : > { %v3585_v10 = vrot.slane %v3550_v39, 6  ;;  %v3586_v21 = vrot.slane %v3551_v47, 6  ;;  %v3627_v38 = vmul.f32 %v16655_v19, %v17008_v52  ;;  %v3658_v37 = vrot.slane %v3624_v28, 6  ;;  %v17042_v28 = vpop.permute.xlu1 %14173 }
 0x25a   : > { %v3659_v51 = vrot.slane %v3625_v44, 6  ;;  %v3661_v53 = vrot.slane %v3626_v2, 6  ;;  %v17031_v60 = vsel %vm3271_vm8, %v3509_v55, %v3510_v23  ;;  %v17034_v30 = vsel %vm3271_vm8, %v3582_v26, %v3583_v16  ;;  %20739 = vst [vmem:[#allocation134_spill] sm:$0xff] %v17042_v28  ;;  %v17052_v26 = vld [vmem:[#allocation2 + $0x30] sm:$0xff] }
 0x25b   : > { %20736 = vst [vmem:[#allocation131_spill] sm:$0xff] %v17031_v60  ;;  %20737 = vst [vmem:[#allocation132_spill] sm:$0xff] %v17034_v30  ;;  %v3701_v15 = vmul.f32 %v16655_v19, %v12977_v42  ;;  %v3702_v9 = vmul.f32 %v16684_v0, %v12977_v42  ;;  %v17039_v20 = vsel %vm3271_vm8, %v3585_v10, %v3586_v21  ;;  %v3662_v59 = vrot.slane %v3627_v38, 6  ;;  %v20793_v60 = vld [vmem:[#allocation45_spill] sm:$0xff] }
 0x25c   : > { %20738 = vst [vmem:[#allocation133_spill] sm:$0xff] %v17039_v20  ;;  %v3703_v39 = vmul.f32 %v16688_v58, %v12977_v42  ;;  %v3734_v47 = vrot.slane %v3700_v1, 6  ;;  %v17045_v44 = vsel %vm3271_vm8, %v3658_v37, %v3659_v51  ;;  %v437_v58 = vmul.f32 %v17052_v26, %v16200_v40  ;;  %v20791_v20 = vld [vmem:[#allocation42_spill] sm:$0xff] }
 0x25d   : > { %20740 = vst [vmem:[#allocation135_spill] sm:$0xff] %v17045_v44  ;;  %v3735_v55 = vrot.slane %v3701_v15, 6  ;;  %v3737_v23 = vrot.slane %v3702_v9, 6  ;;  %v17049_v19 = vsel %vm3271_vm8, %v3661_v53, %v3662_v59  ;;  %v456_v42 = vmul.f32 %v17052_v26, %v16204_v48  ;;  %v20790_v44 = vld [vmem:[#allocation41_spill] sm:$0xff] }
 0x25e   : > { %20741 = vst [vmem:[#allocation136_spill] sm:$0xff] %v17049_v19  ;;  %v3738_v1 = vrot.slane %v3703_v39, 6  ;;  %v580_v15 = vmul.f32 %v17052_v26, %v16293_v3  ;;  %v655_v16 = vmul.f32 %v17052_v26, %v16302_v33  ;;  %v1113_v10 = vmul.f32 %v17052_v26, %v16408_v5 }
 0x25f   : > { %v17065_v21 = vsel %vm3271_vm8, %v3734_v47, %v3735_v55  ;;  %v464_v38 = vadd.f32 %v456_v42, %v16226_v36  ;;  %v465_v37 = vadd.f32 %v16232_v50, %v437_v58  ;;  %v1188_v51 = vmul.f32 %v17052_v26, %v16445_v54 }
 0x260   : > { %20742 = vst [vmem:[#allocation137_spill] sm:$0xff] %v17065_v21  ;;  %v616_v53 = vrot.slane %v580_v15, 1  ;;  %v689_v9 = vrot.slane %v655_v16, 1  ;;  %v1149_v59 = vrot.slane %v1113_v10, 2  ;;  %v1646_v39 = vmul.f32 %v17052_v26, %v16548_v31  ;;  %v20746_v16 = vld [vmem:[#allocation5_spill] sm:$0xff]  ;;  %v20747_v10 = vld [vmem:[#allocation18_spill] sm:$0xff] }
 0x261   : > { %v484_v2 = vadd.f32 %v16238_v25, %v464_v38  ;;  %v485_v0 = vadd.f32 %v16254_v61, %v465_v37  ;;  %v1222_v6 = vrot.slane %v1188_v51, 2  ;;  %v1721_v47 = vmul.f32 %v17052_v26, %v16568_v35  ;;  %v20748_v38 = vld [vmem:[#allocation44_spill] sm:$0xff]  ;;  %v20789_v21 = vld [vmem:[#allocation13_spill] sm:$0xff] }
 0x262   : > { %v17078_v36 = vsel %vm3271_vm8, %v3737_v23, %v3738_v1  ;;  %v20744_v50 = vrot.slane %v16326_v57, 1  ;;  %v20745_v58 = vrot.slane %v16330_v34, 1  ;;  %v1682_v15 = vrot.slane %v1646_v39, 3  ;;  %v20750_v23 = vld [vmem:[#allocation50_spill] sm:$0xff] }
 0x263   : > { %20743 = vst [vmem:[#allocation138_spill] sm:$0xff] %v17078_v36  ;;  %v504_v25 = vadd.f32 %v20746_v16, %v484_v2  ;;  %v505_v61 = vadd.f32 %v20747_v10, %v485_v0  ;;  %v20749_v37 = vrot.slane %v20748_v38, 2  ;;  %v20751_v1 = vrot.slane %v20750_v23, 2  ;;  %v20754_v2 = vld [vmem:[#allocation103_spill] sm:$0xff]  ;;  %v20757_v38 = vld [vmem:[#allocation64_spill] sm:$0xff] }
 0x264   : > { %v618_v55 = vsel %vm606_vm3, %v616_v53, %v20744_v50  ;;  %v691_v42 = vsel %vm606_vm3, %v689_v9, %v20745_v58  ;;  %v1755_v53 = vrot.slane %v1721_v47, 3  ;;  %v20752_v50 = vld [vmem:[#allocation83_spill] sm:$0xff]  ;;  %v20753_v9 = vld [vmem:[#allocation84_spill] sm:$0xff]  ;;  %v2712_v0 = vmul.f32 %v17052_v26, %v20754_v2 }
 0x265   : > { %v17091_v51 = vsel %vm1139_vm4, %v1149_v59, %v20749_v37  ;;  %v17096_v57 = vsel %vm1139_vm4, %v1222_v6, %v20751_v1  ;;  %v2179_v34 = vmul.f32 %v17052_v26, %v20752_v50  ;;  %v2254_v39 = vmul.f32 %v17052_v26, %v20753_v9  ;;  %v20755_v58 = vld [vmem:[#allocation7_spill] sm:$0xff]  ;;  %v20759_v6 = vld [vmem:[#allocation108_spill] sm:$0xff]  ;;  %v20772_v9 = vld [vmem:[#allocation105_spill] sm:$0xff] }
 0x266   : > { %v524_v16 = vadd.f32 %v20755_v58, %v504_v25  ;;  %v20756_v10 = vld [vmem:[#allocation11_spill] sm:$0xff]  ;;  %v20758_v37 = vrot.slane %v20757_v38, 3  ;;  %v2787_v47 = vmul.f32 %v17052_v26, %v20759_v6  ;;  %v2748_v43 = vrot.slane %v2712_v0, 5  ;;  %v20785_v50 = vld [vmem:[#allocation26_spill] sm:$0xff] }
 0x267   : > { %v525_v59 = vadd.f32 %v20756_v10, %v505_v61  ;;  %v2215_v1 = vrot.slane %v2179_v34, 4  ;;  %v2288_v52 = vrot.slane %v2254_v39, 4  ;;  %v3245_v4 = vmul.f32 %v17052_v26, %v16930_v22  ;;  %v20761_v2 = vld [vmem:[#allocation27_spill] sm:$0xff]  ;;  %v17119_v10 = vpop.permute.xlu0 %14168  ;;  %v20765_v34 = vld [vmem:[#allocation85_spill] sm:$0xff]  ;;  %v20767_v22 = vld [vmem:[#allocation88_spill] sm:$0xff] }
 0x268   : > { %v17109_v23 = vsel %vm1672_vm5, %v1682_v15, %v20758_v37  ;;  %v544_v24 = vadd.f32 %v20760_v32, %v524_v16  ;;  %v2821_v58 = vrot.slane %v2787_v47, 5  ;;  %v3320_v61 = vmul.f32 %v17052_v26, %v16934_v62  ;;  %20762 = vst [vmem:[#allocation5_spill] sm:$0xff] %v17119_v10  ;;  %v20763_v15 = vld [vmem:[#allocation66_spill] sm:$0xff]  ;;  %v20770_v47 = vld [vmem:[#allocation29_spill] sm:$0xff]  ;;  %v20771_v6 = vld [vmem:[#allocation31_spill] sm:$0xff] }
 0x269   : > { %v545_v25 = vadd.f32 %v20761_v2, %v525_v59  ;;  %v20764_v38 = vrot.slane %v20763_v15, 3  ;;  %v20766_v39 = vrot.slane %v20765_v34, 4  ;;  %v20768_v32 = vrot.slane %v20767_v22, 4  ;;  %v17136_v59 = vpop.permute.xlu1 %14178  ;;  %v17185_v10 = vld [vmem:[#allocation2 + $0x40] sm:$0xff] }
 0x26a   : > { %v3281_v16 = vrot.slane %v3245_v4, 6  ;;  %20769 = vst [vmem:[#allocation18_spill] sm:$0xff] %v17136_v59  ;;  %v564_v62 = vadd.f32 %v20770_v47, %v544_v24  ;;  %v3354_v34 = vrot.slane %v3320_v61, 6  ;;  %v20776_v4 = vrot.slane %v16945_v45, 6  ;;  %v20782_v24 = vld [vmem:[#allocation24_spill] sm:$0xff] }
 0x26b   : > { %v17124_v37 = vsel %vm1672_vm5, %v1755_v53, %v20764_v38  ;;  %v17129_v0 = vsel %vm2205_vm6, %v2215_v1, %v20766_v39  ;;  %v17134_v2 = vsel %vm2205_vm6, %v2288_v52, %v20768_v32  ;;  %v565_v15 = vadd.f32 %v20771_v6, %v545_v25  ;;  %v17145_v1 = vld [vmem:[#allocation2] sm:$0xff]  ;;  %v20774_v39 = vld [vmem:[#allocation113_spill] sm:$0xff]  ;;  %v20777_v6 = vld [vmem:[#allocation32_spill] sm:$0xff] }
 0x26c   : > { %v20773_v53 = vrot.slane %v20772_v9, 5  ;;  %v20775_v22 = vrot.slane %v20774_v39, 5  ;;  %v17155_v32 = vsel %vm3271_vm8, %v3281_v16, %v20776_v4  ;;  %v20778_v61 = vrot.slane %v16952_v14, 6 }
 0x26d   : > { %v642_v25 = vadd.f32 %v618_v55, %v565_v15  ;;  %v434_v45 = vmul.f32 %v16200_v40, %v17145_v1  ;;  %v20780_v15 = vld [vmem:[#allocation33_spill] sm:$0xff]  ;;  %v494_v9 = vmul.f32 %v17052_v26, %v20782_v24  ;;  %v514_v28 = vmul.f32 %v17185_v10, %v20785_v50 }
 0x26e   : > { %v17143_v38 = vsel %vm2738_vm7, %v2748_v43, %v20773_v53  ;;  %v17150_v52 = vsel %vm2738_vm7, %v2821_v58, %v20775_v22  ;;  %v641_v43 = vadd.f32 %v20777_v6, %v564_v62  ;;  %v17163_v47 = vsel %vm3271_vm8, %v3354_v34, %v20778_v61  ;;  %v17168_v53 = vld [vmem:[#allocation2 + $0x10] sm:$0xff]  ;;  %v17174_v62 = vld [vmem:[#allocation2 + $0x20] sm:$0xff] }
 0x26f   : > { %20779 = vst [vmem:[#allocation44_spill] sm:$0xff] %v17163_v47  ;;  %v435_v16 = vmul.f32 %v17168_v53, %v16200_v40  ;;  %v454_v39 = vmul.f32 %v17168_v53, %v16204_v48  ;;  %v455_v14 = vmul.f32 %v17174_v62, %v16204_v48  ;;  %v718_v34 = vadd.f32 %v20780_v15, %v642_v25  ;;  %v20781_v22 = vld [vmem:[#allocation23_spill] sm:$0xff]  ;;  %v20783_v48 = vld [vmem:[#allocation34_spill] sm:$0xff]  ;;  %v17191_v15 = vld [vmem:[#allocation2 + $0x8] sm:$0x3f] }
 0x270   : > { %v717_v55 = vadd.f32 %v691_v42, %v641_v43  ;;  %v474_v4 = vmul.f32 %v17174_v62, %v20781_v22  ;;  %v475_v6 = vmul.f32 %v17052_v26, %v20781_v22  ;;  %v495_v40 = vmul.f32 %v17185_v10, %v20782_v24  ;;  %v20784_v43 = vld [vmem:[#allocation35_spill] sm:$0xff]  ;;  %v17195_v22 = vld [vmem:[#allocation2 + $0x50] sm:$0xff] }
 0x271   : > { %v462_v61 = vadd.f32 %v454_v39, %v434_v45  ;;  %v463_v58 = vadd.f32 %v455_v14, %v435_v16  ;;  %v794_v25 = vadd.f32 %v20784_v43, %v718_v34  ;;  %v515_v45 = vmul.f32 %v17195_v22, %v20785_v50  ;;  %v20786_v14 = vld [vmem:[#allocation6_spill] sm:$0xff]  ;;  %v17201_v24 = vld [vmem:[#allocation2 + $0x60] sm:$0xff]  ;;  %v20788_v43 = vld [vmem:[#allocation40_spill] sm:$0xff] }
 0x272   : > { %v793_v42 = vadd.f32 %v20783_v48, %v717_v55  ;;  %v534_v59 = vmul.f32 %v17195_v22, %v20786_v14  ;;  %v535_v48 = vmul.f32 %v17201_v24, %v20786_v14  ;;  %v20787_v55 = vld [vmem:[#allocation37_spill] sm:$0xff]  ;;  %v554_v19 = vmul.f32 %v17201_v24, %v20789_v21 }
 0x273   : > { %v482_v16 = vadd.f32 %v474_v4, %v462_v61  ;;  %v483_v39 = vadd.f32 %v475_v6, %v463_v58  ;;  %v870_v36 = vadd.f32 %v20788_v43, %v794_v25  ;;  %v555_v50 = vmul.f32 %v16508_v17, %v20789_v21  ;;  %v20792_v21 = vld [vmem:[#allocation43_spill] sm:$0xff] }
 0x274   : > { %v869_v34 = vadd.f32 %v20787_v55, %v793_v42  ;;  %v574_v6 = vmul.f32 %v16293_v3, %v17145_v1  ;;  %v575_v61 = vmul.f32 %v16293_v3, %v17191_v15  ;;  %v576_v25 = vmul.f32 %v17168_v53, %v16293_v3  ;;  %v17219_v55 = vld [vmem:[#allocation2 + $0x18] sm:$0x3f] }
 0x275   : > { %v502_v4 = vadd.f32 %v494_v9, %v482_v16  ;;  %v503_v58 = vadd.f32 %v495_v40, %v483_v39  ;;  %v946_v42 = vadd.f32 %v20791_v20, %v870_v36  ;;  %v577_v43 = vmul.f32 %v17219_v55, %v16293_v3  ;;  %v20795_v3 = vld [vmem:[#allocation48_spill] sm:$0xff] }
 0x276   : > { %v945_v14 = vadd.f32 %v20790_v44, %v869_v34  ;;  %v607_v16 = vrot.slane %v574_v6, 1  ;;  %v608_v39 = vrot.slane %v575_v61, 1  ;;  %v610_v11 = vrot.slane %v576_v25, 1 }
 0x277   : > { %v522_v9 = vadd.f32 %v514_v28, %v502_v4  ;;  %v523_v40 = vadd.f32 %v515_v45, %v503_v58  ;;  %v1022_v56 = vadd.f32 %v20793_v60, %v946_v42  ;;  %v611_v44 = vrot.slane %v577_v43, 1  ;;  %v20796_v58 = vld [vmem:[#allocation52_spill] sm:$0xff] }
 0x278   : > { %v1021_v30 = vadd.f32 %v20792_v21, %v945_v14  ;;  %v609_v36 = vsel %vm606_vm3, %v607_v16, %v608_v39  ;;  %v651_v41 = vmul.f32 %v17168_v53, %v16302_v33  ;;  %v652_v21 = vmul.f32 %v17219_v55, %v16302_v33  ;;  %v20799_v39 = vld [vmem:[#allocation54_spill] sm:$0xff] }
 0x279   : > { %v542_v34 = vadd.f32 %v534_v59, %v522_v9  ;;  %v543_v20 = vadd.f32 %v535_v48, %v523_v40  ;;  %v1098_v28 = vadd.f32 %v20795_v3, %v1022_v56  ;;  %v612_v45 = vsel %vm606_vm3, %v610_v11, %v611_v44  ;;  %v17235_v48 = vld [vmem:[#allocation2 + $0x28] sm:$0x3f] }
 0x27a   : > { %v1097_v47 = vadd.f32 %v20794_v63, %v1021_v30  ;;  %v653_v59 = vmul.f32 %v17174_v62, %v16302_v33  ;;  %v654_v4 = vmul.f32 %v17235_v48, %v16302_v33  ;;  %v683_v3 = vrot.slane %v651_v41, 1  ;;  %v20798_v9 = vld [vmem:[#allocation28_spill] sm:$0xff] }
 0x27b   : > { %v562_v14 = vadd.f32 %v554_v19, %v542_v34  ;;  %v563_v60 = vadd.f32 %v555_v50, %v543_v20  ;;  %v1175_v63 = vadd.f32 %v17091_v51, %v1098_v28  ;;  %v684_v56 = vrot.slane %v652_v21, 1  ;;  %v20797_v50 = vld [vmem:[#allocation53_spill] sm:$0xff] }
 0x27c   : > { %v1174_v6 = vadd.f32 %v20796_v58, %v1097_v47  ;;  %v686_v61 = vrot.slane %v653_v59, 1  ;;  %v687_v42 = vrot.slane %v654_v4, 1  ;;  %v727_v40 = vmul.f32 %v17174_v62, %v20798_v9  ;;  %v20800_v34 = vld [vmem:[#allocation57_spill] sm:$0xff]  ;;  %v20802_v4 = vld [vmem:[#allocation58_spill] sm:$0xff] }
 0x27d   : > { %v639_v11 = vadd.f32 %v609_v36, %v562_v14  ;;  %v640_v30 = vadd.f32 %v612_v45, %v563_v60  ;;  %v1251_v25 = vadd.f32 %v20797_v50, %v1175_v63  ;;  %v685_v43 = vsel %vm606_vm3, %v683_v3, %v684_v56  ;;  %v17253_v36 = vld [vmem:[#allocation2 + $0x38] sm:$0x3f]  ;;  %v20804_v50 = vld [vmem:[#allocation60_spill] sm:$0xff] }
 0x27e   : > { %v1250_v19 = vadd.f32 %v17096_v57, %v1174_v6  ;;  %v688_v16 = vsel %vm606_vm3, %v686_v61, %v687_v42  ;;  %v728_v41 = vmul.f32 %v17235_v48, %v20798_v9  ;;  %v729_v51 = vmul.f32 %v17052_v26, %v20798_v9  ;;  %v20801_v60 = vld [vmem:[#allocation30_spill] sm:$0xff]  ;;  %v20803_v6 = vld [vmem:[#allocation59_spill] sm:$0xff]  ;;  %v17266_v61 = vld [vmem:[#allocation2 + $0x48] sm:$0x3f] }
 0x27f   : > { %v715_v47 = vadd.f32 %v685_v43, %v639_v11  ;;  %v1327_v57 = vadd.f32 %v20800_v34, %v1251_v25  ;;  %v716_v20 = vadd.f32 %v688_v16, %v640_v30  ;;  %v730_v28 = vmul.f32 %v17253_v36, %v20798_v9  ;;  %v20805_v43 = vld [vmem:[#allocation61_spill] sm:$0xff] }
 0x280   : > { %v1326_v44 = vadd.f32 %v20799_v39, %v1250_v19  ;;  %v759_v45 = vrot.slane %v727_v40, 1  ;;  %v760_v21 = vrot.slane %v728_v41, 1  ;;  %v762_v14 = vrot.slane %v729_v51, 1 }
 0x281   : > { %v803_v59 = vmul.f32 %v17052_v26, %v20801_v60  ;;  %v1403_v63 = vadd.f32 %v20803_v6, %v1327_v57  ;;  %v763_v3 = vrot.slane %v730_v28, 1  ;;  %v804_v56 = vmul.f32 %v17253_v36, %v20801_v60  ;;  %v20806_v57 = vld [vmem:[#allocation63_spill] sm:$0xff] }
 0x282   : > { %v1402_v58 = vadd.f32 %v20802_v4, %v1326_v44  ;;  %v761_v11 = vsel %vm606_vm3, %v759_v45, %v760_v21  ;;  %v805_v30 = vmul.f32 %v17185_v10, %v20801_v60  ;;  %v806_v42 = vmul.f32 %v17266_v61, %v20801_v60  ;;  %v20807_v45 = vld [vmem:[#allocation65_spill] sm:$0xff]  ;;  %v20808_v4 = vld [vmem:[#allocation36_spill] sm:$0xff] }
 0x283   : > { %v835_v19 = vrot.slane %v803_v59, 1  ;;  %v1479_v40 = vadd.f32 %v20805_v43, %v1403_v63  ;;  %v764_v16 = vsel %vm606_vm3, %v762_v14, %v763_v3  ;;  %v791_v41 = vadd.f32 %v761_v11, %v715_v47  ;;  %v20809_v3 = vld [vmem:[#allocation67_spill] sm:$0xff]  ;;  %v20810_v11 = vld [vmem:[#allocation68_spill] sm:$0xff] }
 0x284   : > { %v1478_v25 = vadd.f32 %v20804_v50, %v1402_v58  ;;  %v792_v51 = vadd.f32 %v764_v16, %v716_v20  ;;  %v836_v39 = vrot.slane %v804_v56, 1  ;;  %v838_v44 = vrot.slane %v805_v30, 1  ;;  %v17283_v20 = vld [vmem:[#allocation2 + $0x58] sm:$0x3f]  ;;  %v20811_v16 = vld [vmem:[#allocation69_spill] sm:$0xff] }
 0x285   : > { %v839_v34 = vrot.slane %v806_v42, 1  ;;  %v1555_v21 = vadd.f32 %v20807_v45, %v1479_v40  ;;  %v879_v6 = vmul.f32 %v17185_v10, %v20808_v4  ;;  %v880_v59 = vmul.f32 %v17266_v61, %v20808_v4 }
 0x286   : > { %v1554_v28 = vadd.f32 %v20806_v57, %v1478_v25  ;;  %v837_v58 = vsel %vm606_vm3, %v835_v19, %v836_v39  ;;  %v881_v47 = vmul.f32 %v17195_v22, %v20808_v4  ;;  %v882_v14 = vmul.f32 %v17283_v20, %v20808_v4 }
 0x287   : > { %v840_v63 = vsel %vm606_vm3, %v838_v44, %v839_v34  ;;  %v1631_v30 = vadd.f32 %v20810_v11, %v1555_v21  ;;  %v867_v42 = vadd.f32 %v837_v58, %v791_v41  ;;  %v911_v25 = vrot.slane %v879_v6, 1  ;;  %v20812_v34 = vld [vmem:[#allocation38_spill] sm:$0xff] }
 0x288   : > { %v1630_v56 = vadd.f32 %v20809_v3, %v1554_v28  ;;  %v868_v50 = vadd.f32 %v840_v63, %v792_v51  ;;  %v912_v43 = vrot.slane %v880_v59, 1  ;;  %v914_v40 = vrot.slane %v881_v47, 1  ;;  %v17299_v51 = vld [vmem:[#allocation2 + $0x68] sm:$0x3f]  ;;  %v20813_v59 = vld [vmem:[#allocation74_spill] sm:$0xff] }
 0x289   : > { %v915_v19 = vrot.slane %v882_v14, 1  ;;  %v1708_v44 = vadd.f32 %v17109_v23, %v1631_v30  ;;  %v955_v57 = vmul.f32 %v17195_v22, %v20812_v34  ;;  %v956_v45 = vmul.f32 %v17283_v20, %v20812_v34  ;;  %v20814_v30 = vld [vmem:[#allocation75_spill] sm:$0xff] }
 0x28a   : > { %v1707_v39 = vadd.f32 %v20811_v16, %v1630_v56  ;;  %v913_v28 = vsel %vm606_vm3, %v911_v25, %v912_v43  ;;  %v957_v41 = vmul.f32 %v17201_v24, %v20812_v34  ;;  %v958_v6 = vmul.f32 %v17299_v51, %v20812_v34  ;;  %v20815_v43 = vld [vmem:[#allocation76_spill] sm:$0xff] }
 0x28b   : > { %v916_v21 = vsel %vm606_vm3, %v914_v40, %v915_v19  ;;  %v1784_v58 = vadd.f32 %v20813_v59, %v1708_v44  ;;  %v943_v63 = vadd.f32 %v913_v28, %v867_v42  ;;  %v987_v14 = vrot.slane %v955_v57, 1  ;;  %v20816_v19 = vld [vmem:[#allocation39_spill] sm:$0xff]  ;;  %v20817_v44 = vld [vmem:[#allocation77_spill] sm:$0xff] }
 0x28c   : > { %v1783_v23 = vadd.f32 %v17124_v37, %v1707_v39  ;;  %v944_v47 = vadd.f32 %v916_v21, %v868_v50  ;;  %v988_v3 = vrot.slane %v956_v45, 1  ;;  %v990_v56 = vrot.slane %v957_v41, 1  ;;  %v20818_v45 = vld [vmem:[#allocation78_spill] sm:$0xff] }
 0x28d   : > { %v991_v11 = vrot.slane %v958_v6, 1  ;;  %v1860_v40 = vadd.f32 %v20815_v43, %v1784_v58  ;;  %v1031_v16 = vmul.f32 %v17201_v24, %v20816_v19  ;;  %v1032_v34 = vmul.f32 %v17299_v51, %v20816_v19 }
 0x28e   : > { %v1859_v25 = vadd.f32 %v20814_v30, %v1783_v23  ;;  %v989_v37 = vsel %vm606_vm3, %v987_v14, %v988_v3  ;;  %v1033_v42 = vmul.f32 %v16508_v17, %v20816_v19  ;;  %v1034_v50 = vmul.f32 %v16512_v29, %v20816_v19  ;;  %v20819_v30 = vld [vmem:[#allocation79_spill] sm:$0xff]  ;;  %v20820_v3 = vld [vmem:[#allocation80_spill] sm:$0xff] }
 0x28f   : > { %v992_v39 = vsel %vm606_vm3, %v990_v56, %v991_v11  ;;  %v1936_v28 = vadd.f32 %v20818_v45, %v1860_v40  ;;  %v1019_v21 = vadd.f32 %v989_v37, %v943_v63  ;;  %v1063_v6 = vrot.slane %v1031_v16, 1  ;;  %v20822_v40 = vld [vmem:[#allocation87_spill] sm:$0xff]  ;;  %v20823_v45 = vld [vmem:[#allocation89_spill] sm:$0xff] }
 0x290   : > { %v1935_v57 = vadd.f32 %v20817_v44, %v1859_v25  ;;  %v1020_v41 = vadd.f32 %v992_v39, %v944_v47  ;;  %v1064_v23 = vrot.slane %v1032_v34, 1  ;;  %v1066_v59 = vrot.slane %v1033_v42, 1  ;;  %v20821_v47 = vld [vmem:[#allocation82_spill] sm:$0xff] }
 0x291   : > { %v1067_v58 = vrot.slane %v1034_v50, 1  ;;  %v2012_v56 = vadd.f32 %v20820_v3, %v1936_v28  ;;  %v1107_v17 = vmul.f32 %v16408_v5, %v17145_v1  ;;  %v1108_v29 = vmul.f32 %v16408_v5, %v17191_v15  ;;  %v20825_v3 = vld [vmem:[#allocation91_spill] sm:$0xff] }
 0x292   : > { %v2011_v14 = vadd.f32 %v20819_v30, %v1935_v57  ;;  %v1065_v11 = vsel %vm606_vm3, %v1063_v6, %v1064_v23  ;;  %v1109_v63 = vmul.f32 %v17168_v53, %v16408_v5  ;;  %v1110_v34 = vmul.f32 %v17219_v55, %v16408_v5  ;;  %v20824_v6 = vld [vmem:[#allocation90_spill] sm:$0xff] }
 0x293   : > { %v1068_v25 = vsel %vm606_vm3, %v1066_v59, %v1067_v58  ;;  %v2088_v16 = vadd.f32 %v20822_v40, %v2012_v56  ;;  %v1095_v37 = vadd.f32 %v1065_v11, %v1019_v21  ;;  %v1140_v42 = vrot.slane %v1107_v17, 2  ;;  %v20826_v40 = vld [vmem:[#allocation93_spill] sm:$0xff] }
 0x294   : > { %v2087_v43 = vadd.f32 %v20821_v47, %v2011_v14  ;;  %v1096_v39 = vadd.f32 %v1068_v25, %v1020_v41  ;;  %v1141_v50 = vrot.slane %v1108_v29, 2  ;;  %v1143_v44 = vrot.slane %v1109_v63, 2 }
 0x295   : > { %v1144_v57 = vrot.slane %v1110_v34, 2  ;;  %v2164_v23 = vadd.f32 %v20824_v6, %v2088_v16  ;;  %v1184_v59 = vmul.f32 %v17168_v53, %v16445_v54  ;;  %v1185_v58 = vmul.f32 %v17219_v55, %v16445_v54 }
 0x296   : > { %v2163_v28 = vadd.f32 %v20823_v45, %v2087_v43  ;;  %v1142_v30 = vsel %vm1139_vm4, %v1140_v42, %v1141_v50  ;;  %v1186_v21 = vmul.f32 %v17174_v62, %v16445_v54  ;;  %v1187_v41 = vmul.f32 %v17235_v48, %v16445_v54  ;;  %v20827_v42 = vld [vmem:[#allocation49_spill] sm:$0xff]  ;;  %v20828_v45 = vld [vmem:[#allocation96_spill] sm:$0xff] }
 0x297   : > { %v1145_v14 = vsel %vm1139_vm4, %v1143_v44, %v1144_v57  ;;  %v2241_v17 = vadd.f32 %v17129_v0, %v2164_v23  ;;  %v1172_v29 = vadd.f32 %v1142_v30, %v1095_v37  ;;  %v1216_v25 = vrot.slane %v1184_v59, 2 }
 0x298   : > { %v2240_v56 = vadd.f32 %v20825_v3, %v2163_v28  ;;  %v1173_v11 = vadd.f32 %v1145_v14, %v1096_v39  ;;  %v1217_v63 = vrot.slane %v1185_v58, 2  ;;  %v1219_v34 = vrot.slane %v1186_v21, 2  ;;  %v20829_v28 = vld [vmem:[#allocation97_spill] sm:$0xff] }
 0x299   : > { %v1220_v47 = vrot.slane %v1187_v41, 2  ;;  %v2317_v16 = vadd.f32 %v20826_v40, %v2241_v17  ;;  %v1260_v50 = vmul.f32 %v17174_v62, %v20827_v42  ;;  %v1261_v44 = vmul.f32 %v17235_v48, %v20827_v42  ;;  %v20830_v41 = vld [vmem:[#allocation98_spill] sm:$0xff]  ;;  %v20833_v40 = vld [vmem:[#allocation101_spill] sm:$0xff] }
 0x29a   : > { %v2316_v43 = vadd.f32 %v17134_v2, %v2240_v56  ;;  %v1218_v57 = vsel %vm1139_vm4, %v1216_v25, %v1217_v63  ;;  %v1262_v37 = vmul.f32 %v17052_v26, %v20827_v42  ;;  %v1263_v39 = vmul.f32 %v17253_v36, %v20827_v42  ;;  %v20831_v56 = vld [vmem:[#allocation99_spill] sm:$0xff] }
 0x29b   : > { %v1221_v0 = vsel %vm1139_vm4, %v1219_v34, %v1220_v47  ;;  %v2393_v6 = vadd.f32 %v20829_v28, %v2317_v16  ;;  %v1248_v23 = vadd.f32 %v1218_v57, %v1172_v29  ;;  %v1292_v58 = vrot.slane %v1260_v50, 2  ;;  %v20832_v25 = vld [vmem:[#allocation51_spill] sm:$0xff]  ;;  %v20834_v50 = vld [vmem:[#allocation102_spill] sm:$0xff]  ;;  %v20835_v28 = vld [vmem:[#allocation104_spill] sm:$0xff] }
 0x29c   : > { %v2392_v2 = vadd.f32 %v20828_v45, %v2316_v43  ;;  %v1249_v59 = vadd.f32 %v1221_v0, %v1173_v11  ;;  %v1293_v30 = vrot.slane %v1261_v44, 2  ;;  %v1295_v14 = vrot.slane %v1262_v37, 2 }
 0x29d   : > { %v1296_v21 = vrot.slane %v1263_v39, 2  ;;  %v2469_v17 = vadd.f32 %v20831_v56, %v2393_v6  ;;  %v1336_v63 = vmul.f32 %v17052_v26, %v20832_v25  ;;  %v1337_v34 = vmul.f32 %v17253_v36, %v20832_v25 }
 0x29e   : > { %v2468_v3 = vadd.f32 %v20830_v41, %v2392_v2  ;;  %v1294_v47 = vsel %vm1139_vm4, %v1292_v58, %v1293_v30  ;;  %v1338_v29 = vmul.f32 %v17185_v10, %v20832_v25  ;;  %v1339_v11 = vmul.f32 %v17266_v61, %v20832_v25  ;;  %v20836_v58 = vld [vmem:[#allocation106_spill] sm:$0xff] }
 0x29f   : > { %v1297_v43 = vsel %vm1139_vm4, %v1295_v14, %v1296_v21  ;;  %v2545_v44 = vadd.f32 %v20834_v50, %v2469_v17  ;;  %v1324_v57 = vadd.f32 %v1294_v47, %v1248_v23  ;;  %v1368_v37 = vrot.slane %v1336_v63, 2  ;;  %v20837_v14 = vld [vmem:[#allocation55_spill] sm:$0xff] }
 0x2a0   : > { %v2544_v16 = vadd.f32 %v20833_v40, %v2468_v3  ;;  %v1325_v0 = vadd.f32 %v1297_v43, %v1249_v59  ;;  %v1369_v39 = vrot.slane %v1337_v34, 2  ;;  %v1371_v45 = vrot.slane %v1338_v29, 2  ;;  %v20838_v17 = vld [vmem:[#allocation107_spill] sm:$0xff]  ;;  %v20839_v34 = vld [vmem:[#allocation110_spill] sm:$0xff] }
 0x2a1   : > { %v1372_v2 = vrot.slane %v1339_v11, 2  ;;  %v2621_v30 = vadd.f32 %v20836_v58, %v2545_v44  ;;  %v1412_v21 = vmul.f32 %v17185_v10, %v20837_v14  ;;  %v1413_v41 = vmul.f32 %v17266_v61, %v20837_v14  ;;  %v20840_v44 = vld [vmem:[#allocation111_spill] sm:$0xff] }
 0x2a2   : > { %v2620_v6 = vadd.f32 %v20835_v28, %v2544_v16  ;;  %v1370_v3 = vsel %vm1139_vm4, %v1368_v37, %v1369_v39  ;;  %v1414_v23 = vmul.f32 %v17195_v22, %v20837_v14  ;;  %v1415_v59 = vmul.f32 %v17283_v20, %v20837_v14 }
 0x2a3   : > { %v1373_v56 = vsel %vm1139_vm4, %v1371_v45, %v1372_v2  ;;  %v2697_v47 = vadd.f32 %v20839_v34, %v2621_v30  ;;  %v1400_v43 = vadd.f32 %v1370_v3, %v1324_v57  ;;  %v1444_v11 = vrot.slane %v1412_v21, 2  ;;  %v20841_v45 = vld [vmem:[#allocation56_spill] sm:$0xff] }
 0x2a4   : > { %v2696_v63 = vadd.f32 %v20838_v17, %v2620_v6  ;;  %v1401_v29 = vadd.f32 %v1373_v56, %v1325_v0  ;;  %v1445_v40 = vrot.slane %v1413_v41, 2  ;;  %v1447_v16 = vrot.slane %v1414_v23, 2  ;;  %v20842_v17 = vld [vmem:[#allocation115_spill] sm:$0xff]  ;;  %v20843_v34 = vld [vmem:[#allocation116_spill] sm:$0xff] }
 0x2a5   : > { %v1448_v50 = vrot.slane %v1415_v59, 2  ;;  %v2774_v39 = vadd.f32 %v17143_v38, %v2697_v47  ;;  %v1488_v2 = vmul.f32 %v17195_v22, %v20841_v45  ;;  %v1489_v28 = vmul.f32 %v17283_v20, %v20841_v45 }
 0x2a6   : > { %v2773_v37 = vadd.f32 %v20840_v44, %v2696_v63  ;;  %v1446_v6 = vsel %vm1139_vm4, %v1444_v11, %v1445_v40  ;;  %v1490_v57 = vmul.f32 %v17201_v24, %v20841_v45  ;;  %v1491_v0 = vmul.f32 %v17299_v51, %v20841_v45  ;;  %v20844_v11 = vld [vmem:[#allocation62_spill] sm:$0xff] }
 0x2a7   : > { %v1449_v58 = vsel %vm1139_vm4, %v1447_v16, %v1448_v50  ;;  %v2850_v38 = vadd.f32 %v16873_v18, %v2774_v39  ;;  %v1476_v21 = vadd.f32 %v1446_v6, %v1400_v43  ;;  %v1520_v3 = vrot.slane %v1488_v2, 2  ;;  %v17411_v43 = vld [vmem:[#allocation2 + $0x70] sm:$0xff]  ;;  %v17415_v50 = vld [vmem:[#allocation2 + $0x78] sm:$0x3f]  ;;  %v20846_v2 = vld [vmem:[#allocation120_spill] sm:$0xff] }
 0x2a8   : > { %v2849_v30 = vadd.f32 %v17150_v52, %v2773_v37  ;;  %v1477_v41 = vadd.f32 %v1449_v58, %v1401_v29  ;;  %v1521_v56 = vrot.slane %v1489_v28, 2  ;;  %v1523_v23 = vrot.slane %v1490_v57, 2  ;;  %v20845_v37 = vld [vmem:[#allocation118_spill] sm:$0xff] }
 0x2a9   : > { %v1524_v59 = vrot.slane %v1491_v0, 2  ;;  %v2926_v47 = vadd.f32 %v20843_v34, %v2850_v38  ;;  %v1564_v40 = vmul.f32 %v17201_v24, %v20844_v11  ;;  %v1565_v16 = vmul.f32 %v17299_v51, %v20844_v11 }
 0x2aa   : > { %v2925_v63 = vadd.f32 %v20842_v17, %v2849_v30  ;;  %v1522_v52 = vsel %vm1139_vm4, %v1520_v3, %v1521_v56  ;;  %v1566_v29 = vmul.f32 %v17411_v43, %v20844_v11  ;;  %v1567_v44 = vmul.f32 %v17415_v50, %v20844_v11 }
 0x2ab   : > { %v1525_v18 = vsel %vm1139_vm4, %v1523_v23, %v1524_v59  ;;  %v3002_v28 = vadd.f32 %v20846_v2, %v2926_v47  ;;  %v1552_v6 = vadd.f32 %v1522_v52, %v1476_v21  ;;  %v1596_v57 = vrot.slane %v1564_v40, 2 }
 0x2ac   : > { %v3001_v39 = vadd.f32 %v20845_v37, %v2925_v63  ;;  %v1553_v58 = vadd.f32 %v1525_v18, %v1477_v41  ;;  %v1597_v0 = vrot.slane %v1565_v16, 2  ;;  %v1599_v30 = vrot.slane %v1566_v29, 2 }
 0x2ad   : > { %v1600_v38 = vrot.slane %v1567_v44, 2  ;;  %v3078_v56 = vadd.f32 %v16923_v46, %v3002_v28  ;;  %v1640_v23 = vmul.f32 %v16548_v31, %v17145_v1  ;;  %v1641_v59 = vmul.f32 %v16548_v31, %v17191_v15 }
 0x2ae   : > { %v3077_v3 = vadd.f32 %v16916_v13, %v3001_v39  ;;  %v1598_v17 = vsel %vm1139_vm4, %v1596_v57, %v1597_v0  ;;  %v1642_v21 = vmul.f32 %v17168_v53, %v16548_v31  ;;  %v1643_v41 = vmul.f32 %v17219_v55, %v16548_v31 }
 0x2af   : > { %v1601_v63 = vsel %vm1139_vm4, %v1599_v30, %v1600_v38  ;;  %v3154_v46 = vadd.f32 %v16937_v27, %v3078_v56  ;;  %v1628_v34 = vadd.f32 %v1598_v17, %v1552_v6  ;;  %v1673_v40 = vrot.slane %v1640_v23, 3  ;;  %v20848_v23 = vld [vmem:[#allocation125_spill] sm:$0xff]  ;;  %v20849_v17 = vld [vmem:[#allocation70_spill] sm:$0xff] }
 0x2b0   : > { %v3153_v13 = vadd.f32 %v16926_v7, %v3077_v3  ;;  %v1629_v47 = vadd.f32 %v1601_v63, %v1553_v58  ;;  %v1674_v16 = vrot.slane %v1641_v59, 3  ;;  %v1676_v52 = vrot.slane %v1642_v21, 3  ;;  %v20847_v3 = vld [vmem:[#allocation44_spill] sm:$0xff] }
 0x2b1   : > { %v1677_v18 = vrot.slane %v1643_v41, 3  ;;  %v3230_v44 = vadd.f32 %v16959_v12, %v3154_v46  ;;  %v1717_v37 = vmul.f32 %v17168_v53, %v16568_v35  ;;  %v1718_v39 = vmul.f32 %v17219_v55, %v16568_v35  ;;  %v20850_v46 = vld [vmem:[#allocation126_spill] sm:$0xff] }
 0x2b2   : > { %v3229_v29 = vadd.f32 %v16948_v8, %v3153_v13  ;;  %v1675_v7 = vsel %vm1672_vm5, %v1673_v40, %v1674_v16  ;;  %v1719_v2 = vmul.f32 %v17174_v62, %v16568_v35  ;;  %v1720_v28 = vmul.f32 %v17235_v48, %v16568_v35 }
 0x2b3   : > { %v1678_v27 = vsel %vm1672_vm5, %v1676_v52, %v1677_v18  ;;  %v3307_v12 = vadd.f32 %v17155_v32, %v3230_v44  ;;  %v1705_v6 = vadd.f32 %v1675_v7, %v1628_v34  ;;  %v1749_v57 = vrot.slane %v1717_v37, 3 }
 0x2b4   : > { %v3306_v8 = vadd.f32 %v16978_v49, %v3229_v29  ;;  %v1706_v58 = vadd.f32 %v1678_v27, %v1629_v47  ;;  %v1750_v0 = vrot.slane %v1718_v39, 3  ;;  %v1752_v30 = vrot.slane %v1719_v2, 3  ;;  %v20851_v47 = vld [vmem:[#allocation128_spill] sm:$0xff]  ;;  %v20852_v39 = vld [vmem:[#allocation129_spill] sm:$0xff]  ;;  %v20853_v27 = vld [vmem:[#allocation131_spill] sm:$0xff] }
 0x2b5   : > { %v1753_v38 = vrot.slane %v1720_v28, 3  ;;  %v3383_v59 = vadd.f32 %v20848_v23, %v3307_v12  ;;  %v1793_v63 = vmul.f32 %v17174_v62, %v20849_v17  ;;  %v1794_v21 = vmul.f32 %v17235_v48, %v20849_v17  ;;  %v20854_v28 = vld [vmem:[#allocation71_spill] sm:$0xff] }
 0x2b6   : > { %v3382_v56 = vadd.f32 %v20847_v3, %v3306_v8  ;;  %v1751_v49 = vsel %vm1672_vm5, %v1749_v57, %v1750_v0  ;;  %v1795_v41 = vmul.f32 %v17052_v26, %v20849_v17  ;;  %v1796_v13 = vmul.f32 %v17253_v36, %v20849_v17  ;;  %v20856_v3 = vld [vmem:[#allocation133_spill] sm:$0xff] }
 0x2b7   : > { %v1754_v32 = vsel %vm1672_vm5, %v1752_v30, %v1753_v38  ;;  %v3459_v40 = vadd.f32 %v20851_v47, %v3383_v59  ;;  %v1781_v16 = vadd.f32 %v1751_v49, %v1705_v6  ;;  %v1825_v18 = vrot.slane %v1793_v63, 3  ;;  %v20855_v30 = vld [vmem:[#allocation132_spill] sm:$0xff] }
 0x2b8   : > { %v3458_v34 = vadd.f32 %v20850_v46, %v3382_v56  ;;  %v1782_v52 = vadd.f32 %v1754_v32, %v1706_v58  ;;  %v1826_v29 = vrot.slane %v1794_v21, 3  ;;  %v1828_v44 = vrot.slane %v1795_v41, 3  ;;  %v20857_v41 = vld [vmem:[#allocation135_spill] sm:$0xff]  ;;  %v20858_v46 = vld [vmem:[#allocation136_spill] sm:$0xff] }
 0x2b9   : > { %v1829_v37 = vrot.slane %v1796_v13, 3  ;;  %v3535_v2 = vadd.f32 %v20853_v27, %v3459_v40  ;;  %v1869_v8 = vmul.f32 %v17052_v26, %v20854_v28  ;;  %v1870_v12 = vmul.f32 %v17253_v36, %v20854_v28  ;;  %v20859_v47 = vld [vmem:[#allocation72_spill] sm:$0xff] }
 0x2ba   : > { %v3534_v7 = vadd.f32 %v20852_v39, %v3458_v34  ;;  %v1827_v57 = vsel %vm1672_vm5, %v1825_v18, %v1826_v29  ;;  %v1871_v6 = vmul.f32 %v17185_v10, %v20854_v28  ;;  %v1872_v58 = vmul.f32 %v17266_v61, %v20854_v28 }
 0x2bb   : > { %v1830_v0 = vsel %vm1672_vm5, %v1828_v44, %v1829_v37  ;;  %v3611_v56 = vadd.f32 %v20856_v3, %v3535_v2  ;;  %v1857_v23 = vadd.f32 %v1827_v57, %v1781_v16  ;;  %v1901_v63 = vrot.slane %v1869_v8, 3  ;;  %v20860_v37 = vld [vmem:[#allocation137_spill] sm:$0xff] }
 0x2bc   : > { %v3610_v38 = vadd.f32 %v20855_v30, %v3534_v7  ;;  %v1858_v59 = vadd.f32 %v1830_v0, %v1782_v52  ;;  %v1902_v21 = vrot.slane %v1870_v12, 3  ;;  %v1904_v49 = vrot.slane %v1871_v6, 3  ;;  %v20861_v7 = vld [vmem:[#allocation138_spill] sm:$0xff]  ;;  %v17494_v12 = vld [vmem:[%s20358_s4] ss:$0 sm:$0xff] }
 0x2bd   : > { %v1905_v32 = vrot.slane %v1872_v58, 3  ;;  %v3687_v34 = vadd.f32 %v20858_v46, %v3611_v56  ;;  %v1945_v40 = vmul.f32 %v17185_v10, %v20859_v47  ;;  %v1946_v18 = vmul.f32 %v17266_v61, %v20859_v47  ;;  %v20863_v56 = vld [vmem:[#allocation73_spill] sm:$0xff] }
 0x2be   : > { %v3686_v13 = vadd.f32 %v20857_v41, %v3610_v38  ;;  %v1903_v29 = vsel %vm1672_vm5, %v1901_v63, %v1902_v21  ;;  %v1947_v16 = vmul.f32 %v17195_v22, %v20859_v47  ;;  %v1948_v52 = vmul.f32 %v17283_v20, %v20859_v47  ;;  %v20873_v38 = vld [vmem:[#allocation94_spill] sm:$0xff] }
 0x2bf   : > { %v1906_v44 = vsel %vm1672_vm5, %v1904_v49, %v1905_v32  ;;  %v3763_v27 = vadd.f32 %v20861_v7, %v3687_v34  ;;  %v1933_v2 = vadd.f32 %v1903_v29, %v1857_v23  ;;  %v1977_v57 = vrot.slane %v1945_v40, 3 }
 0x2c0   : > { %v3762_v39 = vadd.f32 %v20860_v37, %v3686_v13  ;;  %v1934_v8 = vadd.f32 %v1906_v44, %v1858_v59  ;;  %v1978_v0 = vrot.slane %v1946_v18, 3  ;;  %v1980_v6 = vrot.slane %v1947_v16, 3  ;;  %v20865_v13 = vld [vmem:[#allocation134_spill] sm:$0xff]  ;;  %v20868_v37 = vld [vmem:[#allocation81_spill] sm:$0xff] }
 0x2c1   : > { %v1981_v58 = vrot.slane %v1948_v52, 3  ;;  %v2021_v63 = vmul.f32 %v17195_v22, %v20863_v56  ;;  %v2022_v23 = vmul.f32 %v17283_v20, %v20863_v56  ;;  %v2023_v49 = vmul.f32 %v17201_v24, %v20863_v56 }
 0x2c2   : > { %v3774_v30 = vadd.f32 %v17494_v12, %v3762_v39  ;;  %v1979_v59 = vsel %vm1672_vm5, %v1977_v57, %v1978_v0  ;;  %v2024_v32 = vmul.f32 %v17299_v51, %v20863_v56  ;;  %v17509_v41 = vadd.f32 %v17494_v12, %v3763_v27 }
 0x2c3   : > { %v1982_v21 = vsel %vm1672_vm5, %v1980_v6, %v1981_v58  ;;  %v20866_v46 = vunpack.i.l.bf16 %v20865_v13  ;;  %v2009_v40 = vadd.f32 %v1979_v59, %v1933_v2  ;;  %v2053_v29 = vrot.slane %v2021_v63, 3 }
 0x2c4   : > { %20864 = vst [vmem:[#allocation50_spill] sm:$0xff] %v17509_v41  ;;  %v2010_v18 = vadd.f32 %v1982_v21, %v1934_v8  ;;  %v2054_v44 = vrot.slane %v2022_v23, 3  ;;  %v2056_v16 = vrot.slane %v2023_v49, 3  ;;  %v2057_v52 = vrot.slane %v2024_v32, 3  ;;  %v20869_v8 = vld [vmem:[#allocation83_spill] sm:$0xff] }
 0x2c5   : > { %v17514_v34 = vsel %vm341_vm0, %v3774_v30, %v20866_v46  ;;  %v2097_v39 = vmul.f32 %v17201_v24, %v20868_v37  ;;  %v2098_v7 = vmul.f32 %v17299_v51, %v20868_v37  ;;  %v2099_v27 = vmul.f32 %v17411_v43, %v20868_v37 }
 0x2c6   : > { %20867 = vst [vmem:[#allocation7_spill] sm:$0xff] %v17514_v34  ;;  %v2100_v57 = vmul.f32 %v17415_v50, %v20868_v37  ;;  %v2055_v0 = vsel %vm1672_vm5, %v2053_v29, %v2054_v44  ;;  %v2058_v2 = vsel %vm1672_vm5, %v2056_v16, %v2057_v52  ;;  %v2173_v6 = vmul.f32 %v20869_v8, %v17145_v1  ;;  %v20870_v52 = vld [vmem:[#allocation84_spill] sm:$0xff] }
 0x2c7   : > { %v2174_v58 = vmul.f32 %v20869_v8, %v17191_v15  ;;  %v2085_v30 = vadd.f32 %v2055_v0, %v2009_v40  ;;  %v2086_v63 = vadd.f32 %v2058_v2, %v2010_v18  ;;  %v2129_v23 = vrot.slane %v2097_v39, 3 }
 0x2c8   : > { %v2130_v59 = vrot.slane %v2098_v7, 3  ;;  %v2132_v21 = vrot.slane %v2099_v27, 3  ;;  %v2133_v49 = vrot.slane %v2100_v57, 3  ;;  %v2175_v32 = vmul.f32 %v17168_v53, %v20869_v8 }
 0x2c9   : > { %v2176_v46 = vmul.f32 %v17219_v55, %v20869_v8  ;;  %v2206_v44 = vrot.slane %v2173_v6, 4  ;;  %v2207_v16 = vrot.slane %v2174_v58, 4  ;;  %v2250_v3 = vmul.f32 %v17168_v53, %v20870_v52 }
 0x2ca   : > { %v2131_v29 = vsel %vm1672_vm5, %v2129_v23, %v2130_v59  ;;  %v2134_v40 = vsel %vm1672_vm5, %v2132_v21, %v2133_v49  ;;  %v2209_v39 = vrot.slane %v2175_v32, 4  ;;  %v2251_v0 = vmul.f32 %v17219_v55, %v20870_v52  ;;  %v20871_v32 = vld [vmem:[#allocation86_spill] sm:$0xff] }
 0x2cb   : > { %v2161_v18 = vadd.f32 %v2131_v29, %v2085_v30  ;;  %v2210_v7 = vrot.slane %v2176_v46, 4  ;;  %v2162_v27 = vadd.f32 %v2134_v40, %v2086_v63  ;;  %v2208_v57 = vsel %vm2205_vm6, %v2206_v44, %v2207_v16 }
 0x2cc   : > { %v2252_v2 = vmul.f32 %v17174_v62, %v20870_v52  ;;  %v2253_v23 = vmul.f32 %v17235_v48, %v20870_v52  ;;  %v2282_v59 = vrot.slane %v2250_v3, 4  ;;  %v2283_v30 = vrot.slane %v2251_v0, 4  ;;  %v20872_v3 = vld [vmem:[#allocation92_spill] sm:$0xff] }
 0x2cd   : > { %v2211_v6 = vsel %vm2205_vm6, %v2209_v39, %v2210_v7  ;;  %v2238_v58 = vadd.f32 %v2208_v57, %v2161_v18  ;;  %v2326_v63 = vmul.f32 %v17174_v62, %v20871_v32  ;;  %v2327_v29 = vmul.f32 %v17235_v48, %v20871_v32 }
 0x2ce   : > { %v2239_v21 = vadd.f32 %v2211_v6, %v2162_v27  ;;  %v2285_v49 = vrot.slane %v2252_v2, 4  ;;  %v2286_v46 = vrot.slane %v2253_v23, 4  ;;  %v2328_v44 = vmul.f32 %v17052_v26, %v20871_v32 }
 0x2cf   : > { %v2329_v16 = vmul.f32 %v17253_v36, %v20871_v32  ;;  %v2284_v40 = vsel %vm2205_vm6, %v2282_v59, %v2283_v30  ;;  %v2358_v18 = vrot.slane %v2326_v63, 4  ;;  %v2402_v39 = vmul.f32 %v17052_v26, %v20872_v3 }
 0x2d0   : > { %v2403_v7 = vmul.f32 %v17253_v36, %v20872_v3  ;;  %v2287_v27 = vsel %vm2205_vm6, %v2285_v49, %v2286_v46  ;;  %v2314_v57 = vadd.f32 %v2284_v40, %v2238_v58  ;;  %v2359_v0 = vrot.slane %v2327_v29, 4 }
 0x2d1   : > { %v2361_v2 = vrot.slane %v2328_v44, 4  ;;  %v2315_v6 = vadd.f32 %v2287_v27, %v2239_v21  ;;  %v2362_v23 = vrot.slane %v2329_v16, 4  ;;  %v2404_v34 = vmul.f32 %v17185_v10, %v20872_v3 }
 0x2d2   : > { %v2405_v59 = vmul.f32 %v17266_v61, %v20872_v3  ;;  %v2360_v30 = vsel %vm2205_vm6, %v2358_v18, %v2359_v0  ;;  %v2434_v63 = vrot.slane %v2402_v39, 4  ;;  %v2435_v26 = vrot.slane %v2403_v7, 4 }
 0x2d3   : > { %v2478_v41 = vmul.f32 %v17185_v10, %v20873_v38  ;;  %v2363_v49 = vsel %vm2205_vm6, %v2361_v2, %v2362_v23  ;;  %v2390_v58 = vadd.f32 %v2360_v30, %v2314_v57  ;;  %v2437_v46 = vrot.slane %v2404_v34, 4  ;;  %v20874_v2 = vld [vmem:[#allocation95_spill] sm:$0xff] }
 0x2d4   : > { %v2438_v29 = vrot.slane %v2405_v59, 4  ;;  %v2391_v21 = vadd.f32 %v2363_v49, %v2315_v6  ;;  %v2436_v44 = vsel %vm2205_vm6, %v2434_v63, %v2435_v26  ;;  %v2479_v16 = vmul.f32 %v17266_v61, %v20873_v38 }
 0x2d5   : > { %v2480_v40 = vmul.f32 %v17195_v22, %v20873_v38  ;;  %v2466_v39 = vadd.f32 %v2436_v44, %v2390_v58  ;;  %v2481_v7 = vmul.f32 %v17283_v20, %v20873_v38  ;;  %v2510_v27 = vrot.slane %v2478_v41, 4  ;;  %v20875_v41 = vld [vmem:[#allocation100_spill] sm:$0xff] }
 0x2d6   : > { %v2439_v18 = vsel %vm2205_vm6, %v2437_v46, %v2438_v29  ;;  %v2511_v57 = vrot.slane %v2479_v16, 4  ;;  %v2554_v6 = vmul.f32 %v17195_v22, %v20874_v2  ;;  %v2555_v59 = vmul.f32 %v17283_v20, %v20874_v2 }
 0x2d7   : > { %v2467_v0 = vadd.f32 %v2439_v18, %v2391_v21  ;;  %v2513_v34 = vrot.slane %v2480_v40, 4  ;;  %v2514_v23 = vrot.slane %v2481_v7, 4  ;;  %v2556_v30 = vmul.f32 %v17201_v24, %v20874_v2 }
 0x2d8   : > { %v2557_v63 = vmul.f32 %v17299_v51, %v20874_v2  ;;  %v2512_v26 = vsel %vm2205_vm6, %v2510_v27, %v2511_v57  ;;  %v2586_v49 = vrot.slane %v2554_v6, 4  ;;  %v2630_v58 = vmul.f32 %v17201_v24, %v20875_v41  ;;  %v20876_v2 = vld [vmem:[#allocation103_spill] sm:$0xff] }
 0x2d9   : > { %v2631_v46 = vmul.f32 %v17299_v51, %v20875_v41  ;;  %v2515_v29 = vsel %vm2205_vm6, %v2513_v34, %v2514_v23  ;;  %v2542_v21 = vadd.f32 %v2512_v26, %v2466_v39  ;;  %v2587_v44 = vrot.slane %v2555_v59, 4 }
 0x2da   : > { %v2589_v16 = vrot.slane %v2556_v30, 4  ;;  %v2543_v40 = vadd.f32 %v2515_v29, %v2467_v0  ;;  %v2590_v18 = vrot.slane %v2557_v63, 4  ;;  %v2632_v7 = vmul.f32 %v17411_v43, %v20875_v41 }
 0x2db   : > { %v2633_v27 = vmul.f32 %v17415_v50, %v20875_v41  ;;  %v2588_v57 = vsel %vm2205_vm6, %v2586_v49, %v2587_v44  ;;  %v2662_v6 = vrot.slane %v2630_v58, 4  ;;  %v2663_v13 = vrot.slane %v2631_v46, 4 }
 0x2dc   : > { %v2706_v38 = vmul.f32 %v20876_v2, %v17145_v1  ;;  %v2591_v34 = vsel %vm2205_vm6, %v2589_v16, %v2590_v18  ;;  %v2618_v39 = vadd.f32 %v2588_v57, %v2542_v21  ;;  %v2665_v23 = vrot.slane %v2632_v7, 4  ;;  %v20877_v16 = vld [vmem:[#allocation108_spill] sm:$0xff] }
 0x2dd   : > { %v2666_v59 = vrot.slane %v2633_v27, 4  ;;  %v2619_v0 = vadd.f32 %v2591_v34, %v2543_v40  ;;  %v2664_v30 = vsel %vm2205_vm6, %v2662_v6, %v2663_v13  ;;  %v2707_v63 = vmul.f32 %v20876_v2, %v17191_v15 }
 0x2de   : > { %v2708_v26 = vmul.f32 %v17168_v53, %v20876_v2  ;;  %v2694_v58 = vadd.f32 %v2664_v30, %v2618_v39  ;;  %v2709_v1 = vmul.f32 %v17219_v55, %v20876_v2  ;;  %v2739_v46 = vrot.slane %v2706_v38, 5  ;;  %v20878_v38 = vld [vmem:[#allocation109_spill] sm:$0xff] }
 0x2df   : > { %v2667_v49 = vsel %vm2205_vm6, %v2665_v23, %v2666_v59  ;;  %v2740_v21 = vrot.slane %v2707_v63, 5  ;;  %v2783_v40 = vmul.f32 %v17168_v53, %v20877_v16  ;;  %v2784_v15 = vmul.f32 %v17219_v55, %v20877_v16  ;;  %v17620_v63 = vld [vmem:[#allocation2 + $0x30] sm:$0xff] }
 0x2e0   : > { %v2695_v29 = vadd.f32 %v2667_v49, %v2619_v0  ;;  %v2742_v44 = vrot.slane %v2708_v26, 5  ;;  %v2743_v13 = vrot.slane %v2709_v1, 5  ;;  %v2785_v18 = vmul.f32 %v17174_v62, %v20877_v16 }
 0x2e1   : > { %v2786_v7 = vmul.f32 %v17235_v48, %v20877_v16  ;;  %v2741_v27 = vsel %vm2738_vm7, %v2739_v46, %v2740_v21  ;;  %v2815_v57 = vrot.slane %v2783_v40, 5  ;;  %v2859_v6 = vmul.f32 %v17174_v62, %v20878_v38  ;;  %v20879_v21 = vld [vmem:[#allocation112_spill] sm:$0xff] }
 0x2e2   : > { %v2860_v34 = vmul.f32 %v17235_v48, %v20878_v38  ;;  %v2744_v53 = vsel %vm2738_vm7, %v2742_v44, %v2743_v13  ;;  %v2771_v39 = vadd.f32 %v2741_v27, %v2694_v58  ;;  %v2816_v23 = vrot.slane %v2784_v15, 5 }
 0x2e3   : > { %v2818_v59 = vrot.slane %v2785_v18, 5  ;;  %v2772_v0 = vadd.f32 %v2744_v53, %v2695_v29  ;;  %v2819_v30 = vrot.slane %v2786_v7, 5  ;;  %v2861_v26 = vmul.f32 %v17620_v63, %v20878_v38 }
 0x2e4   : > { %v2862_v49 = vmul.f32 %v17253_v36, %v20878_v38  ;;  %v2817_v62 = vsel %vm2738_vm7, %v2815_v57, %v2816_v23  ;;  %v2891_v1 = vrot.slane %v2859_v6, 5  ;;  %v2892_v46 = vrot.slane %v2860_v34, 5 }
 0x2e5   : > { %v2935_v44 = vmul.f32 %v17620_v63, %v20879_v21  ;;  %v2820_v58 = vsel %vm2738_vm7, %v2818_v59, %v2819_v30  ;;  %v2847_v40 = vadd.f32 %v2817_v62, %v2771_v39  ;;  %v2894_v29 = vrot.slane %v2861_v26, 5  ;;  %v20880_v30 = vld [vmem:[#allocation114_spill] sm:$0xff] }
 0x2e6   : > { %v2895_v13 = vrot.slane %v2862_v49, 5  ;;  %v2848_v15 = vadd.f32 %v2820_v58, %v2772_v0  ;;  %v2893_v18 = vsel %vm2738_vm7, %v2891_v1, %v2892_v46  ;;  %v2936_v7 = vmul.f32 %v17253_v36, %v20879_v21 }
 0x2e7   : > { %v2937_v27 = vmul.f32 %v17185_v10, %v20879_v21  ;;  %v2923_v6 = vadd.f32 %v2893_v18, %v2847_v40  ;;  %v2938_v34 = vmul.f32 %v17266_v61, %v20879_v21  ;;  %v2967_v53 = vrot.slane %v2935_v44, 5  ;;  %v20881_v44 = vld [vmem:[#allocation117_spill] sm:$0xff] }
 0x2e8   : > { %v2896_v57 = vsel %vm2738_vm7, %v2894_v29, %v2895_v13  ;;  %v2968_v39 = vrot.slane %v2936_v7, 5  ;;  %v3011_v0 = vmul.f32 %v17185_v10, %v20880_v30  ;;  %v3012_v49 = vmul.f32 %v17266_v61, %v20880_v30 }
 0x2e9   : > { %v2924_v23 = vadd.f32 %v2896_v57, %v2848_v15  ;;  %v2970_v59 = vrot.slane %v2937_v27, 5  ;;  %v2971_v26 = vrot.slane %v2938_v34, 5  ;;  %v3013_v62 = vmul.f32 %v17195_v22, %v20880_v30 }
 0x2ea   : > { %v3014_v1 = vmul.f32 %v17283_v20, %v20880_v30  ;;  %v2969_v46 = vsel %vm2738_vm7, %v2967_v53, %v2968_v39  ;;  %v3043_v58 = vrot.slane %v3011_v0, 5  ;;  %v3087_v40 = vmul.f32 %v17195_v22, %v20881_v44  ;;  %v20882_v0 = vld [vmem:[#allocation119_spill] sm:$0xff] }
 0x2eb   : > { %v3088_v29 = vmul.f32 %v17283_v20, %v20881_v44  ;;  %v2972_v10 = vsel %vm2738_vm7, %v2970_v59, %v2971_v26  ;;  %v2999_v13 = vadd.f32 %v2969_v46, %v2923_v6  ;;  %v3044_v15 = vrot.slane %v3012_v49, 5 }
 0x2ec   : > { %v3046_v18 = vrot.slane %v3013_v62, 5  ;;  %v3000_v7 = vadd.f32 %v2972_v10, %v2924_v23  ;;  %v3047_v27 = vrot.slane %v3014_v1, 5  ;;  %v3089_v57 = vmul.f32 %v17201_v24, %v20881_v44 }
 0x2ed   : > { %v3090_v34 = vmul.f32 %v17299_v51, %v20881_v44  ;;  %v3045_v53 = vsel %vm2738_vm7, %v3043_v58, %v3044_v15  ;;  %v3119_v39 = vrot.slane %v3087_v40, 5  ;;  %v3120_v22 = vrot.slane %v3088_v29, 5 }
 0x2ee   : > { %v3163_v30 = vmul.f32 %v17201_v24, %v20882_v0  ;;  %v3048_v59 = vsel %vm2738_vm7, %v3046_v18, %v3047_v27  ;;  %v3075_v6 = vadd.f32 %v3045_v53, %v2999_v13  ;;  %v3122_v26 = vrot.slane %v3089_v57, 5  ;;  %v14262_v18 = vld [vmem:[#allocation2] sm:$0xff] }
 0x2ef   : > { %v3123_v49 = vrot.slane %v3090_v34, 5  ;;  %v3076_v23 = vadd.f32 %v3048_v59, %v3000_v7  ;;  %v3121_v62 = vsel %vm2738_vm7, %v3119_v39, %v3120_v22  ;;  %v3164_v1 = vmul.f32 %v17299_v51, %v20882_v0  ;;  %v20883_v7 = vld [vmem:[#allocation121_spill] sm:$0xff]  ;;  %v14263_v34 = vld [vmem:[#allocation2 + $0x8] sm:$0x3f] }
 0x2f0   : > { %v3165_v46 = vmul.f32 %v17411_v43, %v20882_v0  ;;  %v3151_v40 = vadd.f32 %v3121_v62, %v3075_v6  ;;  %v3166_v24 = vmul.f32 %v17415_v50, %v20882_v0  ;;  %v3195_v29 = vrot.slane %v3163_v30, 5  ;;  %v14264_v39 = vld [vmem:[#allocation2 + $0x10] sm:$0xff]  ;;  %v20884_v30 = vld [vmem:[#allocation122_spill] sm:$0xff] }
 0x2f1   : > { %v3124_v58 = vsel %vm2738_vm7, %v3122_v26, %v3123_v49  ;;  %v3196_v13 = vrot.slane %v3164_v1, 5  ;;  %v3239_v27 = vmul.f32 %v14262_v18, %v20883_v7  ;;  %v3240_v53 = vmul.f32 %v14263_v34, %v20883_v7  ;;  %v14265_v34 = vld [vmem:[#allocation2 + $0x20] sm:$0xff] }
 0x2f2   : > { %v3152_v10 = vadd.f32 %v3124_v58, %v3076_v23  ;;  %v3198_v15 = vrot.slane %v3165_v46, 5  ;;  %v3199_v57 = vrot.slane %v3166_v24, 5  ;;  %v3241_v22 = vmul.f32 %v14264_v39, %v20883_v7 }
 0x2f3   : > { %v3242_v59 = vmul.f32 %v17219_v55, %v20883_v7  ;;  %v3197_v6 = vsel %vm2738_vm7, %v3195_v29, %v3196_v13  ;;  %v3272_v26 = vrot.slane %v3239_v27, 6  ;;  %v3316_v49 = vmul.f32 %v14264_v39, %v20884_v30  ;;  %v20885_v39 = vld [vmem:[#allocation123_spill] sm:$0xff] }
 0x2f4   : > { %v3317_v23 = vmul.f32 %v17219_v55, %v20884_v30  ;;  %v3200_v62 = vsel %vm2738_vm7, %v3198_v15, %v3199_v57  ;;  %v3227_v1 = vadd.f32 %v3197_v6, %v3151_v40  ;;  %v3273_v46 = vrot.slane %v3240_v53, 6 }
 0x2f5   : > { %v3275_v58 = vrot.slane %v3241_v22, 6  ;;  %v3228_v24 = vadd.f32 %v3200_v62, %v3152_v10  ;;  %v3276_v18 = vrot.slane %v3242_v59, 6  ;;  %v3318_v0 = vmul.f32 %v14265_v34, %v20884_v30 }
 0x2f6   : > { %v3319_v7 = vmul.f32 %v17235_v48, %v20884_v30  ;;  %v3274_v29 = vsel %vm3271_vm8, %v3272_v26, %v3273_v46  ;;  %v3348_v13 = vrot.slane %v3316_v49, 6  ;;  %v3349_v27 = vrot.slane %v3317_v23, 6 }
 0x2f7   : > { %v3392_v44 = vmul.f32 %v14265_v34, %v20885_v39  ;;  %v3277_v55 = vsel %vm3271_vm8, %v3275_v58, %v3276_v18  ;;  %v3304_v15 = vadd.f32 %v3274_v29, %v3227_v1  ;;  %v3351_v40 = vrot.slane %v3318_v0, 6 }
 0x2f8   : > { %v3352_v57 = vrot.slane %v3319_v7, 6  ;;  %v3305_v53 = vadd.f32 %v3277_v55, %v3228_v24  ;;  %v3350_v10 = vsel %vm3271_vm8, %v3348_v13, %v3349_v27  ;;  %v3393_v22 = vmul.f32 %v17235_v48, %v20885_v39  ;;  %v20886_v7 = vld [vmem:[#allocation124_spill] sm:$0xff]  ;;  %v17696_v24 = vld [vmem:[#allocation2 + $0x40] sm:$0xff] }
 0x2f9   : > { %v3394_v59 = vmul.f32 %v17620_v63, %v20885_v39  ;;  %v3380_v26 = vadd.f32 %v3350_v10, %v3304_v15  ;;  %v3395_v49 = vmul.f32 %v17253_v36, %v20885_v39  ;;  %v3424_v23 = vrot.slane %v3392_v44, 6  ;;  %v20887_v13 = vld [vmem:[#allocation127_spill] sm:$0xff]  ;;  %v17708_v10 = vld [vmem:[#allocation2 + $0x50] sm:$0xff]  ;;  %v17788_v39 = vld [vmem:[#allocation2 + $0x48] sm:$0x3f] }
 0x2fa   : > { %v3353_v6 = vsel %vm3271_vm8, %v3351_v40, %v3352_v57  ;;  %v3425_v1 = vrot.slane %v3393_v22, 6  ;;  %v3468_v46 = vmul.f32 %v17620_v63, %v20886_v7  ;;  %v3469_v48 = vmul.f32 %v17253_v36, %v20886_v7 }
 0x2fb   : > { %v3381_v62 = vadd.f32 %v3353_v6, %v3305_v53  ;;  %v3427_v0 = vrot.slane %v3394_v59, 6  ;;  %v3428_v58 = vrot.slane %v3395_v49, 6  ;;  %v3470_v18 = vmul.f32 %v17696_v24, %v20886_v7 }
 0x2fc   : > { %v3471_v34 = vmul.f32 %v17266_v61, %v20886_v7  ;;  %v3426_v44 = vsel %vm3271_vm8, %v3424_v23, %v3425_v1  ;;  %v3500_v29 = vrot.slane %v3468_v46, 6  ;;  %v3544_v27 = vmul.f32 %v17696_v24, %v20887_v13 }
 0x2fd   : > { %v3545_v63 = vmul.f32 %v17266_v61, %v20887_v13  ;;  %v3429_v55 = vsel %vm3271_vm8, %v3427_v0, %v3428_v58  ;;  %v3456_v36 = vadd.f32 %v3426_v44, %v3380_v26  ;;  %v3501_v15 = vrot.slane %v3469_v48, 6  ;;  %v20888_v61 = vld [vmem:[#allocation130_spill] sm:$0xff] }
 0x2fe   : > { %v3503_v40 = vrot.slane %v3470_v18, 6  ;;  %v3457_v57 = vadd.f32 %v3429_v55, %v3381_v62  ;;  %v3504_v53 = vrot.slane %v3471_v34, 6  ;;  %v3546_v22 = vmul.f32 %v17708_v10, %v20887_v13  ;;  %v17721_v34 = vld [vmem:[#allocation2 + $0x60] sm:$0xff] }
 0x2ff   : > { %v3547_v59 = vmul.f32 %v17283_v20, %v20887_v13  ;;  %v3502_v6 = vsel %vm3271_vm8, %v3500_v29, %v3501_v15  ;;  %v3576_v49 = vrot.slane %v3544_v27, 6  ;;  %v3577_v23 = vrot.slane %v3545_v63, 6 }
 0x300   : > { %v3620_v1 = vmul.f32 %v17708_v10, %v20888_v61  ;;  %v3505_v26 = vsel %vm3271_vm8, %v3503_v40, %v3504_v53  ;;  %v3532_v0 = vadd.f32 %v3502_v6, %v3456_v36  ;;  %v3579_v62 = vrot.slane %v3546_v22, 6 }
 0x301   : > { %v3580_v46 = vrot.slane %v3547_v59, 6  ;;  %v3533_v58 = vadd.f32 %v3505_v26, %v3457_v57  ;;  %v3578_v48 = vsel %vm3271_vm8, %v3576_v49, %v3577_v23  ;;  %v3621_v18 = vmul.f32 %v17283_v20, %v20888_v61  ;;  %v14269_v57 = vld [vmem:[%s20355_s1 + $0x30] ss:$0 sm:$0xff] }
 0x302   : > { %v3622_v44 = vmul.f32 %v17721_v34, %v20888_v61  ;;  %v3608_v27 = vadd.f32 %v3578_v48, %v3532_v0  ;;  %v3623_v63 = vmul.f32 %v17299_v51, %v20888_v61  ;;  %v3652_v55 = vrot.slane %v3620_v1, 6  ;;  %v20889_v1 = vld [vmem:[#allocation22_spill] sm:$0xff] }
 0x303   : > { %v3581_v29 = vsel %vm3271_vm8, %v3579_v62, %v3580_v46  ;;  %v3653_v15 = vrot.slane %v3621_v18, 6  ;;  %v3696_v20 = vmul.f32 %v14269_v57, %v17721_v34  ;;  %v3697_v22 = vmul.f32 %v14269_v57, %v17299_v51 }
 0x304   : > { %v3609_v36 = vadd.f32 %v3581_v29, %v3533_v58  ;;  %v3655_v40 = vrot.slane %v3622_v44, 6  ;;  %v3656_v53 = vrot.slane %v3623_v63, 6  ;;  %v3698_v59 = vmul.f32 %v14269_v57, %v17411_v43  ;;  %v20890_v44 = vld [vmem:[#allocation20_spill] sm:$0xff] }
 0x305   : > { %v3699_v6 = vmul.f32 %v14269_v57, %v17415_v50  ;;  %v3654_v49 = vsel %vm3271_vm8, %v3652_v55, %v3653_v15  ;;  %v3728_v23 = vrot.slane %v3696_v20, 6  ;;  %v438_v26 = vmul.f32 %v17696_v24, %v20889_v1  ;;  %v20891_v15 = vld [vmem:[#allocation23_spill] sm:$0xff] }
 0x306   : > { %v3657_v0 = vsel %vm3271_vm8, %v3655_v40, %v3656_v53  ;;  %v3684_v62 = vadd.f32 %v3654_v49, %v3608_v27  ;;  %v3729_v46 = vrot.slane %v3697_v22, 6  ;;  %v3731_v58 = vrot.slane %v3698_v59, 6  ;;  %v20892_v53 = vld [vmem:[#allocation24_spill] sm:$0xff]  ;;  %v17753_v49 = vld [vmem:[#allocation2 + $0x80] sm:$0xff] }
 0x307   : > { %v3685_v48 = vadd.f32 %v3657_v0, %v3609_v36  ;;  %v3732_v18 = vrot.slane %v3699_v6, 6  ;;  %v439_v51 = vmul.f32 %v17708_v10, %v20889_v1  ;;  %v458_v29 = vmul.f32 %v17708_v10, %v20890_v44  ;;  %v20893_v0 = vld [vmem:[#allocation26_spill] sm:$0xff]  ;;  %v17760_v1 = vld [vmem:[#allocation2 + $0x90] sm:$0xff] }
 0x308   : > { %v3730_v63 = vsel %vm3271_vm8, %v3728_v23, %v3729_v46  ;;  %v459_v55 = vmul.f32 %v17721_v34, %v20890_v44  ;;  %v478_v57 = vmul.f32 %v17721_v34, %v20891_v15  ;;  %v479_v27 = vmul.f32 %v17411_v43, %v20891_v15 }
 0x309   : > { %v3733_v36 = vsel %vm3271_vm8, %v3731_v58, %v3732_v18  ;;  %v3760_v40 = vadd.f32 %v3730_v63, %v3684_v62  ;;  %v466_v20 = vadd.f32 %v458_v29, %v438_v26  ;;  %v498_v22 = vmul.f32 %v17411_v43, %v20892_v53  ;;  %v20894_v62 = vld [vmem:[#allocation6_spill] sm:$0xff]  ;;  %v20895_v63 = vld [vmem:[#allocation13_spill] sm:$0xff] }
 0x30a   : > { %v3761_v59 = vadd.f32 %v3733_v36, %v3685_v48  ;;  %v467_v6 = vadd.f32 %v459_v55, %v439_v51  ;;  %v499_v23 = vmul.f32 %v17753_v49, %v20892_v53  ;;  %v518_v46 = vmul.f32 %v17753_v49, %v20893_v0  ;;  %v17767_v51 = vld [vmem:[#allocation2 + $0xa0] sm:$0xff] }
 0x30b   : > { %v3772_v44 = vadd.f32 %v17494_v12, %v3760_v40  ;;  %v486_v15 = vadd.f32 %v478_v57, %v466_v20  ;;  %v519_v26 = vmul.f32 %v17760_v1, %v20893_v0  ;;  %v538_v58 = vmul.f32 %v17760_v1, %v20894_v62  ;;  %v20896_v57 = vld [vmem:[#allocation19_spill] sm:$0xff]  ;;  %v17776_v0 = vld [vmem:[#allocation2 + $0xb0] sm:$0xff] }
 0x30c   : > { %v3773_v48 = vadd.f32 %v17494_v12, %v3761_v59  ;;  %v487_v18 = vadd.f32 %v479_v27, %v467_v6  ;;  %v539_v29 = vmul.f32 %v17767_v51, %v20894_v62  ;;  %v558_v55 = vmul.f32 %v17767_v51, %v20895_v63  ;;  %v20898_v12 = vld [vmem:[#allocation17_spill] sm:$0xff] }
 0x30d   : > { %v20897_v36 = vunpack.i.l.bf16 %v20896_v57  ;;  %v506_v20 = vadd.f32 %v498_v22, %v486_v15  ;;  %v559_v53 = vmul.f32 %v17776_v0, %v20895_v63  ;;  %v582_v27 = vmul.f32 %v17696_v24, %v20898_v12  ;;  %v20900_v62 = vld [vmem:[#allocation5_spill] sm:$0xff]  ;;  %v17797_v63 = vld [vmem:[#allocation2 + $0x58] sm:$0x3f] }
 0x30e   : > { %v20899_v59 = vunpack.i.h.bf16 %v20896_v57  ;;  %v20901_v61 = vunpack.i.l.bf16 %v20900_v62  ;;  %v507_v7 = vadd.f32 %v499_v23, %v487_v18  ;;  %v20902_v15 = vunpack.i.h.bf16 %v20900_v62 }
 0x30f   : > { %v6636_v40 = vsel %vm341_vm0, %v3772_v44, %v20897_v36  ;;  %v583_v44 = vmul.f32 %v17788_v39, %v20898_v12  ;;  %v526_v36 = vadd.f32 %v518_v46, %v506_v20  ;;  %v584_v57 = vmul.f32 %v17708_v10, %v20898_v12 }
 0x310   : > { %v6637_v6 = vsel %vm341_vm0, %v3773_v48, %v20899_v59  ;;  %v6645_v13 = vsel %vm6644_vm9, %v6636_v40, %v20901_v61  ;;  %v585_v48 = vmul.f32 %v17797_v63, %v20898_v12  ;;  %v527_v23 = vadd.f32 %v519_v26, %v507_v7  ;;  %v17809_v26 = vld [vmem:[#allocation2 + $0x68] sm:$0x3f] }
 0x311   : > { %v6646_v22 = vsel %vm6644_vm9, %v6637_v6, %v20902_v15  ;;  %v619_v18 = vrot.slane %v582_v27, 1  ;;  %v620_v40 = vrot.slane %v583_v44, 1  ;;  %v546_v59 = vadd.f32 %v538_v58, %v526_v36 }
 0x312   : > { %v13859_v61 = vpack.c.bf16 %v6646_v22, %v6645_v13  ;;  %v622_v30 = vrot.slane %v584_v57, 1  ;;  %v623_v21 = vrot.slane %v585_v48, 1  ;;  %v659_v62 = vmul.f32 %v17708_v10, %v16302_v33 }
 0x313   : > { %v547_v46 = vadd.f32 %v539_v29, %v527_v23  ;;  %v621_v20 = vsel %vm606_vm3, %v619_v18, %v620_v40  ;;  %v660_v6 = vmul.f32 %v17797_v63, %v16302_v33  ;;  %v661_v15 = vmul.f32 %v17721_v34, %v16302_v33 }
 0x314   : > { %13860 = vmatprep.subr.bf16.mxu0 %v13859_v61  ;;  %v566_v13 = vadd.f32 %v558_v55, %v546_v59  ;;  %v624_v7 = vsel %vm606_vm3, %v622_v30, %v623_v21  ;;  %v662_v58 = vmul.f32 %v17809_v26, %v16302_v33  ;;  %v695_v27 = vrot.slane %v659_v62, 1 }
 0x315   : > { %13862 = vmatpush3.bf16.msra.mxu0 %v13859_v61  ;;  %v567_v44 = vadd.f32 %v559_v53, %v547_v46  ;;  %v696_v29 = vrot.slane %v660_v6, 1  ;;  %v698_v22 = vrot.slane %v661_v15, 1  ;;  %v735_v36 = vmul.f32 %v17721_v34, %v20798_v9 }
 0x316   : > { %v643_v57 = vadd.f32 %v621_v20, %v566_v13  ;;  %v699_v48 = vrot.slane %v662_v58, 1  ;;  %v736_v55 = vmul.f32 %v17809_v26, %v20798_v9  ;;  %v737_v21 = vmul.f32 %v17411_v43, %v20798_v9  ;;  %v17830_v58 = vld [vmem:[#allocation2 + $0x88] sm:$0x3f] }
 0x317   : > { %v644_v30 = vadd.f32 %v624_v7, %v567_v44  ;;  %v697_v23 = vsel %vm606_vm3, %v695_v27, %v696_v29  ;;  %v738_v61 = vmul.f32 %v17415_v50, %v20798_v9  ;;  %v771_v53 = vrot.slane %v735_v36, 1 }
 0x318   : > { %v700_v18 = vsel %vm606_vm3, %v698_v22, %v699_v48  ;;  %v719_v40 = vadd.f32 %v697_v23, %v643_v57  ;;  %v772_v59 = vrot.slane %v736_v55, 1  ;;  %v774_v62 = vrot.slane %v737_v21, 1  ;;  %v17842_v23 = vld [vmem:[#allocation2 + $0x98] sm:$0x3f] }
 0x319   : > { %v720_v46 = vadd.f32 %v700_v18, %v644_v30  ;;  %v775_v20 = vrot.slane %v738_v61, 1  ;;  %v811_v6 = vmul.f32 %v17411_v43, %v20801_v60  ;;  %v812_v15 = vmul.f32 %v17415_v50, %v20801_v60 }
 0x31a   : > { %v773_v13 = vsel %vm606_vm3, %v771_v53, %v772_v59  ;;  %v813_v7 = vmul.f32 %v17753_v49, %v20801_v60  ;;  %v814_v27 = vmul.f32 %v17830_v58, %v20801_v60  ;;  %v887_v44 = vmul.f32 %v17753_v49, %v20808_v4 }
 0x31b   : > { %v776_v29 = vsel %vm606_vm3, %v774_v62, %v775_v20  ;;  %v795_v22 = vadd.f32 %v773_v13, %v719_v40  ;;  %v847_v43 = vrot.slane %v811_v6, 1  ;;  %v848_v36 = vrot.slane %v812_v15, 1  ;;  %v20903_v62 = vld [vmem:[#allocation38_spill] sm:$0xff] }
 0x31c   : > { %v796_v57 = vadd.f32 %v776_v29, %v720_v46  ;;  %v850_v50 = vrot.slane %v813_v7, 1  ;;  %v851_v48 = vrot.slane %v814_v27, 1  ;;  %v888_v55 = vmul.f32 %v17830_v58, %v20808_v4  ;;  %v17854_v29 = vld [vmem:[#allocation2 + $0xa8] sm:$0x3f] }
 0x31d   : > { %v849_v21 = vsel %vm606_vm3, %v847_v43, %v848_v36  ;;  %v889_v30 = vmul.f32 %v17760_v1, %v20808_v4  ;;  %v890_v61 = vmul.f32 %v17842_v23, %v20808_v4  ;;  %v923_v53 = vrot.slane %v887_v44, 1 }
 0x31e   : > { %v852_v18 = vsel %vm606_vm3, %v850_v50, %v851_v48  ;;  %v871_v40 = vadd.f32 %v849_v21, %v795_v22  ;;  %v924_v59 = vrot.slane %v888_v55, 1  ;;  %v963_v46 = vmul.f32 %v17760_v1, %v20903_v62 }
 0x31f   : > { %v872_v20 = vadd.f32 %v852_v18, %v796_v57  ;;  %v926_v6 = vrot.slane %v889_v30, 1  ;;  %v927_v15 = vrot.slane %v890_v61, 1  ;;  %v964_v13 = vmul.f32 %v17842_v23, %v20903_v62  ;;  %v17866_v18 = vld [vmem:[#allocation2 + $0xb8] sm:$0x3f] }
 0x320   : > { %v925_v7 = vsel %vm606_vm3, %v923_v53, %v924_v59  ;;  %v965_v27 = vmul.f32 %v17767_v51, %v20903_v62  ;;  %v966_v44 = vmul.f32 %v17854_v29, %v20903_v62  ;;  %v999_v22 = vrot.slane %v963_v46, 1 }
 0x321   : > { %v928_v43 = vsel %vm606_vm3, %v926_v6, %v927_v15  ;;  %v947_v36 = vadd.f32 %v925_v7, %v871_v40  ;;  %v1000_v57 = vrot.slane %v964_v13, 1  ;;  %v1039_v50 = vmul.f32 %v17767_v51, %v20816_v19 }
 0x322   : > { %v948_v48 = vadd.f32 %v928_v43, %v872_v20  ;;  %v1002_v55 = vrot.slane %v965_v27, 1  ;;  %v1003_v21 = vrot.slane %v966_v44, 1  ;;  %v1040_v30 = vmul.f32 %v17854_v29, %v20816_v19 }
 0x323   : > { %v1001_v61 = vsel %vm606_vm3, %v999_v22, %v1000_v57  ;;  %v1041_v53 = vmul.f32 %v17776_v0, %v20816_v19  ;;  %v1042_v40 = vmul.f32 %v17866_v18, %v20816_v19  ;;  %v1075_v59 = vrot.slane %v1039_v50, 1 }
 0x324   : > { %v1004_v46 = vsel %vm606_vm3, %v1002_v55, %v1003_v21  ;;  %v1023_v6 = vadd.f32 %v1001_v61, %v947_v36  ;;  %v1076_v20 = vrot.slane %v1040_v30, 1  ;;  %v1115_v15 = vmul.f32 %v17696_v24, %v16408_v5 }
 0x325   : > { %v1024_v13 = vadd.f32 %v1004_v46, %v948_v48  ;;  %v1078_v7 = vrot.slane %v1041_v53, 1  ;;  %v1079_v27 = vrot.slane %v1042_v40, 1  ;;  %v1116_v44 = vmul.f32 %v17788_v39, %v16408_v5 }
 0x326   : > { %v1077_v22 = vsel %vm606_vm3, %v1075_v59, %v1076_v20  ;;  %v1117_v43 = vmul.f32 %v17708_v10, %v16408_v5  ;;  %v1118_v57 = vmul.f32 %v17797_v63, %v16408_v5  ;;  %v1152_v50 = vrot.slane %v1115_v15, 2 }
 0x327   : > { %v1080_v36 = vsel %vm606_vm3, %v1078_v7, %v1079_v27  ;;  %v1099_v55 = vadd.f32 %v1077_v22, %v1023_v6  ;;  %v1153_v21 = vrot.slane %v1116_v44, 2  ;;  %v1192_v48 = vmul.f32 %v17708_v10, %v16445_v54 }
 0x328   : > { %v1100_v30 = vadd.f32 %v1080_v36, %v1024_v13  ;;  %v1155_v61 = vrot.slane %v1117_v43, 2  ;;  %v1156_v53 = vrot.slane %v1118_v57, 2  ;;  %v1193_v40 = vmul.f32 %v17797_v63, %v16445_v54  ;;  %v17896_v36 = vld [vmem:[#allocation2 + $0x70] sm:$0xff] }
 0x329   : > { %v1154_v59 = vsel %vm1139_vm4, %v1152_v50, %v1153_v21  ;;  %v1194_v46 = vmul.f32 %v17721_v34, %v16445_v54  ;;  %v1195_v20 = vmul.f32 %v17809_v26, %v16445_v54  ;;  %v1228_v15 = vrot.slane %v1192_v48, 2  ;;  %v17900_v48 = vld [vmem:[#allocation2 + $0x78] sm:$0x3f] }
 0x32a   : > { %v1157_v6 = vsel %vm1139_vm4, %v1155_v61, %v1156_v53  ;;  %v1176_v7 = vadd.f32 %v1154_v59, %v1099_v55  ;;  %v1229_v27 = vrot.slane %v1193_v40, 2  ;;  %v1268_v13 = vmul.f32 %v17721_v34, %v20827_v42 }
 0x32b   : > { %v1177_v44 = vadd.f32 %v1157_v6, %v1100_v30  ;;  %v1231_v22 = vrot.slane %v1194_v46, 2  ;;  %v1232_v43 = vrot.slane %v1195_v20, 2  ;;  %v1269_v57 = vmul.f32 %v17809_v26, %v20827_v42 }
 0x32c   : > { %v1230_v50 = vsel %vm1139_vm4, %v1228_v15, %v1229_v27  ;;  %v1270_v21 = vmul.f32 %v17896_v36, %v20827_v42  ;;  %v1271_v55 = vmul.f32 %v17900_v48, %v20827_v42  ;;  %v1304_v61 = vrot.slane %v1268_v13, 2 }
 0x32d   : > { %v1233_v30 = vsel %vm1139_vm4, %v1231_v22, %v1232_v43  ;;  %v1252_v53 = vadd.f32 %v1230_v50, %v1176_v7  ;;  %v1305_v40 = vrot.slane %v1269_v57, 2  ;;  %v1344_v59 = vmul.f32 %v17896_v36, %v20832_v25 }
 0x32e   : > { %v1253_v46 = vadd.f32 %v1233_v30, %v1177_v44  ;;  %v1307_v20 = vrot.slane %v1270_v21, 2  ;;  %v1308_v15 = vrot.slane %v1271_v55, 2  ;;  %v1345_v6 = vmul.f32 %v17900_v48, %v20832_v25 }
 0x32f   : > { %v1306_v27 = vsel %vm1139_vm4, %v1304_v61, %v1305_v40  ;;  %v1346_v54 = vmul.f32 %v17753_v49, %v20832_v25  ;;  %v1347_v13 = vmul.f32 %v17830_v58, %v20832_v25  ;;  %v1380_v22 = vrot.slane %v1344_v59, 2 }
 0x330   : > { %v1309_v7 = vsel %vm1139_vm4, %v1307_v20, %v1308_v15  ;;  %v1328_v43 = vadd.f32 %v1306_v27, %v1252_v53  ;;  %v1381_v57 = vrot.slane %v1345_v6, 2  ;;  %v1420_v44 = vmul.f32 %v17753_v49, %v20837_v14 }
 0x331   : > { %v1329_v50 = vadd.f32 %v1309_v7, %v1253_v46  ;;  %v1383_v21 = vrot.slane %v1346_v54, 2  ;;  %v1384_v55 = vrot.slane %v1347_v13, 2  ;;  %v1421_v61 = vmul.f32 %v17830_v58, %v20837_v14 }
 0x332   : > { %v1382_v30 = vsel %vm1139_vm4, %v1380_v22, %v1381_v57  ;;  %v1422_v40 = vmul.f32 %v17760_v1, %v20837_v14  ;;  %v1423_v59 = vmul.f32 %v17842_v23, %v20837_v14  ;;  %v1456_v20 = vrot.slane %v1420_v44, 2 }
 0x333   : > { %v1385_v53 = vsel %vm1139_vm4, %v1383_v21, %v1384_v55  ;;  %v1404_v15 = vadd.f32 %v1382_v30, %v1328_v43  ;;  %v1457_v6 = vrot.slane %v1421_v61, 2  ;;  %v1496_v54 = vmul.f32 %v17760_v1, %v20841_v45 }
 0x334   : > { %v1405_v46 = vadd.f32 %v1385_v53, %v1329_v50  ;;  %v1459_v27 = vrot.slane %v1422_v40, 2  ;;  %v1460_v13 = vrot.slane %v1423_v59, 2  ;;  %v1497_v22 = vmul.f32 %v17842_v23, %v20841_v45 }
 0x335   : > { %v1458_v7 = vsel %vm1139_vm4, %v1456_v20, %v1457_v6  ;;  %v1498_v57 = vmul.f32 %v17767_v51, %v20841_v45  ;;  %v1499_v44 = vmul.f32 %v17854_v29, %v20841_v45  ;;  %v1532_v21 = vrot.slane %v1496_v54, 2 }
 0x336   : > { %v1461_v43 = vsel %vm1139_vm4, %v1459_v27, %v1460_v13  ;;  %v1480_v55 = vadd.f32 %v1458_v7, %v1404_v15  ;;  %v1533_v61 = vrot.slane %v1497_v22, 2  ;;  %v1572_v50 = vmul.f32 %v17767_v51, %v20844_v11 }
 0x337   : > { %v1481_v30 = vadd.f32 %v1461_v43, %v1405_v46  ;;  %v1535_v40 = vrot.slane %v1498_v57, 2  ;;  %v1536_v59 = vrot.slane %v1499_v44, 2  ;;  %v1573_v20 = vmul.f32 %v17854_v29, %v20844_v11 }
 0x338   : > { %v1534_v53 = vsel %vm1139_vm4, %v1532_v21, %v1533_v61  ;;  %v1574_v6 = vmul.f32 %v17776_v0, %v20844_v11  ;;  %v1575_v54 = vmul.f32 %v17866_v18, %v20844_v11  ;;  %v1608_v27 = vrot.slane %v1572_v50, 2 }
 0x339   : > { %v1537_v15 = vsel %vm1139_vm4, %v1535_v40, %v1536_v59  ;;  %v1556_v13 = vadd.f32 %v1534_v53, %v1480_v55  ;;  %v1609_v22 = vrot.slane %v1573_v20, 2  ;;  %v1648_v46 = vmul.f32 %v17696_v24, %v16548_v31 }
 0x33a   : > { %v1557_v7 = vadd.f32 %v1537_v15, %v1481_v30  ;;  %v1611_v57 = vrot.slane %v1574_v6, 2  ;;  %v1612_v44 = vrot.slane %v1575_v54, 2  ;;  %v1649_v21 = vmul.f32 %v17788_v39, %v16548_v31 }
 0x33b   : > { %v1610_v43 = vsel %vm1139_vm4, %v1608_v27, %v1609_v22  ;;  %v1650_v61 = vmul.f32 %v17708_v10, %v16548_v31  ;;  %v1651_v50 = vmul.f32 %v17797_v63, %v16548_v31  ;;  %v1685_v40 = vrot.slane %v1648_v46, 3 }
 0x33c   : > { %v1613_v55 = vsel %vm1139_vm4, %v1611_v57, %v1612_v44  ;;  %v1632_v59 = vadd.f32 %v1610_v43, %v1556_v13  ;;  %v1686_v20 = vrot.slane %v1649_v21, 3  ;;  %v1725_v30 = vmul.f32 %v17708_v10, %v16568_v35 }
 0x33d   : > { %v1633_v53 = vadd.f32 %v1613_v55, %v1557_v7  ;;  %v1688_v6 = vrot.slane %v1650_v61, 3  ;;  %v1689_v54 = vrot.slane %v1651_v50, 3  ;;  %v1726_v27 = vmul.f32 %v17797_v63, %v16568_v35 }
 0x33e   : > { %v1687_v15 = vsel %vm1672_vm5, %v1685_v40, %v1686_v20  ;;  %v1727_v22 = vmul.f32 %v17721_v34, %v16568_v35  ;;  %v1728_v46 = vmul.f32 %v17809_v26, %v16568_v35  ;;  %v1761_v57 = vrot.slane %v1725_v30, 3 }
 0x33f   : > { %v1690_v13 = vsel %vm1672_vm5, %v1688_v6, %v1689_v54  ;;  %v1709_v44 = vadd.f32 %v1687_v15, %v1632_v59  ;;  %v1762_v21 = vrot.slane %v1726_v27, 3  ;;  %v1801_v7 = vmul.f32 %v17721_v34, %v20849_v17 }
 0x340   : > { %v1710_v43 = vadd.f32 %v1690_v13, %v1633_v53  ;;  %v1764_v61 = vrot.slane %v1727_v22, 3  ;;  %v1765_v50 = vrot.slane %v1728_v46, 3  ;;  %v1802_v40 = vmul.f32 %v17809_v26, %v20849_v17 }
 0x341   : > { %v1763_v55 = vsel %vm1672_vm5, %v1761_v57, %v1762_v21  ;;  %v1803_v20 = vmul.f32 %v17896_v36, %v20849_v17  ;;  %v1804_v30 = vmul.f32 %v17900_v48, %v20849_v17  ;;  %v1837_v6 = vrot.slane %v1801_v7, 3 }
 0x342   : > { %v1766_v59 = vsel %vm1672_vm5, %v1764_v61, %v1765_v50  ;;  %v1785_v54 = vadd.f32 %v1763_v55, %v1709_v44  ;;  %v1838_v27 = vrot.slane %v1802_v40, 3  ;;  %v1877_v53 = vmul.f32 %v17896_v36, %v20854_v28 }
 0x343   : > { %v1786_v15 = vadd.f32 %v1766_v59, %v1710_v43  ;;  %v1840_v22 = vrot.slane %v1803_v20, 3  ;;  %v1841_v46 = vrot.slane %v1804_v30, 3  ;;  %v1878_v57 = vmul.f32 %v17900_v48, %v20854_v28 }
 0x344   : > { %v1839_v13 = vsel %vm1672_vm5, %v1837_v6, %v1838_v27  ;;  %v1879_v21 = vmul.f32 %v17753_v49, %v20854_v28  ;;  %v1880_v7 = vmul.f32 %v17830_v58, %v20854_v28  ;;  %v1913_v61 = vrot.slane %v1877_v53, 3 }
 0x345   : > { %v1842_v44 = vsel %vm1672_vm5, %v1840_v22, %v1841_v46  ;;  %v1861_v50 = vadd.f32 %v1839_v13, %v1785_v54  ;;  %v1914_v40 = vrot.slane %v1878_v57, 3  ;;  %v1953_v43 = vmul.f32 %v17753_v49, %v20859_v47 }
 0x346   : > { %v1862_v55 = vadd.f32 %v1842_v44, %v1786_v15  ;;  %v1916_v20 = vrot.slane %v1879_v21, 3  ;;  %v1917_v30 = vrot.slane %v1880_v7, 3  ;;  %v1954_v6 = vmul.f32 %v17830_v58, %v20859_v47 }
 0x347   : > { %v1915_v59 = vsel %vm1672_vm5, %v1913_v61, %v1914_v40  ;;  %v1955_v27 = vmul.f32 %v17760_v1, %v20859_v47  ;;  %v1956_v53 = vmul.f32 %v17842_v23, %v20859_v47  ;;  %v1989_v22 = vrot.slane %v1953_v43, 3 }
 0x348   : > { %v1918_v54 = vsel %vm1672_vm5, %v1916_v20, %v1917_v30  ;;  %v1937_v46 = vadd.f32 %v1915_v59, %v1861_v50  ;;  %v1990_v57 = vrot.slane %v1954_v6, 3  ;;  %v2029_v15 = vmul.f32 %v17760_v1, %v20863_v56 }
 0x349   : > { %v1938_v13 = vadd.f32 %v1918_v54, %v1862_v55  ;;  %v1992_v21 = vrot.slane %v1955_v27, 3  ;;  %v1993_v7 = vrot.slane %v1956_v53, 3  ;;  %v2030_v61 = vmul.f32 %v17842_v23, %v20863_v56 }
 0x34a   : > { %v1991_v44 = vsel %vm1672_vm5, %v1989_v22, %v1990_v57  ;;  %v2031_v40 = vmul.f32 %v17767_v51, %v20863_v56  ;;  %v2032_v43 = vmul.f32 %v17854_v29, %v20863_v56  ;;  %v2065_v20 = vrot.slane %v2029_v15, 3 }
 0x34b   : > { %v1994_v50 = vsel %vm1672_vm5, %v1992_v21, %v1993_v7  ;;  %v2013_v30 = vadd.f32 %v1991_v44, %v1937_v46  ;;  %v2066_v6 = vrot.slane %v2030_v61, 3  ;;  %v2105_v55 = vmul.f32 %v17767_v51, %v20868_v37 }
 0x34c   : > { %v2014_v59 = vadd.f32 %v1994_v50, %v1938_v13  ;;  %v2068_v27 = vrot.slane %v2031_v40, 3  ;;  %v2069_v53 = vrot.slane %v2032_v43, 3  ;;  %v2106_v22 = vmul.f32 %v17854_v29, %v20868_v37 }
 0x34d   : > { %v2067_v54 = vsel %vm1672_vm5, %v2065_v20, %v2066_v6  ;;  %v2107_v57 = vmul.f32 %v17776_v0, %v20868_v37  ;;  %v2108_v15 = vmul.f32 %v17866_v18, %v20868_v37  ;;  %v2141_v21 = vrot.slane %v2105_v55, 3 }
 0x34e   : > { %v2070_v46 = vsel %vm1672_vm5, %v2068_v27, %v2069_v53  ;;  %v2089_v7 = vadd.f32 %v2067_v54, %v2013_v30  ;;  %v2142_v61 = vrot.slane %v2106_v22, 3  ;;  %v2181_v13 = vmul.f32 %v17696_v24, %v20869_v8 }
 0x34f   : > { %v2090_v44 = vadd.f32 %v2070_v46, %v2014_v59  ;;  %v2144_v40 = vrot.slane %v2107_v57, 3  ;;  %v2145_v43 = vrot.slane %v2108_v15, 3  ;;  %v2182_v20 = vmul.f32 %v17788_v39, %v20869_v8 }
 0x350   : > { %v2143_v50 = vsel %vm1672_vm5, %v2141_v21, %v2142_v61  ;;  %v2183_v6 = vmul.f32 %v17708_v10, %v20869_v8  ;;  %v2184_v55 = vmul.f32 %v17797_v63, %v20869_v8  ;;  %v2218_v27 = vrot.slane %v2181_v13, 4 }
 0x351   : > { %v2146_v30 = vsel %vm1672_vm5, %v2144_v40, %v2145_v43  ;;  %v2165_v53 = vadd.f32 %v2143_v50, %v2089_v7  ;;  %v2219_v22 = vrot.slane %v2182_v20, 4  ;;  %v2258_v59 = vmul.f32 %v17708_v10, %v20870_v52 }
 0x352   : > { %v2166_v54 = vadd.f32 %v2146_v30, %v2090_v44  ;;  %v2221_v57 = vrot.slane %v2183_v6, 4  ;;  %v2222_v15 = vrot.slane %v2184_v55, 4  ;;  %v2259_v21 = vmul.f32 %v17797_v63, %v20870_v52 }
 0x353   : > { %v2220_v46 = vsel %vm2205_vm6, %v2218_v27, %v2219_v22  ;;  %v2260_v61 = vmul.f32 %v17721_v34, %v20870_v52  ;;  %v2261_v13 = vmul.f32 %v17809_v26, %v20870_v52  ;;  %v2294_v40 = vrot.slane %v2258_v59, 4 }
 0x354   : > { %v2223_v7 = vsel %vm2205_vm6, %v2221_v57, %v2222_v15  ;;  %v2242_v43 = vadd.f32 %v2220_v46, %v2165_v53  ;;  %v2295_v20 = vrot.slane %v2259_v21, 4  ;;  %v2334_v44 = vmul.f32 %v17721_v34, %v20871_v32 }
 0x355   : > { %v2243_v50 = vadd.f32 %v2223_v7, %v2166_v54  ;;  %v2297_v6 = vrot.slane %v2260_v61, 4  ;;  %v2298_v55 = vrot.slane %v2261_v13, 4  ;;  %v2335_v27 = vmul.f32 %v17809_v26, %v20871_v32 }
 0x356   : > { %v2296_v30 = vsel %vm2205_vm6, %v2294_v40, %v2295_v20  ;;  %v2336_v22 = vmul.f32 %v17896_v36, %v20871_v32  ;;  %v2337_v59 = vmul.f32 %v17900_v48, %v20871_v32  ;;  %v2370_v57 = vrot.slane %v2334_v44, 4 }
 0x357   : > { %v2299_v53 = vsel %vm2205_vm6, %v2297_v6, %v2298_v55  ;;  %v2318_v15 = vadd.f32 %v2296_v30, %v2242_v43  ;;  %v2371_v21 = vrot.slane %v2335_v27, 4  ;;  %v2410_v54 = vmul.f32 %v17896_v36, %v20872_v3  ;;  %v20904_v30 = vld [vmem:[#allocation94_spill] sm:$0xff] }
 0x358   : > { %v2319_v46 = vadd.f32 %v2299_v53, %v2243_v50  ;;  %v2373_v61 = vrot.slane %v2336_v22, 4  ;;  %v2374_v13 = vrot.slane %v2337_v59, 4  ;;  %v2411_v40 = vmul.f32 %v17900_v48, %v20872_v3 }
 0x359   : > { %v2372_v7 = vsel %vm2205_vm6, %v2370_v57, %v2371_v21  ;;  %v2412_v20 = vmul.f32 %v17753_v49, %v20872_v3  ;;  %v2413_v44 = vmul.f32 %v17830_v58, %v20872_v3  ;;  %v2446_v6 = vrot.slane %v2410_v54, 4 }
 0x35a   : > { %v2375_v43 = vsel %vm2205_vm6, %v2373_v61, %v2374_v13  ;;  %v2394_v55 = vadd.f32 %v2372_v7, %v2318_v15  ;;  %v2447_v27 = vrot.slane %v2411_v40, 4  ;;  %v2486_v50 = vmul.f32 %v17753_v49, %v20904_v30  ;;  %v20905_v7 = vld [vmem:[#allocation95_spill] sm:$0xff] }
 0x35b   : > { %v2395_v22 = vadd.f32 %v2375_v43, %v2319_v46  ;;  %v2449_v59 = vrot.slane %v2412_v20, 4  ;;  %v2450_v53 = vrot.slane %v2413_v44, 4  ;;  %v2487_v57 = vmul.f32 %v17830_v58, %v20904_v30 }
 0x35c   : > { %v2448_v21 = vsel %vm2205_vm6, %v2446_v6, %v2447_v27  ;;  %v2488_v32 = vmul.f32 %v17760_v1, %v20904_v30  ;;  %v2489_v54 = vmul.f32 %v17842_v23, %v20904_v30  ;;  %v2522_v61 = vrot.slane %v2486_v50, 4 }
 0x35d   : > { %v2451_v15 = vsel %vm2205_vm6, %v2449_v59, %v2450_v53  ;;  %v2470_v13 = vadd.f32 %v2448_v21, %v2394_v55  ;;  %v2523_v40 = vrot.slane %v2487_v57, 4  ;;  %v2562_v46 = vmul.f32 %v17760_v1, %v20905_v7 }
 0x35e   : > { %v2471_v20 = vadd.f32 %v2451_v15, %v2395_v22  ;;  %v2525_v44 = vrot.slane %v2488_v32, 4  ;;  %v2526_v43 = vrot.slane %v2489_v54, 4  ;;  %v2563_v6 = vmul.f32 %v17842_v23, %v20905_v7 }
 0x35f   : > { %v2524_v27 = vsel %vm2205_vm6, %v2522_v61, %v2523_v40  ;;  %v2564_v3 = vmul.f32 %v17767_v51, %v20905_v7  ;;  %v2565_v50 = vmul.f32 %v17854_v29, %v20905_v7  ;;  %v2598_v59 = vrot.slane %v2562_v46, 4 }
 0x360   : > { %v2527_v55 = vsel %vm2205_vm6, %v2525_v44, %v2526_v43  ;;  %v2546_v53 = vadd.f32 %v2524_v27, %v2470_v13  ;;  %v2599_v57 = vrot.slane %v2563_v6, 4  ;;  %v2638_v32 = vmul.f32 %v17767_v51, %v20875_v41 }
 0x361   : > { %v2547_v22 = vadd.f32 %v2527_v55, %v2471_v20  ;;  %v2601_v21 = vrot.slane %v2564_v3, 4  ;;  %v2602_v54 = vrot.slane %v2565_v50, 4  ;;  %v2639_v61 = vmul.f32 %v17854_v29, %v20875_v41 }
 0x362   : > { %v2600_v15 = vsel %vm2205_vm6, %v2598_v59, %v2599_v57  ;;  %v2640_v40 = vmul.f32 %v17776_v0, %v20875_v41  ;;  %v2641_v46 = vmul.f32 %v17866_v18, %v20875_v41  ;;  %v2674_v44 = vrot.slane %v2638_v32, 4 }
 0x363   : > { %v2603_v13 = vsel %vm2205_vm6, %v2601_v21, %v2602_v54  ;;  %v2622_v43 = vadd.f32 %v2600_v15, %v2546_v53  ;;  %v2675_v6 = vrot.slane %v2639_v61, 4  ;;  %v2714_v3 = vmul.f32 %v17696_v24, %v20876_v2 }
 0x364   : > { %v2623_v20 = vadd.f32 %v2603_v13, %v2547_v22  ;;  %v2677_v27 = vrot.slane %v2640_v40, 4  ;;  %v2678_v50 = vrot.slane %v2641_v46, 4  ;;  %v2715_v59 = vmul.f32 %v17788_v39, %v20876_v2 }
 0x365   : > { %v2676_v55 = vsel %vm2205_vm6, %v2674_v44, %v2675_v6  ;;  %v2716_v57 = vmul.f32 %v17708_v10, %v20876_v2  ;;  %v2717_v32 = vmul.f32 %v17797_v63, %v20876_v2  ;;  %v2751_v21 = vrot.slane %v2714_v3, 5 }
 0x366   : > { %v2679_v53 = vsel %vm2205_vm6, %v2677_v27, %v2678_v50  ;;  %v2698_v54 = vadd.f32 %v2676_v55, %v2622_v43  ;;  %v2752_v61 = vrot.slane %v2715_v59, 5  ;;  %v2791_v22 = vmul.f32 %v17708_v10, %v20877_v16 }
 0x367   : > { %v2699_v15 = vadd.f32 %v2679_v53, %v2623_v20  ;;  %v2754_v40 = vrot.slane %v2716_v57, 5  ;;  %v2755_v46 = vrot.slane %v2717_v32, 5  ;;  %v2792_v44 = vmul.f32 %v17797_v63, %v20877_v16 }
 0x368   : > { %v2753_v13 = vsel %vm2738_vm7, %v2751_v21, %v2752_v61  ;;  %v2793_v6 = vmul.f32 %v17721_v34, %v20877_v16  ;;  %v2794_v3 = vmul.f32 %v17809_v26, %v20877_v16  ;;  %v2827_v27 = vrot.slane %v2791_v22, 5 }
 0x369   : > { %v2756_v43 = vsel %vm2738_vm7, %v2754_v40, %v2755_v46  ;;  %v2775_v50 = vadd.f32 %v2753_v13, %v2698_v54  ;;  %v2828_v59 = vrot.slane %v2792_v44, 5  ;;  %v2867_v20 = vmul.f32 %v17721_v34, %v20878_v38  ;;  %v20906_v13 = vld [vmem:[#allocation112_spill] sm:$0xff] }
 0x36a   : > { %v2776_v55 = vadd.f32 %v2756_v43, %v2699_v15  ;;  %v2830_v57 = vrot.slane %v2793_v6, 5  ;;  %v2831_v32 = vrot.slane %v2794_v3, 5  ;;  %v2868_v21 = vmul.f32 %v17809_v26, %v20878_v38 }
 0x36b   : > { %v2829_v53 = vsel %vm2738_vm7, %v2827_v27, %v2828_v59  ;;  %v2869_v61 = vmul.f32 %v17896_v36, %v20878_v38  ;;  %v2870_v22 = vmul.f32 %v17900_v48, %v20878_v38  ;;  %v2903_v40 = vrot.slane %v2867_v20, 5 }
 0x36c   : > { %v2832_v54 = vsel %vm2738_vm7, %v2830_v57, %v2831_v32  ;;  %v2851_v46 = vadd.f32 %v2829_v53, %v2775_v50  ;;  %v2904_v44 = vrot.slane %v2868_v21, 5  ;;  %v2943_v15 = vmul.f32 %v17896_v36, %v20906_v13  ;;  %v20907_v53 = vld [vmem:[#allocation114_spill] sm:$0xff] }
 0x36d   : > { %v2852_v6 = vadd.f32 %v2832_v54, %v2776_v55  ;;  %v2906_v3 = vrot.slane %v2869_v61, 5  ;;  %v2907_v43 = vrot.slane %v2870_v22, 5  ;;  %v2944_v27 = vmul.f32 %v17900_v48, %v20906_v13 }
 0x36e   : > { %v2905_v59 = vsel %vm2738_vm7, %v2903_v40, %v2904_v44  ;;  %v2945_v16 = vmul.f32 %v17753_v49, %v20906_v13  ;;  %v2946_v20 = vmul.f32 %v17830_v58, %v20906_v13  ;;  %v2979_v57 = vrot.slane %v2943_v15, 5 }
 0x36f   : > { %v2908_v50 = vsel %vm2738_vm7, %v2906_v3, %v2907_v43  ;;  %v2927_v32 = vadd.f32 %v2905_v59, %v2851_v46  ;;  %v2980_v21 = vrot.slane %v2944_v27, 5  ;;  %v3019_v55 = vmul.f32 %v17753_v49, %v20907_v53  ;;  %v20908_v59 = vld [vmem:[#allocation117_spill] sm:$0xff] }
 0x370   : > { %v2928_v61 = vadd.f32 %v2908_v50, %v2852_v6  ;;  %v2982_v22 = vrot.slane %v2945_v16, 5  ;;  %v2983_v54 = vrot.slane %v2946_v20, 5  ;;  %v3020_v40 = vmul.f32 %v17830_v58, %v20907_v53 }
 0x371   : > { %v2981_v44 = vsel %vm2738_vm7, %v2979_v57, %v2980_v21  ;;  %v3021_v38 = vmul.f32 %v17760_v1, %v20907_v53  ;;  %v3022_v15 = vmul.f32 %v17842_v23, %v20907_v53  ;;  %v3055_v3 = vrot.slane %v3019_v55, 5 }
 0x372   : > { %v2984_v46 = vsel %vm2738_vm7, %v2982_v22, %v2983_v54  ;;  %v3003_v43 = vadd.f32 %v2981_v44, %v2927_v32  ;;  %v3056_v27 = vrot.slane %v3020_v40, 5  ;;  %v3095_v16 = vmul.f32 %v17760_v1, %v20908_v59  ;;  %v20909_v44 = vld [vmem:[#allocation119_spill] sm:$0xff] }
 0x373   : > { %v3004_v6 = vadd.f32 %v2984_v46, %v2928_v61  ;;  %v3058_v20 = vrot.slane %v3021_v38, 5  ;;  %v3059_v50 = vrot.slane %v3022_v15, 5  ;;  %v3096_v57 = vmul.f32 %v17842_v23, %v20908_v59 }
 0x374   : > { %v3057_v21 = vsel %vm2738_vm7, %v3055_v3, %v3056_v27  ;;  %v3097_v13 = vmul.f32 %v17767_v51, %v20908_v59  ;;  %v3098_v55 = vmul.f32 %v17854_v29, %v20908_v59  ;;  %v3131_v22 = vrot.slane %v3095_v16, 5 }
 0x375   : > { %v3060_v32 = vsel %vm2738_vm7, %v3058_v20, %v3059_v50  ;;  %v3079_v54 = vadd.f32 %v3057_v21, %v3003_v43  ;;  %v3132_v40 = vrot.slane %v3096_v57, 5  ;;  %v3171_v38 = vmul.f32 %v17767_v51, %v20909_v44  ;;  %v20910_v21 = vld [vmem:[#allocation121_spill] sm:$0xff] }
 0x376   : > { %v3080_v61 = vadd.f32 %v3060_v32, %v3004_v6  ;;  %v3134_v15 = vrot.slane %v3097_v13, 5  ;;  %v3135_v46 = vrot.slane %v3098_v55, 5  ;;  %v3172_v3 = vmul.f32 %v17854_v29, %v20909_v44 }
 0x377   : > { %v3133_v27 = vsel %vm2738_vm7, %v3131_v22, %v3132_v40  ;;  %v3173_v53 = vmul.f32 %v17776_v0, %v20909_v44  ;;  %v3174_v16 = vmul.f32 %v17866_v18, %v20909_v44  ;;  %v3207_v20 = vrot.slane %v3171_v38, 5 }
 0x378   : > { %v3136_v43 = vsel %vm2738_vm7, %v3134_v15, %v3135_v46  ;;  %v3155_v50 = vadd.f32 %v3133_v27, %v3079_v54  ;;  %v3208_v57 = vrot.slane %v3172_v3, 5  ;;  %v3247_v13 = vmul.f32 %v17696_v24, %v20910_v21  ;;  %v20911_v24 = vld [vmem:[#allocation122_spill] sm:$0xff] }
 0x379   : > { %v3156_v6 = vadd.f32 %v3136_v43, %v3080_v61  ;;  %v3210_v55 = vrot.slane %v3173_v53, 5  ;;  %v3211_v32 = vrot.slane %v3174_v16, 5  ;;  %v3248_v22 = vmul.f32 %v17788_v39, %v20910_v21 }
 0x37a   : > { %v3209_v40 = vsel %vm2738_vm7, %v3207_v20, %v3208_v57  ;;  %v3249_v59 = vmul.f32 %v17708_v10, %v20910_v21  ;;  %v3250_v38 = vmul.f32 %v17797_v63, %v20910_v21  ;;  %v3284_v15 = vrot.slane %v3247_v13, 6 }
 0x37b   : > { %v3212_v54 = vsel %vm2738_vm7, %v3210_v55, %v3211_v32  ;;  %v3231_v46 = vadd.f32 %v3209_v40, %v3155_v50  ;;  %v3285_v3 = vrot.slane %v3248_v22, 6  ;;  %v3324_v53 = vmul.f32 %v17708_v10, %v20911_v24  ;;  %v20912_v10 = vld [vmem:[#allocation123_spill] sm:$0xff] }
 0x37c   : > { %v3232_v61 = vadd.f32 %v3212_v54, %v3156_v6  ;;  %v3287_v27 = vrot.slane %v3249_v59, 6  ;;  %v3288_v16 = vrot.slane %v3250_v38, 6  ;;  %v3325_v39 = vmul.f32 %v17797_v63, %v20911_v24 }
 0x37d   : > { %v3286_v20 = vsel %vm3271_vm8, %v3284_v15, %v3285_v3  ;;  %v3326_v43 = vmul.f32 %v17721_v34, %v20911_v24  ;;  %v3327_v57 = vmul.f32 %v17809_v26, %v20911_v24  ;;  %v3360_v13 = vrot.slane %v3324_v53, 6 }
 0x37e   : > { %v3289_v50 = vsel %vm3271_vm8, %v3287_v27, %v3288_v16  ;;  %v3308_v55 = vadd.f32 %v3286_v20, %v3231_v46  ;;  %v3361_v32 = vrot.slane %v3325_v39, 6  ;;  %v3400_v59 = vmul.f32 %v17721_v34, %v20912_v10  ;;  %v20913_v34 = vld [vmem:[#allocation124_spill] sm:$0xff] }
 0x37f   : > { %v3309_v6 = vadd.f32 %v3289_v50, %v3232_v61  ;;  %v3363_v22 = vrot.slane %v3326_v43, 6  ;;  %v3364_v40 = vrot.slane %v3327_v57, 6  ;;  %v3401_v63 = vmul.f32 %v17809_v26, %v20912_v10 }
 0x380   : > { %v3362_v38 = vsel %vm3271_vm8, %v3360_v13, %v3361_v32  ;;  %v3402_v15 = vmul.f32 %v17896_v36, %v20912_v10  ;;  %v3403_v54 = vmul.f32 %v17900_v48, %v20912_v10  ;;  %v3436_v3 = vrot.slane %v3400_v59, 6 }
 0x381   : > { %v3365_v46 = vsel %vm3271_vm8, %v3363_v22, %v3364_v40  ;;  %v3384_v53 = vadd.f32 %v3362_v38, %v3308_v55  ;;  %v3437_v27 = vrot.slane %v3401_v63, 6  ;;  %v3476_v61 = vmul.f32 %v17896_v36, %v20913_v34  ;;  %v20914_v22 = vld [vmem:[#allocation127_spill] sm:$0xff] }
 0x382   : > { %v3385_v16 = vadd.f32 %v3365_v46, %v3309_v6  ;;  %v3439_v39 = vrot.slane %v3402_v15, 6  ;;  %v3440_v20 = vrot.slane %v3403_v54, 6  ;;  %v3477_v26 = vmul.f32 %v17900_v48, %v20913_v34 }
 0x383   : > { %v3438_v43 = vsel %vm3271_vm8, %v3436_v3, %v3437_v27  ;;  %v3478_v57 = vmul.f32 %v17753_v49, %v20913_v34  ;;  %v3479_v13 = vmul.f32 %v17830_v58, %v20913_v34  ;;  %v3512_v50 = vrot.slane %v3476_v61, 6  ;;  %v18311_v34 = vld [vmem:[#allocation2 + $0x88] sm:$0x3f] }
 0x384   : > { %v3441_v55 = vsel %vm3271_vm8, %v3439_v39, %v3440_v20  ;;  %v3460_v32 = vadd.f32 %v3438_v43, %v3384_v53  ;;  %v3513_v59 = vrot.slane %v3477_v26, 6  ;;  %v3552_v6 = vmul.f32 %v17753_v49, %v20914_v22  ;;  %v20915_v49 = vld [vmem:[#allocation130_spill] sm:$0xff] }
 0x385   : > { %v3461_v40 = vadd.f32 %v3441_v55, %v3385_v16  ;;  %v3515_v63 = vrot.slane %v3478_v57, 6  ;;  %v3516_v38 = vrot.slane %v3479_v13, 6  ;;  %v3553_v15 = vmul.f32 %v17830_v58, %v20914_v22 }
 0x386   : > { %v3514_v54 = vsel %vm3271_vm8, %v3512_v50, %v3513_v59  ;;  %v3554_v3 = vmul.f32 %v17760_v1, %v20914_v22  ;;  %v3555_v46 = vmul.f32 %v17842_v23, %v20914_v22  ;;  %v3588_v27 = vrot.slane %v3552_v6, 6 }
 0x387   : > { %v3517_v53 = vsel %vm3271_vm8, %v3515_v63, %v3516_v38  ;;  %v3536_v61 = vadd.f32 %v3514_v54, %v3460_v32  ;;  %v3589_v39 = vrot.slane %v3553_v15, 6  ;;  %v3628_v16 = vmul.f32 %v17760_v1, %v20915_v49  ;;  %v14283_v1 = vld [vmem:[%s20355_s1 + $0x30] ss:$0 sm:$0xff]  ;;  %v18220_v54 = vpop.permute.xlu0 %14188 }
 0x388   : > { %v3537_v20 = vadd.f32 %v3517_v53, %v3461_v40  ;;  %v3591_v26 = vrot.slane %v3554_v3, 6  ;;  %v3592_v43 = vrot.slane %v3555_v46, 6  ;;  %v3629_v58 = vmul.f32 %v17842_v23, %v20915_v49  ;;  %20916 = vst [vmem:[#allocation11_spill] sm:$0xff] %v18220_v54 }
 0x389   : > { %v3590_v57 = vsel %vm3271_vm8, %v3588_v27, %v3589_v39  ;;  %v3630_v13 = vmul.f32 %v17767_v51, %v20915_v49  ;;  %v3631_v50 = vmul.f32 %v17854_v29, %v20915_v49  ;;  %v3664_v55 = vrot.slane %v3628_v16, 6  ;;  %v20918_v39 = vld [vmem:[#allocation134_spill] sm:$0xff] }
 0x38a   : > { %v3593_v32 = vsel %vm3271_vm8, %v3591_v26, %v3592_v43  ;;  %v3612_v59 = vadd.f32 %v3590_v57, %v3536_v61  ;;  %v3665_v6 = vrot.slane %v3629_v58, 6  ;;  %v3704_v40 = vmul.f32 %v14283_v1, %v17767_v51  ;;  %v18225_v61 = vpop.permute.xlu1 %14183  ;;  %v20920_v26 = vld [vmem:[#allocation50_spill] sm:$0xff] }
 0x38b   : > { %v3613_v23 = vadd.f32 %v3593_v32, %v3537_v20  ;;  %v3667_v63 = vrot.slane %v3630_v13, 6  ;;  %v3668_v38 = vrot.slane %v3631_v50, 6  ;;  %v3705_v15 = vmul.f32 %v14283_v1, %v17854_v29  ;;  %20917 = vst [vmem:[#allocation64_spill] sm:$0xff] %v18225_v61  ;;  %v20921_v32 = vld [vmem:[#allocation18_spill] sm:$0xff] }
 0x38c   : > { %v3666_v3 = vsel %vm3271_vm8, %v3664_v55, %v3665_v6  ;;  %v3706_v46 = vmul.f32 %v14283_v1, %v17776_v0  ;;  %v3707_v27 = vmul.f32 %v14283_v1, %v17866_v18  ;;  %v3740_v53 = vrot.slane %v3704_v40, 6  ;;  %v20923_v1 = vld [vmem:[#allocation7_spill] sm:$0xff]  ;;  %v18281_v55 = vld [vmem:[#allocation2 + $0xb0] sm:$0xff] }
 0x38d   : > { %v20919_v16 = vunpack.i.h.bf16 %v20918_v39  ;;  %v3669_v20 = vsel %vm3271_vm8, %v3667_v63, %v3668_v38  ;;  %v3688_v43 = vadd.f32 %v3666_v3, %v3612_v59  ;;  %v3741_v29 = vrot.slane %v3705_v15, 6  ;;  %v18244_v15 = vld [vmem:[#allocation2 + $0x60] sm:$0xff]  ;;  %v20925_v3 = vld [vmem:[#allocation22_spill] sm:$0xff] }
 0x38e   : > { %v3689_v58 = vadd.f32 %v3669_v20, %v3613_v23  ;;  %v3743_v57 = vrot.slane %v3706_v46, 6  ;;  %v3744_v13 = vrot.slane %v3707_v27, 6  ;;  %v14190_v18 = vunpack.i.l.bf16 %v18220_v54  ;;  %v14285_v20 = vld [vmem:[%s20358_s4] ss:$0 sm:$0xff] }
 0x38f   : > { %v6639_v51 = vsel %vm341_vm0, %v20920_v26, %v20919_v16  ;;  %v3742_v0 = vsel %vm3271_vm8, %v3740_v53, %v3741_v29  ;;  %v20922_v6 = vunpack.i.l.bf16 %v20921_v32  ;;  %v20924_v23 = vunpack.i.h.bf16 %v20921_v32  ;;  %v20926_v16 = vld [vmem:[#allocation20_spill] sm:$0xff]  ;;  %v18255_v29 = vld [vmem:[#allocation2 + $0x80] sm:$0xff] }
 0x390   : > { %v3745_v63 = vsel %vm3271_vm8, %v3743_v57, %v3744_v13  ;;  %v3764_v59 = vadd.f32 %v3742_v0, %v3688_v43  ;;  %v440_v46 = vmul.f32 %v18244_v15, %v20925_v3  ;;  %v441_v39 = vmul.f32 %v17896_v36, %v20925_v3  ;;  %v20927_v57 = vld [vmem:[#allocation23_spill] sm:$0xff]  ;;  %v18261_v13 = vld [vmem:[#allocation2 + $0x90] sm:$0xff] }
 0x391   : > { %v6647_v40 = vsel %vm6644_vm9, %v20923_v1, %v20922_v6  ;;  %v6648_v38 = vsel %vm6644_vm9, %v6639_v51, %v20924_v23  ;;  %v3765_v27 = vadd.f32 %v3745_v63, %v3689_v58  ;;  %v460_v26 = vmul.f32 %v17896_v36, %v20926_v16  ;;  %v18268_v1 = vld [vmem:[#allocation2 + $0xd0] sm:$0xff]  ;;  %v20929_v63 = vld [vmem:[#allocation24_spill] sm:$0xff]  ;;  %v18275_v3 = vld [vmem:[#allocation2 + $0xa0] sm:$0xff] }
 0x392   : > { %v13863_v53 = vpack.c.bf16 %v6648_v38, %v6647_v40  ;;  %v3776_v43 = vadd.f32 %v14285_v20, %v3764_v59  ;;  %v461_v51 = vmul.f32 %v18255_v29, %v20926_v16  ;;  %v480_v58 = vmul.f32 %v18255_v29, %v20927_v57 }
 0x393   : > { %v481_v0 = vmul.f32 %v18261_v13, %v20927_v57  ;;  %v18265_v32 = vadd.f32 %v14285_v20, %v3765_v27  ;;  %v468_v40 = vadd.f32 %v460_v26, %v440_v46  ;;  %v500_v59 = vmul.f32 %v18261_v13, %v20929_v63  ;;  %v20931_v27 = vld [vmem:[#allocation26_spill] sm:$0xff] }
 0x394   : > { %13864 = vmatprep.subr.bf16.mxu0 %v13863_v53  ;;  %v18273_v23 = vsel %vm341_vm0, %v3776_v43, %v14190_v18  ;;  %v469_v38 = vadd.f32 %v461_v51, %v441_v39  ;;  %v501_v16 = vmul.f32 %v18275_v3, %v20929_v63  ;;  %v520_v20 = vmul.f32 %v18275_v3, %v20931_v27  ;;  %v20932_v26 = vld [vmem:[#allocation6_spill] sm:$0xff]  ;;  %v18287_v43 = vld [vmem:[#allocation2 + $0xc0] sm:$0xff]  ;;  %v20933_v63 = vld [vmem:[#allocation13_spill] sm:$0xff] }
 0x395   : > { %20928 = vst [vmem:[#allocation12_spill] sm:$0xff] %v18265_v32  ;;  %20930 = vst [vmem:[#allocation27_spill] sm:$0xff] %v18273_v23  ;;  %13866 = vmatpush3.bf16.msra.mxu0 %v13863_v53  ;;  %v488_v57 = vadd.f32 %v480_v58, %v468_v40  ;;  %v521_v46 = vmul.f32 %v18281_v55, %v20931_v27  ;;  %v540_v18 = vmul.f32 %v18281_v55, %v20932_v26  ;;  %v18297_v27 = vld [vmem:[#allocation2 + $0x68] sm:$0x3f] }
 0x396   : > { %v541_v39 = vmul.f32 %v18287_v43, %v20932_v26  ;;  %v489_v51 = vadd.f32 %v481_v0, %v469_v38  ;;  %v560_v6 = vmul.f32 %v18287_v43, %v20933_v63  ;;  %v561_v53 = vmul.f32 %v20933_v63, %v18268_v1 }
 0x397   : > { %v586_v58 = vmul.f32 %v18244_v15, %v20898_v12  ;;  %v508_v40 = vadd.f32 %v500_v59, %v488_v57  ;;  %v587_v50 = vmul.f32 %v18297_v27, %v20898_v12  ;;  %v588_v23 = vmul.f32 %v17896_v36, %v20898_v12 }
 0x398   : > { %v589_v0 = vmul.f32 %v17900_v48, %v20898_v12  ;;  %v509_v38 = vadd.f32 %v501_v16, %v489_v51  ;;  %v663_v63 = vmul.f32 %v17896_v36, %v16302_v33  ;;  %v664_v61 = vmul.f32 %v17900_v48, %v16302_v33 }
 0x399   : > { %v625_v26 = vrot.slane %v586_v58, 1  ;;  %v528_v59 = vadd.f32 %v520_v20, %v508_v40  ;;  %v626_v57 = vrot.slane %v587_v50, 1  ;;  %v628_v32 = vrot.slane %v588_v23, 1 }
 0x39a   : > { %v629_v54 = vrot.slane %v589_v0, 1  ;;  %v529_v49 = vadd.f32 %v521_v46, %v509_v38  ;;  %v665_v22 = vmul.f32 %v18255_v29, %v16302_v33  ;;  %v666_v12 = vmul.f32 %v18311_v34, %v16302_v33 }
 0x39b   : > { %v701_v16 = vrot.slane %v663_v63, 1  ;;  %v548_v51 = vadd.f32 %v540_v18, %v528_v59  ;;  %v627_v36 = vsel %vm606_vm3, %v625_v26, %v626_v57  ;;  %v702_v48 = vrot.slane %v664_v61, 1 }
 0x39c   : > { %v630_v58 = vsel %vm606_vm3, %v628_v32, %v629_v54  ;;  %v549_v20 = vadd.f32 %v541_v39, %v529_v49  ;;  %v704_v50 = vrot.slane %v665_v22, 1  ;;  %v705_v23 = vrot.slane %v666_v12, 1  ;;  %v18325_v54 = vld [vmem:[#allocation2 + $0x98] sm:$0x3f] }
 0x39d   : > { %v739_v46 = vmul.f32 %v18255_v29, %v20798_v9  ;;  %v568_v40 = vadd.f32 %v560_v6, %v548_v51  ;;  %v703_v0 = vsel %vm606_vm3, %v701_v16, %v702_v48  ;;  %v740_v38 = vmul.f32 %v18311_v34, %v20798_v9  ;;  %v18336_v51 = vld [vmem:[#allocation2 + $0xa8] sm:$0x3f] }
 0x39e   : > { %v741_v33 = vmul.f32 %v18261_v13, %v20798_v9  ;;  %v569_v18 = vadd.f32 %v561_v53, %v549_v20  ;;  %v706_v26 = vsel %vm606_vm3, %v704_v50, %v705_v23  ;;  %v742_v22 = vmul.f32 %v18325_v54, %v20798_v9 }
 0x39f   : > { %v777_v49 = vrot.slane %v739_v46, 1  ;;  %v645_v61 = vadd.f32 %v627_v36, %v568_v40  ;;  %v778_v32 = vrot.slane %v740_v38, 1  ;;  %v815_v39 = vmul.f32 %v18261_v13, %v20801_v60 }
 0x3a0   : > { %v780_v6 = vrot.slane %v741_v33, 1  ;;  %v646_v63 = vadd.f32 %v630_v58, %v569_v18  ;;  %v781_v59 = vrot.slane %v742_v22, 1  ;;  %v816_v57 = vmul.f32 %v18325_v54, %v20801_v60  ;;  %v18348_v18 = vld [vmem:[#allocation2 + $0xb8] sm:$0x3f] }
 0x3a1   : > { %v817_v53 = vmul.f32 %v18275_v3, %v20801_v60  ;;  %v721_v12 = vadd.f32 %v703_v0, %v645_v61  ;;  %v779_v16 = vsel %vm606_vm3, %v777_v49, %v778_v32  ;;  %v818_v9 = vmul.f32 %v18336_v51, %v20801_v60 }
 0x3a2   : > { %v853_v36 = vrot.slane %v815_v39, 1  ;;  %v722_v48 = vadd.f32 %v706_v26, %v646_v63  ;;  %v782_v20 = vsel %vm606_vm3, %v780_v6, %v781_v59  ;;  %v854_v58 = vrot.slane %v816_v57, 1  ;;  %v18355_v57 = vld [vmem:[#allocation2 + $0xd8] sm:$0x3f] }
 0x3a3   : > { %v856_v50 = vrot.slane %v817_v53, 1  ;;  %v797_v23 = vadd.f32 %v779_v16, %v721_v12  ;;  %v857_v46 = vrot.slane %v818_v9, 1  ;;  %v891_v40 = vmul.f32 %v18275_v3, %v20808_v4  ;;  %v18362_v16 = vld [vmem:[#allocation2 + $0xc8] sm:$0x3f] }
 0x3a4   : > { %v892_v0 = vmul.f32 %v18336_v51, %v20808_v4  ;;  %v798_v38 = vadd.f32 %v782_v20, %v722_v48  ;;  %v855_v33 = vsel %vm606_vm3, %v853_v36, %v854_v58  ;;  %v893_v60 = vmul.f32 %v18281_v55, %v20808_v4 }
 0x3a5   : > { %v894_v26 = vmul.f32 %v18348_v18, %v20808_v4  ;;  %v858_v22 = vsel %vm606_vm3, %v856_v50, %v857_v46  ;;  %v873_v49 = vadd.f32 %v855_v33, %v797_v23  ;;  %v929_v61 = vrot.slane %v891_v40, 1 }
 0x3a6   : > { %v930_v32 = vrot.slane %v892_v0, 1  ;;  %v874_v6 = vadd.f32 %v858_v22, %v798_v38  ;;  %v932_v39 = vrot.slane %v893_v60, 1  ;;  %v967_v59 = vmul.f32 %v18281_v55, %v20903_v62 }
 0x3a7   : > { %v933_v63 = vrot.slane %v894_v26, 1  ;;  %v968_v12 = vmul.f32 %v18348_v18, %v20903_v62  ;;  %v969_v4 = vmul.f32 %v18287_v43, %v20903_v62  ;;  %v970_v9 = vmul.f32 %v18362_v16, %v20903_v62 }
 0x3a8   : > { %v931_v53 = vsel %vm606_vm3, %v929_v61, %v930_v32  ;;  %v1005_v20 = vrot.slane %v967_v59, 1  ;;  %v1043_v58 = vmul.f32 %v18287_v43, %v20816_v19  ;;  %v1044_v0 = vmul.f32 %v18362_v16, %v20816_v19  ;;  %v18381_v59 = vld [vmem:[#allocation2 + $0x70] sm:$0xff] }
 0x3a9   : > { %v934_v36 = vsel %vm606_vm3, %v932_v39, %v933_v63  ;;  %v949_v48 = vadd.f32 %v931_v53, %v873_v49  ;;  %v1006_v23 = vrot.slane %v968_v12, 1  ;;  %v1008_v46 = vrot.slane %v969_v4, 1  ;;  %v18385_v53 = vld [vmem:[#allocation2 + $0x78] sm:$0x3f] }
 0x3aa   : > { %v950_v50 = vadd.f32 %v934_v36, %v874_v6  ;;  %v1009_v40 = vrot.slane %v970_v9, 1  ;;  %v1045_v38 = vmul.f32 %v20816_v19, %v18268_v1  ;;  %v1046_v62 = vmul.f32 %v20816_v19, %v18355_v57 }
 0x3ab   : > { %v1081_v33 = vrot.slane %v1043_v58, 1  ;;  %v1007_v60 = vsel %vm606_vm3, %v1005_v20, %v1006_v23  ;;  %v1119_v22 = vmul.f32 %v18244_v15, %v16408_v5  ;;  %v1120_v49 = vmul.f32 %v18297_v27, %v16408_v5  ;;  %v20934_v20 = vld [vmem:[#allocation46_spill] sm:$0xff] }
 0x3ac   : > { %v1010_v26 = vsel %vm606_vm3, %v1008_v46, %v1009_v40  ;;  %v1025_v61 = vadd.f32 %v1007_v60, %v949_v48  ;;  %v1082_v6 = vrot.slane %v1044_v0, 1  ;;  %v1084_v39 = vrot.slane %v1045_v38, 1 }
 0x3ad   : > { %v1026_v32 = vadd.f32 %v1010_v26, %v950_v50  ;;  %v1085_v63 = vrot.slane %v1046_v62, 1  ;;  %v1121_v19 = vmul.f32 %v18381_v59, %v16408_v5  ;;  %v1122_v12 = vmul.f32 %v18385_v53, %v16408_v5 }
 0x3ae   : > { %v1158_v4 = vrot.slane %v1119_v22, 2  ;;  %v1083_v9 = vsel %vm606_vm3, %v1081_v33, %v1082_v6  ;;  %v1159_v36 = vrot.slane %v1120_v49, 2  ;;  %v1196_v48 = vmul.f32 %v18381_v59, %v20934_v20 }
 0x3af   : > { %v1197_v58 = vmul.f32 %v18385_v53, %v20934_v20  ;;  %v1086_v50 = vsel %vm606_vm3, %v1084_v39, %v1085_v63  ;;  %v1101_v23 = vadd.f32 %v1083_v9, %v1025_v61  ;;  %v1161_v46 = vrot.slane %v1121_v19, 2 }
 0x3b0   : > { %v1162_v40 = vrot.slane %v1122_v12, 2  ;;  %v1102_v0 = vadd.f32 %v1086_v50, %v1026_v32  ;;  %v1160_v38 = vsel %vm1139_vm4, %v1158_v4, %v1159_v36  ;;  %v1198_v5 = vmul.f32 %v18255_v29, %v20934_v20 }
 0x3b1   : > { %v1199_v62 = vmul.f32 %v18311_v34, %v20934_v20  ;;  %v1178_v60 = vadd.f32 %v1160_v38, %v1101_v23  ;;  %v1234_v26 = vrot.slane %v1196_v48, 2  ;;  %v1235_v22 = vrot.slane %v1197_v58, 2 }
 0x3b2   : > { %v1163_v33 = vsel %vm1139_vm4, %v1161_v46, %v1162_v40  ;;  %v1237_v6 = vrot.slane %v1198_v5, 2  ;;  %v1272_v61 = vmul.f32 %v18255_v29, %v20827_v42  ;;  %v1273_v63 = vmul.f32 %v18311_v34, %v20827_v42 }
 0x3b3   : > { %v1179_v49 = vadd.f32 %v1163_v33, %v1102_v0  ;;  %v1238_v39 = vrot.slane %v1199_v62, 2  ;;  %v1236_v32 = vsel %vm1139_vm4, %v1234_v26, %v1235_v22  ;;  %v1274_v19 = vmul.f32 %v18261_v13, %v20827_v42 }
 0x3b4   : > { %v1275_v12 = vmul.f32 %v18325_v54, %v20827_v42  ;;  %v1254_v9 = vadd.f32 %v1236_v32, %v1178_v60  ;;  %v1310_v36 = vrot.slane %v1272_v61, 2  ;;  %v1348_v20 = vmul.f32 %v18261_v13, %v20832_v25 }
 0x3b5   : > { %v1239_v4 = vsel %vm1139_vm4, %v1237_v6, %v1238_v39  ;;  %v1311_v58 = vrot.slane %v1273_v63, 2  ;;  %v1313_v50 = vrot.slane %v1274_v19, 2  ;;  %v1349_v46 = vmul.f32 %v18325_v54, %v20832_v25 }
 0x3b6   : > { %v1255_v48 = vadd.f32 %v1239_v4, %v1179_v49  ;;  %v1314_v23 = vrot.slane %v1275_v12, 2  ;;  %v1350_v40 = vmul.f32 %v18275_v3, %v20832_v25  ;;  %v1351_v42 = vmul.f32 %v18336_v51, %v20832_v25 }
 0x3b7   : > { %v1386_v0 = vrot.slane %v1348_v20, 2  ;;  %v1312_v38 = vsel %vm1139_vm4, %v1310_v36, %v1311_v58  ;;  %v1424_v62 = vmul.f32 %v18275_v3, %v20837_v14  ;;  %v1425_v33 = vmul.f32 %v18336_v51, %v20837_v14 }
 0x3b8   : > { %v1315_v5 = vsel %vm1139_vm4, %v1313_v50, %v1314_v23  ;;  %v1330_v60 = vadd.f32 %v1312_v38, %v1254_v9  ;;  %v1387_v22 = vrot.slane %v1349_v46, 2  ;;  %v1389_v49 = vrot.slane %v1350_v40, 2 }
 0x3b9   : > { %v1331_v26 = vadd.f32 %v1315_v5, %v1255_v48  ;;  %v1390_v6 = vrot.slane %v1351_v42, 2  ;;  %v1426_v39 = vmul.f32 %v18281_v55, %v20837_v14  ;;  %v1427_v25 = vmul.f32 %v18348_v18, %v20837_v14 }
 0x3ba   : > { %v1462_v61 = vrot.slane %v1424_v62, 2  ;;  %v1388_v32 = vsel %vm1139_vm4, %v1386_v0, %v1387_v22  ;;  %v1463_v63 = vrot.slane %v1425_v33, 2  ;;  %v1500_v19 = vmul.f32 %v18281_v55, %v20841_v45 }
 0x3bb   : > { %v1501_v12 = vmul.f32 %v18348_v18, %v20841_v45  ;;  %v1391_v4 = vsel %vm1139_vm4, %v1389_v49, %v1390_v6  ;;  %v1406_v9 = vadd.f32 %v1388_v32, %v1330_v60  ;;  %v1465_v36 = vrot.slane %v1426_v39, 2 }
 0x3bc   : > { %v1466_v20 = vrot.slane %v1427_v25, 2  ;;  %v1407_v48 = vadd.f32 %v1391_v4, %v1331_v26  ;;  %v1464_v58 = vsel %vm1139_vm4, %v1462_v61, %v1463_v63  ;;  %v1502_v14 = vmul.f32 %v18287_v43, %v20841_v45 }
 0x3bd   : > { %v1503_v50 = vmul.f32 %v18362_v16, %v20841_v45  ;;  %v1482_v46 = vadd.f32 %v1464_v58, %v1406_v9  ;;  %v1538_v40 = vrot.slane %v1500_v19, 2  ;;  %v1539_v42 = vrot.slane %v1501_v12, 2 }
 0x3be   : > { %v1467_v23 = vsel %vm1139_vm4, %v1465_v36, %v1466_v20  ;;  %v1541_v38 = vrot.slane %v1502_v14, 2  ;;  %v1576_v62 = vmul.f32 %v18287_v43, %v20844_v11  ;;  %v1577_v60 = vmul.f32 %v18362_v16, %v20844_v11 }
 0x3bf   : > { %v1483_v0 = vadd.f32 %v1467_v23, %v1407_v48  ;;  %v1542_v5 = vrot.slane %v1503_v50, 2  ;;  %v1540_v33 = vsel %vm1139_vm4, %v1538_v40, %v1539_v42  ;;  %v1578_v26 = vmul.f32 %v20844_v11, %v18268_v1 }
 0x3c0   : > { %v1579_v45 = vmul.f32 %v20844_v11, %v18355_v57  ;;  %v1558_v49 = vadd.f32 %v1540_v33, %v1482_v46  ;;  %v1614_v6 = vrot.slane %v1576_v62, 2  ;;  %v1652_v39 = vmul.f32 %v18244_v15, %v16548_v31 }
 0x3c1   : > { %v1543_v22 = vsel %vm1139_vm4, %v1541_v38, %v1542_v5  ;;  %v1615_v61 = vrot.slane %v1577_v60, 2  ;;  %v1617_v32 = vrot.slane %v1578_v26, 2  ;;  %v1653_v19 = vmul.f32 %v18297_v27, %v16548_v31 }
 0x3c2   : > { %v1559_v25 = vadd.f32 %v1543_v22, %v1483_v0  ;;  %v1618_v63 = vrot.slane %v1579_v45, 2  ;;  %v1654_v12 = vmul.f32 %v18381_v59, %v16548_v31  ;;  %v1655_v11 = vmul.f32 %v18385_v53, %v16548_v31 }
 0x3c3   : > { %v1691_v4 = vrot.slane %v1652_v39, 3  ;;  %v1616_v9 = vsel %vm1139_vm4, %v1614_v6, %v1615_v61  ;;  %v1729_v20 = vmul.f32 %v18381_v59, %v16568_v35  ;;  %v1730_v48 = vmul.f32 %v18385_v53, %v16568_v35 }
 0x3c4   : > { %v1619_v36 = vsel %vm1139_vm4, %v1617_v32, %v1618_v63  ;;  %v1634_v58 = vadd.f32 %v1616_v9, %v1558_v49  ;;  %v1692_v50 = vrot.slane %v1653_v19, 3  ;;  %v1694_v23 = vrot.slane %v1654_v12, 3 }
 0x3c5   : > { %v1635_v14 = vadd.f32 %v1619_v36, %v1559_v25  ;;  %v1695_v46 = vrot.slane %v1655_v11, 3  ;;  %v1731_v40 = vmul.f32 %v18255_v29, %v16568_v35  ;;  %v1732_v31 = vmul.f32 %v18311_v34, %v16568_v35 }
 0x3c6   : > { %v1767_v42 = vrot.slane %v1729_v20, 3  ;;  %v1693_v0 = vsel %vm1672_vm5, %v1691_v4, %v1692_v50  ;;  %v1768_v38 = vrot.slane %v1730_v48, 3  ;;  %v1805_v5 = vmul.f32 %v18255_v29, %v20849_v17 }
 0x3c7   : > { %v1806_v62 = vmul.f32 %v18311_v34, %v20849_v17  ;;  %v1696_v33 = vsel %vm1672_vm5, %v1694_v23, %v1695_v46  ;;  %v1711_v60 = vadd.f32 %v1693_v0, %v1634_v58  ;;  %v1770_v26 = vrot.slane %v1731_v40, 3 }
 0x3c8   : > { %v1771_v45 = vrot.slane %v1732_v31, 3  ;;  %v1712_v22 = vadd.f32 %v1696_v33, %v1635_v14  ;;  %v1769_v49 = vsel %vm1672_vm5, %v1767_v42, %v1768_v38  ;;  %v1807_v35 = vmul.f32 %v18261_v13, %v20849_v17 }
 0x3c9   : > { %v1808_v6 = vmul.f32 %v18325_v54, %v20849_v17  ;;  %v1787_v25 = vadd.f32 %v1769_v49, %v1711_v60  ;;  %v1843_v61 = vrot.slane %v1805_v5, 3  ;;  %v1844_v32 = vrot.slane %v1806_v62, 3 }
 0x3ca   : > { %v1772_v39 = vsel %vm1672_vm5, %v1770_v26, %v1771_v45  ;;  %v1846_v19 = vrot.slane %v1807_v35, 3  ;;  %v1881_v11 = vmul.f32 %v18261_v13, %v20854_v28  ;;  %v1882_v9 = vmul.f32 %v18325_v54, %v20854_v28 }
 0x3cb   : > { %v1788_v63 = vadd.f32 %v1772_v39, %v1712_v22  ;;  %v1847_v12 = vrot.slane %v1808_v6, 3  ;;  %v1845_v4 = vsel %vm1672_vm5, %v1843_v61, %v1844_v32  ;;  %v1883_v36 = vmul.f32 %v18275_v3, %v20854_v28 }
 0x3cc   : > { %v1884_v17 = vmul.f32 %v18336_v51, %v20854_v28  ;;  %v1863_v48 = vadd.f32 %v1845_v4, %v1787_v25  ;;  %v1919_v58 = vrot.slane %v1881_v11, 3  ;;  %v1957_v14 = vmul.f32 %v18275_v3, %v20859_v47 }
 0x3cd   : > { %v1848_v20 = vsel %vm1672_vm5, %v1846_v19, %v1847_v12  ;;  %v1920_v23 = vrot.slane %v1882_v9, 3  ;;  %v1922_v46 = vrot.slane %v1883_v36, 3  ;;  %v1958_v31 = vmul.f32 %v18336_v51, %v20859_v47 }
 0x3ce   : > { %v1864_v50 = vadd.f32 %v1848_v20, %v1788_v63  ;;  %v1923_v40 = vrot.slane %v1884_v17, 3  ;;  %v1959_v42 = vmul.f32 %v18281_v55, %v20859_v47  ;;  %v1960_v28 = vmul.f32 %v18348_v18, %v20859_v47 }
 0x3cf   : > { %v1995_v0 = vrot.slane %v1957_v14, 3  ;;  %v1921_v38 = vsel %vm1672_vm5, %v1919_v58, %v1920_v23  ;;  %v2033_v62 = vmul.f32 %v18281_v55, %v20863_v56  ;;  %v2034_v33 = vmul.f32 %v18348_v18, %v20863_v56 }
 0x3d0   : > { %v1924_v5 = vsel %vm1672_vm5, %v1922_v46, %v1923_v40  ;;  %v1939_v60 = vadd.f32 %v1921_v38, %v1863_v48  ;;  %v1996_v45 = vrot.slane %v1958_v31, 3  ;;  %v1998_v22 = vrot.slane %v1959_v42, 3 }
 0x3d1   : > { %v1940_v26 = vadd.f32 %v1924_v5, %v1864_v50  ;;  %v1999_v49 = vrot.slane %v1960_v28, 3  ;;  %v2035_v35 = vmul.f32 %v18287_v43, %v20863_v56  ;;  %v2036_v47 = vmul.f32 %v18362_v16, %v20863_v56 }
 0x3d2   : > { %v2071_v6 = vrot.slane %v2033_v62, 3  ;;  %v1997_v39 = vsel %vm1672_vm5, %v1995_v0, %v1996_v45  ;;  %v2072_v25 = vrot.slane %v2034_v33, 3  ;;  %v2109_v61 = vmul.f32 %v18287_v43, %v20868_v37 }
 0x3d3   : > { %v2110_v32 = vmul.f32 %v18362_v16, %v20868_v37  ;;  %v2000_v63 = vsel %vm1672_vm5, %v1998_v22, %v1999_v49  ;;  %v2015_v19 = vadd.f32 %v1997_v39, %v1939_v60  ;;  %v2074_v12 = vrot.slane %v2035_v35, 3 }
 0x3d4   : > { %v2075_v11 = vrot.slane %v2036_v47, 3  ;;  %v2016_v4 = vadd.f32 %v2000_v63, %v1940_v26  ;;  %v2073_v9 = vsel %vm1672_vm5, %v2071_v6, %v2072_v25  ;;  %v2111_v56 = vmul.f32 %v20868_v37, %v18268_v1  ;;  %v20935_v6 = vld [vmem:[#allocation86_spill] sm:$0xff] }
 0x3d5   : > { %v2112_v36 = vmul.f32 %v20868_v37, %v18355_v57  ;;  %v2091_v20 = vadd.f32 %v2073_v9, %v2015_v19  ;;  %v2147_v48 = vrot.slane %v2109_v61, 3  ;;  %v2148_v58 = vrot.slane %v2110_v32, 3 }
 0x3d6   : > { %v2076_v17 = vsel %vm1672_vm5, %v2074_v12, %v2075_v11  ;;  %v2150_v50 = vrot.slane %v2111_v56, 3  ;;  %v2185_v46 = vmul.f32 %v18244_v15, %v20869_v8  ;;  %v2186_v31 = vmul.f32 %v18297_v27, %v20869_v8 }
 0x3d7   : > { %v2092_v14 = vadd.f32 %v2076_v17, %v2016_v4  ;;  %v2151_v23 = vrot.slane %v2112_v36, 3  ;;  %v2149_v40 = vsel %vm1672_vm5, %v2147_v48, %v2148_v58  ;;  %v2187_v42 = vmul.f32 %v18381_v59, %v20869_v8  ;;  %v20936_v36 = vld [vmem:[#allocation92_spill] sm:$0xff] }
 0x3d8   : > { %v2188_v37 = vmul.f32 %v18385_v53, %v20869_v8  ;;  %v2167_v0 = vadd.f32 %v2149_v40, %v2091_v20  ;;  %v2224_v38 = vrot.slane %v2185_v46, 4  ;;  %v2262_v5 = vmul.f32 %v18381_v59, %v20870_v52 }
 0x3d9   : > { %v2152_v28 = vsel %vm1672_vm5, %v2150_v50, %v2151_v23  ;;  %v2225_v33 = vrot.slane %v2186_v31, 4  ;;  %v2227_v60 = vrot.slane %v2187_v42, 4  ;;  %v2263_v45 = vmul.f32 %v18385_v53, %v20870_v52 }
 0x3da   : > { %v2168_v62 = vadd.f32 %v2152_v28, %v2092_v14  ;;  %v2228_v26 = vrot.slane %v2188_v37, 4  ;;  %v2264_v22 = vmul.f32 %v18255_v29, %v20870_v52  ;;  %v2265_v8 = vmul.f32 %v18311_v34, %v20870_v52 }
 0x3db   : > { %v2300_v49 = vrot.slane %v2262_v5, 4  ;;  %v2226_v35 = vsel %vm2205_vm6, %v2224_v38, %v2225_v33  ;;  %v2338_v39 = vmul.f32 %v18255_v29, %v20935_v6  ;;  %v2339_v25 = vmul.f32 %v18311_v34, %v20935_v6 }
 0x3dc   : > { %v2229_v47 = vsel %vm2205_vm6, %v2227_v60, %v2228_v26  ;;  %v2244_v61 = vadd.f32 %v2226_v35, %v2167_v0  ;;  %v2301_v63 = vrot.slane %v2263_v45, 4  ;;  %v2303_v19 = vrot.slane %v2264_v22, 4 }
 0x3dd   : > { %v2245_v32 = vadd.f32 %v2229_v47, %v2168_v62  ;;  %v2304_v12 = vrot.slane %v2265_v8, 4  ;;  %v2340_v11 = vmul.f32 %v18261_v13, %v20935_v6  ;;  %v2341_v52 = vmul.f32 %v18325_v54, %v20935_v6 }
 0x3de   : > { %v2376_v4 = vrot.slane %v2338_v39, 4  ;;  %v2302_v9 = vsel %vm2205_vm6, %v2300_v49, %v2301_v63  ;;  %v2377_v56 = vrot.slane %v2339_v25, 4  ;;  %v2414_v17 = vmul.f32 %v18261_v13, %v20936_v36 }
 0x3df   : > { %v2415_v20 = vmul.f32 %v18325_v54, %v20936_v36  ;;  %v2305_v48 = vsel %vm2205_vm6, %v2303_v19, %v2304_v12  ;;  %v2320_v58 = vadd.f32 %v2302_v9, %v2244_v61  ;;  %v2379_v14 = vrot.slane %v2340_v11, 4 }
 0x3e0   : > { %v2380_v50 = vrot.slane %v2341_v52, 4  ;;  %v2321_v23 = vadd.f32 %v2305_v48, %v2245_v32  ;;  %v2378_v46 = vsel %vm2205_vm6, %v2376_v4, %v2377_v56  ;;  %v2416_v40 = vmul.f32 %v18275_v3, %v20936_v36 }
 0x3e1   : > { %v2417_v31 = vmul.f32 %v18336_v51, %v20936_v36  ;;  %v2396_v37 = vadd.f32 %v2378_v46, %v2320_v58  ;;  %v2452_v28 = vrot.slane %v2414_v17, 4  ;;  %v2453_v0 = vrot.slane %v2415_v20, 4 }
 0x3e2   : > { %v2381_v42 = vsel %vm2205_vm6, %v2379_v14, %v2380_v50  ;;  %v2455_v5 = vrot.slane %v2416_v40, 4  ;;  %v2490_v33 = vmul.f32 %v18275_v3, %v20904_v30  ;;  %v2491_v26 = vmul.f32 %v18336_v51, %v20904_v30 }
 0x3e3   : > { %v2397_v38 = vadd.f32 %v2381_v42, %v2321_v23  ;;  %v2456_v62 = vrot.slane %v2417_v31, 4  ;;  %v2454_v60 = vsel %vm2205_vm6, %v2452_v28, %v2453_v0  ;;  %v2492_v45 = vmul.f32 %v18281_v55, %v20904_v30 }
 0x3e4   : > { %v2493_v22 = vmul.f32 %v18348_v18, %v20904_v30  ;;  %v2472_v49 = vadd.f32 %v2454_v60, %v2396_v37  ;;  %v2528_v35 = vrot.slane %v2490_v33, 4  ;;  %v2566_v47 = vmul.f32 %v18281_v55, %v20905_v7 }
 0x3e5   : > { %v2457_v8 = vsel %vm2205_vm6, %v2455_v5, %v2456_v62  ;;  %v2529_v39 = vrot.slane %v2491_v26, 4  ;;  %v2531_v25 = vrot.slane %v2492_v45, 4  ;;  %v2567_v32 = vmul.f32 %v18348_v18, %v20905_v7 }
 0x3e6   : > { %v2473_v6 = vadd.f32 %v2457_v8, %v2397_v38  ;;  %v2532_v61 = vrot.slane %v2493_v22, 4  ;;  %v2568_v63 = vmul.f32 %v18287_v43, %v20905_v7  ;;  %v2569_v30 = vmul.f32 %v18362_v16, %v20905_v7  ;;  %v20937_v8 = vld [vmem:[#allocation108_spill] sm:$0xff] }
 0x3e7   : > { %v2604_v19 = vrot.slane %v2566_v47, 4  ;;  %v2530_v12 = vsel %vm2205_vm6, %v2528_v35, %v2529_v39  ;;  %v2642_v52 = vmul.f32 %v18287_v43, %v20875_v41  ;;  %v2643_v4 = vmul.f32 %v18362_v16, %v20875_v41 }
 0x3e8   : > { %v2533_v11 = vsel %vm2205_vm6, %v2531_v25, %v2532_v61  ;;  %v2548_v9 = vadd.f32 %v2530_v12, %v2472_v49  ;;  %v2605_v36 = vrot.slane %v2567_v32, 4  ;;  %v2607_v17 = vrot.slane %v2568_v63, 4  ;;  %v20938_v32 = vld [vmem:[#allocation109_spill] sm:$0xff] }
 0x3e9   : > { %v2549_v56 = vadd.f32 %v2533_v11, %v2473_v6  ;;  %v2608_v20 = vrot.slane %v2569_v30, 4  ;;  %v2644_v48 = vmul.f32 %v20875_v41, %v18268_v1  ;;  %v2645_v7 = vmul.f32 %v20875_v41, %v18355_v57 }
 0x3ea   : > { %v2680_v58 = vrot.slane %v2642_v52, 4  ;;  %v2606_v14 = vsel %vm2205_vm6, %v2604_v19, %v2605_v36  ;;  %v2681_v50 = vrot.slane %v2643_v4, 4  ;;  %v2718_v23 = vmul.f32 %v18244_v15, %v20876_v2 }
 0x3eb   : > { %v2719_v46 = vmul.f32 %v18297_v27, %v20876_v2  ;;  %v2609_v40 = vsel %vm2205_vm6, %v2607_v17, %v2608_v20  ;;  %v2624_v31 = vadd.f32 %v2606_v14, %v2548_v9  ;;  %v2683_v42 = vrot.slane %v2644_v48, 4  ;;  %v20939_v20 = vld [vmem:[#allocation112_spill] sm:$0xff] }
 0x3ec   : > { %v2684_v37 = vrot.slane %v2645_v7, 4  ;;  %v2625_v28 = vadd.f32 %v2609_v40, %v2549_v56  ;;  %v2682_v0 = vsel %vm2205_vm6, %v2680_v58, %v2681_v50  ;;  %v2720_v41 = vmul.f32 %v18381_v59, %v20876_v2 }
 0x3ed   : > { %v2721_v38 = vmul.f32 %v18385_v53, %v20876_v2  ;;  %v2700_v62 = vadd.f32 %v2682_v0, %v2624_v31  ;;  %v2757_v33 = vrot.slane %v2718_v23, 5  ;;  %v2758_v60 = vrot.slane %v2719_v46, 5  ;;  %v20940_v0 = vld [vmem:[#allocation114_spill] sm:$0xff] }
 0x3ee   : > { %v2685_v5 = vsel %vm2205_vm6, %v2683_v42, %v2684_v37  ;;  %v2760_v45 = vrot.slane %v2720_v41, 5  ;;  %v2795_v49 = vmul.f32 %v18381_v59, %v20937_v8  ;;  %v2796_v47 = vmul.f32 %v18385_v53, %v20937_v8 }
 0x3ef   : > { %v2701_v26 = vadd.f32 %v2685_v5, %v2625_v28  ;;  %v2761_v22 = vrot.slane %v2721_v38, 5  ;;  %v2759_v35 = vsel %vm2738_vm7, %v2757_v33, %v2758_v60  ;;  %v2797_v6 = vmul.f32 %v18255_v29, %v20937_v8 }
 0x3f0   : > { %v2798_v2 = vmul.f32 %v18311_v34, %v20937_v8  ;;  %v2777_v25 = vadd.f32 %v2759_v35, %v2700_v62  ;;  %v2833_v61 = vrot.slane %v2795_v49, 5  ;;  %v2871_v63 = vmul.f32 %v18255_v29, %v20938_v32 }
 0x3f1   : > { %v2762_v39 = vsel %vm2738_vm7, %v2760_v45, %v2761_v22  ;;  %v2834_v19 = vrot.slane %v2796_v47, 5  ;;  %v2836_v12 = vrot.slane %v2797_v6, 5  ;;  %v2872_v52 = vmul.f32 %v18311_v34, %v20938_v32 }
 0x3f2   : > { %v2778_v30 = vadd.f32 %v2762_v39, %v2701_v26  ;;  %v2837_v11 = vrot.slane %v2798_v2, 5  ;;  %v2873_v4 = vmul.f32 %v18261_v13, %v20938_v32  ;;  %v2874_v9 = vmul.f32 %v18325_v54, %v20938_v32 }
 0x3f3   : > { %v2909_v56 = vrot.slane %v2871_v63, 5  ;;  %v2835_v36 = vsel %vm2738_vm7, %v2833_v61, %v2834_v19  ;;  %v2947_v48 = vmul.f32 %v18261_v13, %v20939_v20  ;;  %v2948_v7 = vmul.f32 %v18325_v54, %v20939_v20  ;;  %v20941_v61 = vld [vmem:[#allocation117_spill] sm:$0xff] }
 0x3f4   : > { %v2838_v17 = vsel %vm2738_vm7, %v2836_v12, %v2837_v11  ;;  %v2853_v58 = vadd.f32 %v2835_v36, %v2777_v25  ;;  %v2910_v50 = vrot.slane %v2872_v52, 5  ;;  %v2912_v23 = vrot.slane %v2873_v4, 5 }
 0x3f5   : > { %v2854_v14 = vadd.f32 %v2838_v17, %v2778_v30  ;;  %v2913_v46 = vrot.slane %v2874_v9, 5  ;;  %v2949_v40 = vmul.f32 %v18275_v3, %v20939_v20  ;;  %v2950_v31 = vmul.f32 %v18336_v51, %v20939_v20 }
 0x3f6   : > { %v2985_v42 = vrot.slane %v2947_v48, 5  ;;  %v2911_v37 = vsel %vm2738_vm7, %v2909_v56, %v2910_v50  ;;  %v2986_v28 = vrot.slane %v2948_v7, 5  ;;  %v3023_v41 = vmul.f32 %v18275_v3, %v20940_v0 }
 0x3f7   : > { %v3024_v38 = vmul.f32 %v18336_v51, %v20940_v0  ;;  %v2914_v5 = vsel %vm2738_vm7, %v2912_v23, %v2913_v46  ;;  %v2929_v62 = vadd.f32 %v2911_v37, %v2853_v58  ;;  %v2988_v33 = vrot.slane %v2949_v40, 5 }
 0x3f8   : > { %v2989_v60 = vrot.slane %v2950_v31, 5  ;;  %v2930_v26 = vadd.f32 %v2914_v5, %v2854_v14  ;;  %v2987_v45 = vsel %vm2738_vm7, %v2985_v42, %v2986_v28  ;;  %v3025_v22 = vmul.f32 %v18281_v55, %v20940_v0 }
 0x3f9   : > { %v3026_v8 = vmul.f32 %v18348_v18, %v20940_v0  ;;  %v3005_v35 = vadd.f32 %v2987_v45, %v2929_v62  ;;  %v3061_v47 = vrot.slane %v3023_v41, 5  ;;  %v3062_v6 = vrot.slane %v3024_v38, 5 }
 0x3fa   : > { %v2990_v49 = vsel %vm2738_vm7, %v2988_v33, %v2989_v60  ;;  %v3064_v39 = vrot.slane %v3025_v22, 5  ;;  %v3099_v32 = vmul.f32 %v18281_v55, %v20941_v61  ;;  %v3100_v30 = vmul.f32 %v18348_v18, %v20941_v61 }
 0x3fb   : > { %v3006_v2 = vadd.f32 %v2990_v49, %v2930_v26  ;;  %v3065_v25 = vrot.slane %v3026_v8, 5  ;;  %v3063_v63 = vsel %vm2738_vm7, %v3061_v47, %v3062_v6  ;;  %v3101_v19 = vmul.f32 %v18287_v43, %v20941_v61 }
 0x3fc   : > { %v3102_v12 = vmul.f32 %v18362_v16, %v20941_v61  ;;  %v3081_v52 = vadd.f32 %v3063_v63, %v3005_v35  ;;  %v3137_v4 = vrot.slane %v3099_v32, 5  ;;  %v3175_v9 = vmul.f32 %v18287_v43, %v20909_v44 }
 0x3fd   : > { %v3066_v11 = vsel %vm2738_vm7, %v3064_v39, %v3065_v25  ;;  %v3138_v36 = vrot.slane %v3100_v30, 5  ;;  %v3140_v17 = vrot.slane %v3101_v19, 5  ;;  %v3176_v48 = vmul.f32 %v18362_v16, %v20909_v44 }
 0x3fe   : > { %v3082_v56 = vadd.f32 %v3066_v11, %v3006_v2  ;;  %v3141_v20 = vrot.slane %v3102_v12, 5  ;;  %v3177_v7 = vmul.f32 %v20909_v44, %v18268_v1  ;;  %v3178_v58 = vmul.f32 %v20909_v44, %v18355_v57  ;;  %v20942_v12 = vld [vmem:[#allocation124_spill] sm:$0xff] }
 0x3ff   : > { %v3213_v14 = vrot.slane %v3175_v9, 5  ;;  %v3139_v50 = vsel %vm2738_vm7, %v3137_v4, %v3138_v36  ;;  %v3251_v46 = vmul.f32 %v18244_v15, %v20910_v21  ;;  %v3252_v40 = vmul.f32 %v18297_v27, %v20910_v21 }
 0x400   : > { %v3142_v23 = vsel %vm2738_vm7, %v3140_v17, %v3141_v20  ;;  %v3157_v31 = vadd.f32 %v3139_v50, %v3081_v52  ;;  %v3214_v37 = vrot.slane %v3176_v48, 5  ;;  %v3216_v28 = vrot.slane %v3177_v7, 5  ;;  %v20943_v48 = vld [vmem:[#allocation127_spill] sm:$0xff] }
 0x401   : > { %v3158_v42 = vadd.f32 %v3142_v23, %v3082_v56  ;;  %v3217_v0 = vrot.slane %v3178_v58, 5  ;;  %v3253_v1 = vmul.f32 %v18381_v59, %v20910_v21  ;;  %v3254_v44 = vmul.f32 %v18385_v53, %v20910_v21 }
 0x402   : > { %v3290_v41 = vrot.slane %v3251_v46, 6  ;;  %v3215_v38 = vsel %vm2738_vm7, %v3213_v14, %v3214_v37  ;;  %v3291_v5 = vrot.slane %v3252_v40, 6  ;;  %v3328_v15 = vmul.f32 %v18381_v59, %v20911_v24 }
 0x403   : > { %v3329_v27 = vmul.f32 %v18385_v53, %v20911_v24  ;;  %v3218_v62 = vsel %vm2738_vm7, %v3216_v28, %v3217_v0  ;;  %v3233_v33 = vadd.f32 %v3215_v38, %v3157_v31  ;;  %v3293_v60 = vrot.slane %v3253_v1, 6  ;;  %v20944_v28 = vld [vmem:[#allocation130_spill] sm:$0xff] }
 0x404   : > { %v3294_v26 = vrot.slane %v3254_v44, 6  ;;  %v3234_v45 = vadd.f32 %v3218_v62, %v3158_v42  ;;  %v3292_v22 = vsel %vm3271_vm8, %v3290_v41, %v3291_v5  ;;  %v3330_v21 = vmul.f32 %v18255_v29, %v20911_v24 }
 0x405   : > { %v3331_v8 = vmul.f32 %v18311_v34, %v20911_v24  ;;  %v3310_v59 = vadd.f32 %v3292_v22, %v3233_v33  ;;  %v3366_v35 = vrot.slane %v3328_v15, 6  ;;  %v3367_v47 = vrot.slane %v3329_v27, 6  ;;  %v14299_v22 = vld [vmem:[%s20355_s1 + $0x30] ss:$0 sm:$0xff] }
 0x406   : > { %v3295_v49 = vsel %vm3271_vm8, %v3293_v60, %v3294_v26  ;;  %v3369_v6 = vrot.slane %v3330_v21, 6  ;;  %v3404_v39 = vmul.f32 %v18255_v29, %v20912_v10  ;;  %v3405_v61 = vmul.f32 %v18311_v34, %v20912_v10 }
 0x407   : > { %v3311_v53 = vadd.f32 %v3295_v49, %v3234_v45  ;;  %v3370_v2 = vrot.slane %v3331_v8, 6  ;;  %v3368_v25 = vsel %vm3271_vm8, %v3366_v35, %v3367_v47  ;;  %v3406_v32 = vmul.f32 %v18261_v13, %v20912_v10 }
 0x408   : > { %v3407_v24 = vmul.f32 %v18325_v54, %v20912_v10  ;;  %v3386_v30 = vadd.f32 %v3368_v25, %v3310_v59  ;;  %v3442_v19 = vrot.slane %v3404_v39, 6  ;;  %v3480_v11 = vmul.f32 %v18261_v13, %v20942_v12  ;;  %v14300_v59 = vld [vmem:[#allocation2 + $0xd0] sm:$0xff]  ;;  %v20947_v39 = vld [vmem:[#allocation12_spill] sm:$0xff] }
 0x409   : > { %v3371_v63 = vsel %vm3271_vm8, %v3369_v6, %v3370_v2  ;;  %v3443_v29 = vrot.slane %v3405_v61, 6  ;;  %v3445_v4 = vrot.slane %v3406_v32, 6  ;;  %v3481_v34 = vmul.f32 %v18325_v54, %v20942_v12  ;;  %v20945_v6 = vld [vmem:[#allocation11_spill] sm:$0xff] }
 0x40a   : > { %v3387_v52 = vadd.f32 %v3371_v63, %v3311_v53  ;;  %v3446_v9 = vrot.slane %v3407_v24, 6  ;;  %v3482_v56 = vmul.f32 %v18275_v3, %v20942_v12  ;;  %v3483_v10 = vmul.f32 %v18336_v51, %v20942_v12  ;;  %v14194_v53 = vpop.permute.xlu0 %14193 }
 0x40b   : > { %v3518_v36 = vrot.slane %v3480_v11, 6  ;;  %v3444_v17 = vsel %vm3271_vm8, %v3442_v19, %v3443_v29  ;;  %v3556_v13 = vmul.f32 %v18275_v3, %v20943_v48  ;;  %v3557_v7 = vmul.f32 %v18336_v51, %v20943_v48  ;;  %v20948_v11 = vld [vmem:[#allocation64_spill] sm:$0xff]  ;;  %v20950_v29 = vld [vmem:[#allocation27_spill] sm:$0xff] }
 0x40c   : > { %v3447_v20 = vsel %vm3271_vm8, %v3445_v4, %v3446_v9  ;;  %v3462_v58 = vadd.f32 %v3444_v17, %v3386_v30  ;;  %v3519_v54 = vrot.slane %v3481_v34, 6  ;;  %v3521_v50 = vrot.slane %v3482_v56, 6 }
 0x40d   : > { %v3463_v14 = vadd.f32 %v3447_v20, %v3387_v52  ;;  %v3522_v23 = vrot.slane %v3483_v10, 6  ;;  %v3558_v46 = vmul.f32 %v18281_v55, %v20943_v48  ;;  %v3559_v40 = vmul.f32 %v18348_v18, %v20943_v48 }
 0x40e   : > { %v3594_v31 = vrot.slane %v3556_v13, 6  ;;  %v3520_v42 = vsel %vm3271_vm8, %v3518_v36, %v3519_v54  ;;  %v3595_v37 = vrot.slane %v3557_v7, 6  ;;  %v3632_v3 = vmul.f32 %v18281_v55, %v20944_v28 }
 0x40f   : > { %v3633_v51 = vmul.f32 %v18348_v18, %v20944_v28  ;;  %v3523_v0 = vsel %vm3271_vm8, %v3521_v50, %v3522_v23  ;;  %v3538_v1 = vadd.f32 %v3520_v42, %v3462_v58  ;;  %v3597_v44 = vrot.slane %v3558_v46, 6  ;;  %v14301_v58 = vld [vmem:[%s20358_s4] ss:$0 sm:$0xff]  ;;  %v6654_v42 = vld [vmem:[%s20359_s5 + $0x8] sm:$0xff] }
 0x410   : > { %v3598_v41 = vrot.slane %v3559_v40, 6  ;;  %v3539_v38 = vadd.f32 %v3523_v0, %v3463_v14  ;;  %v3596_v5 = vsel %vm3271_vm8, %v3594_v31, %v3595_v37  ;;  %v3634_v15 = vmul.f32 %v18287_v43, %v20944_v28  ;;  %v6655_v37 = vld [vmem:[%s20359_s5 + $0x10] sm:$0xff] }
 0x411   : > { %v3635_v27 = vmul.f32 %v18362_v16, %v20944_v28  ;;  %v3614_v55 = vadd.f32 %v3596_v5, %v3538_v1  ;;  %v3670_v33 = vrot.slane %v3632_v3, 6  ;;  %v3671_v60 = vrot.slane %v3633_v51, 6  ;;  %v6656_v28 = vld [vmem:[%s20359_s5 + $0x18] sm:$0xff]  ;;  %v6657_v3 = vld [vmem:[%s20359_s5 + $0x20] sm:$0xff]  ;;  %v6658_v51 = vld [vmem:[%s20359_s5 + $0x28] sm:$0xff] }
 0x412   : > { %v3599_v62 = vsel %vm3271_vm8, %v3597_v44, %v3598_v41  ;;  %v3673_v26 = vrot.slane %v3634_v15, 6  ;;  %v3708_v21 = vmul.f32 %v14299_v22, %v18287_v43  ;;  %v3709_v49 = vmul.f32 %v14299_v22, %v18362_v16  ;;  %v6653_v16 = vld [vmem:[%s20359_s5] sm:$0xff]  ;;  %v6659_v0 = vld [vmem:[%s20359_s5 + $0x30] sm:$0xff]  ;;  %v6660_v1 = vld [vmem:[%s20359_s5 + $0x38] sm:$0xff] }
 0x413   : > { %v3615_v18 = vadd.f32 %v3599_v62, %v3539_v38  ;;  %v3674_v45 = vrot.slane %v3635_v27, 6  ;;  %v3672_v8 = vsel %vm3271_vm8, %v3670_v33, %v3671_v60  ;;  %v3710_v35 = vmul.f32 %v14300_v59, %v14299_v22  ;;  %13371 = vmatprep.mubr.msk.f32.mxu0 %vm6661_vm10, %v6653_v16  ;;  %v7416_v44 = vld [vmem:[%s20361_s7] sm:$0xff]  ;;  %v7417_v41 = vld [vmem:[%s20361_s7 + $0x8] sm:$0xf]  ;;  %v7422_v27 = vld [vmem:[%s20361_s7 + $0x30] sm:$0xff] }
 0x414   : > { %v3711_v47 = vmul.f32 %v14299_v22, %v18355_v57  ;;  %v20946_v2 = vunpack.i.h.bf16 %v20945_v6  ;;  %v3690_v32 = vadd.f32 %v3672_v8, %v3614_v55  ;;  %v3746_v24 = vrot.slane %v3708_v21, 6  ;;  %v14199_v57 = vpop.permute.xlu1 %14198  ;;  %v7423_v62 = vld [vmem:[%s20361_s7 + $0x38] sm:$0xf]  ;;  %v18823_v21 = vld [vmem:[%s20361_s7 + $0x40] sm:$0xff]  ;;  %v18828_v8 = vld [vmem:[%s20361_s7 + $0x48] sm:$0xf] }
 0x415   : > { %v3675_v61 = vsel %vm3271_vm8, %v3673_v26, %v3674_v45  ;;  %v3747_v43 = vrot.slane %v3709_v49, 6  ;;  %v3749_v30 = vrot.slane %v3710_v35, 6  ;;  %v14196_v12 = vunpack.i.h.bf16 %v14194_v53  ;;  %v18813_v45 = vld [vmem:[%s20361_s7 + $0x10] sm:$0xff]  ;;  %v18818_v22 = vld [vmem:[%s20361_s7 + $0x18] sm:$0xf]  ;;  %v18833_v49 = vld [vmem:[%s20361_s7 + $0x20] sm:$0xff] }
 0x416   : > { %v6641_v25 = vsel %vm341_vm0, %v20947_v39, %v20946_v2  ;;  %v3691_v63 = vadd.f32 %v3675_v61, %v3615_v18  ;;  %v3750_v19 = vrot.slane %v3711_v47, 6  ;;  %v20949_v52 = vunpack.i.l.bf16 %v20948_v11  ;;  %v20955_v59 = vld [vmem:[#allocation3_spill] sm:$0xff]  ;;  %v18841_v47 = vld [vmem:[%s20361_s7 + $0x28] sm:$0xf]  ;;  %v18851_v6 = vld [vmem:[%s20361_s7 + $0x58] sm:$0xf] }
 0x417   : > { %v3748_v9 = vsel %vm3271_vm8, %v3746_v24, %v3747_v43  ;;  %v20951_v56 = vunpack.i.h.bf16 %v20948_v11  ;;  %v14195_v20 = vunpack.i.l.bf16 %v14194_v53  ;;  %v14201_v13 = vunpack.i.h.bf16 %v14199_v57  ;;  %v18846_v53 = vld [vmem:[%s20361_s7 + $0x50] sm:$0xff]  ;;  %v18861_v39 = vld [vmem:[%s20361_s7 + $0x78] sm:$0xf]  ;;  %v18871_v61 = vld [vmem:[%s20361_s7 + $0x68] sm:$0xf] }
 0x418   : > { %v6649_v4 = vsel %vm6644_vm9, %v20950_v29, %v20949_v52  ;;  %v3751_v34 = vsel %vm3271_vm8, %v3749_v30, %v3750_v19  ;;  %v3766_v36 = vadd.f32 %v3748_v9, %v3690_v32  ;;  %v14200_v7 = vunpack.i.l.bf16 %v14199_v57  ;;  %v18856_v2 = vld [vmem:[%s20361_s7 + $0x70] sm:$0xff]  ;;  %v18881_v24 = vld [vmem:[%s20361_s7 + $0x98] sm:$0xf]  ;;  %v18892_v16 = vld [vmem:[%s20361_s7 + $0x80] sm:$0xff] }
 0x419   : > { %v6650_v10 = vsel %vm6644_vm9, %v6641_v25, %v20951_v56  ;;  %v3767_v17 = vadd.f32 %v3751_v34, %v3691_v63  ;;  %v13876_v38 = vpack.c.bf16 %v7417_v41, %v7416_v44  ;;  %v20557_v5 = vmov 0.0|0.0   ;;  %v18866_v25 = vld [vmem:[%s20361_s7 + $0x60] sm:$0xff]  ;;  %v18876_v32 = vld [vmem:[%s20361_s7 + $0x90] sm:$0xff]  ;;  %20956 = vst [vmem:[#allocation66_spill] sm:$0xff] %v18892_v16  ;;  %v18912_v34 = vld [vmem:[%s20361_s7 + $0xb8] sm:$0xf] }
 0x41a   : > { %v13867_v48 = vpack.c.bf16 %v6650_v10, %v6649_v4  ;;  %v3778_v14 = vadd.f32 %v14301_v58, %v3766_v36  ;;  %13887 = vmatprep.subr.bf16.mxu1 %v20557_v5  ;;  %v20954_v55 = vmov 0.0   ;;  %v13888_v33 = vpack.c.bf16 %v7423_v62, %v7422_v27  ;;  %v18907_v9 = vld [vmem:[%s20361_s7 + $0xb0] sm:$0xff]  ;;  %20959 = vst [vmem:[#allocation29_spill] sm:$0xff] %v18912_v34 }
 0x41b   : > { %v3779_v54 = vadd.f32 %v14301_v58, %v3767_v17  ;;  %13408 = vmatprep.mubr.msk.f32.mxu1 %vm14315_vm13, %v20954_v55  ;;  %v14316_v60 = vmov 1966171168   ;;  %20958 = vst [vmem:[#allocation88_spill] sm:$0xff] %v18907_v9  ;;  %vm12608_vm3 = vcmask 1043459   ;;  %vm12611_vm4 = vcmask 1044484  }
 0x41c   : > { %13868 = vmatprep.subr.bf16.mxu0 %v13867_v48  ;;  %v6642_v23 = vsel %vm341_vm0, %v3778_v14, %v14195_v20  ;;  %13890 = vmatpush3.bf16.msk.msra.mxu1 %vm18789_vm12, %v13888_v33  ;;  %v6797_v18 = vunpack.c.l.s4 %v14316_v60  ;;  %vm12614_vm5 = vcmask 1045509   ;;  %vm12617_vm6 = vcmask 1046534  }
 0x41d   : > { %13870 = vmatpush3.bf16.msra.mxu0 %v13867_v48  ;;  %v6643_v50 = vsel %vm341_vm0, %v3779_v54, %v14196_v12  ;;  %v6651_v46 = vsel %vm6644_vm9, %v6642_v23, %v14200_v7  ;;  %13891 = vmatprep.subr.bf16.mxu1 %v20557_v5  ;;  %v18897_v12 = vld [vmem:[%s20361_s7 + $0x88] sm:$0xf]  ;;  %vm12620_vm7 = vcmask 1047559  }
 0x41e   : > { %v6652_v40 = vsel %vm6644_vm9, %v6643_v50, %v14201_v13  ;;  %v6798_v26 = vunpack.c.0.s8 %v6797_v18  ;;  %20957 = vst [vmem:[#allocation85_spill] sm:$0xff] %v18897_v12 }
 0x41f   : > { %v13871_v31 = vpack.c.bf16 %v6652_v40, %v6651_v46 }
 0x420   : > { %v18836_v35 = vsub.s32 %v6798_v26, %v20955_v59 }
 0x421   : > { %13872 = vmatprep.subr.bf16.mxu0 %v13871_v31 }
 0x422   : > { %13874 = vmatpush3.bf16.msra.mxu0 %v13871_v31 }
 0x423   : > { %13875 = vmatprep.subr.bf16.mxu0 %v20557_v5 }
 0x425   : > { %13372 = vmatmul.mubr.msk.f32.vlgmr.msra.gmra.mrb[0].mxu0 %vm6661_vm10, %v6654_v42 }
 0x426   : > { %13374 = vmatprep.mubr.msk.f32.mxu0 %vm6661_vm10, %v6655_v37  ;;  %13878 = vmatpush3.bf16.msk.msra.mxu0 %vm18789_vm12, %v13876_v38 }
 0x427   : > { %13879 = vmatprep.subr.bf16.mxu0 %v20557_v5 }
 0x429   : > { %13375 = vmatmul.mubr.msk.f32.gmra.mrb[2].mxu0 %vm6661_vm10, %v6656_v28 }
 0x42a   : > { %13377 = vmatprep.mubr.msk.f32.mxu0 %vm6661_vm10, %v6657_v3 }
 0x42d   : > { %13378 = vmatmul.mubr.msk.f32.gmra.mrb[4].mxu0 %vm6661_vm10, %v6658_v51 }
 0x42e   : > { %13380 = vmatprep.mubr.msk.f32.mxu0 %vm6661_vm10, %v6659_v0 }
 0x431   : > { %13381 = vmatmul.mubr.msk.f32.gmra.mrb[6].mxu0 %vm6661_vm10, %v6660_v1 }
 0x432   : > { %13387 = vmatprep.mubr.msk.f32.mxu0 %vm14315_vm13, %v20954_v55 }
 0x4f8   : > { %v13373_v63 = vpop.f32.mrb[0].mxu0 }
 0x4f9   : > { %v6844_v57 = vcombine.high %v13373_v63, %v13373_v63  ;;  %v6851_v11 = vrot.slane %v13373_v63, %v18836_v35  ;;  %v6752_v52 = vpop.f32.mrb[1].mxu0 }
 0x4fa   : > { %v6795_v56 = vcombine.high %v6752_v52, %v6752_v52  ;;  %v6802_v10 = vrot.slane %v6752_v52, %v18836_v35 }
 0x4fb   : > { %v6858_v20 = vrot.slane %v6844_v57, %v18836_v35  ;;  %v6859_v48 = vcombine.high %v6851_v11, %v6851_v11  ;;  %v18921_v13 = vrot.slane %v6851_v11, %v18836_v35 }
 0x4fc   : > { %v6809_v58 = vrot.slane %v6795_v56, %v18836_v35  ;;  %v6810_v14 = vcombine.high %v6802_v10, %v6802_v10  ;;  %v18927_v54 = vrot.slane %v6802_v10, %v18836_v35  ;;  %v13376_v50 = vpop.f32.mrb[2].mxu0 }
 0x4fd   : > { %v6860_v46 = vcombine.high %v6858_v20, %v6858_v20  ;;  %v18932_v40 = vrot.slane %v6858_v20, %v18836_v35  ;;  %v18935_v31 = vrot.slane %v6859_v48, %v18836_v35  ;;  %v6762_v37 = vpop.f32.mrb[3].mxu0  ;;  %v6942_v38 = vcombine.high %v13376_v50, %v13376_v50 }
 0x4fe   : > { %v6811_v28 = vcombine.high %v6809_v58, %v6809_v58  ;;  %v18940_v3 = vrot.slane %v6809_v58, %v18836_v35  ;;  %v18943_v51 = vrot.slane %v6810_v14, %v18836_v35  ;;  %v6949_v60 = vrot.slane %v13376_v50, %v18836_v35 }
 0x4ff   : > { %v18948_v1 = vrot.slane %v6860_v46, %v18836_v35  ;;  %v6956_v59 = vrot.slane %v6942_v38, %v18836_v35  ;;  %v6893_v63 = vcombine.high %v6762_v37, %v6762_v37  ;;  %v6900_v57 = vrot.slane %v6762_v37, %v18836_v35  ;;  %v20961_v37 = vld [vmem:[#allocation4_spill] sm:$0xff] }
 0x500   : > { %v18955_v27 = vrot.slane %v6811_v28, %v18836_v35  ;;  %v13379_v18 = vpop.f32.mrb[4].mxu0  ;;  %v6957_v56 = vcombine.high %v6949_v60, %v6949_v60  ;;  %v18969_v10 = vrot.slane %v6949_v60, %v18836_v35 }
 0x501   : > { %v6772_v11 = vpop.f32.mrb[5].mxu0  ;;  %v7076_v20 = vcombine.high %v13379_v18, %v13379_v18  ;;  %v6958_v48 = vcombine.high %v6956_v59, %v6956_v59  ;;  %v18972_v58 = vrot.slane %v6956_v59, %v18836_v35  ;;  %v6907_v14 = vrot.slane %v6893_v63, %v18836_v35 }
 0x502   : > { %v6908_v50 = vcombine.high %v6900_v57, %v6900_v57  ;;  %v18976_v46 = vrot.slane %v6957_v56, %v18836_v35  ;;  %v18981_v28 = vrot.slane %v6900_v57, %v18836_v35  ;;  %v7083_v38 = vrot.slane %v13379_v18, %v18836_v35 }
 0x503   : > { %20960 = vst [vmem:[#allocation31_spill] sm:$0xff] %v18972_v58  ;;  %v18985_v7 = vrot.slane %v6958_v48, %v18836_v35  ;;  %v6909_v63 = vcombine.high %v6907_v14, %v6907_v14  ;;  %v18990_v23 = vrot.slane %v6907_v14, %v18836_v35  ;;  %v7090_v48 = vrot.slane %v7076_v20, %v18836_v35 }
 0x504   : > { %v13382_v60 = vpop.f32.mrb[6].mxu0  ;;  %v18995_v57 = vrot.slane %v6908_v50, %v18836_v35  ;;  %v7091_v17 = vcombine.high %v7083_v38, %v7083_v38  ;;  %v19010_v26 = vrot.slane %v7083_v38, %v18836_v35  ;;  %v7027_v36 = vcombine.high %v6772_v11, %v6772_v11 }
 0x505   : > { %v6782_v56 = vpop.f32.mrb[7].mxu0  ;;  %v19003_v59 = vrot.slane %v6909_v63, %v18836_v35  ;;  %v7092_v50 = vcombine.high %v7090_v48, %v7090_v48  ;;  %v19013_v18 = vrot.slane %v7090_v48, %v18836_v35  ;;  %v7034_v14 = vrot.slane %v6772_v11, %v18836_v35 }
 0x506   : > { %v19018_v63 = vrot.slane %v7091_v17, %v18836_v35  ;;  %v7121_v38 = vcombine.high %v19010_v26, %v19010_v26  ;;  %v7041_v20 = vrot.slane %v7027_v36, %v18836_v35  ;;  %v7174_v42 = vcombine.high %v13382_v60, %v13382_v60 }
 0x507   : > { %v19022_v29 = vrot.slane %v7092_v50, %v18836_v35  ;;  %v7122_v48 = vcombine.high %v19013_v18, %v19013_v18  ;;  %v7042_v11 = vcombine.high %v7034_v14, %v7034_v14  ;;  %v7050_v50 = vrot.slane %v7034_v14, %v18836_v35 }
 0x508   : > { %v7123_v17 = vcombine.high %v19018_v63, %v19018_v63  ;;  %v19040_v52 = vrot.slane %v7121_v38, %v20961_v37  ;;  %v7043_v62 = vcombine.high %v7041_v20, %v7041_v20  ;;  %v19052_v36 = vrot.slane %v7041_v20, %v18836_v35 }
 0x509   : > { %v19045_v41 = vrot.slane %v7122_v48, %v20961_v37  ;;  %v7181_v38 = vrot.slane %v13382_v60, %v18836_v35  ;;  %v7125_v30 = vcombine.high %v6782_v56, %v6782_v56  ;;  %v7064_v33 = vrot.slane %v7042_v11, %v18836_v35 }
 0x50a   : > { %v19048_v44 = vrot.slane %v7123_v17, %v20961_v37  ;;  %v19057_v4 = vrot.slane %v7043_v62, %v18836_v35  ;;  %v7072_v48 = vcombine.high %v7050_v50, %v7050_v50  ;;  %v7226_v17 = vrot.slane %v7050_v50, %v20961_v37 }
 0x50b   : > { %v7073_v19 = vcombine.high %v19052_v36, %v19052_v36  ;;  %v7242_v14 = vrot.slane %v19052_v36, %v20961_v37  ;;  %v7188_v20 = vrot.slane %v7174_v42, %v18836_v35  ;;  %v7189_v0 = vcombine.high %v7181_v38, %v7181_v38 }
 0x50c   : > { %v7074_v5 = vcombine.high %v7064_v33, %v7064_v33  ;;  %v7075_v60 = vcombine.high %v19057_v4, %v19057_v4  ;;  %v7230_v11 = vrot.slane %v7064_v33, %v20961_v37  ;;  %v7234_v62 = vrot.slane %v7072_v48, %v20961_v37 }
 0x50d   : > { %v7246_v50 = vrot.slane %v19057_v4, %v20961_v37  ;;  %v7250_v43 = vrot.slane %v7073_v19, %v20961_v37  ;;  %v7190_v16 = vcombine.high %v7188_v20, %v7188_v20  ;;  %v19073_v12 = vrot.slane %v7181_v38, %v18836_v35 }
 0x50e   : > { %v19076_v42 = vrot.slane %v7188_v20, %v18836_v35  ;;  %v19079_v36 = vrot.slane %v7189_v0, %v18836_v35  ;;  %v7132_v9 = vrot.slane %v6782_v56, %v18836_v35  ;;  %v7139_v33 = vrot.slane %v7125_v30, %v18836_v35 }
 0x50f   : > { %v19084_v48 = vrot.slane %v7190_v16, %v18836_v35  ;;  %v7219_v19 = vcombine.high %v19073_v12, %v19073_v12  ;;  %v19092_v38 = vsel %vm7383_vm14, %v18927_v54, %v7226_v17  ;;  %v20964_v58 = vpack.c.bf16 %v18818_v22, %v18813_v45 }
 0x510   : > { %20962 = vst [vmem:[#allocation105_spill] sm:$0xff] %v19076_v42  ;;  %20963 = vst [vmem:[#allocation113_spill] sm:$0xff] %v19092_v38  ;;  %v7220_v0 = vcombine.high %v19076_v42, %v19076_v42  ;;  %v7221_v56 = vcombine.high %v19079_v36, %v19079_v36  ;;  %13388 = vmatmul.mubr.msk.f32.vlgmr.msra.gmra.mrb[8].mxu0 %vm7480_vm15, %v19092_v38  ;;  %v7140_v34 = vcombine.high %v7132_v9, %v7132_v9  ;;  %v20966_v22 = vmov 0.0|0.0  }
 0x511   : > { %v19107_v17 = vrot.slane %v7219_v19, %v20961_v37  ;;  %13882 = vmatpush3.bf16.msk.msra.mxu0 %vm18789_vm12, %v20964_v58  ;;  %v7141_v20 = vcombine.high %v7139_v33, %v7139_v33  ;;  %v7148_v19 = vrot.slane %v7132_v9, %v18836_v35  ;;  %13394 = vmatprep.mubr.msk.f32.mxu0 %vm14315_vm13, %v20954_v55 }
 0x512   : > { %v19117_v16 = vrot.slane %v7221_v56, %v20961_v37  ;;  %v19120_v30 = vrot.slane %v7220_v0, %v20961_v37  ;;  %v7155_v4 = vrot.slane %v7139_v33, %v18836_v35  ;;  %v7162_v38 = vrot.slane %v7140_v34, %v18836_v35  ;;  %13883 = vmatprep.subr.bf16.mxu0 %v20966_v22 }
 0x513   : > { %v19129_v45 = vsel %vm7383_vm14, %v18943_v51, %v7230_v11  ;;  %v7238_v58 = vrot.slane %v7074_v5, %v20961_v37  ;;  %v7169_v0 = vrot.slane %v7141_v20, %v18836_v35  ;;  %v7170_v56 = vcombine.high %v7148_v19, %v7148_v19 }
 0x514   : > { %20965 = vst [vmem:[#allocation32_spill] sm:$0xff] %v19120_v30  ;;  %v7290_v9 = vrot.slane %v7148_v19, %v20961_v37  ;;  %13395 = vmatmul.mubr.msk.f32.vlgmr.msra.gmra.mrb[10].mxu0 %vm7480_vm15, %v19129_v45  ;;  %v20967_v33 = vcombine.high %v18927_v54, %v18927_v54  ;;  %v7171_v11 = vcombine.high %v7155_v4, %v7155_v4 }
 0x515   : > { %v7172_v30 = vcombine.high %v7162_v38, %v7162_v38  ;;  %v7294_v42 = vrot.slane %v7162_v38, %v20961_v37  ;;  %v7306_v5 = vrot.slane %v7155_v4, %v20961_v37  ;;  %v20968_v35 = vpack.c.bf16 %v18841_v47, %v18833_v49  ;;  %13401 = vmatprep.mubr.msk.f32.mxu0 %vm14315_vm13, %v20954_v55 }
 0x516   : > { %v19141_v34 = vsel %vm7383_vm14, %v20967_v33, %v7234_v62  ;;  %v7173_v20 = vcombine.high %v7169_v0, %v7169_v0  ;;  %v7298_v19 = vrot.slane %v7170_v56, %v20961_v37  ;;  %v7310_v54 = vrot.slane %v7169_v0, %v20961_v37 }
 0x517   : > { %13886 = vmatpush3.bf16.msk.msra.mxu0 %vm18789_vm12, %v20968_v35  ;;  %v20969_v62 = vcombine.high %v18943_v51, %v18943_v51  ;;  %v7302_v4 = vrot.slane %v7172_v30, %v20961_v37  ;;  %v7314_v49 = vrot.slane %v7171_v11, %v20961_v37  ;;  %v19166_v47 = vsel %vm7383_vm14, %v18940_v3, %v7242_v14 }
 0x518   : > { %13903 = vmatprep.subr.bf16.mxu0 %v20966_v22  ;;  %v20970_v51 = vpack.c.bf16 %v18828_v8, %v18823_v21  ;;  %v19178_v38 = vsel %vm7383_vm14, %v18955_v27, %v7246_v50  ;;  %v7254_v30 = vrot.slane %v7075_v60, %v20961_v37  ;;  %v20971_v14 = vcombine.high %v18940_v3, %v18940_v3 }
 0x519   : > { %v19156_v33 = vsel %vm7383_vm14, %v20969_v62, %v7238_v58  ;;  %v20972_v21 = vrot.slane %v19018_v63, %v20961_v37  ;;  %v20973_v60 = vrot.slane %v19010_v26, %v20961_v37  ;;  %v20975_v63 = vpack.c.bf16 %v18861_v39, %v18856_v2 }
 0x51a   : > { %13409 = vmatmul.mubr.msk.f32.vlgmr.msra.gmra.mrb[0].mxu1 %vm7480_vm15, %v19156_v33  ;;  %v19185_v58 = vsel %vm7383_vm14, %v20971_v14, %v7250_v43  ;;  %13402 = vmatmul.mubr.msk.f32.vlgmr.msra.gmra.mrb[12].mxu0 %vm7480_vm15, %v19141_v34  ;;  %v20974_v43 = vcombine.high %v18935_v31, %v18935_v31  ;;  %v20976_v26 = vcombine.high %v18955_v27, %v18955_v27 }
 0x51b   : > { %13894 = vmatpush3.bf16.msk.msra.mxu1 %vm18789_vm12, %v20970_v51  ;;  %13415 = vmatprep.mubr.msk.f32.mxu1 %vm14315_vm13, %v20954_v55  ;;  %v19195_v8 = vsel %vm7383_vm14, %v18935_v31, %v20972_v21  ;;  %v19202_v3 = vsel %vm7383_vm14, %v18921_v13, %v20973_v60  ;;  %v20977_v31 = vcombine.high %v18921_v13, %v18921_v13  ;;  %v20997_v60 = vld [vmem:[#allocation31_spill] sm:$0xff] }
 0x51c   : > { %13895 = vmatprep.subr.bf16.mxu1 %v20966_v22  ;;  %v19209_v50 = vsel %vm7383_vm14, %v20974_v43, %v19048_v44  ;;  %13906 = vmatpush3.bf16.msk.msra.mxu0 %vm18789_vm12, %v20975_v63  ;;  %v19222_v0 = vsel %vm7383_vm14, %v20976_v26, %v7254_v30  ;;  %v20978_v2 = vrot.slane %v19022_v29, %v20961_v37 }
 0x51d   : > { %13436 = vmatprep.mubr.msk.f32.mxu0 %vm14315_vm13, %v20954_v55  ;;  %v19229_v44 = vsel %vm7383_vm14, %v20977_v31, %v19040_v52  ;;  %13911 = vmatprep.subr.bf16.mxu0 %v20966_v22  ;;  %v20979_v27 = vrot.slane %v19013_v18, %v20961_v37  ;;  %v20980_v52 = vcombine.high %v19022_v29, %v19022_v29  ;;  %v20999_v31 = vld [vmem:[#allocation32_spill] sm:$0xff] }
 0x51e   : > { %v19236_v39 = vsel %vm7383_vm14, %v18948_v1, %v20978_v2  ;;  %13416 = vmatmul.mubr.msk.f32.vlgmr.msra.gmra.mrb[2].mxu1 %vm7480_vm15, %v19166_v47  ;;  %v20981_v11 = vcombine.high %v18932_v40, %v18932_v40  ;;  %v20982_v62 = vpack.c.bf16 %v18851_v6, %v18846_v53  ;;  %v19268_v29 = vsel %vm7383_vm14, %v18995_v57, %v7294_v42 }
 0x51f   : > { %v19246_v13 = vsel %vm7383_vm14, %v18932_v40, %v20979_v27  ;;  %v7286_v56 = vrot.slane %v20980_v52, %v20961_v37  ;;  %13422 = vmatprep.mubr.msk.f32.mxu1 %vm14315_vm13, %v20954_v55  ;;  %v19272_v18 = vsel %vm7383_vm14, %v18981_v28, %v7290_v9  ;;  %v20983_v40 = vcombine.high %v18995_v57, %v18995_v57  ;;  %v21001_v52 = vld [vmem:[#allocation29_spill] sm:$0xff] }
 0x520   : > { %v19257_v35 = vsel %vm7383_vm14, %v20981_v11, %v19045_v41  ;;  %13898 = vmatpush3.bf16.msk.msra.mxu1 %vm18789_vm12, %v20982_v62  ;;  %13437 = vmatmul.mubr.msk.f32.vlgmr.msra.gmra.mrb[14].mxu0 %vm7480_vm15, %v19222_v0  ;;  %v20984_v53 = vcombine.high %v18948_v1, %v18948_v1  ;;  %v20985_v42 = vcombine.high %v18981_v28, %v18981_v28 }
 0x521   : > { %v19278_v41 = vsel %vm7383_vm14, %v20983_v40, %v7302_v4  ;;  %13899 = vmatprep.subr.bf16.mxu1 %v20966_v22  ;;  %v19297_v57 = vsel %vm7383_vm14, %v19003_v59, %v7310_v54  ;;  %v20986_v4 = vpack.c.bf16 %v18881_v24, %v18876_v32  ;;  %13450 = vmatprep.mubr.msk.f32.mxu0 %vm14315_vm13, %v20954_v55  ;;  %v7442_v32 = vld [vmem:[%s20361_s7 + $0xd0] sm:$0xff]  ;;  %v7443_v24 = vld [vmem:[%s20361_s7 + $0xd8] sm:$0xf] }
 0x522   : > { %v19287_v6 = vsel %vm7383_vm14, %v20984_v53, %v7286_v56  ;;  %v19293_v9 = vsel %vm7383_vm14, %v20985_v42, %v7298_v19  ;;  %v19308_v1 = vsel %vm7383_vm14, %v18990_v23, %v7306_v5  ;;  %v7318_v28 = vrot.slane %v7173_v20, %v20961_v37  ;;  %v21002_v56 = vld [vmem:[#allocation88_spill] sm:$0xff]  ;;  %v21005_v42 = vld [vmem:[#allocation85_spill] sm:$0xff] }
 0x523   : > { %13914 = vmatpush3.bf16.msk.msra.mxu0 %vm18789_vm12, %v20986_v4  ;;  %v20987_v19 = vcombine.high %v18990_v23, %v18990_v23  ;;  %13423 = vmatmul.mubr.msk.f32.vlgmr.msra.gmra.mrb[4].mxu1 %vm7480_vm15, %v19178_v38  ;;  %v20988_v5 = vrot.slane %v19079_v36, %v20961_v37  ;;  %v20989_v20 = vrot.slane %v19073_v12, %v20961_v37  ;;  %v21006_v4 = vld [vmem:[#allocation66_spill] sm:$0xff] }
 0x524   : > { %13919 = vmatprep.subr.bf16.mxu0 %v20966_v22  ;;  %v20990_v51 = vcombine.high %v18976_v46, %v18976_v46  ;;  %v20991_v36 = vpack.c.bf16 %v18871_v61, %v18866_v25  ;;  %13429 = vmatprep.mubr.msk.f32.mxu1 %vm14315_vm13, %v20954_v55  ;;  %v20992_v12 = vcombine.high %v19003_v59, %v19003_v59  ;;  %v7436_v59 = vld [vmem:[%s20361_s7 + $0xa0] sm:$0xff] }
 0x525   : > { %v19315_v54 = vsel %vm7383_vm14, %v20987_v19, %v7314_v49  ;;  %v19331_v23 = vsel %vm7383_vm14, %v18976_v46, %v20988_v5  ;;  %v19338_v49 = vsel %vm7383_vm14, %v18969_v10, %v20989_v20  ;;  %v20993_v46 = vcombine.high %v18969_v10, %v18969_v10  ;;  %v7437_v10 = vld [vmem:[%s20361_s7 + $0xa8] sm:$0xf]  ;;  %v7450_v5 = vld [vmem:[%s20361_s7 + $0x110] sm:$0xff]  ;;  %v7451_v20 = vld [vmem:[%s20361_s7 + $0x118] sm:$0xf] }
 0x526   : > { %v19345_v30 = vsel %vm7383_vm14, %v20990_v51, %v19117_v16  ;;  %13902 = vmatpush3.bf16.msk.msra.mxu1 %vm18789_vm12, %v20991_v36  ;;  %v19358_v14 = vsel %vm7383_vm14, %v20992_v12, %v7318_v28  ;;  %v20994_v25 = vrot.slane %v19084_v48, %v20961_v37  ;;  %13451 = vmatmul.mubr.msk.f32.vlgmr.msra.gmra.mrb[16].mxu0 %vm7480_vm15, %v19195_v8  ;;  %v7444_v36 = vld [vmem:[%s20361_s7 + $0xe0] sm:$0xff]  ;;  %v7445_v12 = vld [vmem:[%s20361_s7 + $0xe8] sm:$0xf] }
 0x527   : > { %v19365_v16 = vsel %vm7383_vm14, %v20993_v46, %v19107_v17  ;;  %13907 = vmatprep.subr.bf16.mxu1 %v20966_v22  ;;  %v20995_v17 = vld [vmem:[#allocation105_spill] sm:$0xff]  ;;  %v20998_v63 = vcombine.high %v19084_v48, %v19084_v48  ;;  %v21000_v2 = vcombine.high %v20997_v60, %v20997_v60  ;;  %v21003_v11 = vpack.c.bf16 %v21001_v52, %v21002_v56  ;;  %v7447_v48 = vld [vmem:[%s20361_s7 + $0xf8] sm:$0xf]  ;;  %v7453_v52 = vld [vmem:[%s20361_s7 + $0x128] sm:$0xf] }
 0x528   : > { %v19372_v61 = vsel %vm7383_vm14, %v18985_v7, %v20994_v25  ;;  %v20996_v21 = vrot.slane %v20995_v17, %v20961_v37  ;;  %13464 = vmatprep.mubr.msk.f32.mxu0 %vm14315_vm13, %v20954_v55  ;;  %v13928_v62 = vpack.c.bf16 %v7443_v24, %v7442_v32  ;;  %v21004_v40 = vcombine.high %v18985_v7, %v18985_v7  ;;  %v7440_v7 = vld [vmem:[%s20361_s7 + $0xc0] sm:$0xff]  ;;  %v7441_v32 = vld [vmem:[%s20361_s7 + $0xc8] sm:$0xf]  ;;  %v7454_v25 = vld [vmem:[%s20361_s7 + $0x130] sm:$0xff] }
 0x529   : > { %v7350_v26 = vrot.slane %v20998_v63, %v20961_v37  ;;  %v19399_v27 = vsel %vm7383_vm14, %v21000_v2, %v20999_v31  ;;  %13922 = vmatpush3.bf16.msk.msra.mxu0 %vm18789_vm12, %v21003_v11  ;;  %13430 = vmatmul.mubr.msk.f32.vlgmr.msra.gmra.mrb[6].mxu1 %vm7480_vm15, %v19185_v58  ;;  %v7446_v37 = vld [vmem:[%s20361_s7 + $0xf0] sm:$0xff]  ;;  %v21007_v28 = vpack.c.bf16 %v21005_v42, %v21006_v4  ;;  %v7448_v17 = vld [vmem:[%s20361_s7 + $0x100] sm:$0xff] }
 0x52a   : > { %v19388_v43 = vsel %vm7383_vm14, %v20997_v60, %v20996_v21  ;;  %13927 = vmatprep.subr.bf16.mxu0 %v20966_v22  ;;  %13443 = vmatprep.mubr.msk.f32.mxu1 %vm14315_vm13, %v20954_v55  ;;  %v13916_v19 = vpack.c.bf16 %v7437_v10, %v7436_v59  ;;  %v13936_v24 = vpack.c.bf16 %v7447_v48, %v7446_v37  ;;  %v7455_v59 = vld [vmem:[%s20361_s7 + $0x138] sm:$0xf]  ;;  %v7449_v21 = vld [vmem:[%s20361_s7 + $0x108] sm:$0xf]  ;;  %v7458_v63 = vld [vmem:[%s20361_s7 + $0x150] sm:$0xff] }
 0x52b   : > { %v19421_v53 = vsel %vm7383_vm14, %v21004_v40, %v7350_v26  ;;  %13910 = vmatpush3.bf16.msk.msra.mxu1 %vm18789_vm12, %v21007_v28  ;;  %v13924_v51 = vpack.c.bf16 %v7441_v32, %v7440_v7  ;;  %v13944_v46 = vpack.c.bf16 %v7451_v20, %v7450_v5  ;;  %v13932_v10 = vpack.c.bf16 %v7445_v12, %v7444_v36  ;;  %v7459_v26 = vld [vmem:[%s20361_s7 + $0x158] sm:$0xf]  ;;  %v7452_v2 = vld [vmem:[%s20361_s7 + $0x120] sm:$0xff]  ;;  %v7462_v11 = vld [vmem:[%s20361_s7 + $0x170] sm:$0xff] }
 0x52c   : > { %13915 = vmatprep.subr.bf16.mxu1 %v20966_v22  ;;  %13465 = vmatmul.mubr.msk.f32.vlgmr.msra.gmra.mrb[18].mxu0 %vm7480_vm15, %v19209_v50  ;;  %v13952_v60 = vpack.c.bf16 %v7455_v59, %v7454_v25  ;;  %v13940_v31 = vpack.c.bf16 %v7449_v21, %v7448_v17  ;;  %v13960_v56 = vpack.c.bf16 %v7459_v26, %v7458_v63  ;;  %v7456_v48 = vld [vmem:[%s20361_s7 + $0x140] sm:$0xff]  ;;  %v7457_v40 = vld [vmem:[%s20361_s7 + $0x148] sm:$0xf]  ;;  %v7466_v4 = vld [vmem:[%s20361_s7 + $0x190] sm:$0xff] }
 0x52d   : > { %13930 = vmatpush3.bf16.msk.msra.mxu0 %vm18789_vm12, %v13928_v62  ;;  %13478 = vmatprep.mubr.msk.f32.mxu0 %vm14315_vm13, %v20954_v55  ;;  %v7463_v62 = vld [vmem:[%s20361_s7 + $0x178] sm:$0xf]  ;;  %v13948_v37 = vpack.c.bf16 %v7453_v52, %v7452_v2  ;;  %v7460_v7 = vld [vmem:[%s20361_s7 + $0x160] sm:$0xff]  ;;  %v7461_v32 = vld [vmem:[%s20361_s7 + $0x168] sm:$0xf] }
 0x52e   : > { %13444 = vmatmul.mubr.msk.f32.vlgmr.msra.gmra.mrb[8].mxu1 %vm7480_vm15, %v19202_v3  ;;  %13935 = vmatprep.subr.bf16.mxu0 %v20966_v22  ;;  %v13968_v42 = vpack.c.bf16 %v7463_v62, %v7462_v11  ;;  %v7467_v28 = vld [vmem:[%s20361_s7 + $0x198] sm:$0xf]  ;;  %v7470_v5 = vld [vmem:[%s20361_s7 + $0x1b0] sm:$0xff]  ;;  %v7464_v36 = vld [vmem:[%s20361_s7 + $0x180] sm:$0xff] }
 0x52f   : > { %13918 = vmatpush3.bf16.msk.msra.mxu1 %vm18789_vm12, %v13916_v19  ;;  %13457 = vmatprep.mubr.msk.f32.mxu1 %vm14315_vm13, %v20954_v55  ;;  %v13956_v19 = vpack.c.bf16 %v7457_v40, %v7456_v48  ;;  %v7471_v20 = vld [vmem:[%s20361_s7 + $0x1b8] sm:$0xf]  ;;  %v7465_v12 = vld [vmem:[%s20361_s7 + $0x188] sm:$0xf]  ;;  %v7474_v25 = vld [vmem:[%s20361_s7 + $0x1d0] sm:$0xff] }
 0x530   : > { %13923 = vmatprep.subr.bf16.mxu1 %v20966_v22  ;;  %13479 = vmatmul.mubr.msk.f32.vlgmr.msra.gmra.mrb[20].mxu0 %vm7480_vm15, %v19236_v39  ;;  %v7475_v59 = vld [vmem:[%s20361_s7 + $0x1d8] sm:$0xf]  ;;  %v7468_v17 = vld [vmem:[%s20361_s7 + $0x1a0] sm:$0xff]  ;;  %v7469_v21 = vld [vmem:[%s20361_s7 + $0x1a8] sm:$0xf] }
 0x531   : > { %13938 = vmatpush3.bf16.msk.msra.mxu0 %vm18789_vm12, %v13936_v24  ;;  %13492 = vmatprep.mubr.msk.f32.mxu0 %vm14315_vm13, %v20954_v55  ;;  %v13976_v24 = vpack.c.bf16 %v7467_v28, %v7466_v4  ;;  %v7478_v63 = vld [vmem:[%s20361_s7 + $0x1f0] sm:$0xff]  ;;  %v7479_v26 = vld [vmem:[%s20361_s7 + $0x1f8] sm:$0xf]  ;;  %v7472_v2 = vld [vmem:[%s20361_s7 + $0x1c0] sm:$0xff] }
 0x532   : > { %13458 = vmatmul.mubr.msk.f32.vlgmr.msra.gmra.mrb[10].mxu1 %vm7480_vm15, %v19229_v44  ;;  %13943 = vmatprep.subr.bf16.mxu0 %v20966_v22  ;;  %v7473_v52 = vld [vmem:[%s20361_s7 + $0x1c8] sm:$0xf]  ;;  %v9915_v11 = vld [vmem:[%s20362_s8 + $0x10] sm:$0xff]  ;;  %v9916_v62 = vld [vmem:[%s20362_s8 + $0x18] sm:$0xf] }
 0x533   : > { %13926 = vmatpush3.bf16.msk.msra.mxu1 %vm18789_vm12, %v13924_v51  ;;  %13471 = vmatprep.mubr.msk.f32.mxu1 %vm14315_vm13, %v20954_v55  ;;  %v13964_v51 = vpack.c.bf16 %v7461_v32, %v7460_v7  ;;  %v7476_v48 = vld [vmem:[%s20361_s7 + $0x1e0] sm:$0xff]  ;;  %v7477_v40 = vld [vmem:[%s20361_s7 + $0x1e8] sm:$0xf]  ;;  %v9919_v4 = vld [vmem:[%s20362_s8 + $0x30] sm:$0xff] }
 0x534   : > { %13931 = vmatprep.subr.bf16.mxu1 %v20966_v22  ;;  %13493 = vmatmul.mubr.msk.f32.vlgmr.msra.gmra.mrb[22].mxu0 %vm7480_vm15, %v19287_v6  ;;  %v9920_v28 = vld [vmem:[%s20362_s8 + $0x38] sm:$0xf]  ;;  %v9913_v7 = vld [vmem:[%s20362_s8] sm:$0xff]  ;;  %v9914_v32 = vld [vmem:[%s20362_s8 + $0x8] sm:$0xf] }
 0x535   : > { %13946 = vmatpush3.bf16.msk.msra.mxu0 %vm18789_vm12, %v13944_v46  ;;  %13506 = vmatprep.mubr.msk.f32.mxu0 %vm14315_vm13, %v20954_v55  ;;  %v13984_v46 = vpack.c.bf16 %v7471_v20, %v7470_v5  ;;  %v9923_v5 = vld [vmem:[%s20362_s8 + $0x50] sm:$0xff]  ;;  %v9924_v20 = vld [vmem:[%s20362_s8 + $0x58] sm:$0xf] }
 0x536   : > { %13472 = vmatmul.mubr.msk.f32.vlgmr.msra.gmra.mrb[12].mxu1 %vm7480_vm15, %v19246_v13  ;;  %13951 = vmatprep.subr.bf16.mxu0 %v20966_v22 }
 0x537   : > { %13934 = vmatpush3.bf16.msk.msra.mxu1 %vm18789_vm12, %v13932_v10  ;;  %13485 = vmatprep.mubr.msk.f32.mxu1 %vm14315_vm13, %v20954_v55  ;;  %v13972_v10 = vpack.c.bf16 %v7465_v12, %v7464_v36  ;;  %v9917_v36 = vld [vmem:[%s20362_s8 + $0x20] sm:$0xff]  ;;  %v9918_v12 = vld [vmem:[%s20362_s8 + $0x28] sm:$0xf] }
 0x538   : > { %13939 = vmatprep.subr.bf16.mxu1 %v20966_v22  ;;  %13507 = vmatmul.mubr.msk.f32.vlgmr.msra.gmra.mrb[24].mxu0 %vm7480_vm15, %v19268_v29 }
 0x539   : > { %13954 = vmatpush3.bf16.msk.msra.mxu0 %vm18789_vm12, %v13952_v60  ;;  %13520 = vmatprep.mubr.msk.f32.mxu0 %vm14315_vm13, %v20954_v55  ;;  %v13992_v60 = vpack.c.bf16 %v7475_v59, %v7474_v25  ;;  %v9928_v25 = vld [vmem:[%s20362_s8 + $0x78] sm:$0xf]  ;;  %v14012_v59 = vpack.c.bf16 %v9918_v12, %v9917_v36 }
 0x53a   : > { %13486 = vmatmul.mubr.msk.f32.vlgmr.msra.gmra.mrb[14].mxu1 %vm7480_vm15, %v19257_v35  ;;  %13959 = vmatprep.subr.bf16.mxu0 %v20966_v22  ;;  %v9952_v36 = vld [vmem:[%s20362_s8 + $0x138] sm:$0xf] }
 0x53b   : > { %13942 = vmatpush3.bf16.msk.msra.mxu1 %vm18789_vm12, %v13940_v31  ;;  %13499 = vmatprep.mubr.msk.f32.mxu1 %vm14315_vm13, %v20954_v55  ;;  %v13980_v31 = vpack.c.bf16 %v7469_v21, %v7468_v17  ;;  %v9922_v17 = vld [vmem:[%s20362_s8 + $0x48] sm:$0xf] }
 0x53c   : > { %13947 = vmatprep.subr.bf16.mxu1 %v20966_v22  ;;  %13521 = vmatmul.mubr.msk.f32.vlgmr.msra.gmra.mrb[26].mxu0 %vm7480_vm15, %v19278_v41 }
 0x53d   : > { %13962 = vmatpush3.bf16.msk.msra.mxu0 %vm18789_vm12, %v13960_v56  ;;  %13534 = vmatprep.mubr.msk.f32.mxu0 %vm14315_vm13, %v20954_v55  ;;  %v14000_v56 = vpack.c.bf16 %v7479_v26, %v7478_v63  ;;  %v9932_v63 = vld [vmem:[%s20362_s8 + $0x98] sm:$0xf] }
 0x53e   : > { %13500 = vmatmul.mubr.msk.f32.vlgmr.msra.gmra.mrb[16].mxu1 %vm7480_vm15, %v19272_v18  ;;  %13967 = vmatprep.subr.bf16.mxu0 %v20966_v22 }
 0x53f   : > { %13950 = vmatpush3.bf16.msk.msra.mxu1 %vm18789_vm12, %v13948_v37  ;;  %13513 = vmatprep.mubr.msk.f32.mxu1 %vm14315_vm13, %v20954_v55  ;;  %v13988_v37 = vpack.c.bf16 %v7473_v52, %v7472_v2  ;;  %v9926_v2 = vld [vmem:[%s20362_s8 + $0x68] sm:$0xf] }
 0x540   : > { %13955 = vmatprep.subr.bf16.mxu1 %v20966_v22  ;;  %13535 = vmatmul.mubr.msk.f32.vlgmr.msra.gmra.mrb[28].mxu0 %vm7480_vm15, %v19297_v57 }
 0x541   : > { %13970 = vmatpush3.bf16.msk.msra.mxu0 %vm18789_vm12, %v13968_v42  ;;  %13548 = vmatprep.mubr.msk.f32.mxu0 %vm14315_vm13, %v20954_v55  ;;  %v14008_v42 = vpack.c.bf16 %v9916_v62, %v9915_v11  ;;  %v9930_v62 = vld [vmem:[%s20362_s8 + $0x88] sm:$0xf] }
 0x542   : > { %13514 = vmatmul.mubr.msk.f32.vlgmr.msra.gmra.mrb[18].mxu1 %vm7480_vm15, %v19293_v9  ;;  %13975 = vmatprep.subr.bf16.mxu0 %v20966_v22 }
 0x543   : > { %13958 = vmatpush3.bf16.msk.msra.mxu1 %vm18789_vm12, %v13956_v19  ;;  %13527 = vmatprep.mubr.msk.f32.mxu1 %vm14315_vm13, %v20954_v55  ;;  %v13996_v19 = vpack.c.bf16 %v7477_v40, %v7476_v48  ;;  %v9940_v48 = vld [vmem:[%s20362_s8 + $0xd8] sm:$0xf] }
 0x544   : > { %13963 = vmatprep.subr.bf16.mxu1 %v20966_v22  ;;  %13549 = vmatmul.mubr.msk.f32.vlgmr.msra.gmra.mrb[30].mxu0 %vm7480_vm15, %v19358_v14 }
 0x545   : > { %13978 = vmatpush3.bf16.msk.msra.mxu0 %vm18789_vm12, %v13976_v24  ;;  %13562 = vmatprep.mubr.msk.f32.mxu0 %vm14315_vm13, %v20954_v55  ;;  %v14016_v24 = vpack.c.bf16 %v9920_v28, %v9919_v4  ;;  %v9944_v28 = vld [vmem:[%s20362_s8 + $0xf8] sm:$0xf] }
 0x546   : > { %13528 = vmatmul.mubr.msk.f32.vlgmr.msra.gmra.mrb[20].mxu1 %vm7480_vm15, %v19308_v1  ;;  %13983 = vmatprep.subr.bf16.mxu0 %v20966_v22 }
 0x547   : > { %13966 = vmatpush3.bf16.msk.msra.mxu1 %vm18789_vm12, %v13964_v51  ;;  %13541 = vmatprep.mubr.msk.f32.mxu1 %vm14315_vm13, %v20954_v55  ;;  %v14004_v51 = vpack.c.bf16 %v9914_v32, %v9913_v7  ;;  %v9938_v7 = vld [vmem:[%s20362_s8 + $0xc8] sm:$0xf] }
 0x548   : > { %13971 = vmatprep.subr.bf16.mxu1 %v20966_v22  ;;  %13563 = vmatmul.mubr.msk.f32.vlgmr.msra.gmra.mrb[32].mxu0 %vm7480_vm15, %v19331_v23 }
 0x549   : > { %13986 = vmatpush3.bf16.msk.msra.mxu0 %vm18789_vm12, %v13984_v46  ;;  %13576 = vmatprep.mubr.msk.f32.mxu0 %vm14315_vm13, %v20954_v55  ;;  %v14024_v46 = vpack.c.bf16 %v9924_v20, %v9923_v5  ;;  %v9942_v20 = vld [vmem:[%s20362_s8 + $0xe8] sm:$0xf] }
 0x54a   : > { %13542 = vmatmul.mubr.msk.f32.vlgmr.msra.gmra.mrb[22].mxu1 %vm7480_vm15, %v19315_v54  ;;  %13991 = vmatprep.subr.bf16.mxu0 %v20966_v22 }
 0x54b   : > { %13974 = vmatpush3.bf16.msk.msra.mxu1 %vm18789_vm12, %v13972_v10  ;;  %13555 = vmatprep.mubr.msk.f32.mxu1 %vm14315_vm13, %v20954_v55  ;;  %v9921_v10 = vld [vmem:[%s20362_s8 + $0x40] sm:$0xff] }
 0x54c   : > { %13979 = vmatprep.subr.bf16.mxu1 %v20966_v22  ;;  %13577 = vmatmul.mubr.msk.f32.vlgmr.msra.gmra.mrb[34].mxu0 %vm7480_vm15, %v19345_v30  ;;  %v14020_v26 = vpack.c.bf16 %v9922_v17, %v9921_v10  ;;  %v9950_v10 = vld [vmem:[%s20362_s8 + $0x128] sm:$0xf] }
 0x54d   : > { %13994 = vmatpush3.bf16.msk.msra.mxu0 %vm18789_vm12, %v13992_v60  ;;  %13590 = vmatprep.mubr.msk.f32.mxu0 %vm14315_vm13, %v20954_v55  ;;  %v21008_v60 = vld [vmem:[#allocation113_spill] sm:$0xff] }
 0x54e   : > { %13556 = vmatmul.mubr.msk.f32.vlgmr.msra.gmra.mrb[24].mxu1 %vm7480_vm15, %v19338_v49  ;;  %13999 = vmatprep.subr.bf16.mxu0 %v20966_v22 }
 0x54f   : > { %13982 = vmatpush3.bf16.msk.msra.mxu1 %vm18789_vm12, %v13980_v31  ;;  %13569 = vmatprep.mubr.msk.f32.mxu1 %vm14315_vm13, %v20954_v55  ;;  %v9925_v31 = vld [vmem:[%s20362_s8 + $0x60] sm:$0xff] }
 0x550   : > { %13987 = vmatprep.subr.bf16.mxu1 %v20966_v22  ;;  %13591 = vmatmul.mubr.msk.f32.vlgmr.msra.gmra.mrb[36].mxu0 %vm7480_vm15, %v19372_v61  ;;  %v14028_v11 = vpack.c.bf16 %v9926_v2, %v9925_v31  ;;  %v9958_v2 = vld [vmem:[%s20362_s8 + $0x168] sm:$0xf] }
 0x551   : > { %14002 = vmatpush3.bf16.msk.msra.mxu0 %vm18789_vm12, %v14000_v56  ;;  %13604 = vmatprep.mubr.msk.f32.mxu0 %vm14315_vm13, %v20954_v55  ;;  %v9936_v56 = vld [vmem:[%s20362_s8 + $0xb8] sm:$0xf] }
 0x552   : > { %13570 = vmatmul.mubr.msk.f32.vlgmr.msra.gmra.mrb[26].mxu1 %vm7480_vm15, %v19365_v16  ;;  %14007 = vmatprep.subr.bf16.mxu0 %v20966_v22 }
 0x553   : > { %13990 = vmatpush3.bf16.msk.msra.mxu1 %vm18789_vm12, %v13988_v37  ;;  %13583 = vmatprep.mubr.msk.f32.mxu1 %vm14315_vm13, %v20954_v55 }
 0x554   : > { %13995 = vmatprep.subr.bf16.mxu1 %v20966_v22  ;;  %13605 = vmatmul.mubr.msk.f32.vlgmr.msra.gmra.mrb[38].mxu0 %vm7480_vm15, %v19421_v53 }
 0x555   : > { %14010 = vmatpush3.bf16.msk.msra.mxu0 %vm18789_vm12, %v14008_v42  ;;  %13618 = vmatprep.mubr.msk.f32.mxu0 %vm14315_vm13, %v20954_v55  ;;  %v9934_v42 = vld [vmem:[%s20362_s8 + $0xa8] sm:$0xf] }
 0x556   : > { %13584 = vmatmul.mubr.msk.f32.vlgmr.msra.gmra.mrb[28].mxu1 %vm7480_vm15, %v19388_v43  ;;  %14015 = vmatprep.subr.bf16.mxu0 %v20966_v22 }
 0x557   : > { %13998 = vmatpush3.bf16.msk.msra.mxu1 %vm18789_vm12, %v13996_v19  ;;  %13597 = vmatprep.mubr.msk.f32.mxu1 %vm14315_vm13, %v20954_v55 }
 0x558   : > { %14003 = vmatprep.subr.bf16.mxu1 %v20966_v22  ;;  %13619 = vmatmul.mubr.msk.f32.vlgmr.msra.gmra.mrb[40].mxu0 %vm7480_vm15, %v19129_v45  ;;  %v9927_v45 = vld [vmem:[%s20362_s8 + $0x70] sm:$0xff] }
 0x559   : > { %14018 = vmatpush3.bf16.msk.msra.mxu0 %vm18789_vm12, %v14016_v24  ;;  %13632 = vmatprep.mubr.msk.f32.mxu0 %vm14315_vm13, %v20954_v55  ;;  %v14032_v21 = vpack.c.bf16 %v9928_v25, %v9927_v45  ;;  %v9948_v24 = vld [vmem:[%s20362_s8 + $0x118] sm:$0xf] }
 0x55a   : > { %13598 = vmatmul.mubr.msk.f32.vlgmr.msra.gmra.mrb[30].mxu1 %vm7480_vm15, %v19399_v27  ;;  %14023 = vmatprep.subr.bf16.mxu0 %v20966_v22  ;;  %v9956_v25 = vld [vmem:[%s20362_s8 + $0x158] sm:$0xf] }
 0x55b   : > { %14006 = vmatpush3.bf16.msk.msra.mxu1 %vm18789_vm12, %v14004_v51  ;;  %13611 = vmatprep.mubr.msk.f32.mxu1 %vm14315_vm13, %v20954_v55 }
 0x55c   : > { %14011 = vmatprep.subr.bf16.mxu1 %v20966_v22  ;;  %13633 = vmatmul.mubr.msk.f32.vlgmr.msra.gmra.mrb[42].mxu0 %vm7480_vm15, %v19156_v33  ;;  %v9931_v33 = vld [vmem:[%s20362_s8 + $0x90] sm:$0xff] }
 0x55d   : > { %14026 = vmatpush3.bf16.msk.msra.mxu0 %vm18789_vm12, %v14024_v46  ;;  %13646 = vmatprep.mubr.msk.f32.mxu0 %vm14315_vm13, %v20954_v55  ;;  %v14040_v52 = vpack.c.bf16 %v9932_v63, %v9931_v33  ;;  %v9946_v46 = vld [vmem:[%s20362_s8 + $0x108] sm:$0xf] }
 0x55e   : > { %13612 = vmatmul.mubr.msk.f32.vlgmr.msra.gmra.mrb[32].mxu1 %vm7480_vm15, %v21008_v60  ;;  %14031 = vmatprep.subr.bf16.mxu0 %v20966_v22  ;;  %v9954_v33 = vld [vmem:[%s20362_s8 + $0x148] sm:$0xf] }
 0x55f   : > { %14014 = vmatpush3.bf16.msk.msra.mxu1 %vm18789_vm12, %v14012_v59  ;;  %13625 = vmatprep.mubr.msk.f32.mxu1 %vm14315_vm13, %v20954_v55 }
 0x560   : > { %14019 = vmatprep.subr.bf16.mxu1 %v20966_v22  ;;  %13647 = vmatmul.mubr.msk.f32.vlgmr.msra.gmra.mrb[44].mxu0 %vm7480_vm15, %v19178_v38  ;;  %v9935_v38 = vld [vmem:[%s20362_s8 + $0xb0] sm:$0xff] }
 0x561   : > { %14034 = vmatpush3.bf16.msk.msra.mxu0 %vm18789_vm12, %v14032_v21  ;;  %13660 = vmatprep.mubr.msk.f32.mxu0 %vm14315_vm13, %v20954_v55  ;;  %v14048_v37 = vpack.c.bf16 %v9936_v56, %v9935_v38  ;;  %v9960_v21 = vld [vmem:[%s20362_s8 + $0x178] sm:$0xf] }
 0x562   : > { %13626 = vmatmul.mubr.msk.f32.vlgmr.msra.gmra.mrb[34].mxu1 %vm7480_vm15, %v19141_v34  ;;  %14039 = vmatprep.subr.bf16.mxu0 %v20966_v22  ;;  %v9929_v34 = vld [vmem:[%s20362_s8 + $0x80] sm:$0xff]  ;;  %v9968_v38 = vld [vmem:[%s20362_s8 + $0x1b8] sm:$0xf] }
 0x563   : > { %14022 = vmatpush3.bf16.msk.msra.mxu1 %vm18789_vm12, %v14020_v26  ;;  %13639 = vmatprep.mubr.msk.f32.mxu1 %vm14315_vm13, %v20954_v55  ;;  %v14036_v40 = vpack.c.bf16 %v9930_v62, %v9929_v34  ;;  %v9964_v26 = vld [vmem:[%s20362_s8 + $0x198] sm:$0xf] }
 0x564   : > { %14027 = vmatprep.subr.bf16.mxu1 %v20966_v22  ;;  %13661 = vmatmul.mubr.msk.f32.vlgmr.msra.gmra.mrb[46].mxu0 %vm7480_vm15, %v19222_v0  ;;  %v9939_v0 = vld [vmem:[%s20362_s8 + $0xd0] sm:$0xff]  ;;  %v9972_v62 = vld [vmem:[%s20362_s8 + $0x1d8] sm:$0xf] }
 0x565   : > { %14042 = vmatpush3.bf16.msk.msra.mxu0 %vm18789_vm12, %v14040_v52  ;;  %13674 = vmatprep.mubr.msk.f32.mxu0 %vm14315_vm13, %v20954_v55  ;;  %v14056_v4 = vpack.c.bf16 %v9940_v48, %v9939_v0  ;;  %v9966_v0 = vld [vmem:[%s20362_s8 + $0x1a8] sm:$0xf] }
 0x566   : > { %13640 = vmatmul.mubr.msk.f32.vlgmr.msra.gmra.mrb[36].mxu1 %vm7480_vm15, %v19166_v47  ;;  %14047 = vmatprep.subr.bf16.mxu0 %v20966_v22  ;;  %v9933_v47 = vld [vmem:[%s20362_s8 + $0xa0] sm:$0xff] }
 0x567   : > { %14030 = vmatpush3.bf16.msk.msra.mxu1 %vm18789_vm12, %v14028_v11  ;;  %13653 = vmatprep.mubr.msk.f32.mxu1 %vm14315_vm13, %v20954_v55  ;;  %v14044_v19 = vpack.c.bf16 %v9934_v42, %v9933_v47  ;;  %v9962_v11 = vld [vmem:[%s20362_s8 + $0x188] sm:$0xf] }
 0x568   : > { %14035 = vmatprep.subr.bf16.mxu1 %v20966_v22  ;;  %13675 = vmatmul.mubr.msk.f32.vlgmr.msra.gmra.mrb[48].mxu0 %vm7480_vm15, %v19195_v8  ;;  %v9943_v8 = vld [vmem:[%s20362_s8 + $0xf0] sm:$0xff]  ;;  %v9970_v42 = vld [vmem:[%s20362_s8 + $0x1c8] sm:$0xf] }
 0x569   : > { %14050 = vmatpush3.bf16.msk.msra.mxu0 %vm18789_vm12, %v14048_v37  ;;  %13688 = vmatprep.mubr.msk.f32.mxu0 %vm14315_vm13, %v20954_v55  ;;  %v14064_v32 = vpack.c.bf16 %v9944_v28, %v9943_v8  ;;  %v9973_v8 = vld [vmem:[%s20362_s8 + $0x1e0] sm:$0xff] }
 0x56a   : > { %13654 = vmatmul.mubr.msk.f32.vlgmr.msra.gmra.mrb[38].mxu1 %vm7480_vm15, %v19185_v58  ;;  %14055 = vmatprep.subr.bf16.mxu0 %v20966_v22  ;;  %v9937_v58 = vld [vmem:[%s20362_s8 + $0xc0] sm:$0xff] }
 0x56b   : > { %14038 = vmatpush3.bf16.msk.msra.mxu1 %vm18789_vm12, %v14036_v40  ;;  %13667 = vmatprep.mubr.msk.f32.mxu1 %vm14315_vm13, %v20954_v55  ;;  %v14052_v5 = vpack.c.bf16 %v9938_v7, %v9937_v58  ;;  %v9976_v40 = vld [vmem:[%s20362_s8 + $0x1f8] sm:$0xf] }
 0x56c   : > { %14043 = vmatprep.subr.bf16.mxu1 %v20966_v22  ;;  %13689 = vmatmul.mubr.msk.f32.vlgmr.msra.gmra.mrb[50].mxu0 %vm7480_vm15, %v19209_v50  ;;  %v9947_v50 = vld [vmem:[%s20362_s8 + $0x110] sm:$0xff] }
 0x56d   : > { %14058 = vmatpush3.bf16.msk.msra.mxu0 %vm18789_vm12, %v14056_v4  ;;  %13702 = vmatprep.mubr.msk.f32.mxu0 %vm14315_vm13, %v20954_v55  ;;  %v14072_v51 = vpack.c.bf16 %v9948_v24, %v9947_v50 }
 0x56e   : > { %13668 = vmatmul.mubr.msk.f32.vlgmr.msra.gmra.mrb[40].mxu1 %vm7480_vm15, %v19202_v3  ;;  %14063 = vmatprep.subr.bf16.mxu0 %v20966_v22  ;;  %v9941_v3 = vld [vmem:[%s20362_s8 + $0xe0] sm:$0xff] }
 0x56f   : > { %14046 = vmatpush3.bf16.msk.msra.mxu1 %vm18789_vm12, %v14044_v19  ;;  %13681 = vmatprep.mubr.msk.f32.mxu1 %vm14315_vm13, %v20954_v55  ;;  %v14060_v12 = vpack.c.bf16 %v9942_v20, %v9941_v3 }
 0x570   : > { %14051 = vmatprep.subr.bf16.mxu1 %v20966_v22  ;;  %13703 = vmatmul.mubr.msk.f32.vlgmr.msra.gmra.mrb[52].mxu0 %vm7480_vm15, %v19236_v39  ;;  %v9951_v39 = vld [vmem:[%s20362_s8 + $0x130] sm:$0xff] }
 0x571   : > { %14066 = vmatpush3.bf16.msk.msra.mxu0 %vm18789_vm12, %v14064_v32  ;;  %13716 = vmatprep.mubr.msk.f32.mxu0 %vm14315_vm13, %v20954_v55  ;;  %v14080_v45 = vpack.c.bf16 %v9952_v36, %v9951_v39 }
 0x572   : > { %13682 = vmatmul.mubr.msk.f32.vlgmr.msra.gmra.mrb[42].mxu1 %vm7480_vm15, %v19229_v44  ;;  %14071 = vmatprep.subr.bf16.mxu0 %v20966_v22  ;;  %v9945_v44 = vld [vmem:[%s20362_s8 + $0x100] sm:$0xff] }
 0x573   : > { %14054 = vmatpush3.bf16.msk.msra.mxu1 %vm18789_vm12, %v14052_v5  ;;  %13695 = vmatprep.mubr.msk.f32.mxu1 %vm14315_vm13, %v20954_v55  ;;  %v14068_v59 = vpack.c.bf16 %v9946_v46, %v9945_v44  ;;  %v12760_v44 = vld [vmem:[%s20360_s6] sm:$0xff] }
 0x574   : > { %14059 = vmatprep.subr.bf16.mxu1 %v20966_v22  ;;  %13717 = vmatmul.mubr.msk.f32.vlgmr.msra.gmra.mrb[54].mxu0 %vm7480_vm15, %v19287_v6  ;;  %v9955_v6 = vld [vmem:[%s20362_s8 + $0x150] sm:$0xff] }
 0x575   : > { %14074 = vmatpush3.bf16.msk.msra.mxu0 %vm18789_vm12, %v14072_v51  ;;  %13730 = vmatprep.mubr.msk.f32.mxu0 %vm14315_vm13, %v20954_v55  ;;  %v14088_v17 = vpack.c.bf16 %v9956_v25, %v9955_v6 }
 0x576   : > { %13696 = vmatmul.mubr.msk.f32.vlgmr.msra.gmra.mrb[44].mxu1 %vm7480_vm15, %v19246_v13  ;;  %14079 = vmatprep.subr.bf16.mxu0 %v20966_v22  ;;  %v9949_v13 = vld [vmem:[%s20362_s8 + $0x120] sm:$0xff] }
 0x577   : > { %14062 = vmatpush3.bf16.msk.msra.mxu1 %vm18789_vm12, %v14060_v12  ;;  %13709 = vmatprep.mubr.msk.f32.mxu1 %vm14315_vm13, %v20954_v55  ;;  %v14076_v60 = vpack.c.bf16 %v9950_v10, %v9949_v13 }
 0x578   : > { %14067 = vmatprep.subr.bf16.mxu1 %v20966_v22  ;;  %13731 = vmatmul.mubr.msk.f32.vlgmr.msra.gmra.mrb[56].mxu0 %vm7480_vm15, %v19268_v29  ;;  %v9959_v29 = vld [vmem:[%s20362_s8 + $0x170] sm:$0xff] }
 0x579   : > { %14082 = vmatpush3.bf16.msk.msra.mxu0 %vm18789_vm12, %v14080_v45  ;;  %13744 = vmatprep.mubr.msk.f32.mxu0 %vm14315_vm13, %v20954_v55  ;;  %v14096_v63 = vpack.c.bf16 %v9960_v21, %v9959_v29 }
 0x57a   : > { %13710 = vmatmul.mubr.msk.f32.vlgmr.msra.gmra.mrb[46].mxu1 %vm7480_vm15, %v19257_v35  ;;  %14087 = vmatprep.subr.bf16.mxu0 %v20966_v22  ;;  %v9953_v35 = vld [vmem:[%s20362_s8 + $0x140] sm:$0xff] }
 0x57b   : > { %14070 = vmatpush3.bf16.msk.msra.mxu1 %vm18789_vm12, %v14068_v59  ;;  %13723 = vmatprep.mubr.msk.f32.mxu1 %vm14315_vm13, %v20954_v55  ;;  %v14084_v31 = vpack.c.bf16 %v9954_v33, %v9953_v35 }
 0x57c   : > { %14075 = vmatprep.subr.bf16.mxu1 %v20966_v22  ;;  %13745 = vmatmul.mubr.msk.f32.vlgmr.msra.gmra.mrb[58].mxu0 %vm7480_vm15, %v19278_v41  ;;  %v9963_v41 = vld [vmem:[%s20362_s8 + $0x190] sm:$0xff] }
 0x57d   : > { %14090 = vmatpush3.bf16.msk.msra.mxu0 %vm18789_vm12, %v14088_v17  ;;  %13758 = vmatprep.mubr.msk.f32.mxu0 %vm14315_vm13, %v20954_v55  ;;  %v14104_v52 = vpack.c.bf16 %v9964_v26, %v9963_v41 }
 0x57e   : > { %13724 = vmatmul.mubr.msk.f32.vlgmr.msra.gmra.mrb[48].mxu1 %vm7480_vm15, %v19272_v18  ;;  %14095 = vmatprep.subr.bf16.mxu0 %v20966_v22  ;;  %v9957_v18 = vld [vmem:[%s20362_s8 + $0x160] sm:$0xff] }
 0x57f   : > { %14078 = vmatpush3.bf16.msk.msra.mxu1 %vm18789_vm12, %v14076_v60  ;;  %13737 = vmatprep.mubr.msk.f32.mxu1 %vm14315_vm13, %v20954_v55  ;;  %v14092_v56 = vpack.c.bf16 %v9958_v2, %v9957_v18 }
 0x580   : > { %14083 = vmatprep.subr.bf16.mxu1 %v20966_v22  ;;  %13759 = vmatmul.mubr.msk.f32.vlgmr.msra.gmra.mrb[60].mxu0 %vm7480_vm15, %v19297_v57  ;;  %v9967_v57 = vld [vmem:[%s20362_s8 + $0x1b0] sm:$0xff] }
 0x581   : > { %14098 = vmatpush3.bf16.msk.msra.mxu0 %vm18789_vm12, %v14096_v63  ;;  %13772 = vmatprep.mubr.msk.f32.mxu0 %vm14315_vm13, %v20954_v55  ;;  %v14112_v34 = vpack.c.bf16 %v9968_v38, %v9967_v57 }
 0x582   : > { %13738 = vmatmul.mubr.msk.f32.vlgmr.msra.gmra.mrb[50].mxu1 %vm7480_vm15, %v19293_v9  ;;  %14103 = vmatprep.subr.bf16.mxu0 %v20966_v22  ;;  %v9961_v9 = vld [vmem:[%s20362_s8 + $0x180] sm:$0xff] }
 0x583   : > { %14086 = vmatpush3.bf16.msk.msra.mxu1 %vm18789_vm12, %v14084_v31  ;;  %13751 = vmatprep.mubr.msk.f32.mxu1 %vm14315_vm13, %v20954_v55  ;;  %v14100_v37 = vpack.c.bf16 %v9962_v11, %v9961_v9 }
 0x584   : > { %14091 = vmatprep.subr.bf16.mxu1 %v20966_v22  ;;  %13773 = vmatmul.mubr.msk.f32.vlgmr.msra.gmra.mrb[62].mxu0 %vm7480_vm15, %v19358_v14  ;;  %v9971_v14 = vld [vmem:[%s20362_s8 + $0x1d0] sm:$0xff] }
 0x585   : > { %14106 = vmatpush3.bf16.msk.msra.mxu0 %vm18789_vm12, %v14104_v52  ;;  %13786 = vmatprep.mubr.msk.f32.mxu0 %vm14315_vm13, %v20954_v55  ;;  %v14120_v48 = vpack.c.bf16 %v9972_v62, %v9971_v14 }
 0x586   : > { %13752 = vmatmul.mubr.msk.f32.vlgmr.msra.gmra.mrb[52].mxu1 %vm7480_vm15, %v19308_v1  ;;  %14111 = vmatprep.subr.bf16.mxu0 %v20966_v22  ;;  %v9965_v1 = vld [vmem:[%s20362_s8 + $0x1a0] sm:$0xff] }
 0x587   : > { %14094 = vmatpush3.bf16.msk.msra.mxu1 %vm18789_vm12, %v14092_v56  ;;  %13765 = vmatprep.mubr.msk.f32.mxu1 %vm14315_vm13, %v20954_v55  ;;  %v14108_v47 = vpack.c.bf16 %v9966_v0, %v9965_v1 }
 0x588   : > { %14099 = vmatprep.subr.bf16.mxu1 %v20966_v22  ;;  %13787 = vmatmul.mubr.msk.f32.vlgmr.msra.gmra.mrb[64].mxu0 %vm7480_vm15, %v19331_v23  ;;  %v9975_v23 = vld [vmem:[%s20362_s8 + $0x1f0] sm:$0xff] }
 0x589   : > { %14114 = vmatpush3.bf16.msk.msra.mxu0 %vm18789_vm12, %v14112_v34  ;;  %13800 = vmatprep.mubr.msk.f32.mxu0 %vm14315_vm13, %v20954_v55  ;;  %v14128_v4 = vpack.c.bf16 %v9976_v40, %v9975_v23 }
 0x58a   : > { %13766 = vmatmul.mubr.msk.f32.vlgmr.msra.gmra.mrb[54].mxu1 %vm7480_vm15, %v19315_v54  ;;  %14119 = vmatprep.subr.bf16.mxu0 %v20966_v22  ;;  %v9969_v54 = vld [vmem:[%s20362_s8 + $0x1c0] sm:$0xff] }
 0x58b   : > { %14102 = vmatpush3.bf16.msk.msra.mxu1 %vm18789_vm12, %v14100_v37  ;;  %13779 = vmatprep.mubr.msk.f32.mxu1 %vm14315_vm13, %v20954_v55 }
 0x58c   : > { %14107 = vmatprep.subr.bf16.mxu1 %v20966_v22  ;;  %13801 = vmatmul.mubr.msk.f32.vlgmr.msra.gmra.mrb[66].mxu0 %vm7480_vm15, %v19345_v30  ;;  %v14116_v30 = vpack.c.bf16 %v9970_v42, %v9969_v54 }
 0x58d   : > { %14122 = vmatpush3.bf16.msk.msra.mxu0 %vm18789_vm12, %v14120_v48  ;;  %13814 = vmatprep.mubr.msk.f32.mxu0 %vm14315_vm13, %v20954_v55 }
 0x58e   : > { %13780 = vmatmul.mubr.msk.f32.vlgmr.msra.gmra.mrb[56].mxu1 %vm7480_vm15, %v19338_v49  ;;  %14127 = vmatprep.subr.bf16.mxu0 %v20966_v22  ;;  %v9974_v49 = vld [vmem:[%s20362_s8 + $0x1e8] sm:$0xf] }
 0x58f   : > { %14110 = vmatpush3.bf16.msk.msra.mxu1 %vm18789_vm12, %v14108_v47  ;;  %13793 = vmatprep.mubr.msk.f32.mxu1 %vm14315_vm13, %v20954_v55 }
 0x590   : > { %14115 = vmatprep.subr.bf16.mxu1 %v20966_v22  ;;  %13815 = vmatmul.mubr.msk.f32.vlgmr.msra.gmra.mrb[68].mxu0 %vm7480_vm15, %v19372_v61  ;;  %v14124_v61 = vpack.c.bf16 %v9974_v49, %v9973_v8 }
 0x591   : > { %14130 = vmatpush3.bf16.msk.msra.mxu0 %vm18789_vm12, %v14128_v4  ;;  %13828 = vmatprep.mubr.msk.f32.mxu0 %vm14315_vm13, %v20954_v55 }
 0x592   : > { %13794 = vmatmul.mubr.msk.f32.vlgmr.msra.gmra.mrb[58].mxu1 %vm7480_vm15, %v19365_v16 }
 0x593   : > { %14118 = vmatpush3.bf16.msk.msra.mxu1 %vm18789_vm12, %v14116_v30  ;;  %13807 = vmatprep.mubr.msk.f32.mxu1 %vm14315_vm13, %v20954_v55 }
 0x594   : > { %14123 = vmatprep.subr.bf16.mxu1 %v20966_v22  ;;  %13829 = vmatmul.mubr.msk.f32.vlgmr.msra.gmra.mrb[70].mxu0 %vm7480_vm15, %v19421_v53 }
 0x596   : > { %13808 = vmatmul.mubr.msk.f32.vlgmr.msra.gmra.mrb[60].mxu1 %vm7480_vm15, %v19388_v43 }
 0x597   : > { %14126 = vmatpush3.bf16.msk.msra.mxu1 %vm18789_vm12, %v14124_v61  ;;  %13821 = vmatprep.mubr.msk.f32.mxu1 %vm14315_vm13, %v20954_v55 }
 0x59a   : > { %13822 = vmatmul.mubr.msk.f32.vlgmr.msra.gmra.mrb[62].mxu1 %vm7480_vm15, %v19399_v27 }
 0x59b   : > { %13847 = vmatprep.mubr.msk.f32.mxu1 %vm6661_vm10, %v12760_v44 }
 0x5e3   : > { %v20104_v16 = vpop.f32.mrb[8].mxu0 }
 0x5e4   : > { %v13389_v28 = vpop.f32.mrb[9].mxu0 }
 0x5e7   : > { %v20106_v19 = vpop.f32.mrb[10].mxu0 }
 0x5e8   : > { %v13396_v22 = vpop.f32.mrb[11].mxu0  ;;  %v12474_v49 = vrot.slane %v20106_v19, 1 }
 0x5ed   : > { %v20108_v58 = vpop.f32.mrb[0].mxu1  ;;  %v20110_v7 = vpop.f32.mrb[12].mxu0 }
 0x5ee   : > { %v13410_v53 = vpop.f32.mrb[1].mxu1  ;;  %v13403_v43 = vpop.f32.mrb[13].mxu0 }
 0x5f1   : > { %v20112_v15 = vpop.f32.mrb[2].mxu1 }
 0x5f2   : > { %v13417_v32 = vpop.f32.mrb[3].mxu1 }
 0x5f3   : > { %v20114_v50 = vpop.f32.mrb[14].mxu0 }
 0x5f4   : > { %v13438_v55 = vpop.f32.mrb[15].mxu0 }
 0x5f5   : > { %v12476_v55 = vrot.slane %v20108_v58, 1 }
 0x5f6   : > { %v20116_v24 = vpop.f32.mrb[4].mxu1 }
 0x5f7   : > { %v13424_v27 = vpop.f32.mrb[5].mxu1 }
 0x5f9   : > { %v20118_v5 = vpop.f32.mrb[16].mxu0 }
 0x5fa   : > { %v13452_v3 = vpop.f32.mrb[17].mxu0 }
 0x5fc   : > { %v20120_v20 = vpop.f32.mrb[6].mxu1 }
 0x5fd   : > { %v13431_v51 = vpop.f32.mrb[7].mxu1 }
 0x5ff   : > { %v20122_v39 = vpop.f32.mrb[18].mxu0 }
 0x600   : > { %v13466_v36 = vpop.f32.mrb[19].mxu0 }
 0x601   : > { %v20124_v12 = vpop.f32.mrb[8].mxu1  ;;  %v12473_v36 = vrot.slane %v20104_v16, 1 }
 0x602   : > { %v13445_v46 = vpop.f32.mrb[9].mxu1 }
 0x603   : > { %v20130_v45 = vpop.f32.mrb[20].mxu0 }
 0x604   : > { %v13480_v6 = vpop.f32.mrb[21].mxu0 }
 0x605   : > { %v20132_v25 = vpop.f32.mrb[10].mxu1 }
 0x606   : > { %v13459_v59 = vpop.f32.mrb[11].mxu1 }
 0x607   : > { %v20134_v13 = vpop.f32.mrb[22].mxu0 }
 0x608   : > { %v13494_v10 = vpop.f32.mrb[23].mxu0 }
 0x609   : > { %v20136_v17 = vpop.f32.mrb[12].mxu1 }
 0x60a   : > { %v13473_v29 = vpop.f32.mrb[13].mxu1 }
 0x60b   : > { %v20138_v21 = vpop.f32.mrb[24].mxu0 }
 0x60c   : > { %v13508_v60 = vpop.f32.mrb[25].mxu0 }
 0x60d   : > { %v20140_v35 = vpop.f32.mrb[14].mxu1 }
 0x60e   : > { %v13487_v33 = vpop.f32.mrb[15].mxu1 }
 0x60f   : > { %v20142_v63 = vpop.f32.mrb[26].mxu0 }
 0x610   : > { %v13522_v41 = vpop.f32.mrb[27].mxu0 }
 0x611   : > { %v20144_v26 = vpop.f32.mrb[16].mxu1 }
 0x612   : > { %v13501_v31 = vpop.f32.mrb[17].mxu1 }
 0x613   : > { %v20146_v18 = vpop.f32.mrb[28].mxu0  ;;  %v12475_v31 = vrot.slane %v20110_v7, 1 }
 0x614   : > { %v13536_v2 = vpop.f32.mrb[29].mxu0 }
 0x615   : > { %v20148_v52 = vpop.f32.mrb[18].mxu1  ;;  %v12478_v2 = vrot.slane %v20116_v24, 1 }
 0x616   : > { %v13515_v57 = vpop.f32.mrb[19].mxu1 }
 0x617   : > { %v20150_v38 = vpop.f32.mrb[30].mxu0 }
 0x618   : > { %v13550_v56 = vpop.f32.mrb[31].mxu0 }
 0x619   : > { %v20152_v9 = vpop.f32.mrb[20].mxu1 }
 0x61a   : > { %v13529_v11 = vpop.f32.mrb[21].mxu1 }
 0x61b   : > { %v20154_v34 = vpop.f32.mrb[32].mxu0 }
 0x61c   : > { %v13564_v14 = vpop.f32.mrb[33].mxu0 }
 0x61d   : > { %v20156_v62 = vpop.f32.mrb[22].mxu1 }
 0x61e   : > { %v13543_v37 = vpop.f32.mrb[23].mxu1 }
 0x61f   : > { %v20158_v1 = vpop.f32.mrb[34].mxu0 }
 0x620   : > { %v13578_v0 = vpop.f32.mrb[35].mxu0 }
 0x621   : > { %v20160_v48 = vpop.f32.mrb[24].mxu1 }
 0x622   : > { %v13557_v23 = vpop.f32.mrb[25].mxu1 }
 0x623   : > { %v20162_v40 = vpop.f32.mrb[36].mxu0 }
 0x624   : > { %v13592_v47 = vpop.f32.mrb[37].mxu0 }
 0x625   : > { %v20164_v54 = vpop.f32.mrb[26].mxu1 }
 0x626   : > { %v13571_v42 = vpop.f32.mrb[27].mxu1 }
 0x627   : > { %v20166_v4 = vpop.f32.mrb[38].mxu0 }
 0x628   : > { %v13606_v30 = vpop.f32.mrb[39].mxu0 }
 0x629   : > { %v20168_v8 = vpop.f32.mrb[28].mxu1 }
 0x62a   : > { %v13585_v61 = vpop.f32.mrb[29].mxu1 }
 0x62b   : > { %v10119_v28 = vpop.f32.mrb[40].mxu0  ;;  %v12480_v61 = vrot.slane %v20114_v50, 1 }
 0x62c   : > { %v12346_v22 = vrot.slane %v10119_v28, 1  ;;  %v12538_v53 = vadd.f32 %v12474_v49, %v10119_v28  ;;  %v13620_v43 = vpop.f32.mrb[41].mxu0 }
 0x62d   : > { %v20171_v32 = vpop.f32.mrb[30].mxu1 }
 0x62e   : > { %v12410_v27 = vsub.f32 %v20106_v19, %v12346_v22  ;;  %v13599_v3 = vpop.f32.mrb[31].mxu1  ;;  %v12700_v10 = vrot.slane %v12538_v53, 7 }
 0x62f   : > { %v10265_v51 = vpop.f32.mrb[42].mxu0  ;;  %v12482_v3 = vrot.slane %v20118_v5, 1 }
 0x630   : > { %v12348_v44 = vrot.slane %v10265_v51, 1  ;;  %v12540_v46 = vadd.f32 %v12476_v55, %v10265_v51  ;;  %v13634_v6 = vpop.f32.mrb[43].mxu0  ;;  %v12601_v57 = vrot.slane %v12410_v27, 7  ;;  %v12479_v27 = vrot.slane %v20120_v20, 1 }
 0x631   : > { %v10046_v59 = vpop.f32.mrb[32].mxu1 }
 0x632   : > { %v12345_v29 = vrot.slane %v10046_v59, 1  ;;  %v12537_v60 = vadd.f32 %v12473_v36, %v10046_v59  ;;  %v12412_v33 = vsub.f32 %v20108_v58, %v12348_v44  ;;  %v13613_v41 = vpop.f32.mrb[33].mxu1 }
 0x633   : > { %v10411_v19 = vpop.f32.mrb[44].mxu0 }
 0x634   : > { %v12409_v56 = vsub.f32 %v20104_v16, %v12345_v29  ;;  %v12701_v11 = vsel %vm12602_vm1, %v12700_v10, %v12537_v60  ;;  %v12350_v14 = vrot.slane %v10411_v19, 1  ;;  %v13648_v37 = vpop.f32.mrb[45].mxu0  ;;  %v12542_v23 = vadd.f32 %v12478_v2, %v10411_v19 }
 0x635   : > { %v10192_v0 = vpop.f32.mrb[34].mxu1  ;;  %v12477_v16 = vrot.slane %v20112_v15, 1  ;;  %v12484_v60 = vrot.slane %v20122_v39, 1 }
 0x636   : > { %v12603_v47 = vsel %vm12602_vm1, %v12601_v57, %v12409_v56  ;;  %v12347_v58 = vrot.slane %v10192_v0, 1  ;;  %v12539_v42 = vadd.f32 %v12475_v31, %v10192_v0  ;;  %v12414_v30 = vsub.f32 %v20116_v24, %v12350_v14  ;;  %v13627_v49 = vpop.f32.mrb[35].mxu1 }
 0x637   : > { %v10557_v28 = vpop.f32.mrb[46].mxu0  ;;  %v12704_v24 = vrot.slane %v12540_v46, 5  ;;  %v12708_v37 = vrot.slane %v12542_v23, 3 }
 0x638   : > { %v12411_v22 = vsub.f32 %v20110_v7, %v12347_v58  ;;  %v12702_v53 = vrot.slane %v12539_v42, 6  ;;  %v12352_v43 = vrot.slane %v10557_v28, 1  ;;  %v13662_v55 = vpop.f32.mrb[47].mxu0  ;;  %v12544_v36 = vadd.f32 %v12480_v61, %v10557_v28 }
 0x639   : > { %v10338_v51 = vpop.f32.mrb[36].mxu1  ;;  %v12607_v7 = vrot.slane %v12412_v33, 5 }
 0x63a   : > { %v12604_v44 = vrot.slane %v12411_v22, 6  ;;  %v12703_v6 = vsel %vm12605_vm2, %v12702_v53, %v12701_v11  ;;  %v12349_v59 = vrot.slane %v10338_v51, 1  ;;  %v12541_v10 = vadd.f32 %v12477_v16, %v10338_v51  ;;  %v13641_v29 = vpop.f32.mrb[37].mxu1 }
 0x63b   : > { %v12705_v41 = vsel %vm12608_vm3, %v12704_v24, %v12703_v6  ;;  %v12416_v31 = vsub.f32 %v20114_v50, %v12352_v43  ;;  %v10703_v2 = vpop.f32.mrb[48].mxu0  ;;  %v12481_v11 = vrot.slane %v20124_v12, 1  ;;  %v12613_v16 = vrot.slane %v12414_v30, 3 }
 0x63c   : > { %v12606_v19 = vsel %vm12605_vm2, %v12604_v44, %v12603_v47  ;;  %v12413_v46 = vsub.f32 %v20112_v15, %v12349_v59  ;;  %v12706_v57 = vrot.slane %v12541_v10, 4  ;;  %v12354_v56 = vrot.slane %v10703_v2, 1  ;;  %v13676_v14 = vpop.f32.mrb[49].mxu0 }
 0x63d   : > { %v12609_v0 = vsel %vm12608_vm3, %v12607_v7, %v12606_v19  ;;  %v10484_v58 = vpop.f32.mrb[38].mxu1  ;;  %v12546_v42 = vadd.f32 %v12482_v3, %v10703_v2  ;;  %v12486_v47 = vrot.slane %v20130_v45, 1  ;;  %v12712_v51 = vrot.slane %v12544_v36, 1 }
 0x63e   : > { %v12610_v33 = vrot.slane %v12413_v46, 4  ;;  %v12707_v49 = vsel %vm12611_vm4, %v12706_v57, %v12705_v41  ;;  %v12351_v61 = vrot.slane %v10484_v58, 1  ;;  %v12543_v50 = vadd.f32 %v12479_v27, %v10484_v58  ;;  %v13655_v28 = vpop.f32.mrb[39].mxu1 }
 0x63f   : > { %v12709_v15 = vsel %vm12614_vm5, %v12708_v37, %v12707_v49  ;;  %v12418_v22 = vsub.f32 %v20118_v5, %v12354_v56  ;;  %v10849_v53 = vpop.f32.mrb[50].mxu0  ;;  %v12714_v44 = vrot.slane %v12546_v42, 7  ;;  %v12483_v41 = vrot.slane %v20132_v25, 1 }
 0x640   : > { %v12612_v23 = vsel %vm12611_vm4, %v12610_v33, %v12609_v0  ;;  %v12415_v43 = vsub.f32 %v20120_v20, %v12351_v61  ;;  %v12710_v55 = vrot.slane %v12543_v50, 2  ;;  %v12356_v3 = vrot.slane %v10849_v53, 1  ;;  %v13690_v24 = vpop.f32.mrb[51].mxu0 }
 0x641   : > { %v10630_v6 = vpop.f32.mrb[40].mxu1  ;;  %v12548_v27 = vadd.f32 %v12484_v60, %v10849_v53  ;;  %v12615_v59 = vsel %vm12614_vm5, %v12613_v16, %v12612_v23  ;;  %v12622_v2 = vrot.slane %v12418_v22, 7  ;;  %v12619_v37 = vrot.slane %v12416_v31, 1 }
 0x642   : > { %v12616_v10 = vrot.slane %v12415_v43, 2  ;;  %v12711_v30 = vsel %vm12617_vm6, %v12710_v55, %v12709_v15  ;;  %v12353_v29 = vrot.slane %v10630_v6, 1  ;;  %v12545_v7 = vadd.f32 %v12481_v11, %v10630_v6  ;;  %v13669_v5 = vpop.f32.mrb[41].mxu1 }
 0x643   : > { %v12420_v20 = vsub.f32 %v20122_v39, %v12356_v3  ;;  %v10995_v19 = vpop.f32.mrb[52].mxu0  ;;  %v20207_v46 = vsel %vm12620_vm7, %v12712_v51, %v12711_v30  ;;  %v12488_v61 = vrot.slane %v20134_v13, 1  ;;  %v12485_v28 = vrot.slane %v20136_v17, 1 }
 0x644   : > { %v12417_v36 = vsub.f32 %v20124_v12, %v12353_v29  ;;  %v12715_v60 = vsel %vm12602_vm1, %v12714_v44, %v12545_v7  ;;  %v12358_v57 = vrot.slane %v10995_v19, 1  ;;  %v12550_v56 = vadd.f32 %v12486_v47, %v10995_v19  ;;  %v13704_v14 = vpop.f32.mrb[53].mxu0 }
 0x645   : > { %v10776_v0 = vpop.f32.mrb[42].mxu1  ;;  %v12618_v11 = vsel %vm12617_vm6, %v12616_v10, %v12615_v59  ;;  %v12487_v22 = vrot.slane %v20140_v35, 1  ;;  %v12490_v53 = vrot.slane %v20138_v21, 1  ;;  %v12718_v23 = vrot.slane %v12548_v27, 5 }
 0x646   : > { %v12623_v58 = vsel %vm12602_vm1, %v12622_v2, %v12417_v36  ;;  %v12355_v42 = vrot.slane %v10776_v0, 1  ;;  %v12547_v33 = vadd.f32 %v12483_v41, %v10776_v0  ;;  %v12422_v39 = vsub.f32 %v20130_v45, %v12358_v57  ;;  %v13683_v49 = vpop.f32.mrb[43].mxu1 }
 0x647   : > { %v11141_v50 = vpop.f32.mrb[54].mxu0  ;;  %v20216_v12 = vsel %vm12620_vm7, %v12619_v37, %v12618_v11  ;;  %v12492_v6 = vrot.slane %v20142_v63, 1  ;;  %v12626_v59 = vrot.slane %v12420_v20, 5  ;;  %v12489_v2 = vrot.slane %v20144_v26, 1 }
 0x648   : > { %v12419_v31 = vsub.f32 %v20132_v25, %v12355_v42  ;;  %v12716_v47 = vrot.slane %v12547_v33, 6  ;;  %v12360_v16 = vrot.slane %v11141_v50, 1  ;;  %v13718_v15 = vpop.f32.mrb[55].mxu0  ;;  %v12552_v43 = vadd.f32 %v12488_v61, %v11141_v50 }
 0x649   : > { %v10922_v45 = vpop.f32.mrb[44].mxu1  ;;  %v12722_v19 = vrot.slane %v12550_v56, 3  ;;  %v12494_v11 = vrot.slane %v20146_v18, 1 }
 0x64a   : > { %v12624_v55 = vrot.slane %v12419_v31, 6  ;;  %v12717_v3 = vsel %vm12605_vm2, %v12716_v47, %v12715_v60  ;;  %v12357_v24 = vrot.slane %v10922_v45, 1  ;;  %v12549_v51 = vadd.f32 %v12485_v28, %v10922_v45  ;;  %v13697_v44 = vpop.f32.mrb[45].mxu1 }
 0x64b   : > { %v12719_v25 = vsel %vm12608_vm3, %v12718_v23, %v12717_v3  ;;  %v12424_v10 = vsub.f32 %v20134_v13, %v12360_v16  ;;  %v11287_v30 = vpop.f32.mrb[56].mxu0  ;;  %v12726_v31 = vrot.slane %v12552_v43, 1 }
 0x64c   : > { %v12625_v29 = vsel %vm12605_vm2, %v12624_v55, %v12623_v58  ;;  %v12421_v27 = vsub.f32 %v20136_v17, %v12357_v24  ;;  %v12720_v7 = vrot.slane %v12549_v51, 4  ;;  %v12362_v5 = vrot.slane %v11287_v30, 1  ;;  %v13732_v41 = vpop.f32.mrb[57].mxu0 }
 0x64d   : > { %v12627_v36 = vsel %vm12608_vm3, %v12626_v59, %v12625_v29  ;;  %v11068_v60 = vpop.f32.mrb[46].mxu1  ;;  %v12554_v57 = vadd.f32 %v12490_v53, %v11287_v30  ;;  %v12630_v58 = vrot.slane %v12422_v39, 3  ;;  %v12491_v55 = vrot.slane %v20148_v52, 1 }
 0x64e   : > { %v12628_v20 = vrot.slane %v12421_v27, 4  ;;  %v12721_v14 = vsel %vm12611_vm4, %v12720_v7, %v12719_v25  ;;  %v12359_v37 = vrot.slane %v11068_v60, 1  ;;  %v12551_v13 = vadd.f32 %v12487_v22, %v11068_v60  ;;  %v13711_v0 = vpop.f32.mrb[47].mxu1 }
 0x64f   : > { %v12723_v17 = vsel %vm12614_vm5, %v12722_v19, %v12721_v14  ;;  %v12426_v42 = vsub.f32 %v20138_v21, %v12362_v5  ;;  %v11433_v33 = vpop.f32.mrb[58].mxu0  ;;  %v12728_v47 = vrot.slane %v12554_v57, 7  ;;  %v12634_v30 = vrot.slane %v12424_v10, 1 }
 0x650   : > { %v12629_v56 = vsel %vm12611_vm4, %v12628_v20, %v12627_v36  ;;  %v12423_v49 = vsub.f32 %v20140_v35, %v12359_v37  ;;  %v12724_v61 = vrot.slane %v12551_v13, 2  ;;  %v12364_v50 = vrot.slane %v11433_v33, 1  ;;  %v13746_v28 = vpop.f32.mrb[59].mxu0 }
 0x651   : > { %v11214_v16 = vpop.f32.mrb[48].mxu1  ;;  %v12556_v15 = vadd.f32 %v12492_v6, %v11433_v33  ;;  %v12631_v22 = vsel %vm12614_vm5, %v12630_v58, %v12629_v56  ;;  %v12636_v3 = vrot.slane %v12426_v42, 7  ;;  %v12496_v36 = vrot.slane %v20150_v38, 1 }
 0x652   : > { %v12632_v53 = vrot.slane %v12423_v49, 2  ;;  %v12725_v39 = vsel %vm12617_vm6, %v12724_v61, %v12723_v17  ;;  %v12361_v23 = vrot.slane %v11214_v16, 1  ;;  %v12553_v45 = vadd.f32 %v12489_v2, %v11214_v16  ;;  %v13725_v21 = vpop.f32.mrb[49].mxu1 }
 0x653   : > { %v12428_v35 = vsub.f32 %v20142_v63, %v12364_v50  ;;  %v11579_v24 = vpop.f32.mrb[60].mxu0  ;;  %v12727_v51 = vsel %vm12620_vm7, %v12726_v31, %v12725_v39  ;;  %v12498_v57 = vrot.slane %v20154_v34, 1  ;;  %v12495_v13 = vrot.slane %v20156_v62, 1 }
 0x654   : > { %v12425_v43 = vsub.f32 %v20144_v26, %v12361_v23  ;;  %v12729_v44 = vsel %vm12602_vm1, %v12728_v47, %v12553_v45  ;;  %v12366_v6 = vrot.slane %v11579_v24, 1  ;;  %v12558_v59 = vadd.f32 %v12494_v11, %v11579_v24  ;;  %v13760_v25 = vpop.f32.mrb[61].mxu0 }
 0x655   : > { %v11360_v29 = vpop.f32.mrb[50].mxu1  ;;  %v12633_v27 = vsel %vm12617_vm6, %v12632_v53, %v12631_v22  ;;  %v20245_v7 = vpack.c.bf16 %v12727_v51, %v20207_v46  ;;  %v12493_v26 = vrot.slane %v20152_v9, 1  ;;  %v12732_v0 = vrot.slane %v12556_v15, 5 }
 0x656   : > { %v12637_v5 = vsel %vm12602_vm1, %v12636_v3, %v12425_v43  ;;  %v12363_v63 = vrot.slane %v11360_v29, 1  ;;  %v12555_v41 = vadd.f32 %v12491_v55, %v11360_v29  ;;  %v12430_v2 = vsub.f32 %v20146_v18, %v12366_v6  ;;  %v13739_v19 = vpop.f32.mrb[51].mxu1 }
 0x657   : > { %v12635_v60 = vsel %vm12620_vm7, %v12634_v30, %v12633_v27  ;;  %v11725_v10 = vpop.f32.mrb[62].mxu0  ;;  %v12500_v61 = vrot.slane %v20158_v1, 1  ;;  %v12497_v53 = vrot.slane %v20160_v48, 1  ;;  %v12736_v39 = vrot.slane %v12558_v59, 3 }
 0x658   : > { %v12427_v20 = vsub.f32 %v20148_v52, %v12363_v63  ;;  %v12730_v46 = vrot.slane %v12555_v41, 6  ;;  %v14131_v14 = vpack.c.bf16 %v12635_v60, %v20216_v12  ;;  %v13774_v37 = vpop.f32.mrb[63].mxu0  ;;  %v12368_v11 = vrot.slane %v11725_v10, 1 }
 0x659   : > { %v11506_v18 = vpop.f32.mrb[52].mxu1  ;;  %v12560_v58 = vadd.f32 %v12496_v36, %v11725_v10  ;;  %v12640_v52 = vrot.slane %v12428_v35, 5  ;;  %v12502_v51 = vrot.slane %v20162_v40, 1  ;;  %v12644_v43 = vrot.slane %v12430_v2, 3 }
 0x65a   : > { %v12638_v17 = vrot.slane %v12427_v20, 6  ;;  %v12731_v42 = vsel %vm12605_vm2, %v12730_v46, %v12729_v44  ;;  %14132 = vmatprep.subr.bf16.mxu1 %v14131_v14  ;;  %v12365_v33 = vrot.slane %v11506_v18, 1  ;;  %v12557_v56 = vadd.f32 %v12493_v26, %v11506_v18  ;;  %v13753_v49 = vpop.f32.mrb[53].mxu1 }
 0x65b   : > { %v12733_v50 = vsel %vm12608_vm3, %v12732_v0, %v12731_v42  ;;  %v12432_v12 = vsub.f32 %v20150_v38, %v12368_v11  ;;  %14134 = vmatpush3.bf16.msra.mxu1 %v14131_v14  ;;  %v11871_v28 = vpop.f32.mrb[64].mxu0 }
 0x65c   : > { %v12639_v31 = vsel %vm12605_vm2, %v12638_v17, %v12637_v5  ;;  %v12429_v47 = vsub.f32 %v20152_v9, %v12365_v33  ;;  %v12734_v16 = vrot.slane %v12557_v56, 4  ;;  %v12370_v15 = vrot.slane %v11871_v28, 1  ;;  %v13788_v22 = vpop.f32.mrb[65].mxu0 }
 0x65d   : > { %v12641_v23 = vsel %vm12608_vm3, %v12640_v52, %v12639_v31  ;;  %v11652_v45 = vpop.f32.mrb[54].mxu1  ;;  %v12562_v21 = vadd.f32 %v12498_v57, %v11871_v28  ;;  %v12740_v5 = vrot.slane %v12560_v58, 1  ;;  %v12499_v57 = vrot.slane %v20164_v54, 1 }
 0x65e   : > { %v12642_v55 = vrot.slane %v12429_v47, 4  ;;  %v12735_v3 = vsel %vm12611_vm4, %v12734_v16, %v12733_v50  ;;  %v12367_v38 = vrot.slane %v11652_v45, 1  ;;  %v12559_v35 = vadd.f32 %v12495_v13, %v11652_v45  ;;  %v13767_v24 = vpop.f32.mrb[55].mxu1 }
 0x65f   : > { %v12737_v9 = vsel %vm12614_vm5, %v12736_v39, %v12735_v3  ;;  %v12434_v44 = vsub.f32 %v20154_v34, %v12370_v15  ;;  %v12017_v6 = vpop.f32.mrb[66].mxu0  ;;  %v12742_v63 = vrot.slane %v12562_v21, 7  ;;  %v12648_v58 = vrot.slane %v12432_v12, 1 }
 0x660   : > { %v12643_v59 = vsel %vm12611_vm4, %v12642_v55, %v12641_v23  ;;  %v12431_v25 = vsub.f32 %v20156_v62, %v12367_v38  ;;  %v12738_v30 = vrot.slane %v12559_v35, 2  ;;  %v12372_v29 = vrot.slane %v12017_v6, 1  ;;  %v13802_v27 = vpop.f32.mrb[67].mxu0 }
 0x661   : > { %v11798_v41 = vpop.f32.mrb[56].mxu1  ;;  %v12564_v19 = vadd.f32 %v12500_v61, %v12017_v6  ;;  %v12645_v26 = vsel %vm12614_vm5, %v12644_v43, %v12643_v59  ;;  %v12650_v20 = vrot.slane %v12434_v44, 7  ;;  %v12504_v52 = vrot.slane %v20166_v4, 1 }
 0x662   : > { %v12646_v36 = vrot.slane %v12431_v25, 2  ;;  %v12739_v2 = vsel %vm12617_vm6, %v12738_v30, %v12737_v9  ;;  %v12369_v60 = vrot.slane %v11798_v41, 1  ;;  %v12561_v10 = vadd.f32 %v12497_v53, %v11798_v41  ;;  %v13781_v34 = vpop.f32.mrb[57].mxu1 }
 0x663   : > { %v12436_v62 = vsub.f32 %v20158_v1, %v12372_v29  ;;  %v12163_v46 = vpop.f32.mrb[68].mxu0  ;;  %v12741_v14 = vsel %vm12620_vm7, %v12740_v5, %v12739_v2  ;;  %v12501_v28 = vrot.slane %v20168_v8, 1  ;;  %v12746_v15 = vrot.slane %v12564_v19, 5 }
 0x664   : > { %v12433_v37 = vsub.f32 %v20160_v48, %v12369_v60  ;;  %v12743_v13 = vsel %vm12602_vm1, %v12742_v63, %v12561_v10  ;;  %v12374_v0 = vrot.slane %v12163_v46, 1  ;;  %v12566_v18 = vadd.f32 %v12502_v51, %v12163_v46  ;;  %v13816_v11 = vpop.f32.mrb[69].mxu0  ;;  %v12763_v46 = vld [vmem:[%s20360_s6 + $0x18] sm:$0xff] }
 0x665   : > { %v11944_v17 = vpop.f32.mrb[58].mxu1  ;;  %v12647_v42 = vsel %vm12617_vm6, %v12646_v36, %v12645_v26  ;;  %v12654_v55 = vrot.slane %v12436_v62, 5  ;;  %v12503_v35 = vrot.slane %v20171_v32, 1  ;;  %v12762_v62 = vld [vmem:[%s20360_s6 + $0x10] sm:$0xff] }
 0x666   : > { %v12651_v33 = vsel %vm12602_vm1, %v12650_v20, %v12433_v37  ;;  %v12371_v56 = vrot.slane %v11944_v17, 1  ;;  %v12563_v49 = vadd.f32 %v12499_v57, %v11944_v17  ;;  %v12438_v1 = vsub.f32 %v20162_v40, %v12374_v0  ;;  %v13795_v61 = vpop.f32.mrb[59].mxu1  ;;  %v12766_v37 = vld [vmem:[%s20360_s6 + $0x30] sm:$0xff]  ;;  %v21010_v17 = vld [vmem:[#allocation8_spill] sm:$0xff] }
 0x667   : > { %v12309_v50 = vpop.f32.mrb[70].mxu0  ;;  %v12649_v48 = vsel %vm12620_vm7, %v12648_v58, %v12647_v42  ;;  %v12750_v43 = vrot.slane %v12566_v18, 3  ;;  %v21009_v18 = vld [vmem:[#allocation9_spill] sm:$0xff]  ;;  %v21012_v61 = vld [vmem:[#allocation10_spill] sm:$0xff] }
 0x668   : > { %v12435_v31 = vsub.f32 %v20164_v54, %v12371_v56  ;;  %v12744_v12 = vrot.slane %v12563_v49, 6  ;;  %v12376_v47 = vrot.slane %v12309_v50, 1  ;;  %v13830_v16 = vpop.f32.mrb[71].mxu0  ;;  %v12568_v53 = vadd.f32 %v12504_v52, %v12309_v50  ;;  %v21011_v56 = vld [vmem:[#allocation14_spill] sm:$0xff] }
 0x669   : > { %v12090_v22 = vpop.f32.mrb[60].mxu1  ;;  %v12658_v27 = vrot.slane %v12438_v1, 3 }
 0x66a   : > { %v12652_v39 = vrot.slane %v12435_v31, 6  ;;  %v12745_v23 = vsel %vm12605_vm2, %v12744_v12, %v12743_v13  ;;  %v12373_v40 = vrot.slane %v12090_v22, 1  ;;  %v12565_v45 = vadd.f32 %v12501_v28, %v12090_v22  ;;  %v13809_v21 = vpop.f32.mrb[61].mxu1  ;;  %v12767_v13 = vld [vmem:[%s20360_s6 + $0x38] sm:$0xff]  ;;  %v21014_v12 = vld [vmem:[#allocation15_spill] sm:$0xff] }
 0x66b   : > { %v12747_v3 = vsel %vm12608_vm3, %v12746_v15, %v12745_v23  ;;  %v12440_v38 = vsub.f32 %v20166_v4, %v12376_v47  ;;  %v21015_v15 = vld [vmem:[#allocation25_spill] sm:$0xff] }
 0x66c   : > { %v12653_v54 = vsel %vm12605_vm2, %v12652_v39, %v12651_v33  ;;  %v12437_v24 = vsub.f32 %v20168_v8, %v12373_v40  ;;  %v12748_v51 = vrot.slane %v12565_v45, 4  ;;  %v12754_v8 = vrot.slane %v12568_v53, 1  ;;  %v21016_v39 = vld [vmem:[#allocation21_spill] sm:$0xff] }
 0x66d   : > { %v12655_v9 = vsel %vm12608_vm3, %v12654_v55, %v12653_v54  ;;  %v12236_v44 = vpop.f32.mrb[62].mxu1  ;;  %v12662_v2 = vrot.slane %v12440_v38, 1 }
 0x66e   : > { %v12656_v6 = vrot.slane %v12437_v24, 4  ;;  %v12749_v59 = vsel %vm12611_vm4, %v12748_v51, %v12747_v3  ;;  %v12375_v25 = vrot.slane %v12236_v44, 1  ;;  %v12567_v30 = vadd.f32 %v12503_v35, %v12236_v44  ;;  %v13823_v29 = vpop.f32.mrb[63].mxu1 }
 0x66f   : > { %v12751_v4 = vsel %vm12614_vm5, %v12750_v43, %v12749_v59 }
 0x670   : > { %v12657_v5 = vsel %vm12611_vm4, %v12656_v6, %v12655_v9  ;;  %v12439_v63 = vsub.f32 %v20171_v32, %v12375_v25  ;;  %v12752_v41 = vrot.slane %v12567_v30, 2  ;;  %v12761_v32 = vld [vmem:[%s20360_s6 + $0x8] sm:$0xff] }
 0x671   : > { %v12659_v19 = vsel %vm12614_vm5, %v12658_v27, %v12657_v5 }
 0x672   : > { %v12660_v26 = vrot.slane %v12439_v63, 2  ;;  %v12753_v36 = vsel %vm12617_vm6, %v12752_v41, %v12751_v4 }
 0x673   : > { %v12755_v60 = vsel %vm12620_vm7, %v12754_v8, %v12753_v36 }
 0x674   : > { %v12661_v10 = vsel %vm12617_vm6, %v12660_v26, %v12659_v19  ;;  %v14143_v34 = vpack.c.bf16 %v12755_v60, %v12741_v14  ;;  %v12765_v14 = vld [vmem:[%s20360_s6 + $0x28] sm:$0xff] }
 0x675   : > { %v12663_v57 = vsel %vm12620_vm7, %v12662_v2, %v12661_v10 }
 0x676   : > { %v14135_v20 = vpack.c.bf16 %v12663_v57, %v12649_v48  ;;  %v21013_v48 = vld [vmem:[#allocation16_spill] sm:$0xff] }
 0x678   : > { %14136 = vmatprep.subr.bf16.mxu1 %v14135_v20 }
 0x679   : > { %14138 = vmatpush3.bf16.msra.mxu1 %v14135_v20 }
 0x67a   : > { %14140 = vmatprep.subr.bf16.mxu1 %v20245_v7 }
 0x67d   : > { %14142 = vmatpush3.bf16.msra.mxu1 %v20245_v7  ;;  %v12764_v7 = vld [vmem:[%s20360_s6 + $0x20] sm:$0xff] }
 0x67e   : > { %14144 = vmatprep.subr.bf16.mxu1 %v14143_v34 }
 0x681   : > { %14146 = vmatpush3.bf16.msra.mxu1 %v14143_v34 }
 0x684   : > { %13848 = vmatmul.mubr.msk.f32.vlgmr.msra.gmra.mrb[64].mxu1 %vm6661_vm10, %v12761_v32 }
 0x685   : > { %13850 = vmatprep.mubr.msk.f32.mxu1 %vm6661_vm10, %v12762_v62 }
 0x688   : > { %13851 = vmatmul.mubr.msk.f32.gmra.mrb[66].mxu1 %vm6661_vm10, %v12763_v46 }
 0x689   : > { %13853 = vmatprep.mubr.msk.f32.mxu1 %vm6661_vm10, %v12764_v7 }
 0x68c   : > { %13854 = vmatmul.mubr.msk.f32.gmra.mrb[68].mxu1 %vm6661_vm10, %v12765_v14 }
 0x68d   : > { %13856 = vmatprep.mubr.msk.f32.mxu1 %vm6661_vm10, %v12766_v37 }
 0x690   : > { %13857 = vmatmul.mubr.msk.f32.gmra.mrb[70].mxu1 %vm6661_vm10, %v12767_v13 }
 0x757   : > { %v13849_v0 = vpop.f32.mrb[64].mxu1 }
 0x758   : > { %v12898_v11 = vadd.f32 %v13849_v0, %v21009_v18  ;;  %v12858_v58 = vpop.f32.mrb[65].mxu1 }
 0x759   : > { %v12897_v42 = vadd.f32 %v12858_v58, %v21010_v17 }
 0x75a   : > { %12906 = vst.msk [vmem:[%s332_s17 + $0x8] sm:$0xff] %vm341_vm0, %v12898_v11 }
 0x75b   : > { %12905 = vst.msk [vmem:[%s332_s17] sm:$0xff] %vm341_vm0, %v12897_v42  ;;  %v13852_v33 = vpop.f32.mrb[66].mxu1 }
 0x75c   : > { %v12900_v49 = vadd.f32 %v13852_v33, %v21011_v56  ;;  %v12868_v1 = vpop.f32.mrb[67].mxu1 }
 0x75d   : > { %v12899_v52 = vadd.f32 %v12868_v1, %v21012_v61 }
 0x75e   : > { %12908 = vst.msk [vmem:[%s332_s17 + $0x18] sm:$0xff] %vm341_vm0, %v12900_v49 }
 0x75f   : > { %12907 = vst.msk [vmem:[%s332_s17 + $0x10] sm:$0xff] %vm341_vm0, %v12899_v52  ;;  %v13855_v50 = vpop.f32.mrb[68].mxu1 }
 0x760   : > { %v12902_v28 = vadd.f32 %v13855_v50, %v21013_v48  ;;  %v12878_v31 = vpop.f32.mrb[69].mxu1 }
 0x761   : > { %v12901_v47 = vadd.f32 %v12878_v31, %v21014_v12 }
 0x762   : > { %12910 = vst.msk [vmem:[%s332_s17 + $0x28] sm:$0xff] %vm341_vm0, %v12902_v28 }
 0x763   : > { %12909 = vst.msk [vmem:[%s332_s17 + $0x20] sm:$0xff] %vm341_vm0, %v12901_v47  ;;  %v13858_v16 = vpop.f32.mrb[70].mxu1 }
 0x764   : > { %v12904_v22 = vadd.f32 %v13858_v16, %v21015_v15  ;;  %v12888_v53 = vpop.f32.mrb[71].mxu1 }
 0x765   : > { %v12903_v23 = vadd.f32 %v12888_v53, %v21016_v39 }
 0x766   : > { %12912 = vst.msk [vmem:[%s332_s17 + $0x38] sm:$0xff] %vm341_vm0, %v12904_v22 }
 0x767   : > { %12911 = vst.msk [vmem:[%s332_s17 + $0x30] sm:$0xff] %vm341_vm0, %v12903_v23 }
 0x768 PF: > { %s19_s30 = sadd.s32 1, %s14308_s30  }
 0x769   : > { %p16_p4 = scmp.ge.s32.totalorder %s19_s30, 4  }
 0x76b   :  { %18 = sbr.rel (!%p16_p4) target bundleno = 1 (0x1), region = 88 }

</bundles_post_ra>
